<compile_context>
chip_gen: v7x
topology: tpu7x:2x2x1
jax: 0.10.0
libtpu: 0.0.40
codegen_flags: <defaults>
</compile_context>

<pallas_src>
import jax
import jax.numpy as jnp
from jax.experimental import pallas as pl
from jax.experimental.pallas import tpu as pltpu

latent_dim = 128
beat_resolution = 4
measure_resolution = 4 * beat_resolution   # 16
n_measures = 4
n_pitches = 72
n_tracks = 5
BN_EPS = 1e-5


# ----------------------------------------------------------------------------
# Fused generator kernel: the whole forward pass in one pallas_call.
# ----------------------------------------------------------------------------
def _generator_kernel(*refs):
    (z_ref, place0_ref,
     w0_ref, b0_ref, g0_ref, be0_ref,
     w1_ref, b1_ref, g1_ref, be1_ref,
     w2_ref, b2_ref, g2_ref, be2_ref,
     w3_ref, b3_ref, g3_ref, be3_ref,
     w4_ref, b4_ref, g4_ref, be4_ref,
     w5_ref, b5_ref, g5_ref, be5_ref, pbn_ref,
     out_ref,
     s1_ref, s2_ref, s3_ref, s4_ref) = refs

    def bn_relu(y, g_ref, be_ref):
        # Training-mode BatchNorm: per-column batch stats (biased var) + ReLU.
        mean = jnp.mean(y, axis=0, keepdims=True)
        var = jnp.mean(jnp.square(y - mean), axis=0, keepdims=True)
        yn = (y - mean) * jax.lax.rsqrt(var + BN_EPS) * g_ref[...] + be_ref[...]
        return jnp.maximum(yn, 0.0)

    def stride_eq_block(x, w_ref, b_ref, g_ref, be_ref, s_ref):
        # ConvTranspose3d with stride == kernel: K independent matmuls; kernel
        # offset k's output occupies contiguous rows [k*R, (k+1)*R) of scratch.
        K = w_ref.shape[0]
        R = x.shape[0]
        for k in range(K):
            s_ref[pl.ds(k * R, R), :] = jnp.dot(
                x, w_ref[k], preferred_element_type=jnp.float32)
        return bn_relu(s_ref[...] + b_ref[...], g_ref, be_ref)

    # ---- layer 0: (B,128) -> (4B,256); rows become (d, b). -------------------
    # Per-offset outputs are only B rows (not 8-sublane aligned), so stack them
    # with constant 0/1 placement matmuls instead of unaligned stores.
    z = z_ref[...]
    acc0 = jnp.zeros((place0_ref.shape[1], w0_ref.shape[2]), jnp.float32)
    for i in range(w0_ref.shape[0]):
        y_i = jnp.dot(z, w0_ref[i], preferred_element_type=jnp.float32)
        acc0 = acc0 + jnp.dot(place0_ref[i], y_i,
                              preferred_element_type=jnp.float32)
    x = bn_relu(acc0 + b0_ref[...], g0_ref, be0_ref)                  # (4B, 256)

    # ---- layer 1: rows (h,d,b);  layer 2: rows (w,h,d,b). --------------------
    x = stride_eq_block(x, w1_ref, b1_ref, g1_ref, be1_ref, s1_ref)   # (16B, 128)
    x = stride_eq_block(x, w2_ref, b2_ref, g2_ref, be2_ref, s2_ref)   # (64B, 64)

    # ---- layer 3: ConvTranspose3d(64,32,(1,1,3),stride 1): overlap-add. ------
    R = x.shape[0]                      # 64B rows, W-major blocks of 16B rows
    r_blk = R // 4
    s3_ref[...] = jnp.zeros_like(s3_ref)
    for k in range(w3_ref.shape[0]):
        upd = jnp.dot(x, w3_ref[k], preferred_element_type=jnp.float32)
        cur = s3_ref[pl.ds(k * r_blk, R), :]
        s3_ref[pl.ds(k * r_blk, R), :] = cur + upd
    x = bn_relu(s3_ref[...] + b3_ref[...], g3_ref, be3_ref)           # (96B, 32)

    # ---- layer 4: all 5 tracks fused; cols = (track, channel). ---------------
    x = stride_eq_block(x, w4_ref, b4_ref, g4_ref, be4_ref, s4_ref)   # (384B, 80)

    # ---- layer 5: block-diagonal over tracks; cols = (track, pitch offset). --
    y = jnp.dot(x, w5_ref[...], preferred_element_type=jnp.float32) + b5_ref[...]
    colmean = jnp.mean(y, axis=0, keepdims=True)                      # (1, 60)
    mean = jnp.dot(colmean, pbn_ref[...],
                   preferred_element_type=jnp.float32)                # per-track mean
    d = y - mean
    colvar = jnp.mean(d * d, axis=0, keepdims=True)
    var = jnp.dot(colvar, pbn_ref[...],
                  preferred_element_type=jnp.float32)                 # per-track var
    y = d * jax.lax.rsqrt(var + BN_EPS) * g5_ref[...] + be5_ref[...]
    out_ref[...] = jnp.maximum(y, 0.0)


# ----------------------------------------------------------------------------
# Wrapper: one pallas_call + one final XLA transpose to NCDHW-view order.
# ----------------------------------------------------------------------------
def generator_forward(packed, z):
    B = z.shape[0]
    assert B % 2 == 0, "row blocks must stay 8-sublane aligned after layer 0"
    r_out = 4 * 6 * 4 * 4 * B          # rows = (j, w, h_in, d, b)
    c_out = n_tracks * 12              # cols = (track, pitch offset)

    inputs = [z.astype(jnp.float32)] + list(packed)

    def full_spec(a):
        nd = a.ndim
        return pl.BlockSpec(a.shape, lambda i, _nd=nd: (0,) * _nd)

    out = pl.pallas_call(
        _generator_kernel,
        out_shape=jax.ShapeDtypeStruct((r_out, c_out), jnp.float32),
        grid=(1,),
        in_specs=[full_spec(a) for a in inputs],
        out_specs=pl.BlockSpec((r_out, c_out), lambda i: (0, 0)),
        scratch_shapes=[
            pltpu.VMEM((16 * B, 128), jnp.float32),   # layer-1 slab (h,d,b)
            pltpu.VMEM((64 * B, 64), jnp.float32),    # layer-2 slab (w,h,d,b)
            pltpu.VMEM((96 * B, 32), jnp.float32),    # layer-3 overlap-add slab
            pltpu.VMEM((384 * B, 80), jnp.float32),   # layer-4 slab (j,w,h,d,b)
        ],
        compiler_params=pltpu.CompilerParams(
            dimension_semantics=("arbitrary",)),
    )(*inputs)

    # rows = (j, w, h_in, d, b), cols = (t, k)
    # -> out[b, t, time = d*16 + h_in*4 + j, pitch = w*12 + k]
    y = out.reshape(4, 6, 4, 4, B, n_tracks, 12)
    y = y.transpose(4, 5, 3, 2, 0, 1, 6)
    return y.reshape(B, n_tracks, n_measures * measure_resolution, n_pitches)


# ----------------------------------------------------------------------------
# Parameters: PyTorch ConvTranspose3d layout (Cin, Cout, kd, kh, kw) + one-time
# repacking into kernel-ready constants.
# ----------------------------------------------------------------------------
def init_params(key):
    ks = list(jax.random.split(key, 40))

    def nrm(shape, scale=0.05):
        return (scale * jax.random.normal(ks.pop(0), shape)).astype(jnp.float32)

    p = {}
    p["w0"], p["b0"] = nrm((latent_dim, 256, 4, 1, 1)), nrm((256,), 0.01)
    p["g0"], p["be0"] = jnp.ones((256,), jnp.float32), jnp.zeros((256,), jnp.float32)
    p["w1"], p["b1"] = nrm((256, 128, 1, 4, 1)), nrm((128,), 0.01)
    p["g1"], p["be1"] = jnp.ones((128,), jnp.float32), jnp.zeros((128,), jnp.float32)
    p["w2"], p["b2"] = nrm((128, 64, 1, 1, 4)), nrm((64,), 0.01)
    p["g2"], p["be2"] = jnp.ones((64,), jnp.float32), jnp.zeros((64,), jnp.float32)
    p["w3"], p["b3"] = nrm((64, 32, 1, 1, 3)), nrm((32,), 0.01)
    p["g3"], p["be3"] = jnp.ones((32,), jnp.float32), jnp.zeros((32,), jnp.float32)
    p["w4"] = [nrm((32, 16, 1, 4, 1)) for _ in range(n_tracks)]
    p["b4"] = [nrm((16,), 0.01) for _ in range(n_tracks)]
    p["g4"] = [jnp.ones((16,), jnp.float32) for _ in range(n_tracks)]
    p["be4"] = [jnp.zeros((16,), jnp.float32) for _ in range(n_tracks)]
    p["w5"] = [nrm((16, 1, 1, 1, 12)) for _ in range(n_tracks)]
    p["b5"] = [nrm((1,), 0.01) for _ in range(n_tracks)]
    p["g5"] = [jnp.ones((1,), jnp.float32) for _ in range(n_tracks)]
    p["be5"] = [jnp.zeros((1,), jnp.float32) for _ in range(n_tracks)]
    return p


def pack_params(p, batch):
    """One-time repack of PyTorch-layout params into kernel-ready constants."""
    f32 = jnp.float32

    def row(v):
        return jnp.asarray(v, f32).reshape(1, -1)

    # layer-0 placement matrices: place0[i] drops a (B, :) block at rows
    # [i*B, (i+1)*B) of a (4B, :) slab.
    place0 = jnp.zeros((4, 4 * batch, batch), f32)
    for i in range(4):
        place0 = place0.at[i, i * batch:(i + 1) * batch, :].set(
            jnp.eye(batch, dtype=f32))

    # stride == kernel weights, repacked as (K, Cin, Cout)
    w0p = jnp.transpose(p["w0"][:, :, :, 0, 0], (2, 0, 1)).astype(f32)  # (4,128,256)
    w1p = jnp.transpose(p["w1"][:, :, 0, :, 0], (2, 0, 1)).astype(f32)  # (4,256,128)
    w2p = jnp.transpose(p["w2"][:, :, 0, 0, :], (2, 0, 1)).astype(f32)  # (4,128,64)
    w3p = jnp.transpose(p["w3"][:, :, 0, 0, :], (2, 0, 1)).astype(f32)  # (3,64,32)

    # layer 4: all tracks fused; col = track*16 + channel
    w4_stack = jnp.stack([p["w4"][t][:, :, 0, :, 0] for t in range(n_tracks)],
                         axis=2)                                        # (ci,co,t,j)
    w4p = jnp.transpose(w4_stack, (3, 0, 2, 1)).reshape(
        4, 32, n_tracks * 16).astype(f32)                               # (j,ci,t*16+co)
    b4p = row(jnp.concatenate(p["b4"]))
    g4p = row(jnp.concatenate(p["g4"]))
    be4p = row(jnp.concatenate(p["be4"]))

    # layer 5: block-diagonal (5*16, 5*12); col = track*12 + pitch offset
    w5bd = jnp.zeros((n_tracks * 16, n_tracks * 12), f32)
    for t in range(n_tracks):
        w5bd = w5bd.at[t * 16:(t + 1) * 16, t * 12:(t + 1) * 12].set(
            p["w5"][t][:, 0, 0, 0, :])
    b5p = row(jnp.repeat(jnp.stack([p["b5"][t][0] for t in range(n_tracks)]), 12))
    g5p = row(jnp.repeat(jnp.stack([p["g5"][t][0] for t in range(n_tracks)]), 12))
    be5p = row(jnp.repeat(jnp.stack([p["be5"][t][0] for t in range(n_tracks)]), 12))
    # per-track averaging projection for the Cout=1 BatchNorm of transconv5
    pbn = jnp.kron(jnp.eye(n_tracks, dtype=f32), jnp.ones((12, 12), f32) / 12.0)

    return [place0,
            w0p, row(p["b0"]), row(p["g0"]), row(p["be0"]),
            w1p, row(p["b1"]), row(p["g1"]), row(p["be1"]),
            w2p, row(p["b2"]), row(p["g2"]), row(p["be2"]),
            w3p, row(p["b3"]), row(p["g3"]), row(p["be3"]),
            w4p, b4p, g4p, be4p,
            w5bd, b5p, g5p, be5p, pbn]


# ----------------------------------------------------------------------------
# Pure-JAX (XLA) reference that mirrors the PyTorch module op-for-op; used only
# to validate the fused kernel's bookkeeping in __main__.
# ----------------------------------------------------------------------------
def _ref_bn_relu(y, g, be):
    mean = jnp.mean(y, axis=(0, 1, 2, 3), keepdims=True)
    var = jnp.mean(jnp.square(y - mean), axis=(0, 1, 2, 3), keepdims=True)
    return jnp.maximum((y - mean) * jax.lax.rsqrt(var + BN_EPS) * g + be, 0.0)


def _ref_block_stride_eq(x, w, b, g, be):
    B, D, H, W, _ = x.shape
    _, Cout, kd, kh, kw = w.shape
    y = jnp.einsum("bdhwc,coijk->bdihjwko", x, w)
    y = y.reshape(B, D * kd, H * kh, W * kw, Cout) + b
    return _ref_bn_relu(y, g, be)


def _ref_block_overlap_w(x, w, b, g, be):
    B, D, H, W, _ = x.shape
    _, Cout, _, _, kw = w.shape
    y = jnp.einsum("bdhwc,cok->bdhwko", x, w[:, :, 0, 0, :])
    out = jnp.zeros((B, D, H, W + kw - 1, Cout), jnp.float32)
    for k in range(kw):
        out = out.at[:, :, :, k:k + W, :].add(y[..., k, :])
    return _ref_bn_relu(out + b, g, be)


def reference_forward(p, z):
    B = z.shape[0]
    x = z.reshape(B, 1, 1, 1, latent_dim)
    x = _ref_block_stride_eq(x, p["w0"], p["b0"], p["g0"], p["be0"])
    x = _ref_block_stride_eq(x, p["w1"], p["b1"], p["g1"], p["be1"])
    x = _ref_block_stride_eq(x, p["w2"], p["b2"], p["g2"], p["be2"])
    x = _ref_block_overlap_w(x, p["w3"], p["b3"], p["g3"], p["be3"])
    tracks = []
    for t in range(n_tracks):
        xt = _ref_block_stride_eq(x, p["w4"][t], p["b4"][t], p["g4"][t], p["be4"][t])
        xt = _ref_block_stride_eq(xt, p["w5"][t], p["b5"][t], p["g5"][t], p["be5"][t])
        tracks.append(xt[..., 0])
    out = jnp.stack(tracks, axis=1)
    return out.reshape(B, n_tracks, n_measures * measure_resolution, n_pitches)


if __name__ == "__main__":
    key = jax.random.PRNGKey(0)
    k_params, k_z = jax.random.split(key)
    raw = init_params(k_params)

    B = 2
    packed = pack_params(raw, B)
    z = jax.random.normal(k_z, (B, latent_dim), dtype=jnp.float32)

    fwd = jax.jit(generator_forward)
    out = jax.block_until_ready(fwd(packed, z))

    assert out.shape == (B, n_tracks, n_measures * measure_resolution, n_pitches)
    assert out.dtype == jnp.float32
    assert bool(jnp.all(jnp.isfinite(out)))

    # Structural cross-check against a pure-JAX reference of the same forward
    # pass (loose tolerance: MXU vs XLA matmul rounding differs).
    ref = jax.block_until_ready(jax.jit(reference_forward)(raw, z))
    max_diff = float(jnp.max(jnp.abs(out - ref)))
    assert bool(jnp.allclose(out, ref, rtol=5e-2, atol=5e-2)), max_diff

    print("KERNEL_OK")
</pallas_src>

<mosaic_0001>
module attributes {stable_mosaic.version = 11 : i64} {
  func.func @_generator_kernel(%arg0: i32, %arg1: memref<2x128xf32, #tpu.memory_space<vmem>>, %arg2: memref<4x8x2xf32, #tpu.memory_space<vmem>>, %arg3: memref<4x128x256xf32, #tpu.memory_space<vmem>>, %arg4: memref<1x256xf32, #tpu.memory_space<vmem>>, %arg5: memref<1x256xf32, #tpu.memory_space<vmem>>, %arg6: memref<1x256xf32, #tpu.memory_space<vmem>>, %arg7: memref<4x256x128xf32, #tpu.memory_space<vmem>>, %arg8: memref<1x128xf32, #tpu.memory_space<vmem>>, %arg9: memref<1x128xf32, #tpu.memory_space<vmem>>, %arg10: memref<1x128xf32, #tpu.memory_space<vmem>>, %arg11: memref<4x128x64xf32, #tpu.memory_space<vmem>>, %arg12: memref<1x64xf32, #tpu.memory_space<vmem>>, %arg13: memref<1x64xf32, #tpu.memory_space<vmem>>, %arg14: memref<1x64xf32, #tpu.memory_space<vmem>>, %arg15: memref<3x64x32xf32, #tpu.memory_space<vmem>>, %arg16: memref<1x32xf32, #tpu.memory_space<vmem>>, %arg17: memref<1x32xf32, #tpu.memory_space<vmem>>, %arg18: memref<1x32xf32, #tpu.memory_space<vmem>>, %arg19: memref<4x32x80xf32, #tpu.memory_space<vmem>>, %arg20: memref<1x80xf32, #tpu.memory_space<vmem>>, %arg21: memref<1x80xf32, #tpu.memory_space<vmem>>, %arg22: memref<1x80xf32, #tpu.memory_space<vmem>>, %arg23: memref<80x60xf32, #tpu.memory_space<vmem>>, %arg24: memref<1x60xf32, #tpu.memory_space<vmem>>, %arg25: memref<1x60xf32, #tpu.memory_space<vmem>>, %arg26: memref<1x60xf32, #tpu.memory_space<vmem>>, %arg27: memref<60x60xf32, #tpu.memory_space<vmem>>, %arg28: memref<768x60xf32, #tpu.memory_space<vmem>>, %arg29: memref<32x128xf32, #tpu.memory_space<vmem>>, %arg30: memref<128x64xf32, #tpu.memory_space<vmem>>, %arg31: memref<192x32xf32, #tpu.memory_space<vmem>>, %arg32: memref<768x80xf32, #tpu.memory_space<vmem>>) attributes {dimension_semantics = [#tpu.dimension_semantics<arbitrary>], iteration_bounds = array<i64: 1>, scalar_prefetch = 0 : i64, scratch_operands = 4 : i64, tpu.core_type = #tpu.core_type<tc>, window_params = [{pipeline_mode = #tpu.pipeline_mode<synchronous>, transform_indices = @transform_0, window_bounds = array<i64: 2, 128>}, {pipeline_mode = #tpu.pipeline_mode<synchronous>, transform_indices = @transform_1, window_bounds = array<i64: 4, 8, 2>}, {pipeline_mode = #tpu.pipeline_mode<synchronous>, transform_indices = @transform_2, window_bounds = array<i64: 4, 128, 256>}, {pipeline_mode = #tpu.pipeline_mode<synchronous>, transform_indices = @transform_3, window_bounds = array<i64: 1, 256>}, {pipeline_mode = #tpu.pipeline_mode<synchronous>, transform_indices = @transform_4, window_bounds = array<i64: 1, 256>}, {pipeline_mode = #tpu.pipeline_mode<synchronous>, transform_indices = @transform_5, window_bounds = array<i64: 1, 256>}, {pipeline_mode = #tpu.pipeline_mode<synchronous>, transform_indices = @transform_6, window_bounds = array<i64: 4, 256, 128>}, {pipeline_mode = #tpu.pipeline_mode<synchronous>, transform_indices = @transform_7, window_bounds = array<i64: 1, 128>}, {pipeline_mode = #tpu.pipeline_mode<synchronous>, transform_indices = @transform_8, window_bounds = array<i64: 1, 128>}, {pipeline_mode = #tpu.pipeline_mode<synchronous>, transform_indices = @transform_9, window_bounds = array<i64: 1, 128>}, {pipeline_mode = #tpu.pipeline_mode<synchronous>, transform_indices = @transform_10, window_bounds = array<i64: 4, 128, 64>}, {pipeline_mode = #tpu.pipeline_mode<synchronous>, transform_indices = @transform_11, window_bounds = array<i64: 1, 64>}, {pipeline_mode = #tpu.pipeline_mode<synchronous>, transform_indices = @transform_12, window_bounds = array<i64: 1, 64>}, {pipeline_mode = #tpu.pipeline_mode<synchronous>, transform_indices = @transform_13, window_bounds = array<i64: 1, 64>}, {pipeline_mode = #tpu.pipeline_mode<synchronous>, transform_indices = @transform_14, window_bounds = array<i64: 3, 64, 32>}, {pipeline_mode = #tpu.pipeline_mode<synchronous>, transform_indices = @transform_15, window_bounds = array<i64: 1, 32>}, {pipeline_mode = #tpu.pipeline_mode<synchronous>, transform_indices = @transform_16, window_bounds = array<i64: 1, 32>}, {pipeline_mode = #tpu.pipeline_mode<synchronous>, transform_indices = @transform_17, window_bounds = array<i64: 1, 32>}, {pipeline_mode = #tpu.pipeline_mode<synchronous>, transform_indices = @transform_18, window_bounds = array<i64: 4, 32, 80>}, {pipeline_mode = #tpu.pipeline_mode<synchronous>, transform_indices = @transform_19, window_bounds = array<i64: 1, 80>}, {pipeline_mode = #tpu.pipeline_mode<synchronous>, transform_indices = @transform_20, window_bounds = array<i64: 1, 80>}, {pipeline_mode = #tpu.pipeline_mode<synchronous>, transform_indices = @transform_21, window_bounds = array<i64: 1, 80>}, {pipeline_mode = #tpu.pipeline_mode<synchronous>, transform_indices = @transform_22, window_bounds = array<i64: 80, 60>}, {pipeline_mode = #tpu.pipeline_mode<synchronous>, transform_indices = @transform_23, window_bounds = array<i64: 1, 60>}, {pipeline_mode = #tpu.pipeline_mode<synchronous>, transform_indices = @transform_24, window_bounds = array<i64: 1, 60>}, {pipeline_mode = #tpu.pipeline_mode<synchronous>, transform_indices = @transform_25, window_bounds = array<i64: 1, 60>}, {pipeline_mode = #tpu.pipeline_mode<synchronous>, transform_indices = @transform_26, window_bounds = array<i64: 60, 60>}, {pipeline_mode = #tpu.pipeline_mode<synchronous>, transform_indices = @transform_27, window_bounds = array<i64: 768, 60>}]} {
    %c0 = arith.constant 0 : index
    %c0_0 = arith.constant 0 : index
    %0 = vector.load %arg1[%c0, %c0_0] : memref<2x128xf32, #tpu.memory_space<vmem>>, vector<2x128xf32>
    %cst = arith.constant 0.000000e+00 : f32
    %1 = vector.broadcast %cst : f32 to vector<8x256xf32>
    %c0_1 = arith.constant 0 : index
    %c0_2 = arith.constant 0 : index
    %c0_3 = arith.constant 0 : index
    %2 = vector.load %arg3[%c0_1, %c0_2, %c0_3] : memref<4x128x256xf32, #tpu.memory_space<vmem>>, vector<1x128x256xf32>
    %3 = vector.shape_cast %2 : vector<1x128x256xf32> to vector<128x256xf32>
    %cst_4 = arith.constant dense<0.000000e+00> : vector<2x256xf32>
    %4 = tpu.matmul %0, %3, %cst_4 {dimension_numbers = #tpu.dot_dimension_numbers<[1], [0], [0], [1], [0, 0, 1, 1], [], []>} : vector<2x128xf32>, vector<128x256xf32>, vector<2x256xf32> -> vector<2x256xf32>
    %c0_5 = arith.constant 0 : index
    %c0_6 = arith.constant 0 : index
    %c0_7 = arith.constant 0 : index
    %5 = vector.load %arg2[%c0_5, %c0_6, %c0_7] : memref<4x8x2xf32, #tpu.memory_space<vmem>>, vector<1x8x2xf32>
    %6 = vector.shape_cast %5 : vector<1x8x2xf32> to vector<8x2xf32>
    %cst_8 = arith.constant dense<0.000000e+00> : vector<8x256xf32>
    %7 = tpu.matmul %6, %4, %cst_8 {dimension_numbers = #tpu.dot_dimension_numbers<[1], [0], [0], [1], [0, 0, 1, 1], [], []>} : vector<8x2xf32>, vector<2x256xf32>, vector<8x256xf32> -> vector<8x256xf32>
    %8 = arith.addf %1, %7 : vector<8x256xf32>
    %c1 = arith.constant 1 : index
    %c0_9 = arith.constant 0 : index
    %c0_10 = arith.constant 0 : index
    %9 = vector.load %arg3[%c1, %c0_9, %c0_10] : memref<4x128x256xf32, #tpu.memory_space<vmem>>, vector<1x128x256xf32>
    %10 = vector.shape_cast %9 : vector<1x128x256xf32> to vector<128x256xf32>
    %cst_11 = arith.constant dense<0.000000e+00> : vector<2x256xf32>
    %11 = tpu.matmul %0, %10, %cst_11 {dimension_numbers = #tpu.dot_dimension_numbers<[1], [0], [0], [1], [0, 0, 1, 1], [], []>} : vector<2x128xf32>, vector<128x256xf32>, vector<2x256xf32> -> vector<2x256xf32>
    %c1_12 = arith.constant 1 : index
    %c0_13 = arith.constant 0 : index
    %c0_14 = arith.constant 0 : index
    %12 = vector.load %arg2[%c1_12, %c0_13, %c0_14] : memref<4x8x2xf32, #tpu.memory_space<vmem>>, vector<1x8x2xf32>
    %13 = vector.shape_cast %12 : vector<1x8x2xf32> to vector<8x2xf32>
    %cst_15 = arith.constant dense<0.000000e+00> : vector<8x256xf32>
    %14 = tpu.matmul %13, %11, %cst_15 {dimension_numbers = #tpu.dot_dimension_numbers<[1], [0], [0], [1], [0, 0, 1, 1], [], []>} : vector<8x2xf32>, vector<2x256xf32>, vector<8x256xf32> -> vector<8x256xf32>
    %15 = arith.addf %8, %14 : vector<8x256xf32>
    %c2 = arith.constant 2 : index
    %c0_16 = arith.constant 0 : index
    %c0_17 = arith.constant 0 : index
    %16 = vector.load %arg3[%c2, %c0_16, %c0_17] : memref<4x128x256xf32, #tpu.memory_space<vmem>>, vector<1x128x256xf32>
    %17 = vector.shape_cast %16 : vector<1x128x256xf32> to vector<128x256xf32>
    %cst_18 = arith.constant dense<0.000000e+00> : vector<2x256xf32>
    %18 = tpu.matmul %0, %17, %cst_18 {dimension_numbers = #tpu.dot_dimension_numbers<[1], [0], [0], [1], [0, 0, 1, 1], [], []>} : vector<2x128xf32>, vector<128x256xf32>, vector<2x256xf32> -> vector<2x256xf32>
    %c2_19 = arith.constant 2 : index
    %c0_20 = arith.constant 0 : index
    %c0_21 = arith.constant 0 : index
    %19 = vector.load %arg2[%c2_19, %c0_20, %c0_21] : memref<4x8x2xf32, #tpu.memory_space<vmem>>, vector<1x8x2xf32>
    %20 = vector.shape_cast %19 : vector<1x8x2xf32> to vector<8x2xf32>
    %cst_22 = arith.constant dense<0.000000e+00> : vector<8x256xf32>
    %21 = tpu.matmul %20, %18, %cst_22 {dimension_numbers = #tpu.dot_dimension_numbers<[1], [0], [0], [1], [0, 0, 1, 1], [], []>} : vector<8x2xf32>, vector<2x256xf32>, vector<8x256xf32> -> vector<8x256xf32>
    %22 = arith.addf %15, %21 : vector<8x256xf32>
    %c3 = arith.constant 3 : index
    %c0_23 = arith.constant 0 : index
    %c0_24 = arith.constant 0 : index
    %23 = vector.load %arg3[%c3, %c0_23, %c0_24] : memref<4x128x256xf32, #tpu.memory_space<vmem>>, vector<1x128x256xf32>
    %24 = vector.shape_cast %23 : vector<1x128x256xf32> to vector<128x256xf32>
    %cst_25 = arith.constant dense<0.000000e+00> : vector<2x256xf32>
    %25 = tpu.matmul %0, %24, %cst_25 {dimension_numbers = #tpu.dot_dimension_numbers<[1], [0], [0], [1], [0, 0, 1, 1], [], []>} : vector<2x128xf32>, vector<128x256xf32>, vector<2x256xf32> -> vector<2x256xf32>
    %c3_26 = arith.constant 3 : index
    %c0_27 = arith.constant 0 : index
    %c0_28 = arith.constant 0 : index
    %26 = vector.load %arg2[%c3_26, %c0_27, %c0_28] : memref<4x8x2xf32, #tpu.memory_space<vmem>>, vector<1x8x2xf32>
    %27 = vector.shape_cast %26 : vector<1x8x2xf32> to vector<8x2xf32>
    %cst_29 = arith.constant dense<0.000000e+00> : vector<8x256xf32>
    %28 = tpu.matmul %27, %25, %cst_29 {dimension_numbers = #tpu.dot_dimension_numbers<[1], [0], [0], [1], [0, 0, 1, 1], [], []>} : vector<8x2xf32>, vector<2x256xf32>, vector<8x256xf32> -> vector<8x256xf32>
    %29 = arith.addf %22, %28 : vector<8x256xf32>
    %c0_30 = arith.constant 0 : index
    %c0_31 = arith.constant 0 : index
    %30 = vector.load %arg4[%c0_30, %c0_31] : memref<1x256xf32, #tpu.memory_space<vmem>>, vector<1x256xf32>
    %31 = vector.broadcast %30 : vector<1x256xf32> to vector<8x256xf32>
    %32 = arith.addf %29, %31 : vector<8x256xf32>
    %cst_32 = arith.constant dense<0.000000e+00> : vector<256xf32>
    %33 = vector.multi_reduction <add>, %32, %cst_32 [0] : vector<8x256xf32> to vector<256xf32>
    %34 = vector.shape_cast %33 : vector<256xf32> to vector<1x256xf32>
    %cst_33 = arith.constant 8.000000e+00 : f32
    %35 = vector.broadcast %cst_33 : f32 to vector<1x256xf32>
    %36 = arith.divf %34, %35 : vector<1x256xf32>
    %37 = vector.broadcast %36 : vector<1x256xf32> to vector<8x256xf32>
    %38 = arith.subf %32, %37 : vector<8x256xf32>
    %39 = arith.mulf %38, %38 : vector<8x256xf32>
    %cst_34 = arith.constant dense<0.000000e+00> : vector<256xf32>
    %40 = vector.multi_reduction <add>, %39, %cst_34 [0] : vector<8x256xf32> to vector<256xf32>
    %41 = vector.shape_cast %40 : vector<256xf32> to vector<1x256xf32>
    %cst_35 = arith.constant 8.000000e+00 : f32
    %42 = vector.broadcast %cst_35 : f32 to vector<1x256xf32>
    %43 = arith.divf %41, %42 : vector<1x256xf32>
    %44 = vector.broadcast %36 : vector<1x256xf32> to vector<8x256xf32>
    %45 = arith.subf %32, %44 : vector<8x256xf32>
    %cst_36 = arith.constant 9.99999974E-6 : f32
    %46 = vector.broadcast %cst_36 : f32 to vector<1x256xf32>
    %47 = arith.addf %43, %46 : vector<1x256xf32>
    %48 = math.rsqrt %47 : vector<1x256xf32>
    %49 = vector.broadcast %48 : vector<1x256xf32> to vector<8x256xf32>
    %50 = arith.mulf %45, %49 : vector<8x256xf32>
    %c0_37 = arith.constant 0 : index
    %c0_38 = arith.constant 0 : index
    %51 = vector.load %arg5[%c0_37, %c0_38] : memref<1x256xf32, #tpu.memory_space<vmem>>, vector<1x256xf32>
    %52 = vector.broadcast %51 : vector<1x256xf32> to vector<8x256xf32>
    %53 = arith.mulf %50, %52 : vector<8x256xf32>
    %c0_39 = arith.constant 0 : index
    %c0_40 = arith.constant 0 : index
    %54 = vector.load %arg6[%c0_39, %c0_40] : memref<1x256xf32, #tpu.memory_space<vmem>>, vector<1x256xf32>
    %55 = vector.broadcast %54 : vector<1x256xf32> to vector<8x256xf32>
    %56 = arith.addf %53, %55 : vector<8x256xf32>
    %cst_41 = arith.constant 0.000000e+00 : f32
    %57 = vector.broadcast %cst_41 : f32 to vector<8x256xf32>
    %58 = arith.maximumf %56, %57 : vector<8x256xf32>
    %c0_42 = arith.constant 0 : index
    %c0_43 = arith.constant 0 : index
    %c0_44 = arith.constant 0 : index
    %59 = vector.load %arg7[%c0_42, %c0_43, %c0_44] : memref<4x256x128xf32, #tpu.memory_space<vmem>>, vector<1x256x128xf32>
    %60 = vector.shape_cast %59 : vector<1x256x128xf32> to vector<256x128xf32>
    %cst_45 = arith.constant dense<0.000000e+00> : vector<8x128xf32>
    %61 = tpu.matmul %58, %60, %cst_45 {dimension_numbers = #tpu.dot_dimension_numbers<[1], [0], [0], [1], [0, 0, 1, 1], [], []>} : vector<8x256xf32>, vector<256x128xf32>, vector<8x128xf32> -> vector<8x128xf32>
    %c0_46 = arith.constant 0 : index
    %c0_47 = arith.constant 0 : index
    %62 = vector.load %arg29[%c0_46, %c0_47] : memref<32x128xf32, #tpu.memory_space<vmem>>, vector<8x128xf32>
    tpu.vector_store %arg29[%c0_46, %c0_47], %61 {strides = array<i32>} : memref<32x128xf32, #tpu.memory_space<vmem>>, vector<8x128xf32>,
    %c1_48 = arith.constant 1 : index
    %c0_49 = arith.constant 0 : index
    %c0_50 = arith.constant 0 : index
    %63 = vector.load %arg7[%c1_48, %c0_49, %c0_50] : memref<4x256x128xf32, #tpu.memory_space<vmem>>, vector<1x256x128xf32>
    %64 = vector.shape_cast %63 : vector<1x256x128xf32> to vector<256x128xf32>
    %cst_51 = arith.constant dense<0.000000e+00> : vector<8x128xf32>
    %65 = tpu.matmul %58, %64, %cst_51 {dimension_numbers = #tpu.dot_dimension_numbers<[1], [0], [0], [1], [0, 0, 1, 1], [], []>} : vector<8x256xf32>, vector<256x128xf32>, vector<8x128xf32> -> vector<8x128xf32>
    %c8 = arith.constant 8 : index
    %c0_52 = arith.constant 0 : index
    %66 = vector.load %arg29[%c8, %c0_52] : memref<32x128xf32, #tpu.memory_space<vmem>>, vector<8x128xf32>
    tpu.vector_store %arg29[%c8, %c0_52], %65 {strides = array<i32>} : memref<32x128xf32, #tpu.memory_space<vmem>>, vector<8x128xf32>,
    %c2_53 = arith.constant 2 : index
    %c0_54 = arith.constant 0 : index
    %c0_55 = arith.constant 0 : index
    %67 = vector.load %arg7[%c2_53, %c0_54, %c0_55] : memref<4x256x128xf32, #tpu.memory_space<vmem>>, vector<1x256x128xf32>
    %68 = vector.shape_cast %67 : vector<1x256x128xf32> to vector<256x128xf32>
    %cst_56 = arith.constant dense<0.000000e+00> : vector<8x128xf32>
    %69 = tpu.matmul %58, %68, %cst_56 {dimension_numbers = #tpu.dot_dimension_numbers<[1], [0], [0], [1], [0, 0, 1, 1], [], []>} : vector<8x256xf32>, vector<256x128xf32>, vector<8x128xf32> -> vector<8x128xf32>
    %c16 = arith.constant 16 : index
    %c0_57 = arith.constant 0 : index
    %70 = vector.load %arg29[%c16, %c0_57] : memref<32x128xf32, #tpu.memory_space<vmem>>, vector<8x128xf32>
    tpu.vector_store %arg29[%c16, %c0_57], %69 {strides = array<i32>} : memref<32x128xf32, #tpu.memory_space<vmem>>, vector<8x128xf32>,
    %c3_58 = arith.constant 3 : index
    %c0_59 = arith.constant 0 : index
    %c0_60 = arith.constant 0 : index
    %71 = vector.load %arg7[%c3_58, %c0_59, %c0_60] : memref<4x256x128xf32, #tpu.memory_space<vmem>>, vector<1x256x128xf32>
    %72 = vector.shape_cast %71 : vector<1x256x128xf32> to vector<256x128xf32>
    %cst_61 = arith.constant dense<0.000000e+00> : vector<8x128xf32>
    %73 = tpu.matmul %58, %72, %cst_61 {dimension_numbers = #tpu.dot_dimension_numbers<[1], [0], [0], [1], [0, 0, 1, 1], [], []>} : vector<8x256xf32>, vector<256x128xf32>, vector<8x128xf32> -> vector<8x128xf32>
    %c24 = arith.constant 24 : index
    %c0_62 = arith.constant 0 : index
    %74 = vector.load %arg29[%c24, %c0_62] : memref<32x128xf32, #tpu.memory_space<vmem>>, vector<8x128xf32>
    tpu.vector_store %arg29[%c24, %c0_62], %73 {strides = array<i32>} : memref<32x128xf32, #tpu.memory_space<vmem>>, vector<8x128xf32>,
    %c0_63 = arith.constant 0 : index
    %c0_64 = arith.constant 0 : index
    %75 = vector.load %arg29[%c0_63, %c0_64] : memref<32x128xf32, #tpu.memory_space<vmem>>, vector<32x128xf32>
    %c0_65 = arith.constant 0 : index
    %c0_66 = arith.constant 0 : index
    %76 = vector.load %arg8[%c0_65, %c0_66] : memref<1x128xf32, #tpu.memory_space<vmem>>, vector<1x128xf32>
    %77 = vector.broadcast %76 : vector<1x128xf32> to vector<32x128xf32>
    %78 = arith.addf %75, %77 : vector<32x128xf32>
    %cst_67 = arith.constant dense<0.000000e+00> : vector<128xf32>
    %79 = vector.multi_reduction <add>, %78, %cst_67 [0] : vector<32x128xf32> to vector<128xf32>
    %80 = vector.shape_cast %79 : vector<128xf32> to vector<1x128xf32>
    %cst_68 = arith.constant 3.200000e+01 : f32
    %81 = vector.broadcast %cst_68 : f32 to vector<1x128xf32>
    %82 = arith.divf %80, %81 : vector<1x128xf32>
    %83 = vector.broadcast %82 : vector<1x128xf32> to vector<32x128xf32>
    %84 = arith.subf %78, %83 : vector<32x128xf32>
    %85 = arith.mulf %84, %84 : vector<32x128xf32>
    %cst_69 = arith.constant dense<0.000000e+00> : vector<128xf32>
    %86 = vector.multi_reduction <add>, %85, %cst_69 [0] : vector<32x128xf32> to vector<128xf32>
    %87 = vector.shape_cast %86 : vector<128xf32> to vector<1x128xf32>
    %cst_70 = arith.constant 3.200000e+01 : f32
    %88 = vector.broadcast %cst_70 : f32 to vector<1x128xf32>
    %89 = arith.divf %87, %88 : vector<1x128xf32>
    %90 = vector.broadcast %82 : vector<1x128xf32> to vector<32x128xf32>
    %91 = arith.subf %78, %90 : vector<32x128xf32>
    %cst_71 = arith.constant 9.99999974E-6 : f32
    %92 = vector.broadcast %cst_71 : f32 to vector<1x128xf32>
    %93 = arith.addf %89, %92 : vector<1x128xf32>
    %94 = math.rsqrt %93 : vector<1x128xf32>
    %95 = vector.broadcast %94 : vector<1x128xf32> to vector<32x128xf32>
    %96 = arith.mulf %91, %95 : vector<32x128xf32>
    %c0_72 = arith.constant 0 : index
    %c0_73 = arith.constant 0 : index
    %97 = vector.load %arg9[%c0_72, %c0_73] : memref<1x128xf32, #tpu.memory_space<vmem>>, vector<1x128xf32>
    %98 = vector.broadcast %97 : vector<1x128xf32> to vector<32x128xf32>
    %99 = arith.mulf %96, %98 : vector<32x128xf32>
    %c0_74 = arith.constant 0 : index
    %c0_75 = arith.constant 0 : index
    %100 = vector.load %arg10[%c0_74, %c0_75] : memref<1x128xf32, #tpu.memory_space<vmem>>, vector<1x128xf32>
    %101 = vector.broadcast %100 : vector<1x128xf32> to vector<32x128xf32>
    %102 = arith.addf %99, %101 : vector<32x128xf32>
    %cst_76 = arith.constant 0.000000e+00 : f32
    %103 = vector.broadcast %cst_76 : f32 to vector<32x128xf32>
    %104 = arith.maximumf %102, %103 : vector<32x128xf32>
    %c0_77 = arith.constant 0 : index
    %c0_78 = arith.constant 0 : index
    %c0_79 = arith.constant 0 : index
    %105 = vector.load %arg11[%c0_77, %c0_78, %c0_79] : memref<4x128x64xf32, #tpu.memory_space<vmem>>, vector<1x128x64xf32>
    %106 = vector.shape_cast %105 : vector<1x128x64xf32> to vector<128x64xf32>
    %cst_80 = arith.constant dense<0.000000e+00> : vector<32x64xf32>
    %107 = tpu.matmul %104, %106, %cst_80 {dimension_numbers = #tpu.dot_dimension_numbers<[1], [0], [0], [1], [0, 0, 1, 1], [], []>} : vector<32x128xf32>, vector<128x64xf32>, vector<32x64xf32> -> vector<32x64xf32>
    %c0_81 = arith.constant 0 : index
    %c0_82 = arith.constant 0 : index
    %108 = vector.load %arg30[%c0_81, %c0_82] : memref<128x64xf32, #tpu.memory_space<vmem>>, vector<32x64xf32>
    tpu.vector_store %arg30[%c0_81, %c0_82], %107 {strides = array<i32>} : memref<128x64xf32, #tpu.memory_space<vmem>>, vector<32x64xf32>,
    %c1_83 = arith.constant 1 : index
    %c0_84 = arith.constant 0 : index
    %c0_85 = arith.constant 0 : index
    %109 = vector.load %arg11[%c1_83, %c0_84, %c0_85] : memref<4x128x64xf32, #tpu.memory_space<vmem>>, vector<1x128x64xf32>
    %110 = vector.shape_cast %109 : vector<1x128x64xf32> to vector<128x64xf32>
    %cst_86 = arith.constant dense<0.000000e+00> : vector<32x64xf32>
    %111 = tpu.matmul %104, %110, %cst_86 {dimension_numbers = #tpu.dot_dimension_numbers<[1], [0], [0], [1], [0, 0, 1, 1], [], []>} : vector<32x128xf32>, vector<128x64xf32>, vector<32x64xf32> -> vector<32x64xf32>
    %c32 = arith.constant 32 : index
    %c0_87 = arith.constant 0 : index
    %112 = vector.load %arg30[%c32, %c0_87] : memref<128x64xf32, #tpu.memory_space<vmem>>, vector<32x64xf32>
    tpu.vector_store %arg30[%c32, %c0_87], %111 {strides = array<i32>} : memref<128x64xf32, #tpu.memory_space<vmem>>, vector<32x64xf32>,
    %c2_88 = arith.constant 2 : index
    %c0_89 = arith.constant 0 : index
    %c0_90 = arith.constant 0 : index
    %113 = vector.load %arg11[%c2_88, %c0_89, %c0_90] : memref<4x128x64xf32, #tpu.memory_space<vmem>>, vector<1x128x64xf32>
    %114 = vector.shape_cast %113 : vector<1x128x64xf32> to vector<128x64xf32>
    %cst_91 = arith.constant dense<0.000000e+00> : vector<32x64xf32>
    %115 = tpu.matmul %104, %114, %cst_91 {dimension_numbers = #tpu.dot_dimension_numbers<[1], [0], [0], [1], [0, 0, 1, 1], [], []>} : vector<32x128xf32>, vector<128x64xf32>, vector<32x64xf32> -> vector<32x64xf32>
    %c64 = arith.constant 64 : index
    %c0_92 = arith.constant 0 : index
    %116 = vector.load %arg30[%c64, %c0_92] : memref<128x64xf32, #tpu.memory_space<vmem>>, vector<32x64xf32>
    tpu.vector_store %arg30[%c64, %c0_92], %115 {strides = array<i32>} : memref<128x64xf32, #tpu.memory_space<vmem>>, vector<32x64xf32>,
    %c3_93 = arith.constant 3 : index
    %c0_94 = arith.constant 0 : index
    %c0_95 = arith.constant 0 : index
    %117 = vector.load %arg11[%c3_93, %c0_94, %c0_95] : memref<4x128x64xf32, #tpu.memory_space<vmem>>, vector<1x128x64xf32>
    %118 = vector.shape_cast %117 : vector<1x128x64xf32> to vector<128x64xf32>
    %cst_96 = arith.constant dense<0.000000e+00> : vector<32x64xf32>
    %119 = tpu.matmul %104, %118, %cst_96 {dimension_numbers = #tpu.dot_dimension_numbers<[1], [0], [0], [1], [0, 0, 1, 1], [], []>} : vector<32x128xf32>, vector<128x64xf32>, vector<32x64xf32> -> vector<32x64xf32>
    %c96 = arith.constant 96 : index
    %c0_97 = arith.constant 0 : index
    %120 = vector.load %arg30[%c96, %c0_97] : memref<128x64xf32, #tpu.memory_space<vmem>>, vector<32x64xf32>
    tpu.vector_store %arg30[%c96, %c0_97], %119 {strides = array<i32>} : memref<128x64xf32, #tpu.memory_space<vmem>>, vector<32x64xf32>,
    %c0_98 = arith.constant 0 : index
    %c0_99 = arith.constant 0 : index
    %121 = vector.load %arg30[%c0_98, %c0_99] : memref<128x64xf32, #tpu.memory_space<vmem>>, vector<128x64xf32>
    %c0_100 = arith.constant 0 : index
    %c0_101 = arith.constant 0 : index
    %122 = vector.load %arg12[%c0_100, %c0_101] : memref<1x64xf32, #tpu.memory_space<vmem>>, vector<1x64xf32>
    %123 = vector.broadcast %122 : vector<1x64xf32> to vector<128x64xf32>
    %124 = arith.addf %121, %123 : vector<128x64xf32>
    %cst_102 = arith.constant dense<0.000000e+00> : vector<64xf32>
    %125 = vector.multi_reduction <add>, %124, %cst_102 [0] : vector<128x64xf32> to vector<64xf32>
    %126 = vector.shape_cast %125 : vector<64xf32> to vector<1x64xf32>
    %cst_103 = arith.constant 1.280000e+02 : f32
    %127 = vector.broadcast %cst_103 : f32 to vector<1x64xf32>
    %128 = arith.divf %126, %127 : vector<1x64xf32>
    %129 = vector.broadcast %128 : vector<1x64xf32> to vector<128x64xf32>
    %130 = arith.subf %124, %129 : vector<128x64xf32>
    %131 = arith.mulf %130, %130 : vector<128x64xf32>
    %cst_104 = arith.constant dense<0.000000e+00> : vector<64xf32>
    %132 = vector.multi_reduction <add>, %131, %cst_104 [0] : vector<128x64xf32> to vector<64xf32>
    %133 = vector.shape_cast %132 : vector<64xf32> to vector<1x64xf32>
    %cst_105 = arith.constant 1.280000e+02 : f32
    %134 = vector.broadcast %cst_105 : f32 to vector<1x64xf32>
    %135 = arith.divf %133, %134 : vector<1x64xf32>
    %136 = vector.broadcast %128 : vector<1x64xf32> to vector<128x64xf32>
    %137 = arith.subf %124, %136 : vector<128x64xf32>
    %cst_106 = arith.constant 9.99999974E-6 : f32
    %138 = vector.broadcast %cst_106 : f32 to vector<1x64xf32>
    %139 = arith.addf %135, %138 : vector<1x64xf32>
    %140 = math.rsqrt %139 : vector<1x64xf32>
    %141 = vector.broadcast %140 : vector<1x64xf32> to vector<128x64xf32>
    %142 = arith.mulf %137, %141 : vector<128x64xf32>
    %c0_107 = arith.constant 0 : index
    %c0_108 = arith.constant 0 : index
    %143 = vector.load %arg13[%c0_107, %c0_108] : memref<1x64xf32, #tpu.memory_space<vmem>>, vector<1x64xf32>
    %144 = vector.broadcast %143 : vector<1x64xf32> to vector<128x64xf32>
    %145 = arith.mulf %142, %144 : vector<128x64xf32>
    %c0_109 = arith.constant 0 : index
    %c0_110 = arith.constant 0 : index
    %146 = vector.load %arg14[%c0_109, %c0_110] : memref<1x64xf32, #tpu.memory_space<vmem>>, vector<1x64xf32>
    %147 = vector.broadcast %146 : vector<1x64xf32> to vector<128x64xf32>
    %148 = arith.addf %145, %147 : vector<128x64xf32>
    %cst_111 = arith.constant 0.000000e+00 : f32
    %149 = vector.broadcast %cst_111 : f32 to vector<128x64xf32>
    %150 = arith.maximumf %148, %149 : vector<128x64xf32>
    %cst_112 = arith.constant 0.000000e+00 : f32
    %151 = vector.broadcast %cst_112 : f32 to vector<192x32xf32>
    %c0_113 = arith.constant 0 : index
    %c0_114 = arith.constant 0 : index
    %152 = vector.load %arg31[%c0_113, %c0_114] : memref<192x32xf32, #tpu.memory_space<vmem>>, vector<192x32xf32>
    tpu.vector_store %arg31[%c0_113, %c0_114], %151 {strides = array<i32>} : memref<192x32xf32, #tpu.memory_space<vmem>>, vector<192x32xf32>,
    %c0_115 = arith.constant 0 : index
    %c0_116 = arith.constant 0 : index
    %c0_117 = arith.constant 0 : index
    %153 = vector.load %arg15[%c0_115, %c0_116, %c0_117] : memref<3x64x32xf32, #tpu.memory_space<vmem>>, vector<1x64x32xf32>
    %154 = vector.shape_cast %153 : vector<1x64x32xf32> to vector<64x32xf32>
    %cst_118 = arith.constant dense<0.000000e+00> : vector<128x32xf32>
    %155 = tpu.matmul %150, %154, %cst_118 {dimension_numbers = #tpu.dot_dimension_numbers<[1], [0], [0], [1], [0, 0, 1, 1], [], []>} : vector<128x64xf32>, vector<64x32xf32>, vector<128x32xf32> -> vector<128x32xf32>
    %c0_119 = arith.constant 0 : index
    %c0_120 = arith.constant 0 : index
    %156 = vector.load %arg31[%c0_119, %c0_120] : memref<192x32xf32, #tpu.memory_space<vmem>>, vector<128x32xf32>
    %157 = arith.addf %156, %155 : vector<128x32xf32>
    %c0_121 = arith.constant 0 : index
    %c0_122 = arith.constant 0 : index
    %158 = vector.load %arg31[%c0_121, %c0_122] : memref<192x32xf32, #tpu.memory_space<vmem>>, vector<128x32xf32>
    tpu.vector_store %arg31[%c0_121, %c0_122], %157 {strides = array<i32>} : memref<192x32xf32, #tpu.memory_space<vmem>>, vector<128x32xf32>,
    %c1_123 = arith.constant 1 : index
    %c0_124 = arith.constant 0 : index
    %c0_125 = arith.constant 0 : index
    %159 = vector.load %arg15[%c1_123, %c0_124, %c0_125] : memref<3x64x32xf32, #tpu.memory_space<vmem>>, vector<1x64x32xf32>
    %160 = vector.shape_cast %159 : vector<1x64x32xf32> to vector<64x32xf32>
    %cst_126 = arith.constant dense<0.000000e+00> : vector<128x32xf32>
    %161 = tpu.matmul %150, %160, %cst_126 {dimension_numbers = #tpu.dot_dimension_numbers<[1], [0], [0], [1], [0, 0, 1, 1], [], []>} : vector<128x64xf32>, vector<64x32xf32>, vector<128x32xf32> -> vector<128x32xf32>
    %c32_127 = arith.constant 32 : index
    %c0_128 = arith.constant 0 : index
    %162 = vector.load %arg31[%c32_127, %c0_128] : memref<192x32xf32, #tpu.memory_space<vmem>>, vector<128x32xf32>
    %163 = arith.addf %162, %161 : vector<128x32xf32>
    %c32_129 = arith.constant 32 : index
    %c0_130 = arith.constant 0 : index
    %164 = vector.load %arg31[%c32_129, %c0_130] : memref<192x32xf32, #tpu.memory_space<vmem>>, vector<128x32xf32>
    tpu.vector_store %arg31[%c32_129, %c0_130], %163 {strides = array<i32>} : memref<192x32xf32, #tpu.memory_space<vmem>>, vector<128x32xf32>,
    %c2_131 = arith.constant 2 : index
    %c0_132 = arith.constant 0 : index
    %c0_133 = arith.constant 0 : index
    %165 = vector.load %arg15[%c2_131, %c0_132, %c0_133] : memref<3x64x32xf32, #tpu.memory_space<vmem>>, vector<1x64x32xf32>
    %166 = vector.shape_cast %165 : vector<1x64x32xf32> to vector<64x32xf32>
    %cst_134 = arith.constant dense<0.000000e+00> : vector<128x32xf32>
    %167 = tpu.matmul %150, %166, %cst_134 {dimension_numbers = #tpu.dot_dimension_numbers<[1], [0], [0], [1], [0, 0, 1, 1], [], []>} : vector<128x64xf32>, vector<64x32xf32>, vector<128x32xf32> -> vector<128x32xf32>
    %c64_135 = arith.constant 64 : index
    %c0_136 = arith.constant 0 : index
    %168 = vector.load %arg31[%c64_135, %c0_136] : memref<192x32xf32, #tpu.memory_space<vmem>>, vector<128x32xf32>
    %169 = arith.addf %168, %167 : vector<128x32xf32>
    %c64_137 = arith.constant 64 : index
    %c0_138 = arith.constant 0 : index
    %170 = vector.load %arg31[%c64_137, %c0_138] : memref<192x32xf32, #tpu.memory_space<vmem>>, vector<128x32xf32>
    tpu.vector_store %arg31[%c64_137, %c0_138], %169 {strides = array<i32>} : memref<192x32xf32, #tpu.memory_space<vmem>>, vector<128x32xf32>,
    %c0_139 = arith.constant 0 : index
    %c0_140 = arith.constant 0 : index
    %171 = vector.load %arg31[%c0_139, %c0_140] : memref<192x32xf32, #tpu.memory_space<vmem>>, vector<192x32xf32>
    %c0_141 = arith.constant 0 : index
    %c0_142 = arith.constant 0 : index
    %172 = vector.load %arg16[%c0_141, %c0_142] : memref<1x32xf32, #tpu.memory_space<vmem>>, vector<1x32xf32>
    %173 = vector.broadcast %172 : vector<1x32xf32> to vector<192x32xf32>
    %174 = arith.addf %171, %173 : vector<192x32xf32>
    %cst_143 = arith.constant dense<0.000000e+00> : vector<32xf32>
    %175 = vector.multi_reduction <add>, %174, %cst_143 [0] : vector<192x32xf32> to vector<32xf32>
    %176 = vector.shape_cast %175 : vector<32xf32> to vector<1x32xf32>
    %cst_144 = arith.constant 1.920000e+02 : f32
    %177 = vector.broadcast %cst_144 : f32 to vector<1x32xf32>
    %178 = arith.divf %176, %177 : vector<1x32xf32>
    %179 = vector.broadcast %178 : vector<1x32xf32> to vector<192x32xf32>
    %180 = arith.subf %174, %179 : vector<192x32xf32>
    %181 = arith.mulf %180, %180 : vector<192x32xf32>
    %cst_145 = arith.constant dense<0.000000e+00> : vector<32xf32>
    %182 = vector.multi_reduction <add>, %181, %cst_145 [0] : vector<192x32xf32> to vector<32xf32>
    %183 = vector.shape_cast %182 : vector<32xf32> to vector<1x32xf32>
    %cst_146 = arith.constant 1.920000e+02 : f32
    %184 = vector.broadcast %cst_146 : f32 to vector<1x32xf32>
    %185 = arith.divf %183, %184 : vector<1x32xf32>
    %186 = vector.broadcast %178 : vector<1x32xf32> to vector<192x32xf32>
    %187 = arith.subf %174, %186 : vector<192x32xf32>
    %cst_147 = arith.constant 9.99999974E-6 : f32
    %188 = vector.broadcast %cst_147 : f32 to vector<1x32xf32>
    %189 = arith.addf %185, %188 : vector<1x32xf32>
    %190 = math.rsqrt %189 : vector<1x32xf32>
    %191 = vector.broadcast %190 : vector<1x32xf32> to vector<192x32xf32>
    %192 = arith.mulf %187, %191 : vector<192x32xf32>
    %c0_148 = arith.constant 0 : index
    %c0_149 = arith.constant 0 : index
    %193 = vector.load %arg17[%c0_148, %c0_149] : memref<1x32xf32, #tpu.memory_space<vmem>>, vector<1x32xf32>
    %194 = vector.broadcast %193 : vector<1x32xf32> to vector<192x32xf32>
    %195 = arith.mulf %192, %194 : vector<192x32xf32>
    %c0_150 = arith.constant 0 : index
    %c0_151 = arith.constant 0 : index
    %196 = vector.load %arg18[%c0_150, %c0_151] : memref<1x32xf32, #tpu.memory_space<vmem>>, vector<1x32xf32>
    %197 = vector.broadcast %196 : vector<1x32xf32> to vector<192x32xf32>
    %198 = arith.addf %195, %197 : vector<192x32xf32>
    %cst_152 = arith.constant 0.000000e+00 : f32
    %199 = vector.broadcast %cst_152 : f32 to vector<192x32xf32>
    %200 = arith.maximumf %198, %199 : vector<192x32xf32>
    %c0_153 = arith.constant 0 : index
    %c0_154 = arith.constant 0 : index
    %c0_155 = arith.constant 0 : index
    %201 = vector.load %arg19[%c0_153, %c0_154, %c0_155] : memref<4x32x80xf32, #tpu.memory_space<vmem>>, vector<1x32x80xf32>
    %202 = vector.shape_cast %201 : vector<1x32x80xf32> to vector<32x80xf32>
    %cst_156 = arith.constant dense<0.000000e+00> : vector<192x80xf32>
    %203 = tpu.matmul %200, %202, %cst_156 {dimension_numbers = #tpu.dot_dimension_numbers<[1], [0], [0], [1], [0, 0, 1, 1], [], []>} : vector<192x32xf32>, vector<32x80xf32>, vector<192x80xf32> -> vector<192x80xf32>
    %c0_157 = arith.constant 0 : index
    %c0_158 = arith.constant 0 : index
    %204 = vector.load %arg32[%c0_157, %c0_158] : memref<768x80xf32, #tpu.memory_space<vmem>>, vector<192x80xf32>
    tpu.vector_store %arg32[%c0_157, %c0_158], %203 {strides = array<i32>} : memref<768x80xf32, #tpu.memory_space<vmem>>, vector<192x80xf32>,
    %c1_159 = arith.constant 1 : index
    %c0_160 = arith.constant 0 : index
    %c0_161 = arith.constant 0 : index
    %205 = vector.load %arg19[%c1_159, %c0_160, %c0_161] : memref<4x32x80xf32, #tpu.memory_space<vmem>>, vector<1x32x80xf32>
    %206 = vector.shape_cast %205 : vector<1x32x80xf32> to vector<32x80xf32>
    %cst_162 = arith.constant dense<0.000000e+00> : vector<192x80xf32>
    %207 = tpu.matmul %200, %206, %cst_162 {dimension_numbers = #tpu.dot_dimension_numbers<[1], [0], [0], [1], [0, 0, 1, 1], [], []>} : vector<192x32xf32>, vector<32x80xf32>, vector<192x80xf32> -> vector<192x80xf32>
    %c192 = arith.constant 192 : index
    %c0_163 = arith.constant 0 : index
    %208 = vector.load %arg32[%c192, %c0_163] : memref<768x80xf32, #tpu.memory_space<vmem>>, vector<192x80xf32>
    tpu.vector_store %arg32[%c192, %c0_163], %207 {strides = array<i32>} : memref<768x80xf32, #tpu.memory_space<vmem>>, vector<192x80xf32>,
    %c2_164 = arith.constant 2 : index
    %c0_165 = arith.constant 0 : index
    %c0_166 = arith.constant 0 : index
    %209 = vector.load %arg19[%c2_164, %c0_165, %c0_166] : memref<4x32x80xf32, #tpu.memory_space<vmem>>, vector<1x32x80xf32>
    %210 = vector.shape_cast %209 : vector<1x32x80xf32> to vector<32x80xf32>
    %cst_167 = arith.constant dense<0.000000e+00> : vector<192x80xf32>
    %211 = tpu.matmul %200, %210, %cst_167 {dimension_numbers = #tpu.dot_dimension_numbers<[1], [0], [0], [1], [0, 0, 1, 1], [], []>} : vector<192x32xf32>, vector<32x80xf32>, vector<192x80xf32> -> vector<192x80xf32>
    %c384 = arith.constant 384 : index
    %c0_168 = arith.constant 0 : index
    %212 = vector.load %arg32[%c384, %c0_168] : memref<768x80xf32, #tpu.memory_space<vmem>>, vector<192x80xf32>
    tpu.vector_store %arg32[%c384, %c0_168], %211 {strides = array<i32>} : memref<768x80xf32, #tpu.memory_space<vmem>>, vector<192x80xf32>,
    %c3_169 = arith.constant 3 : index
    %c0_170 = arith.constant 0 : index
    %c0_171 = arith.constant 0 : index
    %213 = vector.load %arg19[%c3_169, %c0_170, %c0_171] : memref<4x32x80xf32, #tpu.memory_space<vmem>>, vector<1x32x80xf32>
    %214 = vector.shape_cast %213 : vector<1x32x80xf32> to vector<32x80xf32>
    %cst_172 = arith.constant dense<0.000000e+00> : vector<192x80xf32>
    %215 = tpu.matmul %200, %214, %cst_172 {dimension_numbers = #tpu.dot_dimension_numbers<[1], [0], [0], [1], [0, 0, 1, 1], [], []>} : vector<192x32xf32>, vector<32x80xf32>, vector<192x80xf32> -> vector<192x80xf32>
    %c576 = arith.constant 576 : index
    %c0_173 = arith.constant 0 : index
    %216 = vector.load %arg32[%c576, %c0_173] : memref<768x80xf32, #tpu.memory_space<vmem>>, vector<192x80xf32>
    tpu.vector_store %arg32[%c576, %c0_173], %215 {strides = array<i32>} : memref<768x80xf32, #tpu.memory_space<vmem>>, vector<192x80xf32>,
    %c0_174 = arith.constant 0 : index
    %c0_175 = arith.constant 0 : index
    %217 = vector.load %arg32[%c0_174, %c0_175] : memref<768x80xf32, #tpu.memory_space<vmem>>, vector<768x80xf32>
    %c0_176 = arith.constant 0 : index
    %c0_177 = arith.constant 0 : index
    %218 = vector.load %arg20[%c0_176, %c0_177] : memref<1x80xf32, #tpu.memory_space<vmem>>, vector<1x80xf32>
    %219 = vector.broadcast %218 : vector<1x80xf32> to vector<768x80xf32>
    %220 = arith.addf %217, %219 : vector<768x80xf32>
    %cst_178 = arith.constant dense<0.000000e+00> : vector<80xf32>
    %221 = vector.multi_reduction <add>, %220, %cst_178 [0] : vector<768x80xf32> to vector<80xf32>
    %222 = vector.shape_cast %221 : vector<80xf32> to vector<1x80xf32>
    %cst_179 = arith.constant 7.680000e+02 : f32
    %223 = vector.broadcast %cst_179 : f32 to vector<1x80xf32>
    %224 = arith.divf %222, %223 : vector<1x80xf32>
    %225 = vector.broadcast %224 : vector<1x80xf32> to vector<768x80xf32>
    %226 = arith.subf %220, %225 : vector<768x80xf32>
    %227 = arith.mulf %226, %226 : vector<768x80xf32>
    %cst_180 = arith.constant dense<0.000000e+00> : vector<80xf32>
    %228 = vector.multi_reduction <add>, %227, %cst_180 [0] : vector<768x80xf32> to vector<80xf32>
    %229 = vector.shape_cast %228 : vector<80xf32> to vector<1x80xf32>
    %cst_181 = arith.constant 7.680000e+02 : f32
    %230 = vector.broadcast %cst_181 : f32 to vector<1x80xf32>
    %231 = arith.divf %229, %230 : vector<1x80xf32>
    %232 = vector.broadcast %224 : vector<1x80xf32> to vector<768x80xf32>
    %233 = arith.subf %220, %232 : vector<768x80xf32>
    %cst_182 = arith.constant 9.99999974E-6 : f32
    %234 = vector.broadcast %cst_182 : f32 to vector<1x80xf32>
    %235 = arith.addf %231, %234 : vector<1x80xf32>
    %236 = math.rsqrt %235 : vector<1x80xf32>
    %237 = vector.broadcast %236 : vector<1x80xf32> to vector<768x80xf32>
    %238 = arith.mulf %233, %237 : vector<768x80xf32>
    %c0_183 = arith.constant 0 : index
    %c0_184 = arith.constant 0 : index
    %239 = vector.load %arg21[%c0_183, %c0_184] : memref<1x80xf32, #tpu.memory_space<vmem>>, vector<1x80xf32>
    %240 = vector.broadcast %239 : vector<1x80xf32> to vector<768x80xf32>
    %241 = arith.mulf %238, %240 : vector<768x80xf32>
    %c0_185 = arith.constant 0 : index
    %c0_186 = arith.constant 0 : index
    %242 = vector.load %arg22[%c0_185, %c0_186] : memref<1x80xf32, #tpu.memory_space<vmem>>, vector<1x80xf32>
    %243 = vector.broadcast %242 : vector<1x80xf32> to vector<768x80xf32>
    %244 = arith.addf %241, %243 : vector<768x80xf32>
    %cst_187 = arith.constant 0.000000e+00 : f32
    %245 = vector.broadcast %cst_187 : f32 to vector<768x80xf32>
    %246 = arith.maximumf %244, %245 : vector<768x80xf32>
    %c0_188 = arith.constant 0 : index
    %c0_189 = arith.constant 0 : index
    %247 = vector.load %arg23[%c0_188, %c0_189] : memref<80x60xf32, #tpu.memory_space<vmem>>, vector<80x60xf32>
    %cst_190 = arith.constant dense<0.000000e+00> : vector<768x60xf32>
    %248 = tpu.matmul %246, %247, %cst_190 {dimension_numbers = #tpu.dot_dimension_numbers<[1], [0], [0], [1], [0, 0, 1, 1], [], []>} : vector<768x80xf32>, vector<80x60xf32>, vector<768x60xf32> -> vector<768x60xf32>
    %c0_191 = arith.constant 0 : index
    %c0_192 = arith.constant 0 : index
    %249 = vector.load %arg24[%c0_191, %c0_192] : memref<1x60xf32, #tpu.memory_space<vmem>>, vector<1x60xf32>
    %250 = vector.broadcast %249 : vector<1x60xf32> to vector<768x60xf32>
    %251 = arith.addf %248, %250 : vector<768x60xf32>
    %cst_193 = arith.constant dense<0.000000e+00> : vector<60xf32>
    %252 = vector.multi_reduction <add>, %251, %cst_193 [0] : vector<768x60xf32> to vector<60xf32>
    %253 = vector.shape_cast %252 : vector<60xf32> to vector<1x60xf32>
    %cst_194 = arith.constant 7.680000e+02 : f32
    %254 = vector.broadcast %cst_194 : f32 to vector<1x60xf32>
    %255 = arith.divf %253, %254 : vector<1x60xf32>
    %c0_195 = arith.constant 0 : index
    %c0_196 = arith.constant 0 : index
    %256 = vector.load %arg27[%c0_195, %c0_196] : memref<60x60xf32, #tpu.memory_space<vmem>>, vector<60x60xf32>
    %cst_197 = arith.constant dense<0.000000e+00> : vector<1x60xf32>
    %257 = tpu.matmul %255, %256, %cst_197 {dimension_numbers = #tpu.dot_dimension_numbers<[1], [0], [0], [1], [0, 0, 1, 1], [], []>} : vector<1x60xf32>, vector<60x60xf32>, vector<1x60xf32> -> vector<1x60xf32>
    %258 = vector.broadcast %257 : vector<1x60xf32> to vector<768x60xf32>
    %259 = arith.subf %251, %258 : vector<768x60xf32>
    %260 = arith.mulf %259, %259 : vector<768x60xf32>
    %cst_198 = arith.constant dense<0.000000e+00> : vector<60xf32>
    %261 = vector.multi_reduction <add>, %260, %cst_198 [0] : vector<768x60xf32> to vector<60xf32>
    %262 = vector.shape_cast %261 : vector<60xf32> to vector<1x60xf32>
    %cst_199 = arith.constant 7.680000e+02 : f32
    %263 = vector.broadcast %cst_199 : f32 to vector<1x60xf32>
    %264 = arith.divf %262, %263 : vector<1x60xf32>
    %c0_200 = arith.constant 0 : index
    %c0_201 = arith.constant 0 : index
    %265 = vector.load %arg27[%c0_200, %c0_201] : memref<60x60xf32, #tpu.memory_space<vmem>>, vector<60x60xf32>
    %cst_202 = arith.constant dense<0.000000e+00> : vector<1x60xf32>
    %266 = tpu.matmul %264, %265, %cst_202 {dimension_numbers = #tpu.dot_dimension_numbers<[1], [0], [0], [1], [0, 0, 1, 1], [], []>} : vector<1x60xf32>, vector<60x60xf32>, vector<1x60xf32> -> vector<1x60xf32>
    %cst_203 = arith.constant 9.99999974E-6 : f32
    %267 = vector.broadcast %cst_203 : f32 to vector<1x60xf32>
    %268 = arith.addf %266, %267 : vector<1x60xf32>
    %269 = math.rsqrt %268 : vector<1x60xf32>
    %270 = vector.broadcast %269 : vector<1x60xf32> to vector<768x60xf32>
    %271 = arith.mulf %259, %270 : vector<768x60xf32>
    %c0_204 = arith.constant 0 : index
    %c0_205 = arith.constant 0 : index
    %272 = vector.load %arg25[%c0_204, %c0_205] : memref<1x60xf32, #tpu.memory_space<vmem>>, vector<1x60xf32>
    %273 = vector.broadcast %272 : vector<1x60xf32> to vector<768x60xf32>
    %274 = arith.mulf %271, %273 : vector<768x60xf32>
    %c0_206 = arith.constant 0 : index
    %c0_207 = arith.constant 0 : index
    %275 = vector.load %arg26[%c0_206, %c0_207] : memref<1x60xf32, #tpu.memory_space<vmem>>, vector<1x60xf32>
    %276 = vector.broadcast %275 : vector<1x60xf32> to vector<768x60xf32>
    %277 = arith.addf %274, %276 : vector<768x60xf32>
    %cst_208 = arith.constant 0.000000e+00 : f32
    %278 = vector.broadcast %cst_208 : f32 to vector<768x60xf32>
    %279 = arith.maximumf %277, %278 : vector<768x60xf32>
    %c0_209 = arith.constant 0 : index
    %c0_210 = arith.constant 0 : index
    %280 = vector.load %arg28[%c0_209, %c0_210] : memref<768x60xf32, #tpu.memory_space<vmem>>, vector<768x60xf32>
    tpu.vector_store %arg28[%c0_209, %c0_210], %279 {strides = array<i32>} : memref<768x60xf32, #tpu.memory_space<vmem>>, vector<768x60xf32>,
    return
  }
  func.func @transform_0(%arg0: i32) -> (i32, i32) {
    %c0_i32 = arith.constant 0 : i32
    %c0_i32_0 = arith.constant 0 : i32
    %c0_i32_1 = arith.constant 0 : i32
    return %c0_i32, %c0_i32_0 : i32, i32
  }
  func.func @transform_1(%arg0: i32) -> (i32, i32, i32) {
    %c0_i32 = arith.constant 0 : i32
    %c0_i32_0 = arith.constant 0 : i32
    %c0_i32_1 = arith.constant 0 : i32
    %c0_i32_2 = arith.constant 0 : i32
    return %c0_i32, %c0_i32_0, %c0_i32_1 : i32, i32, i32
  }
  func.func @transform_2(%arg0: i32) -> (i32, i32, i32) {
    %c0_i32 = arith.constant 0 : i32
    %c0_i32_0 = arith.constant 0 : i32
    %c0_i32_1 = arith.constant 0 : i32
    %c0_i32_2 = arith.constant 0 : i32
    return %c0_i32, %c0_i32_0, %c0_i32_1 : i32, i32, i32
  }
  func.func @transform_3(%arg0: i32) -> (i32, i32) {
    %c0_i32 = arith.constant 0 : i32
    %c0_i32_0 = arith.constant 0 : i32
    %c0_i32_1 = arith.constant 0 : i32
    return %c0_i32, %c0_i32_0 : i32, i32
  }
  func.func @transform_4(%arg0: i32) -> (i32, i32) {
    %c0_i32 = arith.constant 0 : i32
    %c0_i32_0 = arith.constant 0 : i32
    %c0_i32_1 = arith.constant 0 : i32
    return %c0_i32, %c0_i32_0 : i32, i32
  }
  func.func @transform_5(%arg0: i32) -> (i32, i32) {
    %c0_i32 = arith.constant 0 : i32
    %c0_i32_0 = arith.constant 0 : i32
    %c0_i32_1 = arith.constant 0 : i32
    return %c0_i32, %c0_i32_0 : i32, i32
  }
  func.func @transform_6(%arg0: i32) -> (i32, i32, i32) {
    %c0_i32 = arith.constant 0 : i32
    %c0_i32_0 = arith.constant 0 : i32
    %c0_i32_1 = arith.constant 0 : i32
    %c0_i32_2 = arith.constant 0 : i32
    return %c0_i32, %c0_i32_0, %c0_i32_1 : i32, i32, i32
  }
  func.func @transform_7(%arg0: i32) -> (i32, i32) {
    %c0_i32 = arith.constant 0 : i32
    %c0_i32_0 = arith.constant 0 : i32
    %c0_i32_1 = arith.constant 0 : i32
    return %c0_i32, %c0_i32_0 : i32, i32
  }
  func.func @transform_8(%arg0: i32) -> (i32, i32) {
    %c0_i32 = arith.constant 0 : i32
    %c0_i32_0 = arith.constant 0 : i32
    %c0_i32_1 = arith.constant 0 : i32
    return %c0_i32, %c0_i32_0 : i32, i32
  }
  func.func @transform_9(%arg0: i32) -> (i32, i32) {
    %c0_i32 = arith.constant 0 : i32
    %c0_i32_0 = arith.constant 0 : i32
    %c0_i32_1 = arith.constant 0 : i32
    return %c0_i32, %c0_i32_0 : i32, i32
  }
  func.func @transform_10(%arg0: i32) -> (i32, i32, i32) {
    %c0_i32 = arith.constant 0 : i32
    %c0_i32_0 = arith.constant 0 : i32
    %c0_i32_1 = arith.constant 0 : i32
    %c0_i32_2 = arith.constant 0 : i32
    return %c0_i32, %c0_i32_0, %c0_i32_1 : i32, i32, i32
  }
  func.func @transform_11(%arg0: i32) -> (i32, i32) {
    %c0_i32 = arith.constant 0 : i32
    %c0_i32_0 = arith.constant 0 : i32
    %c0_i32_1 = arith.constant 0 : i32
    return %c0_i32, %c0_i32_0 : i32, i32
  }
  func.func @transform_12(%arg0: i32) -> (i32, i32) {
    %c0_i32 = arith.constant 0 : i32
    %c0_i32_0 = arith.constant 0 : i32
    %c0_i32_1 = arith.constant 0 : i32
    return %c0_i32, %c0_i32_0 : i32, i32
  }
  func.func @transform_13(%arg0: i32) -> (i32, i32) {
    %c0_i32 = arith.constant 0 : i32
    %c0_i32_0 = arith.constant 0 : i32
    %c0_i32_1 = arith.constant 0 : i32
    return %c0_i32, %c0_i32_0 : i32, i32
  }
  func.func @transform_14(%arg0: i32) -> (i32, i32, i32) {
    %c0_i32 = arith.constant 0 : i32
    %c0_i32_0 = arith.constant 0 : i32
    %c0_i32_1 = arith.constant 0 : i32
    %c0_i32_2 = arith.constant 0 : i32
    return %c0_i32, %c0_i32_0, %c0_i32_1 : i32, i32, i32
  }
  func.func @transform_15(%arg0: i32) -> (i32, i32) {
    %c0_i32 = arith.constant 0 : i32
    %c0_i32_0 = arith.constant 0 : i32
    %c0_i32_1 = arith.constant 0 : i32
    return %c0_i32, %c0_i32_0 : i32, i32
  }
  func.func @transform_16(%arg0: i32) -> (i32, i32) {
    %c0_i32 = arith.constant 0 : i32
    %c0_i32_0 = arith.constant 0 : i32
    %c0_i32_1 = arith.constant 0 : i32
    return %c0_i32, %c0_i32_0 : i32, i32
  }
  func.func @transform_17(%arg0: i32) -> (i32, i32) {
    %c0_i32 = arith.constant 0 : i32
    %c0_i32_0 = arith.constant 0 : i32
    %c0_i32_1 = arith.constant 0 : i32
    return %c0_i32, %c0_i32_0 : i32, i32
  }
  func.func @transform_18(%arg0: i32) -> (i32, i32, i32) {
    %c0_i32 = arith.constant 0 : i32
    %c0_i32_0 = arith.constant 0 : i32
    %c0_i32_1 = arith.constant 0 : i32
    %c0_i32_2 = arith.constant 0 : i32
    return %c0_i32, %c0_i32_0, %c0_i32_1 : i32, i32, i32
  }
  func.func @transform_19(%arg0: i32) -> (i32, i32) {
    %c0_i32 = arith.constant 0 : i32
    %c0_i32_0 = arith.constant 0 : i32
    %c0_i32_1 = arith.constant 0 : i32
    return %c0_i32, %c0_i32_0 : i32, i32
  }
  func.func @transform_20(%arg0: i32) -> (i32, i32) {
    %c0_i32 = arith.constant 0 : i32
    %c0_i32_0 = arith.constant 0 : i32
    %c0_i32_1 = arith.constant 0 : i32
    return %c0_i32, %c0_i32_0 : i32, i32
  }
  func.func @transform_21(%arg0: i32) -> (i32, i32) {
    %c0_i32 = arith.constant 0 : i32
    %c0_i32_0 = arith.constant 0 : i32
    %c0_i32_1 = arith.constant 0 : i32
    return %c0_i32, %c0_i32_0 : i32, i32
  }
  func.func @transform_22(%arg0: i32) -> (i32, i32) {
    %c0_i32 = arith.constant 0 : i32
    %c0_i32_0 = arith.constant 0 : i32
    %c0_i32_1 = arith.constant 0 : i32
    return %c0_i32, %c0_i32_0 : i32, i32
  }
  func.func @transform_23(%arg0: i32) -> (i32, i32) {
    %c0_i32 = arith.constant 0 : i32
    %c0_i32_0 = arith.constant 0 : i32
    %c0_i32_1 = arith.constant 0 : i32
    return %c0_i32, %c0_i32_0 : i32, i32
  }
  func.func @transform_24(%arg0: i32) -> (i32, i32) {
    %c0_i32 = arith.constant 0 : i32
    %c0_i32_0 = arith.constant 0 : i32
    %c0_i32_1 = arith.constant 0 : i32
    return %c0_i32, %c0_i32_0 : i32, i32
  }
  func.func @transform_25(%arg0: i32) -> (i32, i32) {
    %c0_i32 = arith.constant 0 : i32
    %c0_i32_0 = arith.constant 0 : i32
    %c0_i32_1 = arith.constant 0 : i32
    return %c0_i32, %c0_i32_0 : i32, i32
  }
  func.func @transform_26(%arg0: i32) -> (i32, i32) {
    %c0_i32 = arith.constant 0 : i32
    %c0_i32_0 = arith.constant 0 : i32
    %c0_i32_1 = arith.constant 0 : i32
    return %c0_i32, %c0_i32_0 : i32, i32
  }
  func.func @transform_27(%arg0: i32) -> (i32, i32) {
    %c0_i32 = arith.constant 0 : i32
    %c0_i32_0 = arith.constant 0 : i32
    %c0_i32_1 = arith.constant 0 : i32
    return %c0_i32, %c0_i32_0 : i32, i32
  }
}

</mosaic_0001>

<bundles_post_ra>
// kernel: generator_forward.1
= control target key start
LH: loop header
LB: loop body
LE: loop exit
PB: predicated region body
PF: predicated region fallthrough
CT: control target
= control target key end

     0   :  { %s16792_s0 = inlined_call_operand.hbm [shape: f32[2,128], index: 0, kind: input, shape index: {}]   ;;  %s16793_s1 = inlined_call_operand.vmem [shape: f32[4,8,2], index: 1, kind: input, shape index: {}]   ;;  %s16794_s2 = inlined_call_operand.hbm [shape: f32[4,128,256], index: 2, kind: input, shape index: {}]   ;;  %s16795_s3 = inlined_call_operand.hbm [shape: f32[1,256], index: 3, kind: input, shape index: {}]   ;;  %s16796_s4 = inlined_call_operand.hbm [shape: f32[1,256], index: 4, kind: input, shape index: {}]   ;;  %s16797_s5 = inlined_call_operand.hbm [shape: f32[1,256], index: 5, kind: input, shape index: {}]   ;;  %s16798_s6 = inlined_call_operand.hbm [shape: f32[4,256,128], index: 6, kind: input, shape index: {}]   ;;  %s16799_s7 = inlined_call_operand.hbm [shape: f32[1,128], index: 7, kind: input, shape index: {}]   ;;  %s16800_s8 = inlined_call_operand.hbm [shape: f32[1,128], index: 8, kind: input, shape index: {}]   ;;  %s16801_s9 = inlined_call_operand.hbm [shape: f32[1,128], index: 9, kind: input, shape index: {}]   ;;  %s16802_s10 = inlined_call_operand.vmem [shape: f32[4,128,64], index: 10, kind: input, shape index: {}]   ;;  %s16803_s11 = inlined_call_operand.hbm [shape: f32[1,64], index: 11, kind: input, shape index: {}]   ;;  %s16804_s12 = inlined_call_operand.hbm [shape: f32[1,64], index: 12, kind: input, shape index: {}]   ;;  %s16805_s13 = inlined_call_operand.hbm [shape: f32[1,64], index: 13, kind: input, shape index: {}]   ;;  %s16806_s14 = inlined_call_operand.vmem [shape: f32[3,64,32], index: 14, kind: input, shape index: {}]   ;;  %s16807_s15 = inlined_call_operand.hbm [shape: f32[1,32], index: 15, kind: input, shape index: {}]   ;;  %s16808_s16 = inlined_call_operand.hbm [shape: f32[1,32], index: 16, kind: input, shape index: {}]   ;;  %s16809_s17 = inlined_call_operand.hbm [shape: f32[1,32], index: 17, kind: input, shape index: {}]   ;;  %s16810_s18 = inlined_call_operand.hbm [shape: f32[4,32,80], index: 18, kind: input, shape index: {}]   ;;  %s16811_s19 = inlined_call_operand.hbm [shape: f32[1,80], index: 19, kind: input, shape index: {}]   ;;  %s16812_s20 = inlined_call_operand.hbm [shape: f32[1,80], index: 20, kind: input, shape index: {}]   ;;  %s16813_s21 = inlined_call_operand.hbm [shape: f32[1,80], index: 21, kind: input, shape index: {}]   ;;  %s16814_s22 = inlined_call_operand.vmem [shape: f32[80,60], index: 22, kind: input, shape index: {}]   ;;  %s16815_s23 = inlined_call_operand.hbm [shape: f32[1,60], index: 23, kind: input, shape index: {}]   ;;  %s16816_s24 = inlined_call_operand.hbm [shape: f32[1,60], index: 24, kind: input, shape index: {}]   ;;  %s16817_s25 = inlined_call_operand.hbm [shape: f32[1,60], index: 25, kind: input, shape index: {}]   ;;  %s16818_s26 = inlined_call_operand.hbm [shape: f32[60,60], index: 26, kind: input, shape index: {}]   ;;  %s16819_s27 = inlined_call_operand.vmem [shape: f32[768,60], index: 27, kind: output, shape index: {}]  }
   0x1   :  { %17049 = sst [smem:[#allocation126_spill]] %s16792_s0 }
   0x2   :  { %17050 = sst [smem:[#allocation127_spill]] %s16793_s1 }
   0x3   :  { %17051 = sst [smem:[#allocation128_spill]] %s16794_s2 }
   0x4   :  { %17052 = sst [smem:[#allocation129_spill]] %s16795_s3 }
   0x5   :  { %17053 = sst [smem:[#allocation130_spill]] %s16796_s4 }
   0x6   :  { %17054 = sst [smem:[#allocation131_spill]] %s16797_s5 }
   0x7   :  { %17055 = sst [smem:[#allocation132_spill]] %s16798_s6 }
   0x8   :  { %17056 = sst [smem:[#allocation133_spill]] %s16799_s7 }
   0x9   :  { %17057 = sst [smem:[#allocation134_spill]] %s16800_s8 }
   0xa   :  { %17058 = sst [smem:[#allocation135_spill]] %s16801_s9 }
   0xb   :  { %17059 = sst [smem:[#allocation136_spill]] %s16802_s10 }
   0xc   :  { %17060 = sst [smem:[#allocation137_spill]] %s16803_s11 }
   0xd   :  { %17061 = sst [smem:[#allocation138_spill]] %s16806_s14 }
   0xe   :  { %17062 = sst [smem:[#allocation139_spill]] %s16814_s22 }
   0xf   :  { %17063 = sst [smem:[#allocation140_spill]] %s16819_s27 }
  0x10   :  { %32 = vsyncpa [#allocation7], 0 }
  0x11   :  { %33 = vsyncpa [#allocation9], 0 }
  0x12   :  { %34 = vsyncpa [#allocation12], 0 }
  0x13   :  { %35 = vsyncpa [#allocation15], 0 }
  0x14   :  { %36 = vsyncpa [#allocation18], 0 }
  0x15   :  { %37 = vsyncpa [#allocation21], 0 }
  0x16   :  { %38 = vsyncpa [#allocation24], 0 }
  0x17   :  { %39 = vsyncpa [#allocation27], 0 }
  0x18   :  { %40 = vsyncpa [#allocation30], 0 }
  0x19   :  { %41 = vsyncpa [#allocation33], 0 }
  0x1a   :  { %42 = vsyncpa [#allocation36], 0 }
  0x1b   :  { %43 = vsyncpa [#allocation39], 0  ;;  %s10186_s7 = smov [#allocation8]   ;;  %s17064_s9 = sld [smem:[#allocation128_spill]] }
  0x1c   :  { %s61_s4 = sshll.u32 %s10186_s7, 4  ;;  %s62_s4 = int_to_ptr.vmem [resolvable:$true] %s61_s4 }
  0x21   :  { %s9656_s5 = scalar_lea.hbm %s17064_s9, 16384 }
  0x22   :  { %p9657_p0 = scmp.ne.s32.totalorder %s17064_s9, %s9656_s5  ;;  %p9660_p1 = scmp.lt.u32.totalorder %s9656_s5, %s17064_s9 }
  0x24   :  { %p9662_p2 = pnand %p9660_p1, %p9657_p0 }
  0x26   :  { %9665 = shalt.err (!%p9662_p2)
}
  0x27   :  { %s9666_s1 = scalar_lea.vmem %s62_s4, 16384  ;;  %p9671_p4 = scmp.lt.s32.totalorder %s62_s4, %s62_s4 }
  0x28   :  { %p9667_p3 = scmp.ne.s32.totalorder %s62_s4, %s9666_s1  ;;  %p9672_p5 = scmp.lt.s32.totalorder %s9666_s1, %s9666_s1 }
  0x2a   :  { %p9673_p6 = por %p9672_p5, %p9671_p4 }
  0x2c   :  { %p9674_p7 = pnand %p9673_p6, %p9667_p3 }
  0x2e   :  { %9677 = shalt.err (!%p9674_p7)
}
  0x2f   :  { %s10187_s6 = smov 256   ;;  %s10188_s11 = smov 16  }
  0x30   :  { %67 = dma.hbm_to_vmem [thread:$0]  %s17064_s9, 16384, %s62_s4, [#allocation9], %s10187_s6, %s10187_s6, %s10188_s11  }
  0x31   :  { %s10189_s7 = smov [#allocation11]   ;;  %s10190_s30 = smov [#allocation14]  }
  0x32   :  { %s84_s8 = sshll.u32 %s10189_s7, 4  ;;  %s103_s5 = sshll.u32 %s10190_s30, 4  ;;  %s85_s8 = int_to_ptr.vmem [resolvable:$true] %s84_s8  ;;  %s104_s5 = int_to_ptr.vmem [resolvable:$true] %s103_s5 }
  0x33   :  { %s17065_s10 = sld [smem:[#allocation130_spill]] }
  0x39   :  { %s9678_s29 = scalar_lea.hbm %s17065_s10, 32 }
  0x3a   :  { %p9679_p8 = scmp.ne.s32.totalorder %s17065_s10, %s9678_s29  ;;  %p9682_p9 = scmp.lt.u32.totalorder %s9678_s29, %s17065_s10 }
  0x3c   :  { %p9684_p10 = pnand %p9682_p9, %p9679_p8 }
  0x3e   :  { %9687 = shalt.err (!%p9684_p10)
}
  0x3f   :  { %s9688_s4 = scalar_lea.vmem %s85_s8, 32  ;;  %p9693_p12 = scmp.lt.s32.totalorder %s85_s8, %s85_s8 }
  0x40   :  { %p9689_p11 = scmp.ne.s32.totalorder %s85_s8, %s9688_s4  ;;  %p9694_p13 = scmp.lt.s32.totalorder %s9688_s4, %s9688_s4 }
  0x42   :  { %p9695_p0 = por %p9694_p13, %p9693_p12 }
  0x44   :  { %p9696_p1 = pnand %p9695_p0, %p9689_p11 }
  0x46   :  { %9699 = shalt.err (!%p9696_p1)
}
  0x47   :  { %87 = dma.hbm_to_vmem [thread:$0]  %s17065_s10, 32, %s85_s8, [#allocation12]  }
  0x48   :  { %s17066_s2 = sld [smem:[#allocation132_spill]] }
  0x4e   :  { %s9700_s3 = scalar_lea.hbm %s17066_s2, 16384 }
  0x4f   :  { %p9701_p2 = scmp.ne.s32.totalorder %s17066_s2, %s9700_s3  ;;  %p9704_p3 = scmp.lt.u32.totalorder %s9700_s3, %s17066_s2 }
  0x51   :  { %p9706_p4 = pnand %p9704_p3, %p9701_p2 }
  0x53   :  { %9709 = shalt.err (!%p9706_p4)
}
  0x54   :  { %s9710_s28 = scalar_lea.vmem %s104_s5, 16384  ;;  %p9715_p6 = scmp.lt.s32.totalorder %s104_s5, %s104_s5 }
  0x55   :  { %p9711_p5 = scmp.ne.s32.totalorder %s104_s5, %s9710_s28  ;;  %p9716_p7 = scmp.lt.s32.totalorder %s9710_s28, %s9710_s28 }
  0x57   :  { %p9717_p8 = por %p9716_p7, %p9715_p6 }
  0x59   :  { %p9718_p9 = pnand %p9717_p8, %p9711_p5 }
  0x5b   :  { %9721 = shalt.err (!%p9718_p9)
}
  0x5c   :  { %s10191_s8 = smov 128   ;;  %s10192_s0 = smov 8  }
  0x5d   :  { %109 = dma.hbm_to_vmem [thread:$0]  %s17066_s2, 16384, %s104_s5, [#allocation15], %s10191_s8, %s10191_s8, %s10192_s0  }
  0x5e   :  { %s10193_s1 = smov [#allocation17]   ;;  %s10194_s9 = smov [#allocation20]  }
  0x5f   :  { %s126_s4 = sshll.u32 %s10193_s1, 4  ;;  %s148_s6 = sshll.u32 %s10194_s9, 4  ;;  %s127_s4 = int_to_ptr.vmem [resolvable:$true] %s126_s4  ;;  %s149_s6 = int_to_ptr.vmem [resolvable:$true] %s148_s6 }
  0x60   :  { %s17067_s3 = sld [smem:[#allocation134_spill]] }
  0x66   :  { %s9722_s14 = scalar_lea.hbm %s17067_s3, 16 }
  0x67   :  { %p9723_p10 = scmp.ne.s32.totalorder %s17067_s3, %s9722_s14  ;;  %p9726_p11 = scmp.lt.u32.totalorder %s9722_s14, %s17067_s3 }
  0x69   :  { %p9728_p12 = pnand %p9726_p11, %p9723_p10 }
  0x6b   :  { %9731 = shalt.err (!%p9728_p12)
}
  0x6c   :  { %s9732_s5 = scalar_lea.vmem %s127_s4, 16  ;;  %s9736_s2 = scalar_lea.vmem %s127_s4, 32 }
  0x6d   :  { %p9733_p13 = scmp.ne.s32.totalorder %s127_s4, %s9732_s5  ;;  %p9737_p0 = scmp.lt.s32.totalorder %s127_s4, %s127_s4 }
  0x6e   :  { %p9738_p1 = scmp.lt.s32.totalorder %s9736_s2, %s9732_s5 }
  0x70   :  { %p9739_p2 = por %p9738_p1, %p9737_p0 }
  0x72   :  { %p9740_p3 = pnand %p9739_p2, %p9733_p13 }
  0x74   :  { %9743 = shalt.err (!%p9740_p3)
}
  0x75   :  { %129 = dma.hbm_to_vmem [thread:$0]  %s17067_s3, 16, %s127_s4, [#allocation18]  }
  0x76   :  { %s17068_s27 = sld [smem:[#allocation137_spill]] }
  0x7c   :  { %s9744_s11 = scalar_lea.hbm %s17068_s27, 16 }
  0x7d   :  { %p9745_p4 = scmp.ne.s32.totalorder %s17068_s27, %s9744_s11  ;;  %p9748_p5 = scmp.lt.u32.totalorder %s9744_s11, %s17068_s27 }
  0x7f   :  { %p9750_p6 = pnand %p9748_p5, %p9745_p4 }
  0x81   :  { %9753 = shalt.err (!%p9750_p6)
}
  0x82   :  { %s9754_s28 = scalar_lea.vmem %s149_s6, 16  ;;  %s9758_s5 = scalar_lea.vmem %s149_s6, 32 }
  0x83   :  { %p9755_p7 = scmp.ne.s32.totalorder %s149_s6, %s9754_s28  ;;  %p9759_p8 = scmp.lt.s32.totalorder %s149_s6, %s149_s6 }
  0x84   :  { %p9760_p9 = scmp.lt.s32.totalorder %s9758_s5, %s9754_s28 }
  0x86   :  { %p9761_p10 = por %p9760_p9, %p9759_p8 }
  0x88   :  { %p9762_p11 = pnand %p9761_p10, %p9755_p7 }
  0x8a   :  { %9765 = shalt.err (!%p9762_p11)
}
  0x8b   :  { %151 = dma.hbm_to_vmem [thread:$0]  %s17068_s27, 16, %s149_s6, [#allocation21]  }
  0x8c   :  { %s10195_s2 = smov [#allocation23]   ;;  %s10196_s29 = smov [#allocation26]  }
  0x8d   :  { %s168_s10 = sshll.u32 %s10195_s2, 4  ;;  %s190_s1 = sshll.u32 %s10196_s29, 4  ;;  %s169_s10 = int_to_ptr.vmem [resolvable:$true] %s168_s10  ;;  %s191_s1 = int_to_ptr.vmem [resolvable:$true] %s190_s1 }
  0x8e   :  { %s9766_s14 = scalar_lea.hbm %s16805_s13, 16 }
  0x8f   :  { %p9767_p12 = scmp.ne.s32.totalorder %s16805_s13, %s9766_s14  ;;  %p9770_p13 = scmp.lt.u32.totalorder %s9766_s14, %s16805_s13 }
  0x91   :  { %p9772_p0 = pnand %p9770_p13, %p9767_p12 }
  0x93   :  { %9775 = shalt.err (!%p9772_p0)
}
  0x94   :  { %s9776_s6 = scalar_lea.vmem %s169_s10, 16  ;;  %s9780_s27 = scalar_lea.vmem %s169_s10, 32 }
  0x95   :  { %p9777_p1 = scmp.ne.s32.totalorder %s169_s10, %s9776_s6  ;;  %p9781_p2 = scmp.lt.s32.totalorder %s169_s10, %s169_s10 }
  0x96   :  { %p9782_p3 = scmp.lt.s32.totalorder %s9780_s27, %s9776_s6 }
  0x98   :  { %p9783_p4 = por %p9782_p3, %p9781_p2 }
  0x9a   :  { %p9784_p5 = pnand %p9783_p4, %p9777_p1 }
  0x9c   :  { %9787 = shalt.err (!%p9784_p5)
}
  0x9d   :  { %171 = dma.hbm_to_vmem [thread:$0]  %s16805_s13, 16, %s169_s10, [#allocation24]  }
  0x9e   :  { %s9788_s29 = scalar_lea.hbm %s16808_s16, 16 }
  0x9f   :  { %p9789_p6 = scmp.ne.s32.totalorder %s16808_s16, %s9788_s29  ;;  %p9792_p7 = scmp.lt.u32.totalorder %s9788_s29, %s16808_s16 }
  0xa1   :  { %p9794_p8 = pnand %p9792_p7, %p9789_p6 }
  0xa3   :  { %9797 = shalt.err (!%p9794_p8)
}
  0xa4   :  { %s9798_s7 = scalar_lea.vmem %s191_s1, 16  ;;  %s9802_s30 = scalar_lea.vmem %s191_s1, 32 }
  0xa5   :  { %p9799_p9 = scmp.ne.s32.totalorder %s191_s1, %s9798_s7  ;;  %p9803_p10 = scmp.lt.s32.totalorder %s191_s1, %s191_s1 }
  0xa6   :  { %p9804_p11 = scmp.lt.s32.totalorder %s9802_s30, %s9798_s7 }
  0xa8   :  { %p9805_p12 = por %p9804_p11, %p9803_p10 }
  0xaa   :  { %p9806_p13 = pnand %p9805_p12, %p9799_p9 }
  0xac   :  { %9809 = shalt.err (!%p9806_p13)
}
  0xad   :  { %193 = dma.hbm_to_vmem [thread:$0]  %s16808_s16, 16, %s191_s1, [#allocation27]  }
  0xae   :  { %s10197_s28 = smov [#allocation29]   ;;  %s10198_s27 = smov [#allocation32]  }
  0xaf   :  { %s209_s6 = sshll.u32 %s10197_s28, 4  ;;  %s232_s5 = sshll.u32 %s10198_s27, 4  ;;  %s210_s6 = int_to_ptr.vmem [resolvable:$true] %s209_s6  ;;  %s233_s5 = int_to_ptr.vmem [resolvable:$true] %s232_s5 }
  0xb0   :  { %s9810_s2 = scalar_lea.hbm %s16810_s18, 2048 }
  0xb1   :  { %p9811_p0 = scmp.ne.s32.totalorder %s16810_s18, %s9810_s2  ;;  %p9814_p1 = scmp.lt.u32.totalorder %s9810_s2, %s16810_s18 }
  0xb3   :  { %p9816_p2 = pnand %p9814_p1, %p9811_p0 }
  0xb5   :  { %9819 = shalt.err (!%p9816_p2)
}
  0xb6   :  { %s9820_s16 = scalar_lea.vmem %s210_s6, 2048  ;;  %p9825_p4 = scmp.lt.s32.totalorder %s210_s6, %s210_s6 }
  0xb7   :  { %p9821_p3 = scmp.ne.s32.totalorder %s210_s6, %s9820_s16  ;;  %p9826_p5 = scmp.lt.s32.totalorder %s9820_s16, %s9820_s16 }
  0xb9   :  { %p9827_p6 = por %p9826_p5, %p9825_p4 }
  0xbb   :  { %p9828_p7 = pnand %p9827_p6, %p9821_p3 }
  0xbd   :  { %9831 = shalt.err (!%p9828_p7)
}
  0xbe   :  { %215 = dma.hbm_to_vmem [thread:$0]  %s16810_s18, 2048, %s210_s6, [#allocation30], %s10191_s8, %s10191_s8, %s10192_s0  }
  0xbf   :  { %s9832_s13 = scalar_lea.hbm %s16812_s20, 16 }
  0xc0   :  { %p9833_p8 = scmp.ne.s32.totalorder %s16812_s20, %s9832_s13  ;;  %p9836_p9 = scmp.lt.u32.totalorder %s9832_s13, %s16812_s20 }
  0xc2   :  { %p9838_p10 = pnand %p9836_p9, %p9833_p8 }
  0xc4   :  { %9841 = shalt.err (!%p9838_p10)
}
  0xc5   :  { %s9842_s3 = scalar_lea.vmem %s233_s5, 16  ;;  %s9846_s2 = scalar_lea.vmem %s233_s5, 32 }
  0xc6   :  { %p9843_p11 = scmp.ne.s32.totalorder %s233_s5, %s9842_s3  ;;  %p9847_p12 = scmp.lt.s32.totalorder %s233_s5, %s233_s5 }
  0xc7   :  { %p9848_p13 = scmp.lt.s32.totalorder %s9846_s2, %s9842_s3 }
  0xc9   :  { %p9849_p0 = por %p9848_p13, %p9847_p12 }
  0xcb   :  { %p9850_p1 = pnand %p9849_p0, %p9843_p11 }
  0xcd   :  { %9853 = shalt.err (!%p9850_p1)
}
  0xce   :  { %235 = dma.hbm_to_vmem [thread:$0]  %s16812_s20, 16, %s233_s5, [#allocation33]  }
  0xcf   :  { %s10199_s29 = smov [#allocation35]   ;;  %s10200_s11 = smov [#allocation38]  }
  0xd0   :  { %s254_s9 = sshll.u32 %s10199_s29, 4  ;;  %s274_s14 = sshll.u32 %s10200_s11, 4  ;;  %s255_s9 = int_to_ptr.vmem [resolvable:$true] %s254_s9  ;;  %s275_s14 = int_to_ptr.vmem [resolvable:$true] %s274_s14 }
  0xd1   :  { %s9854_s22 = scalar_lea.hbm %s16815_s23, 16 }
  0xd2   :  { %p9855_p2 = scmp.ne.s32.totalorder %s16815_s23, %s9854_s22  ;;  %p9858_p3 = scmp.lt.u32.totalorder %s9854_s22, %s16815_s23 }
  0xd4   :  { %p9860_p4 = pnand %p9858_p3, %p9855_p2 }
  0xd6   :  { %9863 = shalt.err (!%p9860_p4)
}
  0xd7   :  { %s9864_s20 = scalar_lea.vmem %s255_s9, 16  ;;  %s9868_s5 = scalar_lea.vmem %s255_s9, 32 }
  0xd8   :  { %p9865_p5 = scmp.ne.s32.totalorder %s255_s9, %s9864_s20  ;;  %p9869_p6 = scmp.lt.s32.totalorder %s255_s9, %s255_s9 }
  0xd9   :  { %p9870_p7 = scmp.lt.s32.totalorder %s9868_s5, %s9864_s20 }
  0xdb   :  { %p9871_p8 = por %p9870_p7, %p9869_p6 }
  0xdd   :  { %p9872_p9 = pnand %p9871_p8, %p9865_p5 }
  0xdf   :  { %9875 = shalt.err (!%p9872_p9)
}
  0xe0   :  { %257 = dma.hbm_to_vmem [thread:$0]  %s16815_s23, 16, %s255_s9, [#allocation36]  }
  0xe1   :  { %s9876_s2 = scalar_lea.hbm %s16817_s25, 16 }
  0xe2   :  { %p9877_p10 = scmp.ne.s32.totalorder %s16817_s25, %s9876_s2  ;;  %p9880_p11 = scmp.lt.u32.totalorder %s9876_s2, %s16817_s25 }
  0xe4   :  { %p9882_p12 = pnand %p9880_p11, %p9877_p10 }
  0xe6   :  { %9885 = shalt.err (!%p9882_p12)
}
  0xe7   :  { %s9886_s16 = scalar_lea.vmem %s275_s14, 16  ;;  %s9890_s1 = scalar_lea.vmem %s275_s14, 32 }
  0xe8   :  { %p9887_p13 = scmp.ne.s32.totalorder %s275_s14, %s9886_s16  ;;  %p9891_p0 = scmp.lt.s32.totalorder %s275_s14, %s275_s14 }
  0xe9   :  { %p9892_p1 = scmp.lt.s32.totalorder %s9890_s1, %s9886_s16 }
  0xeb   :  { %p9893_p2 = por %p9892_p1, %p9891_p0 }
  0xed   :  { %p9894_p3 = pnand %p9893_p2, %p9887_p13 }
  0xef   :  { %9897 = shalt.err (!%p9894_p3)
}
  0xf0   :  { %277 = dma.hbm_to_vmem [thread:$0]  %s16817_s25, 16, %s275_s14, [#allocation39]  }
  0xf1   :  { %s10201_s22 = smov [#allocation6]   ;;  %s10202_s30 = smov [#allocation10]  }
  0xf2   :  { %s50_s7 = sshll.u32 %s10201_s22, 4  ;;  %s74_s13 = sshll.u32 %s10202_s30, 4  ;;  %s51_s7 = int_to_ptr.vmem [resolvable:$true] %s50_s7  ;;  %s75_s13 = int_to_ptr.vmem [resolvable:$true] %s74_s13 }
  0xf3   :  { %s17069_s5 = sld [smem:[#allocation126_spill]] }
  0xf9   :  { %s9898_s28 = scalar_lea.hbm %s17069_s5, 32 }
  0xfa   :  { %p9899_p4 = scmp.ne.s32.totalorder %s17069_s5, %s9898_s28  ;;  %p9902_p5 = scmp.lt.u32.totalorder %s9898_s28, %s17069_s5 }
  0xfc   :  { %p9904_p6 = pnand %p9902_p5, %p9899_p4 }
  0xfe   :  { %9907 = shalt.err (!%p9904_p6)
}
  0xff   :  { %s9908_s25 = scalar_lea.vmem %s51_s7, 32  ;;  %p9913_p8 = scmp.lt.s32.totalorder %s51_s7, %s51_s7 }
 0x100   :  { %p9909_p7 = scmp.ne.s32.totalorder %s51_s7, %s9908_s25  ;;  %p9914_p9 = scmp.lt.s32.totalorder %s9908_s25, %s9908_s25 }
 0x102   :  { %p9915_p10 = por %p9914_p9, %p9913_p8 }
 0x104   :  { %p9916_p11 = pnand %p9915_p10, %p9909_p7 }
 0x106   :  { %9919 = shalt.err (!%p9916_p11)
}
 0x107   :  { %53 = dma.hbm_to_vmem [thread:$0]  %s17069_s5, 32, %s51_s7, [#allocation7]  }
 0x108   :  { %s17070_s11 = sld [smem:[#allocation129_spill]] }
 0x10e   :  { %s9920_s16 = scalar_lea.hbm %s17070_s11, 32 }
 0x10f   :  { %p9921_p12 = scmp.ne.s32.totalorder %s17070_s11, %s9920_s16  ;;  %p9924_p13 = scmp.lt.u32.totalorder %s9920_s16, %s17070_s11 }
 0x111   :  { %p9926_p0 = pnand %p9924_p13, %p9921_p12 }
 0x113   :  { %9929 = shalt.err (!%p9926_p0)
}
 0x114   :  { %s9930_s30 = scalar_lea.vmem %s75_s13, 32  ;;  %p9935_p2 = scmp.lt.s32.totalorder %s75_s13, %s75_s13 }
 0x115   :  { %p9931_p1 = scmp.ne.s32.totalorder %s75_s13, %s9930_s30  ;;  %p9936_p3 = scmp.lt.s32.totalorder %s9930_s30, %s9930_s30 }
 0x117   :  { %p9937_p4 = por %p9936_p3, %p9935_p2 }
 0x119   :  { %p9938_p5 = pnand %p9937_p4, %p9931_p1 }
 0x11b   :  { %9941 = shalt.err (!%p9938_p5)
}
 0x11c   :  { %77 = dma.hbm_to_vmem [thread:$0]  %s17070_s11, 32, %s75_s13, [#allocation9]  }
 0x11d   :  { %s10203_s20 = smov [#allocation13]   ;;  %s10204_s28 = smov [#allocation16]  }
 0x11e   :  { %s94_s5 = sshll.u32 %s10203_s20, 4  ;;  %s116_s27 = sshll.u32 %s10204_s28, 4  ;;  %s95_s5 = int_to_ptr.vmem [resolvable:$true] %s94_s5  ;;  %s117_s27 = int_to_ptr.vmem [resolvable:$true] %s116_s27 }
 0x11f   :  { %s17071_s2 = sld [smem:[#allocation131_spill]] }
 0x125   :  { %s9942_s25 = scalar_lea.hbm %s17071_s2, 32 }
 0x126   :  { %p9943_p6 = scmp.ne.s32.totalorder %s17071_s2, %s9942_s25  ;;  %p9946_p7 = scmp.lt.u32.totalorder %s9942_s25, %s17071_s2 }
 0x128   :  { %p9948_p8 = pnand %p9946_p7, %p9943_p6 }
 0x12a   :  { %9951 = shalt.err (!%p9948_p8)
}
 0x12b   :  { %s9952_s13 = scalar_lea.vmem %s95_s5, 32  ;;  %p9957_p10 = scmp.lt.s32.totalorder %s95_s5, %s95_s5 }
 0x12c   :  { %p9953_p9 = scmp.ne.s32.totalorder %s95_s5, %s9952_s13  ;;  %p9958_p11 = scmp.lt.s32.totalorder %s9952_s13, %s9952_s13 }
 0x12e   :  { %p9959_p12 = por %p9958_p11, %p9957_p10 }
 0x130   :  { %p9960_p13 = pnand %p9959_p12, %p9953_p9 }
 0x132   :  { %9963 = shalt.err (!%p9960_p13)
}
 0x133   :  { %97 = dma.hbm_to_vmem [thread:$0]  %s17071_s2, 32, %s95_s5, [#allocation12]  }
 0x134   :  { %s17072_s9 = sld [smem:[#allocation133_spill]] }
 0x13a   :  { %s9964_s22 = scalar_lea.hbm %s17072_s9, 16 }
 0x13b   :  { %p9965_p0 = scmp.ne.s32.totalorder %s17072_s9, %s9964_s22  ;;  %p9968_p1 = scmp.lt.u32.totalorder %s9964_s22, %s17072_s9 }
 0x13d   :  { %p9970_p2 = pnand %p9968_p1, %p9965_p0 }
 0x13f   :  { %9973 = shalt.err (!%p9970_p2)
}
 0x140   :  { %s9974_s28 = scalar_lea.vmem %s117_s27, 16  ;;  %s9978_s4 = scalar_lea.vmem %s117_s27, 32 }
 0x141   :  { %p9975_p3 = scmp.ne.s32.totalorder %s117_s27, %s9974_s28  ;;  %p9979_p4 = scmp.lt.s32.totalorder %s117_s27, %s117_s27 }
 0x142   :  { %p9980_p5 = scmp.lt.s32.totalorder %s9978_s4, %s9974_s28 }
 0x144   :  { %p9981_p6 = por %p9980_p5, %p9979_p4 }
 0x146   :  { %p9982_p7 = pnand %p9981_p6, %p9975_p3 }
 0x148   :  { %9985 = shalt.err (!%p9982_p7)
}
 0x149   :  { %119 = dma.hbm_to_vmem [thread:$0]  %s17072_s9, 16, %s117_s27, [#allocation15]  }
 0x14a   :  { %s10205_s2 = smov [#allocation19]   ;;  %s10206_s14 = smov [#allocation22]  }
 0x14b   :  { %s136_s25 = sshll.u32 %s10205_s2, 4  ;;  %s158_s18 = sshll.u32 %s10206_s14, 4  ;;  %s137_s25 = int_to_ptr.vmem [resolvable:$true] %s136_s25  ;;  %s159_s18 = int_to_ptr.vmem [resolvable:$true] %s158_s18 }
 0x14c   :  { %s17073_s13 = sld [smem:[#allocation135_spill]] }
 0x152   :  { %s9986_s11 = scalar_lea.hbm %s17073_s13, 16 }
 0x153   :  { %p9987_p8 = scmp.ne.s32.totalorder %s17073_s13, %s9986_s11  ;;  %p9990_p9 = scmp.lt.u32.totalorder %s9986_s11, %s17073_s13 }
 0x155   :  { %p9992_p10 = pnand %p9990_p9, %p9987_p8 }
 0x157   :  { %9995 = shalt.err (!%p9992_p10)
}
 0x158   :  { %s9996_s27 = scalar_lea.vmem %s137_s25, 16  ;;  %s10000_s9 = scalar_lea.vmem %s137_s25, 32 }
 0x159   :  { %p9997_p11 = scmp.ne.s32.totalorder %s137_s25, %s9996_s27  ;;  %p10001_p12 = scmp.lt.s32.totalorder %s137_s25, %s137_s25 }
 0x15a   :  { %p10002_p13 = scmp.lt.s32.totalorder %s10000_s9, %s9996_s27 }
 0x15c   :  { %p10003_p0 = por %p10002_p13, %p10001_p12 }
 0x15e   :  { %p10004_p1 = pnand %p10003_p0, %p9997_p11 }
 0x160   :  { %10007 = shalt.err (!%p10004_p1)
}
 0x161   :  { %139 = dma.hbm_to_vmem [thread:$0]  %s17073_s13, 16, %s137_s25, [#allocation18]  }
 0x162   :  { %s10008_s28 = scalar_lea.hbm %s16804_s12, 16 }
 0x163   :  { %p10009_p2 = scmp.ne.s32.totalorder %s16804_s12, %s10008_s28  ;;  %p10012_p3 = scmp.lt.u32.totalorder %s10008_s28, %s16804_s12 }
 0x165   :  { %p10014_p4 = pnand %p10012_p3, %p10009_p2 }
 0x167   :  { %10017 = shalt.err (!%p10014_p4)
}
 0x168   :  { %s10018_s14 = scalar_lea.vmem %s159_s18, 16  ;;  %s10022_s6 = scalar_lea.vmem %s159_s18, 32 }
 0x169   :  { %p10019_p5 = scmp.ne.s32.totalorder %s159_s18, %s10018_s14  ;;  %p10023_p6 = scmp.lt.s32.totalorder %s159_s18, %s159_s18 }
 0x16a   :  { %p10024_p7 = scmp.lt.s32.totalorder %s10022_s6, %s10018_s14 }
 0x16c   :  { %p10025_p8 = por %p10024_p7, %p10023_p6 }
 0x16e   :  { %p10026_p9 = pnand %p10025_p8, %p10019_p5 }
 0x170   :  { %10029 = shalt.err (!%p10026_p9)
}
 0x171   :  { %161 = dma.hbm_to_vmem [thread:$0]  %s16804_s12, 16, %s159_s18, [#allocation21]  }
 0x172   :  { %s10207_s13 = smov [#allocation25]   ;;  %s10208_s16 = smov [#allocation28]  }
 0x173   :  { %s180_s11 = sshll.u32 %s10207_s13, 4  ;;  %s200_s1 = sshll.u32 %s10208_s16, 4  ;;  %s181_s11 = int_to_ptr.vmem [resolvable:$true] %s180_s11  ;;  %s201_s1 = int_to_ptr.vmem [resolvable:$true] %s200_s1 }
 0x174   :  { %s10030_s27 = scalar_lea.hbm %s16807_s15, 16 }
 0x175   :  { %p10031_p10 = scmp.ne.s32.totalorder %s16807_s15, %s10030_s27  ;;  %p10034_p11 = scmp.lt.u32.totalorder %s10030_s27, %s16807_s15 }
 0x177   :  { %p10036_p12 = pnand %p10034_p11, %p10031_p10 }
 0x179   :  { %10039 = shalt.err (!%p10036_p12)
}
 0x17a   :  { %s10040_s12 = scalar_lea.vmem %s181_s11, 16  ;;  %s10044_s18 = scalar_lea.vmem %s181_s11, 32 }
 0x17b   :  { %p10041_p13 = scmp.ne.s32.totalorder %s181_s11, %s10040_s12  ;;  %p10045_p0 = scmp.lt.s32.totalorder %s181_s11, %s181_s11 }
 0x17c   :  { %p10046_p1 = scmp.lt.s32.totalorder %s10044_s18, %s10040_s12 }
 0x17e   :  { %p10047_p2 = por %p10046_p1, %p10045_p0 }
 0x180   :  { %p10048_p3 = pnand %p10047_p2, %p10041_p13 }
 0x182   :  { %10051 = shalt.err (!%p10048_p3)
}
 0x183   :  { %183 = dma.hbm_to_vmem [thread:$0]  %s16807_s15, 16, %s181_s11, [#allocation24]  }
 0x184   :  { %s10052_s3 = scalar_lea.hbm %s16809_s17, 16 }
 0x185   :  { %p10053_p4 = scmp.ne.s32.totalorder %s16809_s17, %s10052_s3  ;;  %p10056_p5 = scmp.lt.u32.totalorder %s10052_s3, %s16809_s17 }
 0x187   :  { %p10058_p6 = pnand %p10056_p5, %p10053_p4 }
 0x189   :  { %10061 = shalt.err (!%p10058_p6)
}
 0x18a   :  { %s10062_s29 = scalar_lea.vmem %s201_s1, 16  ;;  %s10066_s13 = scalar_lea.vmem %s201_s1, 32 }
 0x18b   :  { %p10063_p7 = scmp.ne.s32.totalorder %s201_s1, %s10062_s29  ;;  %p10067_p8 = scmp.lt.s32.totalorder %s201_s1, %s201_s1 }
 0x18c   :  { %p10068_p9 = scmp.lt.s32.totalorder %s10066_s13, %s10062_s29 }
 0x18e   :  { %p10069_p10 = por %p10068_p9, %p10067_p8 }
 0x190   :  { %p10070_p11 = pnand %p10069_p10, %p10063_p7 }
 0x192   :  { %10073 = shalt.err (!%p10070_p11)
}
 0x193   :  { %203 = dma.hbm_to_vmem [thread:$0]  %s16809_s17, 16, %s201_s1, [#allocation27]  }
 0x194   :  { %s10209_s16 = smov [#allocation31]   ;;  %s10210_s22 = smov [#allocation34]  }
 0x195   :  { %s222_s23 = sshll.u32 %s10209_s16, 4  ;;  %s242_s27 = sshll.u32 %s10210_s22, 4  ;;  %s223_s23 = int_to_ptr.vmem [resolvable:$true] %s222_s23  ;;  %s243_s27 = int_to_ptr.vmem [resolvable:$true] %s242_s27 }
 0x196   :  { %s10074_s7 = scalar_lea.hbm %s16811_s19, 16 }
 0x197   :  { %p10075_p12 = scmp.ne.s32.totalorder %s16811_s19, %s10074_s7  ;;  %p10078_p13 = scmp.lt.u32.totalorder %s10074_s7, %s16811_s19 }
 0x199   :  { %p10080_p0 = pnand %p10078_p13, %p10075_p12 }
 0x19b   :  { %10083 = shalt.err (!%p10080_p0)
}
 0x19c   :  { %s10084_s17 = scalar_lea.vmem %s223_s23, 16  ;;  %s10088_s1 = scalar_lea.vmem %s223_s23, 32 }
 0x19d   :  { %p10085_p1 = scmp.ne.s32.totalorder %s223_s23, %s10084_s17  ;;  %p10089_p2 = scmp.lt.s32.totalorder %s223_s23, %s223_s23 }
 0x19e   :  { %p10090_p3 = scmp.lt.s32.totalorder %s10088_s1, %s10084_s17 }
 0x1a0   :  { %p10091_p4 = por %p10090_p3, %p10089_p2 }
 0x1a2   :  { %p10092_p5 = pnand %p10091_p4, %p10085_p1 }
 0x1a4   :  { %10095 = shalt.err (!%p10092_p5)
}
 0x1a5   :  { %225 = dma.hbm_to_vmem [thread:$0]  %s16811_s19, 16, %s223_s23, [#allocation30]  }
 0x1a6   :  { %s10096_s2 = scalar_lea.hbm %s16813_s21, 16 }
 0x1a7   :  { %p10097_p6 = scmp.ne.s32.totalorder %s16813_s21, %s10096_s2  ;;  %p10100_p7 = scmp.lt.u32.totalorder %s10096_s2, %s16813_s21 }
 0x1a9   :  { %p10102_p8 = pnand %p10100_p7, %p10097_p6 }
 0x1ab   :  { %10105 = shalt.err (!%p10102_p8)
}
 0x1ac   :  { %s10106_s13 = scalar_lea.vmem %s243_s27, 16  ;;  %s10110_s15 = scalar_lea.vmem %s243_s27, 32 }
 0x1ad   :  { %p10107_p9 = scmp.ne.s32.totalorder %s243_s27, %s10106_s13  ;;  %p10111_p10 = scmp.lt.s32.totalorder %s243_s27, %s243_s27 }
 0x1ae   :  { %p10112_p11 = scmp.lt.s32.totalorder %s10110_s15, %s10106_s13 }
 0x1b0   :  { %p10113_p12 = por %p10112_p11, %p10111_p10 }
 0x1b2   :  { %p10114_p13 = pnand %p10113_p12, %p10107_p9 }
 0x1b4   :  { %10117 = shalt.err (!%p10114_p13)
}
 0x1b5   :  { %245 = dma.hbm_to_vmem [thread:$0]  %s16813_s21, 16, %s243_s27, [#allocation33]  }
 0x1b6   :  { %s10211_s16 = smov [#allocation37]   ;;  %s10212_s22 = smov [#allocation40]  }
 0x1b7   :  { %s264_s23 = sshll.u32 %s10211_s16, 4  ;;  %s283_s9 = sshll.u32 %s10212_s22, 4  ;;  %s265_s23 = int_to_ptr.vmem [resolvable:$true] %s264_s23  ;;  %s284_s9 = int_to_ptr.vmem [resolvable:$true] %s283_s9 }
 0x1b8   :  { %s10118_s10 = scalar_lea.hbm %s16816_s24, 16 }
 0x1b9   :  { %p10119_p0 = scmp.ne.s32.totalorder %s16816_s24, %s10118_s10  ;;  %p10122_p1 = scmp.lt.u32.totalorder %s10118_s10, %s16816_s24 }
 0x1bb   :  { %p10124_p2 = pnand %p10122_p1, %p10119_p0 }
 0x1bd   :  { %10127 = shalt.err (!%p10124_p2)
}
 0x1be   :  { %s10128_s21 = scalar_lea.vmem %s265_s23, 16  ;;  %s10132_s27 = scalar_lea.vmem %s265_s23, 32 }
 0x1bf   :  { %p10129_p3 = scmp.ne.s32.totalorder %s265_s23, %s10128_s21  ;;  %p10133_p4 = scmp.lt.s32.totalorder %s265_s23, %s265_s23 }
 0x1c0   :  { %p10134_p5 = scmp.lt.s32.totalorder %s10132_s27, %s10128_s21 }
 0x1c2   :  { %p10135_p6 = por %p10134_p5, %p10133_p4 }
 0x1c4   :  { %p10136_p7 = pnand %p10135_p6, %p10129_p3 }
 0x1c6   :  { %10139 = shalt.err (!%p10136_p7)
}
 0x1c7   :  { %267 = dma.hbm_to_vmem [thread:$0]  %s16816_s24, 16, %s265_s23, [#allocation36]  }
 0x1c8   :  { %s10140_s3 = scalar_lea.hbm %s16818_s26, 1024 }
 0x1c9   :  { %p10141_p8 = scmp.ne.s32.totalorder %s16818_s26, %s10140_s3  ;;  %p10144_p9 = scmp.lt.u32.totalorder %s10140_s3, %s16818_s26 }
 0x1cb   :  { %p10146_p10 = pnand %p10144_p9, %p10141_p8 }
 0x1cd   :  { %10149 = shalt.err (!%p10146_p10)
}
 0x1ce   :  { %s10150_s29 = scalar_lea.vmem %s284_s9, 1024  ;;  %p10155_p12 = scmp.lt.s32.totalorder %s284_s9, %s284_s9 }
 0x1cf   :  { %p10151_p11 = scmp.ne.s32.totalorder %s284_s9, %s10150_s29  ;;  %p10156_p13 = scmp.lt.s32.totalorder %s10150_s29, %s10150_s29 }
 0x1d1   :  { %p10157_p0 = por %p10156_p13, %p10155_p12 }
 0x1d3   :  { %p10158_p1 = pnand %p10157_p0, %p10151_p11 }
 0x1d5   :  { %10161 = shalt.err (!%p10158_p1)
}
 0x1d6   :  { %289 = dma.hbm_to_vmem [thread:$0]  %s16818_s26, 1024, %s284_s9, [#allocation39], %s10191_s8, %s10191_s8, %s10192_s0  }
 0x1d7   :  { %10162 = dma.done.wait [#allocation7], 32  }
 0x1d8   :  { %10163 = vsyncadd [#allocation7], 4294967264 }
 0x1d9   :  { %10164 = dma.done.wait [#allocation9], 16416  }
 0x1da   :  { %10165 = vsyncadd [#allocation9], 4294950880 }
 0x1db   :  { %10166 = dma.done.wait [#allocation12], 64  }
 0x1dc   :  { %10167 = vsyncadd [#allocation12], 4294967232 }
 0x1dd   :  { %10168 = dma.done.wait [#allocation15], 16400  }
 0x1de   :  { %10169 = vsyncadd [#allocation15], 4294950896 }
 0x1df   :  { %10170 = dma.done.wait [#allocation18], 32  }
 0x1e0   :  { %10171 = vsyncadd [#allocation18], 4294967264 }
 0x1e1   :  { %10172 = dma.done.wait [#allocation21], 32  }
 0x1e2   :  { %10173 = vsyncadd [#allocation21], 4294967264 }
 0x1e3   :  { %10174 = dma.done.wait [#allocation24], 32  }
 0x1e4   :  { %10175 = vsyncadd [#allocation24], 4294967264 }
 0x1e5   :  { %10176 = dma.done.wait [#allocation27], 32  }
 0x1e6   :  { %10177 = vsyncadd [#allocation27], 4294967264 }
 0x1e7   :  { %10178 = dma.done.wait [#allocation30], 2064  }
 0x1e8   :  { %10179 = vsyncadd [#allocation30], 4294965232 }
 0x1e9   :  { %10180 = dma.done.wait [#allocation33], 32  }
 0x1ea   :  { %10181 = vsyncadd [#allocation33], 4294967264 }
 0x1eb   :  { %10182 = dma.done.wait [#allocation36], 32  }
 0x1ec   :  { %10183 = vsyncadd [#allocation36], 4294967264 }
 0x1ed   :  { %10184 = dma.done.wait [#allocation39], 1040  }
 0x1ee   :  { %10185 = vsyncadd [#allocation39], 4294966256  ;;  %v16835_v0 = vmov 0.0   ;;  %v466_v1 = vld [vmem:[#allocation8 + $0x108] sm:$0xff]  ;;  %v468_v2 = vld [vmem:[#allocation8 + $0x118] sm:$0xff]  ;;  %vm574_vm0 = vcmask 1041408  }
 0x1ef   :  { %561 = vmatprep.mubr.f32.mxu1 %v16835_v0  ;;  %456 = vmatprep.mubr.f32.mxu0 %v16835_v0  ;;  %v465_v3 = vld [vmem:[#allocation8 + $0x100] sm:$0xff]  ;;  %v9116_v4 = vpack.c.bf16 %v468_v2, %v466_v1  ;;  %v467_v5 = vld [vmem:[#allocation8 + $0x110] sm:$0xff]  ;;  %v470_v6 = vld [vmem:[#allocation8 + $0x128] sm:$0xff]  ;;  %s17074_s0 = sld [smem:[#allocation127_spill]]  ;;  %vm570_vm1 = vcmask 15360   ;;  %s17076_s7 = sld [smem:[#allocation136_spill]] }
 0x1f0   :  { %v472_v7 = vld [vmem:[#allocation8 + $0x138] sm:$0xff]  ;;  %v9118_v8 = vpack.c.bf16 %v467_v5, %v465_v3  ;;  %v469_v10 = vld [vmem:[#allocation8 + $0x120] sm:$0xff]  ;;  %v471_v11 = vld [vmem:[#allocation8 + $0x130] sm:$0xff]  ;;  %s17077_s1 = sld [smem:[#allocation138_spill]]  ;;  %vm1783_vm2 = vcmask 523264   ;;  %vm2334_vm3 = vcmask 261120  }
 0x1f1   :  { %v9120_v9 = vpack.c.bf16 %v472_v7, %v470_v6  ;;  %v474_v12 = vld [vmem:[#allocation8 + $0x148] sm:$0xff]  ;;  %9117 = vmatprep.subr.bf16.mxu1 %v9116_v4  ;;  %v476_v13 = vld [vmem:[#allocation8 + $0x158] sm:$0xff]  ;;  %v9122_v14 = vpack.c.bf16 %v471_v11, %v469_v10  ;;  %v473_v16 = vld [vmem:[#allocation8 + $0x140] sm:$0xff]  ;;  %2336 = vst.msk [vmem:[#allocation4 + $0x8] sm:$0xff] %vm2334_vm3, %v16835_v0  ;;  %vm3597_vm4 = vcmask 654336   ;;  %s17105_s16 = sld [smem:[#allocation139_spill]] }
 0x1f2   :  { %9119 = vmatpush1.bf16.msra.mxu1 %v9118_v8  ;;  %v9124_v15 = vpack.c.bf16 %v476_v13, %v474_v12  ;;  %v475_v17 = vld [vmem:[#allocation8 + $0x150] sm:$0xff]  ;;  %v478_v18 = vld [vmem:[#allocation8 + $0x168] sm:$0xff]  ;;  %v480_v19 = vld [vmem:[#allocation8 + $0x178] sm:$0xff]  ;;  %2335 = vst.msk [vmem:[#allocation4] sm:$0xff] %vm2334_vm3, %v16835_v0  ;;  %vm6302_vm5 = vcmask 490496   ;;  %vm10215_vm6 = vmmov 0  }
 0x1f3   :  { %9121 = vmatprep.subr.bf16.mxu1 %v9120_v9  ;;  %v9126_v20 = vpack.c.bf16 %v475_v17, %v473_v16  ;;  %v361_v21 = vld [vmem:[#allocation8 + $0x8] sm:$0xff]  ;;  %v363_v22 = vld [vmem:[#allocation8 + $0x18] sm:$0xff]  ;;  %v360_v23 = vld [vmem:[#allocation8] sm:$0xff]  ;;  %v9128_v24 = vpack.c.bf16 %v480_v19, %v478_v18  ;;  %2337 = vst.msk [vmem:[#allocation4 + $0x10] sm:$0xff] %vm2334_vm3, %v16835_v0  ;;  %vm6512_vm7 = vcmask 1043456   ;;  %vm10216_vm8 = vmmov 1  }
 0x1f4   :  { %v477_v25 = vld [vmem:[#allocation8 + $0x160] sm:$0xff]  ;;  %v479_v26 = vld [vmem:[#allocation8 + $0x170] sm:$0xff]  ;;  %v9084_v27 = vpack.c.bf16 %v363_v22, %v361_v21  ;;  %v482_v29 = vld [vmem:[#allocation8 + $0x188] sm:$0xff]  ;;  %2338 = vst.msk [vmem:[#allocation4 + $0x18] sm:$0xff] %vm2334_vm3, %v16835_v0  ;;  %s17708_s29 = sld [smem:[#allocation140_spill]] }
 0x1f5   :  { %v362_v28 = vld [vmem:[#allocation8 + $0x10] sm:$0xff]  ;;  %v484_v30 = vld [vmem:[#allocation8 + $0x198] sm:$0xff]  ;;  %v365_v32 = vld [vmem:[#allocation8 + $0x28] sm:$0xff]  ;;  %v9130_v36 = vpack.c.bf16 %v479_v26, %v477_v25  ;;  %2339 = vst.msk [vmem:[#allocation4 + $0x20] sm:$0xff] %vm2334_vm3, %v16835_v0 }
 0x1f6   :  { %9123 = vmatpush1.bf16.msra.mxu1 %v9122_v14  ;;  %v9086_v31 = vpack.c.bf16 %v362_v28, %v360_v23  ;;  %9085 = vmatprep.subr.bf16.mxu0 %v9084_v27  ;;  %v367_v33 = vld [vmem:[#allocation8 + $0x38] sm:$0xff]  ;;  %v364_v34 = vld [vmem:[#allocation8 + $0x20] sm:$0xff]  ;;  %v366_v35 = vld [vmem:[#allocation8 + $0x30] sm:$0xff]  ;;  %v9132_v41 = vpack.c.bf16 %v484_v30, %v482_v29  ;;  %2340 = vst.msk [vmem:[#allocation4 + $0x28] sm:$0xff] %vm2334_vm3, %v16835_v0 }
 0x1f7   :  { %9125 = vmatprep.subr.bf16.mxu1 %v9124_v15  ;;  %v481_v37 = vld [vmem:[#allocation8 + $0x180] sm:$0xff]  ;;  %v483_v38 = vld [vmem:[#allocation8 + $0x190] sm:$0xff]  ;;  %v9088_v39 = vpack.c.bf16 %v367_v33, %v365_v32  ;;  %v9090_v40 = vpack.c.bf16 %v366_v35, %v364_v34  ;;  %v486_v42 = vld [vmem:[#allocation8 + $0x1a8] sm:$0xff]  ;;  %2341 = vst.msk [vmem:[#allocation4 + $0x30] sm:$0xff] %vm2334_vm3, %v16835_v0 }
 0x1f8   :  { %9087 = vmatpush1.bf16.msra.mxu0 %v9086_v31  ;;  %v369_v43 = vld [vmem:[#allocation8 + $0x48] sm:$0xff]  ;;  %v371_v44 = vld [vmem:[#allocation8 + $0x58] sm:$0xff]  ;;  %v368_v47 = vld [vmem:[#allocation8 + $0x40] sm:$0xff]  ;;  %v9134_v49 = vpack.c.bf16 %v483_v38, %v481_v37  ;;  %2342 = vst.msk [vmem:[#allocation4 + $0x38] sm:$0xff] %vm2334_vm3, %v16835_v0 }
 0x1f9   :  { %v488_v45 = vld [vmem:[#allocation8 + $0x1b8] sm:$0xff]  ;;  %9089 = vmatprep.subr.bf16.mxu0 %v9088_v39  ;;  %v9092_v46 = vpack.c.bf16 %v371_v44, %v369_v43  ;;  %v370_v48 = vld [vmem:[#allocation8 + $0x50] sm:$0xff]  ;;  %v485_v50 = vld [vmem:[#allocation8 + $0x1a0] sm:$0xff]  ;;  %2343 = vst.msk [vmem:[#allocation4 + $0x40] sm:$0xff] %vm2334_vm3, %v16835_v0 }
 0x1fa   :  { %9127 = vmatpush1.bf16.msra.mxu1 %v9126_v20  ;;  %v9094_v51 = vpack.c.bf16 %v370_v48, %v368_v47  ;;  %v373_v52 = vld [vmem:[#allocation8 + $0x68] sm:$0xff]  ;;  %v375_v53 = vld [vmem:[#allocation8 + $0x78] sm:$0xff]  ;;  %v9136_v54 = vpack.c.bf16 %v488_v45, %v486_v42  ;;  %v487_v55 = vld [vmem:[#allocation8 + $0x1b0] sm:$0xff]  ;;  %2344 = vst.msk [vmem:[#allocation4 + $0x48] sm:$0xff] %vm2334_vm3, %v16835_v0 }
 0x1fb   :  { %9129 = vmatprep.subr.bf16.mxu1 %v9128_v24  ;;  %v9096_v56 = vpack.c.bf16 %v375_v53, %v373_v52  ;;  %v372_v57 = vld [vmem:[#allocation8 + $0x60] sm:$0xff]  ;;  %v374_v58 = vld [vmem:[#allocation8 + $0x70] sm:$0xff]  ;;  %v490_v59 = vld [vmem:[#allocation8 + $0x1c8] sm:$0xff]  ;;  %v9138_v63 = vpack.c.bf16 %v487_v55, %v485_v50  ;;  %2345 = vst.msk [vmem:[#allocation4 + $0x50] sm:$0xff] %vm2334_vm3, %v16835_v0 }
 0x1fc   :  { %9091 = vmatpush1.bf16.msra.mxu0 %v9090_v40  ;;  %v492_v60 = vld [vmem:[#allocation8 + $0x1d8] sm:$0xff]  ;;  %v377_v61 = vld [vmem:[#allocation8 + $0x88] sm:$0xff]  ;;  %v489_v1 = vld [vmem:[#allocation8 + $0x1c0] sm:$0xff]  ;;  %v9098_v3 = vpack.c.bf16 %v374_v58, %v372_v57  ;;  %2346 = vst.msk [vmem:[#allocation4 + $0x58] sm:$0xff] %vm2334_vm3, %v16835_v0 }
 0x1fd   :  { %9093 = vmatprep.subr.bf16.mxu0 %v9092_v46  ;;  %v379_v62 = vld [vmem:[#allocation8 + $0x98] sm:$0xff]  ;;  %v491_v2 = vld [vmem:[#allocation8 + $0x1d0] sm:$0xff]  ;;  %v9140_v4 = vpack.c.bf16 %v492_v60, %v490_v59  ;;  %v494_v5 = vld [vmem:[#allocation8 + $0x1e8] sm:$0xff]  ;;  %2347 = vst.msk [vmem:[#allocation4 + $0x60] sm:$0xff] %vm2334_vm3, %v16835_v0 }
 0x1fe   :  { %9131 = vmatpush1.bf16.msra.mxu1 %v9130_v36  ;;  %v9100_v6 = vpack.c.bf16 %v379_v62, %v377_v61  ;;  %v376_v7 = vld [vmem:[#allocation8 + $0x80] sm:$0xff]  ;;  %v378_v8 = vld [vmem:[#allocation8 + $0x90] sm:$0xff]  ;;  %v496_v9 = vld [vmem:[#allocation8 + $0x1f8] sm:$0xff]  ;;  %v9142_v12 = vpack.c.bf16 %v491_v2, %v489_v1  ;;  %2348 = vst.msk [vmem:[#allocation4 + $0x68] sm:$0xff] %vm2334_vm3, %v16835_v0 }
 0x1ff   :  { %9133 = vmatprep.subr.bf16.mxu1 %v9132_v41  ;;  %v381_v10 = vld [vmem:[#allocation8 + $0xa8] sm:$0xff]  ;;  %v383_v11 = vld [vmem:[#allocation8 + $0xb8] sm:$0xff]  ;;  %v493_v13 = vld [vmem:[#allocation8 + $0x1e0] sm:$0xff]  ;;  %v9102_v15 = vpack.c.bf16 %v378_v8, %v376_v7  ;;  %v9144_v16 = vpack.c.bf16 %v496_v9, %v494_v5  ;;  %2349 = vst.msk [vmem:[#allocation4 + $0x70] sm:$0xff] %vm2334_vm3, %v16835_v0 }
 0x200   :  { %9095 = vmatpush1.bf16.msra.mxu0 %v9094_v51  ;;  %v495_v14 = vld [vmem:[#allocation8 + $0x1f0] sm:$0xff]  ;;  %v734_v17 = vld [vmem:[#allocation8 + $0x208] sm:$0xff]  ;;  %v9104_v18 = vpack.c.bf16 %v383_v11, %v381_v10  ;;  %v380_v19 = vld [vmem:[#allocation8 + $0xa0] sm:$0xff]  ;;  %2350 = vst.msk [vmem:[#allocation4 + $0x78] sm:$0xff] %vm2334_vm3, %v16835_v0 }
 0x201   :  { %9097 = vmatprep.subr.bf16.mxu0 %v9096_v56  ;;  %v382_v20 = vld [vmem:[#allocation8 + $0xb0] sm:$0xff]  ;;  %v736_v21 = vld [vmem:[#allocation8 + $0x218] sm:$0xff]  ;;  %v385_v22 = vld [vmem:[#allocation8 + $0xc8] sm:$0xff]  ;;  %v9146_v24 = vpack.c.bf16 %v495_v14, %v493_v13  ;;  %2351 = vst.msk [vmem:[#allocation4 + $0x80] sm:$0xff] %vm2334_vm3, %v16835_v0 }
 0x202   :  { %9135 = vmatpush1.bf16.msra.mxu1 %v9134_v49  ;;  %v387_v23 = vld [vmem:[#allocation8 + $0xd8] sm:$0xff]  ;;  %v733_v25 = vld [vmem:[#allocation8 + $0x200] sm:$0xff]  ;;  %v735_v26 = vld [vmem:[#allocation8 + $0x210] sm:$0xff]  ;;  %v9106_v27 = vpack.c.bf16 %v382_v20, %v380_v19  ;;  %v9148_v28 = vpack.c.bf16 %v736_v21, %v734_v17  ;;  %2352 = vst.msk [vmem:[#allocation4 + $0x88] sm:$0xff] %vm2334_vm3, %v16835_v0 }
 0x203   :  { %9137 = vmatprep.subr.bf16.mxu1 %v9136_v54  ;;  %v738_v29 = vld [vmem:[#allocation8 + $0x228] sm:$0xff]  ;;  %v9108_v30 = vpack.c.bf16 %v387_v23, %v385_v22  ;;  %v384_v31 = vld [vmem:[#allocation8 + $0xc0] sm:$0xff]  ;;  %v386_v32 = vld [vmem:[#allocation8 + $0xd0] sm:$0xff]  ;;  %v9150_v37 = vpack.c.bf16 %v735_v26, %v733_v25  ;;  %2353 = vst.msk [vmem:[#allocation4 + $0x90] sm:$0xff] %vm2334_vm3, %v16835_v0 }
 0x204   :  { %9099 = vmatpush1.bf16.msra.mxu0 %v9098_v3  ;;  %v740_v33 = vld [vmem:[#allocation8 + $0x238] sm:$0xff]  ;;  %v389_v34 = vld [vmem:[#allocation8 + $0xe8] sm:$0xff]  ;;  %v737_v38 = vld [vmem:[#allocation8 + $0x220] sm:$0xff]  ;;  %v9110_v39 = vpack.c.bf16 %v386_v32, %v384_v31  ;;  %2354 = vst.msk [vmem:[#allocation4 + $0x98] sm:$0xff] %vm2334_vm3, %v16835_v0 }
 0x205   :  { %9101 = vmatprep.subr.bf16.mxu0 %v9100_v6  ;;  %v391_v35 = vld [vmem:[#allocation8 + $0xf8] sm:$0xff]  ;;  %v9152_v40 = vpack.c.bf16 %v740_v33, %v738_v29  ;;  %v739_v41 = vld [vmem:[#allocation8 + $0x230] sm:$0xff]  ;;  %v388_v43 = vld [vmem:[#allocation8 + $0xe0] sm:$0xff]  ;;  %2355 = vst.msk [vmem:[#allocation4 + $0xa0] sm:$0xff] %vm2334_vm3, %v16835_v0 }
 0x206   :  { %9139 = vmatpush1.bf16.msra.mxu1 %v9138_v63  ;;  %v10644_v36 = vld [vmem:[#allocation6] sm:$0x3]  ;;  %v9112_v42 = vpack.c.bf16 %v391_v35, %v389_v34  ;;  %v390_v44 = vld [vmem:[#allocation8 + $0xf0] sm:$0xff]  ;;  %v742_v45 = vld [vmem:[#allocation8 + $0x248] sm:$0xff]  ;;  %v9154_v47 = vpack.c.bf16 %v739_v41, %v737_v38  ;;  %2356 = vst.msk [vmem:[#allocation4 + $0xa8] sm:$0xff] %vm2334_vm3, %v16835_v0 }
 0x207   :  { %9141 = vmatprep.subr.bf16.mxu1 %v9140_v4  ;;  %v744_v46 = vld [vmem:[#allocation8 + $0x258] sm:$0xff]  ;;  %v9114_v48 = vpack.c.bf16 %v390_v44, %v388_v43  ;;  %v741_v50 = vld [vmem:[#allocation8 + $0x240] sm:$0xff]  ;;  %v743_v51 = vld [vmem:[#allocation8 + $0x250] sm:$0xff]  ;;  %2357 = vst.msk [vmem:[#allocation4 + $0xb0] sm:$0xff] %vm2334_vm3, %v16835_v0 }
 0x208   :  { %9103 = vmatpush1.bf16.msra.mxu0 %v9102_v15  ;;  %v9156_v49 = vpack.c.bf16 %v744_v46, %v742_v45  ;;  %v746_v52 = vld [vmem:[#allocation8 + $0x268] sm:$0xff]  ;;  %v748_v53 = vld [vmem:[#allocation8 + $0x278] sm:$0xff]  ;;  %v9158_v54 = vpack.c.bf16 %v743_v51, %v741_v50  ;;  %v745_v56 = vld [vmem:[#allocation8 + $0x260] sm:$0xff]  ;;  %2358 = vst.msk [vmem:[#allocation4 + $0xb8] sm:$0xff] %vm2334_vm3, %v16835_v0 }
 0x209   :  { %9105 = vmatprep.subr.bf16.mxu0 %v9104_v18  ;;  %v9160_v55 = vpack.c.bf16 %v748_v53, %v746_v52  ;;  %v747_v57 = vld [vmem:[#allocation8 + $0x270] sm:$0xff]  ;;  %v750_v58 = vld [vmem:[#allocation8 + $0x288] sm:$0xff]  ;;  %v752_v59 = vld [vmem:[#allocation8 + $0x298] sm:$0xff] }
 0x20a   :  { %9143 = vmatpush1.bf16.msra.mxu1 %v9142_v12  ;;  %v9162_v60 = vpack.c.bf16 %v747_v57, %v745_v56  ;;  %v9164_v61 = vpack.c.bf16 %v752_v59, %v750_v58  ;;  %v749_v62 = vld [vmem:[#allocation8 + $0x280] sm:$0xff]  ;;  %v751_v63 = vld [vmem:[#allocation8 + $0x290] sm:$0xff]  ;;  %v754_v1 = vld [vmem:[#allocation8 + $0x2a8] sm:$0xff] }
 0x20b   :  { %9145 = vmatprep.subr.bf16.mxu1 %v9144_v16  ;;  %v756_v2 = vld [vmem:[#allocation8 + $0x2b8] sm:$0xff]  ;;  %v9166_v3 = vpack.c.bf16 %v751_v63, %v749_v62  ;;  %v753_v5 = vld [vmem:[#allocation8 + $0x2a0] sm:$0xff]  ;;  %v755_v6 = vld [vmem:[#allocation8 + $0x2b0] sm:$0xff] }
 0x20c   :  { %9107 = vmatpush1.bf16.msra.mxu0 %v9106_v27  ;;  %v9168_v4 = vpack.c.bf16 %v756_v2, %v754_v1  ;;  %v758_v7 = vld [vmem:[#allocation8 + $0x2c8] sm:$0xff]  ;;  %v760_v8 = vld [vmem:[#allocation8 + $0x2d8] sm:$0xff]  ;;  %v9170_v9 = vpack.c.bf16 %v755_v6, %v753_v5  ;;  %v757_v11 = vld [vmem:[#allocation8 + $0x2c0] sm:$0xff] }
 0x20d   :  { %9109 = vmatprep.subr.bf16.mxu0 %v9108_v30  ;;  %v9172_v10 = vpack.c.bf16 %v760_v8, %v758_v7  ;;  %v759_v12 = vld [vmem:[#allocation8 + $0x2d0] sm:$0xff]  ;;  %v762_v13 = vld [vmem:[#allocation8 + $0x2e8] sm:$0xff]  ;;  %v764_v14 = vld [vmem:[#allocation8 + $0x2f8] sm:$0xff] }
 0x20e   :  { %9147 = vmatpush1.bf16.msra.mxu1 %v9146_v24  ;;  %v9174_v15 = vpack.c.bf16 %v759_v12, %v757_v11  ;;  %v9176_v16 = vpack.c.bf16 %v764_v14, %v762_v13  ;;  %v761_v17 = vld [vmem:[#allocation8 + $0x2e0] sm:$0xff]  ;;  %v763_v18 = vld [vmem:[#allocation8 + $0x2f0] sm:$0xff]  ;;  %v922_v26 = vld [vmem:[#allocation8 + $0x308] sm:$0xff] }
 0x20f   :  { %9149 = vmatprep.subr.bf16.mxu1 %v9148_v28  ;;  %v9178_v19 = vpack.c.bf16 %v763_v18, %v761_v17  ;;  %v7568_v22 = vld [vmem:[%s17074_s0 + $0x8] sm:$0xff]  ;;  %v463_v25 = vld [vmem:[%s17074_s0] sm:$0xff]  ;;  %v923_v29 = vld [vmem:[#allocation8 + $0x310] sm:$0xff] }
 0x210   :  { %9111 = vmatpush1.bf16.msra.mxu0 %v9110_v39  ;;  %v924_v27 = vld [vmem:[#allocation8 + $0x318] sm:$0xff]  ;;  %v921_v28 = vld [vmem:[#allocation8 + $0x300] sm:$0xff]  ;;  %v926_v30 = vld [vmem:[#allocation8 + $0x328] sm:$0xff] }
 0x211   :  { %562 = vmatmul.mubr.f32.vlgmr.msra.gmra.mrb[0].mxu1 %v10644_v36  ;;  %9113 = vmatprep.subr.bf16.mxu0 %v9112_v42  ;;  %v928_v31 = vld [vmem:[#allocation8 + $0x338] sm:$0xff]  ;;  %v9180_v33 = vpack.c.bf16 %v924_v27, %v922_v26  ;;  %v7575_v35 = vld [vmem:[%s17074_s0 + $0x10] sm:$0xff]  ;;  %v925_v39 = vld [vmem:[#allocation8 + $0x320] sm:$0xff] }
 0x212   :  { %9151 = vmatpush1.bf16.msra.mxu1 %v9150_v37  ;;  %829 = vmatprep.mubr.f32.mxu1 %v16835_v0  ;;  %v9182_v37 = vpack.c.bf16 %v923_v29, %v921_v28  ;;  %v9184_v38 = vpack.c.bf16 %v928_v31, %v926_v30  ;;  %v930_v41 = vld [vmem:[#allocation8 + $0x348] sm:$0xff]  ;;  %v932_v42 = vld [vmem:[#allocation8 + $0x358] sm:$0xff]  ;;  %v929_v45 = vld [vmem:[#allocation8 + $0x340] sm:$0xff] }
 0x213   :  { %9153 = vmatprep.subr.bf16.mxu1 %v9152_v40  ;;  %v927_v40 = vld [vmem:[#allocation8 + $0x330] sm:$0xff]  ;;  %v9188_v44 = vpack.c.bf16 %v932_v42, %v930_v41  ;;  %v933_v51 = vld [vmem:[#allocation8 + $0x360] sm:$0xff]  ;;  %v938_v53 = vld [vmem:[#allocation8 + $0x388] sm:$0xff] }
 0x214   :  { %9115 = vmatpush1.bf16.msra.mxu0 %v9114_v48  ;;  %v9186_v43 = vpack.c.bf16 %v927_v40, %v925_v39  ;;  %v931_v46 = vld [vmem:[#allocation8 + $0x350] sm:$0xff]  ;;  %v936_v48 = vld [vmem:[#allocation8 + $0x378] sm:$0xff]  ;;  %v937_v57 = vld [vmem:[#allocation8 + $0x380] sm:$0xff] }
 0x215   :  { %v935_v52 = vld [vmem:[#allocation8 + $0x370] sm:$0xff]  ;;  %v942_v59 = vld [vmem:[#allocation8 + $0x3a8] sm:$0xff]  ;;  %v941_v63 = vld [vmem:[#allocation8 + $0x3a0] sm:$0xff] }
 0x216   :  { %9155 = vmatpush1.bf16.msra.mxu1 %v9154_v47  ;;  %v934_v47 = vld [vmem:[#allocation8 + $0x368] sm:$0xff]  ;;  %v939_v58 = vld [vmem:[#allocation8 + $0x390] sm:$0xff]  ;;  %v945_v6 = vld [vmem:[#allocation8 + $0x3c0] sm:$0xff] }
 0x217   :  { %9157 = vmatprep.subr.bf16.mxu1 %v9156_v49  ;;  %457 = vmatmul.mubr.f32.vlgmr.msra.gmra.mrb[0].mxu0 %v10644_v36  ;;  %v9190_v49 = vpack.c.bf16 %v931_v46, %v929_v45  ;;  %v9192_v50 = vpack.c.bf16 %v936_v48, %v934_v47  ;;  %v943_v1 = vld [vmem:[#allocation8 + $0x3b0] sm:$0xff]  ;;  %v946_v2 = vld [vmem:[#allocation8 + $0x3c8] sm:$0xff]  ;;  %v949_v12 = vld [vmem:[#allocation8 + $0x3e0] sm:$0xff] }
 0x218   :  { %645 = vmatprep.mubr.f32.mxu0 %v16835_v0  ;;  %v947_v7 = vld [vmem:[#allocation8 + $0x3d0] sm:$0xff]  ;;  %v950_v8 = vld [vmem:[#allocation8 + $0x3e8] sm:$0xff]  ;;  %v1210_v30 = vld [vmem:[#allocation14 + $0x98] sm:$0xff] }
 0x219   :  { %v951_v13 = vld [vmem:[#allocation8 + $0x3f0] sm:$0xff]  ;;  %v1207_v18 = vld [vmem:[#allocation14 + $0x80] sm:$0xff]  ;;  %v1298_v40 = vld [vmem:[#allocation14 + $0x118] sm:$0xff] }
 0x21a   :  { %9159 = vmatpush1.bf16.msra.mxu1 %v9158_v54  ;;  %v940_v54 = vld [vmem:[#allocation8 + $0x398] sm:$0xff]  ;;  %v9210_v14 = vpack.c.bf16 %v951_v13, %v949_v12  ;;  %v1295_v26 = vld [vmem:[#allocation14 + $0x100] sm:$0xff]  ;;  %v1296_v27 = vld [vmem:[#allocation14 + $0x108] sm:$0xff] }
 0x21b   :  { %9161 = vmatprep.subr.bf16.mxu1 %v9160_v55  ;;  %v9194_v55 = vpack.c.bf16 %v935_v52, %v933_v51  ;;  %v9196_v56 = vpack.c.bf16 %v940_v54, %v938_v53  ;;  %v7579_v17 = vld [vmem:[%s17074_s0 + $0x18] sm:$0xff]  ;;  %v9246_v28 = vpack.c.bf16 %v1296_v27, %v1295_v26  ;;  %v1211_v42 = vld [vmem:[#allocation14 + $0xa0] sm:$0xff]  ;;  %v1316_v46 = vld [vmem:[#allocation14 + $0x1a8] sm:$0xff] }
 0x21c   :  { %v1209_v29 = vld [vmem:[#allocation14 + $0x90] sm:$0xff]  ;;  %v1195_v47 = vld [vmem:[#allocation14 + $0x20] sm:$0xff]  ;;  %v1196_v48 = vld [vmem:[#allocation14 + $0x28] sm:$0xff] }
 0x21d   :  { %v1313_v31 = vld [vmem:[#allocation14 + $0x190] sm:$0xff]  ;;  %v1299_v51 = vld [vmem:[#allocation14 + $0x120] sm:$0xff]  ;;  %v1300_v52 = vld [vmem:[#allocation14 + $0x128] sm:$0xff] }
 0x21e   :  { %9163 = vmatpush1.bf16.msra.mxu1 %v9162_v60  ;;  %v944_v60 = vld [vmem:[#allocation8 + $0x3b8] sm:$0xff]  ;;  %v9254_v53 = vpack.c.bf16 %v1300_v52, %v1299_v51  ;;  %v1303_v12 = vld [vmem:[#allocation14 + $0x140] sm:$0xff]  ;;  %v1304_v13 = vld [vmem:[#allocation14 + $0x148] sm:$0xff] }
 0x21f   :  { %9165 = vmatprep.subr.bf16.mxu1 %v9164_v61  ;;  %v9198_v61 = vpack.c.bf16 %v939_v58, %v937_v57  ;;  %v9200_v62 = vpack.c.bf16 %v944_v60, %v942_v59  ;;  %v1297_v39 = vld [vmem:[#allocation14 + $0x110] sm:$0xff]  ;;  %v1318_v58 = vld [vmem:[#allocation14 + $0x1b8] sm:$0xff]  ;;  %v1219_v26 = vld [vmem:[#allocation14 + $0xe0] sm:$0xff] }
 0x220   :  { %v9250_v41 = vpack.c.bf16 %v1298_v40, %v1297_v39  ;;  %v1213_v54 = vld [vmem:[#allocation14 + $0xb0] sm:$0xff]  ;;  %v1198_v60 = vld [vmem:[#allocation14 + $0x38] sm:$0xff]  ;;  %v1220_v27 = vld [vmem:[#allocation14 + $0xe8] sm:$0xff] }
 0x221   :  { %v1197_v59 = vld [vmem:[#allocation14 + $0x30] sm:$0xff]  ;;  %v1222_v40 = vld [vmem:[#allocation14 + $0xf8] sm:$0xff]  ;;  %v1415_v51 = vld [vmem:[#allocation14 + $0x280] sm:$0xff] }
 0x222   :  { %9167 = vmatpush1.bf16.msra.mxu1 %v9166_v3  ;;  %v948_v3 = vld [vmem:[#allocation8 + $0x3d8] sm:$0xff]  ;;  %v1416_v52 = vld [vmem:[#allocation14 + $0x288] sm:$0xff]  ;;  %vm14029_vm9 = vmpackc.low %vm6512_vm7, %vm10216_vm8 }
 0x223   :  { %9169 = vmatprep.subr.bf16.mxu1 %v9168_v4  ;;  %v9202_v4 = vpack.c.bf16 %v943_v1, %v941_v63  ;;  %v9204_v5 = vpack.c.bf16 %v948_v3, %v946_v2  ;;  %v1301_v63 = vld [vmem:[#allocation14 + $0x130] sm:$0xff]  ;;  %v1302_v1 = vld [vmem:[#allocation14 + $0x138] sm:$0xff]  ;;  %v1215_v3 = vld [vmem:[#allocation14 + $0xc0] sm:$0xff] }
 0x224   :  { %v9258_v2 = vpack.c.bf16 %v1302_v1, %v1301_v63  ;;  %v1221_v39 = vld [vmem:[#allocation14 + $0xf0] sm:$0xff] }
 0x226   :  { %9171 = vmatpush1.bf16.msra.mxu1 %v9170_v9  ;;  %v952_v9 = vld [vmem:[#allocation8 + $0x3f8] sm:$0xff] }
 0x227   :  { %9173 = vmatprep.subr.bf16.mxu1 %v9172_v10  ;;  %v9206_v10 = vpack.c.bf16 %v947_v7, %v945_v6  ;;  %v9208_v11 = vpack.c.bf16 %v952_v9, %v950_v8  ;;  %v1320_v7 = vld [vmem:[#allocation14 + $0x1c8] sm:$0xff]  ;;  %v1199_v8 = vld [vmem:[#allocation14 + $0x40] sm:$0xff] }
 0x228   :  { %v1200_v9 = vld [vmem:[#allocation14 + $0x48] sm:$0xff] }
 0x22a   :  { %9175 = vmatpush1.bf16.msra.mxu1 %v9174_v15 }
 0x22b   :  { %9177 = vmatprep.subr.bf16.mxu1 %v9176_v16 }
 0x22e   :  { %9179 = vmatpush1.bf16.msra.mxu1 %v9178_v19  ;;  %v1208_v19 = vld [vmem:[#allocation14 + $0x88] sm:$0xff] }
 0x231   :  { %830 = vmatmul.mubr.f32.vlgmr.msra.gmra.mrb[2].mxu1 %v10644_v36 }
 0x2e4   :  { %v563_v20 = vpop.f32.mrb[0].mxu1 }
 0x2e5   :  { %v565_v21 = vpop.f32.mrb[1].mxu1 }
 0x2e6   :  { %7569 = vmatprep.subr.msk.mxu0 %vm574_vm0, %v565_v21  ;;  %v9212_v21 = vpack.c.bf16 %v1208_v19, %v1207_v18  ;;  %v1322_v19 = vld [vmem:[#allocation14 + $0x1d8] sm:$0xff] }
 0x2e7   :  { %7570 = vmatpush1.msk.msra.mxu0 %vm574_vm0, %v563_v20  ;;  %v1311_v20 = vld [vmem:[#allocation14 + $0x180] sm:$0xff] }
 0x2e8   :  { %7571 = vmatmul.mubr.msk.f32.vlgmr.msra.gmra.mrb[2].mxu0 %vm570_vm1, %v7568_v22  ;;  %v1312_v22 = vld [vmem:[#allocation14 + $0x188] sm:$0xff]  ;;  %9213 = vmatprep.subr.bf16.mxu1 %v9212_v21  ;;  %v1202_v21 = vld [vmem:[#allocation14 + $0x58] sm:$0xff] }
 0x2e9   :  { %725 = vmatprep.mubr.f32.mxu0 %v16835_v0 }
 0x2ea   :  { %v458_v23 = vpop.f32.mrb[0].mxu0 }
 0x2eb   :  { %v460_v24 = vpop.f32.mrb[1].mxu0 }
 0x2ec   :  { %7572 = vmatprep.subr.msk.mxu0 %vm574_vm0, %v460_v24  ;;  %v9244_v24 = vpack.c.bf16 %v1312_v22, %v1311_v20  ;;  %v1201_v20 = vld [vmem:[#allocation14 + $0x50] sm:$0xff] }
 0x2ed   :  { %7573 = vmatpush1.msk.msra.mxu0 %vm574_vm0, %v458_v23  ;;  %v1192_v23 = vld [vmem:[#allocation14 + $0x8] sm:$0xff] }
 0x2f0   :  { %7574 = vmatmul.mubr.msk.f32.vlgmr.msra.gmra.mrb[2].mxu0 %vm570_vm1, %v463_v25 }
 0x2f1   :  { %911 = vmatprep.mubr.f32.mxu0 %v16835_v0 }
 0x304   :  { %v831_v32 = vpop.f32.mrb[2].mxu1 }
 0x305   :  { %v833_v34 = vpop.f32.mrb[3].mxu1 }
 0x306   :  { %7576 = vmatprep.subr.msk.mxu0 %vm574_vm0, %v833_v34  ;;  %v1193_v34 = vld [vmem:[#allocation14 + $0x10] sm:$0xff] }
 0x307   :  { %7577 = vmatpush1.msk.msra.mxu0 %vm574_vm0, %v831_v32  ;;  %v9216_v32 = vpack.c.bf16 %v1210_v30, %v1209_v29  ;;  %v9236_v29 = vpack.c.bf16 %v1220_v27, %v1219_v26  ;;  %v1324_v30 = vld [vmem:[#allocation14 + $0x1e8] sm:$0xff] }
 0x308   :  { %9181 = vmatprep.subr.bf16.mxu0 %v9180_v33  ;;  %7578 = vmatmul.mubr.msk.f32.vlgmr.msra.gmra.mrb[2].mxu0 %vm570_vm1, %v7575_v35  ;;  %v1314_v33 = vld [vmem:[#allocation14 + $0x198] sm:$0xff] }
 0x309   :  { %9183 = vmatpush1.bf16.msra.mxu0 %v9182_v37  ;;  %1017 = vmatprep.mubr.f32.mxu0 %v16835_v0  ;;  %v1194_v35 = vld [vmem:[#allocation14 + $0x18] sm:$0xff]  ;;  %v9248_v37 = vpack.c.bf16 %v1314_v33, %v1313_v31  ;;  %v1203_v31 = vld [vmem:[#allocation14 + $0x60] sm:$0xff]  ;;  %v1204_v33 = vld [vmem:[#allocation14 + $0x68] sm:$0xff] }
 0x30a   :  { %9185 = vmatprep.subr.bf16.mxu0 %v9184_v38  ;;  %v9218_v38 = vpack.c.bf16 %v1194_v35, %v1193_v34  ;;  %v1307_v34 = vld [vmem:[#allocation14 + $0x160] sm:$0xff]  ;;  %v1308_v35 = vld [vmem:[#allocation14 + $0x168] sm:$0xff] }
 0x30d   :  { %9187 = vmatpush1.bf16.msra.mxu0 %v9186_v43  ;;  %v1212_v43 = vld [vmem:[#allocation14 + $0xa8] sm:$0xff] }
 0x30e   :  { %9189 = vmatprep.subr.bf16.mxu0 %v9188_v44  ;;  %v1315_v44 = vld [vmem:[#allocation14 + $0x1a0] sm:$0xff]  ;;  %v9220_v45 = vpack.c.bf16 %v1212_v43, %v1211_v42  ;;  %v9240_v42 = vpack.c.bf16 %v1222_v40, %v1221_v39  ;;  %v1326_v43 = vld [vmem:[#allocation14 + $0x1f8] sm:$0xff] }
 0x30f   :  { %v1161_v39 = vld [vmem:[#allocation11] sm:$0x3]  ;;  %v1175_v40 = vld [vmem:[#allocation13] sm:$0x3] }
 0x311   :  { %9191 = vmatpush1.bf16.msra.mxu0 %v9190_v49  ;;  %v9252_v49 = vpack.c.bf16 %v1316_v46, %v1315_v44  ;;  %v1205_v44 = vld [vmem:[#allocation14 + $0x70] sm:$0xff] }
 0x312   :  { %9193 = vmatprep.subr.bf16.mxu0 %v9192_v50  ;;  %v9222_v50 = vpack.c.bf16 %v1196_v48, %v1195_v47  ;;  %v1309_v48 = vld [vmem:[#allocation14 + $0x170] sm:$0xff] }
 0x315   :  { %9195 = vmatpush1.bf16.msra.mxu0 %v9194_v55  ;;  %v1214_v55 = vld [vmem:[#allocation14 + $0xb8] sm:$0xff] }
 0x316   :  { %9197 = vmatprep.subr.bf16.mxu0 %v9196_v56  ;;  %v1317_v56 = vld [vmem:[#allocation14 + $0x1b0] sm:$0xff]  ;;  %v9224_v57 = vpack.c.bf16 %v1214_v55, %v1213_v54  ;;  %v9276_v54 = vpack.c.bf16 %v1416_v52, %v1415_v51  ;;  %v1520_v55 = vld [vmem:[#allocation14 + $0x388] sm:$0xff]  ;;  %v1399_v51 = vld [vmem:[#allocation14 + $0x200] sm:$0xff] }
 0x319   :  { %9199 = vmatpush1.bf16.msra.mxu0 %v9198_v61  ;;  %v9256_v61 = vpack.c.bf16 %v1318_v58, %v1317_v56 }
 0x31a   :  { %9201 = vmatprep.subr.bf16.mxu0 %v9200_v62  ;;  %v9226_v62 = vpack.c.bf16 %v1198_v60, %v1197_v59  ;;  %v1108_v60 = vld [vmem:[#allocation10] sm:$0x3] }
 0x31d   :  { %9203 = vmatpush1.bf16.msra.mxu0 %v9202_v4  ;;  %v1216_v4 = vld [vmem:[#allocation14 + $0xc8] sm:$0xff] }
 0x31e   :  { %9205 = vmatprep.subr.bf16.mxu0 %v9204_v5  ;;  %v1319_v5 = vld [vmem:[#allocation14 + $0x1c0] sm:$0xff]  ;;  %v9228_v6 = vpack.c.bf16 %v1216_v4, %v1215_v3 }
 0x321   :  { %9207 = vmatpush1.bf16.msra.mxu0 %v9206_v10  ;;  %v9260_v10 = vpack.c.bf16 %v1320_v7, %v1319_v5 }
 0x322   :  { %9209 = vmatprep.subr.bf16.mxu0 %v9208_v11  ;;  %v9230_v11 = vpack.c.bf16 %v1200_v9, %v1199_v8 }
 0x325   :  { %9211 = vmatpush1.bf16.msra.mxu0 %v9210_v14  ;;  %v9262_v14 = vpack.c.bf16 %v1304_v13, %v1303_v12 }
 0x328   :  { %1018 = vmatmul.mubr.f32.vlgmr.msra.gmra.mrb[4].mxu0 %v10644_v36  ;;  %v1191_v36 = vld [vmem:[#allocation14] sm:$0xff] }
 0x329   :  { %1099 = vmatprep.mubr.f32.mxu0 %v16835_v0  ;;  %v9214_v25 = vpack.c.bf16 %v1192_v23, %v1191_v36  ;;  %v9234_v36 = vpack.c.bf16 %v1202_v21, %v1201_v20  ;;  %v1305_v23 = vld [vmem:[#allocation14 + $0x150] sm:$0xff] }
 0x32b   :  { %9215 = vmatpush3.bf16.msra.mxu1 %v9214_v25 }
 0x32c   :  { %9217 = vmatprep.subr.bf16.mxu1 %v9216_v32 }
 0x32f   :  { %9219 = vmatpush3.bf16.msra.mxu1 %v9218_v38  ;;  %v9270_v38 = vpack.c.bf16 %v1308_v35, %v1307_v34 }
 0x330   :  { %9221 = vmatprep.subr.bf16.mxu1 %v9220_v45  ;;  %v1206_v45 = vld [vmem:[#allocation14 + $0x78] sm:$0xff] }
 0x331   :  { %v9242_v47 = vpack.c.bf16 %v1206_v45, %v1205_v44 }
 0x333   :  { %9223 = vmatpush3.bf16.msra.mxu1 %v9222_v50 }
 0x334   :  { %9225 = vmatprep.subr.bf16.mxu1 %v9224_v57  ;;  %v1110_v57 = vlaneseq }
 0x336   :  { %v1111_v58 = vshrl.u32 %v1110_v57, 7  ;;  %v1417_v57 = vld [vmem:[#allocation14 + $0x290] sm:$0xff] }
 0x337   :  { %9227 = vmatpush3.bf16.msra.mxu1 %v9226_v62 }
 0x338   :  { %9229 = vmatprep.subr.bf16.mxu1 %v9228_v6  ;;  %v10680_v59 = vsub.s32 0, %v1111_v58 }
 0x33a   :  { %17075 = vst [vmem:[#allocation53_spill] sm:$0xff] %v10680_v59  ;;  %v1113_v62 = vrot.slane %v1108_v60, %v10680_v59 }
 0x33b   :  { %9231 = vmatpush3.bf16.msra.mxu1 %v9230_v11 }
 0x3fb   :  { %v1019_v15 = vpop.f32.mrb[4].mxu0 }
 0x3fc   :  { %v1021_v16 = vpop.f32.mrb[5].mxu0 }
 0x3fd   :  { %7580 = vmatprep.subr.msk.mxu0 %vm574_vm0, %v1021_v16  ;;  %v1218_v16 = vld [vmem:[#allocation14 + $0xd8] sm:$0xff] }
 0x3fe   :  { %7581 = vmatpush1.msk.msra.mxu0 %vm574_vm0, %v1019_v15  ;;  %v1217_v15 = vld [vmem:[#allocation14 + $0xd0] sm:$0xff] }
 0x3ff   :  { %7582 = vmatmul.mubr.msk.f32.vlgmr.msra.gmra.mrb[2].mxu0 %vm570_vm1, %v7579_v17  ;;  %9245 = vmatprep.subr.bf16.mxu0 %v9244_v24  ;;  %v1321_v17 = vld [vmem:[#allocation14 + $0x1d0] sm:$0xff]  ;;  %v9232_v18 = vpack.c.bf16 %v1218_v16, %v1217_v15  ;;  %v1306_v24 = vld [vmem:[#allocation14 + $0x158] sm:$0xff] }
 0x400   :  { %9247 = vmatpush3.bf16.msra.mxu0 %v9246_v28  ;;  %v9264_v22 = vpack.c.bf16 %v1322_v19, %v1321_v17  ;;  %v9266_v25 = vpack.c.bf16 %v1306_v24, %v1305_v23  ;;  %v1323_v28 = vld [vmem:[#allocation14 + $0x1e0] sm:$0xff] }
 0x401   :  { %9249 = vmatprep.subr.bf16.mxu0 %v9248_v37  ;;  %9233 = vmatprep.subr.bf16.mxu1 %v9232_v18  ;;  %v9268_v32 = vpack.c.bf16 %v1324_v30, %v1323_v28  ;;  %v9238_v37 = vpack.c.bf16 %v1204_v33, %v1203_v31 }
 0x402   :  { %9235 = vmatpush3.bf16.msra.mxu1 %v9234_v36 }
 0x403   :  { %9237 = vmatprep.subr.bf16.mxu1 %v9236_v29 }
 0x404   :  { %9251 = vmatpush3.bf16.msra.mxu0 %v9250_v41  ;;  %v1325_v41 = vld [vmem:[#allocation14 + $0x1f0] sm:$0xff] }
 0x405   :  { %9253 = vmatprep.subr.bf16.mxu0 %v9252_v49  ;;  %v9272_v46 = vpack.c.bf16 %v1326_v43, %v1325_v41  ;;  %v1310_v49 = vld [vmem:[#allocation14 + $0x178] sm:$0xff]  ;;  %v1166_v41 = vrot.slane %v1161_v39, %v10680_v59 }
 0x406   :  { %9239 = vmatpush3.bf16.msra.mxu1 %v9238_v37  ;;  %v9274_v50 = vpack.c.bf16 %v1310_v49, %v1309_v48 }
 0x407   :  { %9241 = vmatprep.subr.bf16.mxu1 %v9240_v42 }
 0x408   :  { %9255 = vmatpush3.bf16.msra.mxu0 %v9254_v53  ;;  %v1519_v53 = vld [vmem:[#allocation14 + $0x380] sm:$0xff] }
 0x409   :  { %9257 = vmatprep.subr.bf16.mxu0 %v9256_v61  ;;  %v9308_v56 = vpack.c.bf16 %v1520_v55, %v1519_v53  ;;  %v1116_v61 = vsub.s32 1, %v1111_v58  ;;  %v1400_v53 = vld [vmem:[#allocation14 + $0x208] sm:$0xff]  ;;  %v1418_v58 = vld [vmem:[#allocation14 + $0x298] sm:$0xff] }
 0x40a   :  { %9243 = vmatpush3.bf16.msra.mxu1 %v9242_v47  ;;  %v1504_v55 = vld [vmem:[#allocation14 + $0x308] sm:$0xff] }
 0x40b   :  { %9277 = vmatprep.subr.bf16.mxu1 %v9276_v54  ;;  %v1117_v63 = vrot.slane %v1108_v60, %v1116_v61  ;;  %v1170_v43 = vrot.slane %v1161_v39, %v1116_v61  ;;  %v1184_v48 = vrot.slane %v1175_v40, %v1116_v61  ;;  %v1503_v54 = vld [vmem:[#allocation14 + $0x300] sm:$0xff]  ;;  %v1521_v60 = vld [vmem:[#allocation14 + $0x390] sm:$0xff] }
 0x40c   :  { %9259 = vmatpush3.bf16.msra.mxu0 %v9258_v2  ;;  %v1505_v61 = vld [vmem:[#allocation14 + $0x310] sm:$0xff]  ;;  %v1407_v39 = vld [vmem:[#allocation14 + $0x240] sm:$0xff] }
 0x40d   :  { %9261 = vmatprep.subr.bf16.mxu0 %v9260_v10 }
 0x410   :  { %9263 = vmatpush3.bf16.msra.mxu0 %v9262_v14 }
 0x411   :  { %9265 = vmatprep.subr.bf16.mxu0 %v9264_v22 }
 0x414   :  { %9267 = vmatpush3.bf16.msra.mxu0 %v9266_v25 }
 0x415   :  { %9269 = vmatprep.subr.bf16.mxu0 %v9268_v32 }
 0x418   :  { %9271 = vmatpush3.bf16.msra.mxu0 %v9270_v38 }
 0x419   :  { %9273 = vmatprep.subr.bf16.mxu0 %v9272_v46  ;;  %v1180_v46 = vrot.slane %v1175_v40, %v10680_v59  ;;  %v1408_v40 = vld [vmem:[#allocation14 + $0x248] sm:$0xff] }
 0x41c   :  { %9275 = vmatpush3.bf16.msra.mxu0 %v9274_v50 }
 0x41d   :  { %9309 = vmatprep.subr.bf16.mxu0 %v9308_v56 }
 0x4d2   :  { %v1101_v1 = vpop.f32.mrb[2].mxu0 }
 0x4d3   :  { %v1120_v2 = vadd.f32 %v1113_v62, %v1101_v1  ;;  %v1103_v3 = vpop.f32.mrb[3].mxu0  ;;  %v1522_v62 = vld [vmem:[#allocation14 + $0x398] sm:$0xff]  ;;  %v9278_v1 = vpack.c.bf16 %v1400_v53, %v1399_v51  ;;  %v1409_v51 = vld [vmem:[#allocation14 + $0x250] sm:$0xff] }
 0x4d4   :  { %v1121_v4 = vadd.f32 %v1117_v63, %v1103_v3  ;;  %v1401_v3 = vld [vmem:[#allocation14 + $0x210] sm:$0xff] }
 0x4d5   :  { %v1122_v5 = vrot.slane %v1120_v2, 4 }
 0x4d6   :  { %v1128_v6 = vrot.slane %v1121_v4, 4 }
 0x4d7   :  { %v1123_v7 = vadd.f32 %v1122_v5, %v1120_v2 }
 0x4d8   :  { %v1129_v8 = vadd.f32 %v1128_v6, %v1121_v4  ;;  %v1506_v6 = vld [vmem:[#allocation14 + $0x318] sm:$0xff] }
 0x4d9   :  { %v1124_v9 = vrot.slane %v1123_v7, 2 }
 0x4da   :  { %v1130_v10 = vrot.slane %v1129_v8, 2 }
 0x4db   :  { %v1125_v11 = vadd.f32 %v1124_v9, %v1123_v7  ;;  %v1419_v7 = vld [vmem:[#allocation14 + $0x2a0] sm:$0xff]  ;;  %v9312_v9 = vpack.c.bf16 %v1522_v62, %v1521_v60  ;;  %v1532_v62 = vld [vmem:[#allocation14 + $0x3e8] sm:$0xff] }
 0x4dc   :  { %v1131_v12 = vadd.f32 %v1130_v10, %v1129_v8  ;;  %v9280_v8 = vpack.c.bf16 %v1418_v58, %v1417_v57  ;;  %v1420_v10 = vld [vmem:[#allocation14 + $0x2a8] sm:$0xff]  ;;  %v1427_v57 = vld [vmem:[#allocation14 + $0x2e0] sm:$0xff] }
 0x4dd   :  { %v1126_v13 = vrot.slane %v1125_v11, 1  ;;  %v1428_v58 = vld [vmem:[#allocation14 + $0x2e8] sm:$0xff]  ;;  %v1531_v60 = vld [vmem:[#allocation14 + $0x3e0] sm:$0xff] }
 0x4de   :  { %v1132_v14 = vrot.slane %v1131_v12, 1 }
 0x4df   :  { %v1127_v15 = vadd.f32 %v1126_v13, %v1125_v11  ;;  %v1523_v11 = vld [vmem:[#allocation14 + $0x3a0] sm:$0xff] }
 0x4e0   :  { %v1133_v16 = vadd.f32 %v1132_v14, %v1131_v12  ;;  %v1524_v12 = vld [vmem:[#allocation14 + $0x3a8] sm:$0xff]  ;;  %v9314_v14 = vpack.c.bf16 %v1506_v6, %v1505_v61  ;;  %v9332_v61 = vpack.c.bf16 %v1532_v62, %v1531_v60  ;;  %v1515_v6 = vld [vmem:[#allocation14 + $0x360] sm:$0xff]  ;;  %v7598_v60 = vld [vmem:[%s17076_s7 + $0xe0] sm:$0xff] }
 0x4e1   :  { %v1135_v17 = vmul.f32 0.125, %v1127_v15  ;;  %v1403_v15 = vld [vmem:[#allocation14 + $0x220] sm:$0xff] }
 0x4e2   :  { %v1136_v18 = vmul.f32 0.125, %v1133_v16  ;;  %v1404_v16 = vld [vmem:[#allocation14 + $0x228] sm:$0xff] }
 0x4e3   :  { %v1137_v19 = vsub.f32 %v1120_v2, %v1135_v17  ;;  %v9310_v2 = vpack.c.bf16 %v1504_v55, %v1503_v54  ;;  %v9284_v17 = vpack.c.bf16 %v1420_v10, %v1419_v7  ;;  %v1513_v55 = vld [vmem:[#allocation14 + $0x350] sm:$0xff]  ;;  %v1516_v7 = vld [vmem:[#allocation14 + $0x368] sm:$0xff] }
 0x4e4   :  { %v1138_v20 = vsub.f32 %v1121_v4, %v1136_v18  ;;  %v1402_v4 = vld [vmem:[#allocation14 + $0x218] sm:$0xff]  ;;  %v9316_v18 = vpack.c.bf16 %v1524_v12, %v1523_v11  ;;  %v1533_v10 = vld [vmem:[#allocation14 + $0x3f0] sm:$0xff] }
 0x4e5   :  { %v1139_v21 = vmul.f32 %v1137_v19, %v1137_v19  ;;  %v9282_v13 = vpack.c.bf16 %v1402_v4, %v1401_v3  ;;  %v1412_v3 = vld [vmem:[#allocation14 + $0x268] sm:$0xff]  ;;  %v9300_v4 = vpack.c.bf16 %v1428_v58, %v1427_v57  ;;  %v1534_v11 = vld [vmem:[#allocation14 + $0x3f8] sm:$0xff]  ;;  %v1695_v58 = vld [vmem:[%s17076_s7 + $0x68] sm:$0xff] }
 0x4e6   :  { %v1140_v22 = vmul.f32 %v1138_v20, %v1138_v20  ;;  %v1694_v57 = vld [vmem:[%s17076_s7 + $0x60] sm:$0xff] }
 0x4e7   :  { %v1141_v36 = vrot.slane %v1139_v21, 4  ;;  %v9364_v62 = vpack.c.bf16 %v1695_v58, %v1694_v57 }
 0x4e8   :  { %v1147_v23 = vrot.slane %v1140_v22, 4 }
 0x4e9   :  { %v1142_v24 = vadd.f32 %v1141_v36, %v1139_v21  ;;  %v1421_v21 = vld [vmem:[#allocation14 + $0x2b0] sm:$0xff] }
 0x4ea   :  { %v1148_v25 = vadd.f32 %v1147_v23, %v1140_v22  ;;  %v1422_v22 = vld [vmem:[#allocation14 + $0x2b8] sm:$0xff]  ;;  %v1525_v36 = vld [vmem:[#allocation14 + $0x3b0] sm:$0xff] }
 0x4eb   :  { %v1143_v26 = vrot.slane %v1142_v24, 2  ;;  %v1526_v23 = vld [vmem:[#allocation14 + $0x3b8] sm:$0xff] }
 0x4ec   :  { %v1149_v27 = vrot.slane %v1148_v25, 2 }
 0x4ed   :  { %v1144_v28 = vadd.f32 %v1143_v26, %v1142_v24  ;;  %v9286_v24 = vpack.c.bf16 %v1404_v16, %v1403_v15  ;;  %v1405_v26 = vld [vmem:[#allocation14 + $0x230] sm:$0xff]  ;;  %v9336_v16 = vpack.c.bf16 %v1534_v11, %v1533_v10  ;;  %v7618_v10 = vld [vmem:[%s17076_s7 + $0x180] sm:$0xff] }
 0x4ee   :  { %v1150_v29 = vadd.f32 %v1149_v27, %v1148_v25  ;;  %v1406_v27 = vld [vmem:[#allocation14 + $0x238] sm:$0xff] }
 0x4ef   :  { %v1145_v30 = vrot.slane %v1144_v28, 1 }
 0x4f0   :  { %v1151_v31 = vrot.slane %v1150_v29, 1 }
 0x4f1   :  { %v1146_v32 = vadd.f32 %v1145_v30, %v1144_v28  ;;  %v9288_v28 = vpack.c.bf16 %v1422_v22, %v1421_v21  ;;  %v1509_v30 = vld [vmem:[#allocation14 + $0x330] sm:$0xff]  ;;  %v1682_v22 = vld [vmem:[%s17076_s7] sm:$0xff] }
 0x4f2   :  { %v1152_v33 = vadd.f32 %v1151_v31, %v1150_v29  ;;  %v9320_v29 = vpack.c.bf16 %v1526_v23, %v1525_v36  ;;  %v1510_v31 = vld [vmem:[#allocation14 + $0x338] sm:$0xff]  ;;  %v1683_v36 = vld [vmem:[%s17076_s7 + $0x8] sm:$0xff] }
 0x4f3   :  { %v1153_v34 = vmul.f32 0.125, %v1146_v32  ;;  %v1423_v32 = vld [vmem:[#allocation14 + $0x2c0] sm:$0xff]  ;;  %v7586_v23 = vld [vmem:[%s17076_s7 + $0x80] sm:$0xff] }
 0x4f4   :  { %v1154_v35 = vmul.f32 0.125, %v1152_v33  ;;  %v1424_v33 = vld [vmem:[#allocation14 + $0x2c8] sm:$0xff] }
 0x4f5   :  { %v1155_v37 = vadd.f32 1e-05, %v1153_v34  ;;  %v1527_v34 = vld [vmem:[#allocation14 + $0x3c0] sm:$0xff] }
 0x4f6   :  { %v1156_v38 = vadd.f32 1e-05, %v1154_v35  ;;  %v1528_v35 = vld [vmem:[#allocation14 + $0x3c8] sm:$0xff] }
 0x4f7   :  { %9641 = vrsqrt.f32 %v1155_v37  ;;  %v9290_v37 = vpack.c.bf16 %v1406_v27, %v1405_v26  ;;  %v1685_v27 = vld [vmem:[%s17076_s7 + $0x18] sm:$0xff] }
 0x4f8   :  { %9643 = vrsqrt.f32 %v1156_v38  ;;  %v9322_v38 = vpack.c.bf16 %v1510_v31, %v1509_v30  ;;  %v7589_v30 = vld [vmem:[%s17076_s7 + $0x98] sm:$0xff] }
 0x501   :  { %v9642_v42 = vpop.eup %9641 }
 0x502   :  { %v9644_v44 = vpop.eup %9643  ;;  %v1159_v45 = vmul.f32 %v9642_v42, %v1137_v19  ;;  %v1507_v19 = vld [vmem:[#allocation14 + $0x320] sm:$0xff]  ;;  %v9324_v42 = vpack.c.bf16 %v1528_v35, %v1527_v34  ;;  %v7590_v34 = vld [vmem:[%s17076_s7 + $0xa0] sm:$0xff] }
 0x503   :  { %v1160_v47 = vmul.f32 %v9644_v44, %v1138_v20  ;;  %v1508_v20 = vld [vmem:[#allocation14 + $0x328] sm:$0xff] }
 0x504   :  { %v1173_v49 = vmul.f32 %v1166_v41, %v1159_v45  ;;  %v9318_v25 = vpack.c.bf16 %v1508_v20, %v1507_v19  ;;  %v9292_v41 = vpack.c.bf16 %v1424_v33, %v1423_v32  ;;  %v1512_v44 = vld [vmem:[#allocation14 + $0x348] sm:$0xff]  ;;  %v1425_v45 = vld [vmem:[#allocation14 + $0x2d0] sm:$0xff]  ;;  %v1518_v19 = vld [vmem:[#allocation14 + $0x378] sm:$0xff] }
 0x505   :  { %v1174_v50 = vmul.f32 %v1170_v43, %v1160_v47  ;;  %v1511_v43 = vld [vmem:[#allocation14 + $0x340] sm:$0xff]  ;;  %v1529_v47 = vld [vmem:[#allocation14 + $0x3d0] sm:$0xff]  ;;  %v1686_v32 = vld [vmem:[%s17076_s7 + $0x20] sm:$0xff] }
 0x506   :  { %v1187_v52 = vadd.f32 %v1180_v46, %v1173_v49  ;;  %v1426_v46 = vld [vmem:[#allocation14 + $0x2d8] sm:$0xff]  ;;  %v9294_v49 = vpack.c.bf16 %v1408_v40, %v1407_v39  ;;  %v1687_v33 = vld [vmem:[%s17076_s7 + $0x28] sm:$0xff]  ;;  %v1688_v39 = vld [vmem:[%s17076_s7 + $0x30] sm:$0xff] }
 0x507   :  { %v1188_v56 = vadd.f32 %v1184_v48, %v1174_v50  ;;  %v1530_v48 = vld [vmem:[#allocation14 + $0x3d8] sm:$0xff]  ;;  %v9326_v50 = vpack.c.bf16 %v1512_v44, %v1511_v43  ;;  %v9296_v53 = vpack.c.bf16 %v1426_v46, %v1425_v45  ;;  %v9348_v35 = vpack.c.bf16 %v1687_v33, %v1686_v32  ;;  %v1689_v40 = vld [vmem:[%s17076_s7 + $0x38] sm:$0xff]  ;;  %v1691_v46 = vld [vmem:[%s17076_s7 + $0x48] sm:$0xff] }
 0x508   :  { %v10685_v5 = vmax.f32 %v1187_v52, 0.0  ;;  %v1410_v52 = vld [vmem:[#allocation14 + $0x258] sm:$0xff]  ;;  %v9328_v54 = vpack.c.bf16 %v1530_v48, %v1529_v47  ;;  %v7593_v43 = vld [vmem:[%s17076_s7 + $0xb8] sm:$0xff] }
 0x509   :  { %v1190_v63 = vmax.f32 %v1188_v56, 0.0  ;;  %v1514_v56 = vld [vmem:[#allocation14 + $0x358] sm:$0xff] }
 0x50a   :  { %v1690_v45 = vld [vmem:[%s17076_s7 + $0x40] sm:$0xff] }
 0x50b   :  { %1287 = vmatprep.mubr.f32.mxu1 %v1190_v63  ;;  %1391 = vmatprep.mubr.f32.mxu0 %v1190_v63  ;;  %v7594_v47 = vld [vmem:[%s17076_s7 + $0xc0] sm:$0xff]  ;;  %v9356_v48 = vpack.c.bf16 %v1691_v46, %v1690_v45 }
 0x50c   :  { %1288 = vmatmul.mubr.f32.vlgmr.msra.gmra.mrb[4].mxu1 %v10685_v5  ;;  %1392 = vmatmul.mubr.f32.vlgmr.msra.gmra.mrb[6].mxu0 %v10685_v5 }
 0x50d   :  { %9279 = vmatpush3.bf16.msra.mxu1 %v9278_v1  ;;  %9311 = vmatpush3.bf16.msra.mxu0 %v9310_v2  ;;  %v9330_v1 = vpack.c.bf16 %v1514_v56, %v1513_v55  ;;  %v1411_v2 = vld [vmem:[#allocation14 + $0x260] sm:$0xff]  ;;  %v7597_v55 = vld [vmem:[%s17076_s7 + $0xd8] sm:$0xff] }
 0x50e   :  { %1495 = vmatprep.mubr.f32.mxu1 %v1190_v63  ;;  %1599 = vmatprep.mubr.f32.mxu0 %v1190_v63  ;;  %v9298_v63 = vpack.c.bf16 %v1410_v52, %v1409_v51  ;;  %v9302_v12 = vpack.c.bf16 %v1412_v3, %v1411_v2  ;;  %v1692_v51 = vld [vmem:[%s17076_s7 + $0x50] sm:$0xff]  ;;  %v1693_v52 = vld [vmem:[%s17076_s7 + $0x58] sm:$0xff] }
 0x50f   :  { %9281 = vmatprep.subr.bf16.mxu1 %v9280_v8  ;;  %9313 = vmatprep.subr.bf16.mxu0 %v9312_v9  ;;  %v1429_v8 = vld [vmem:[#allocation14 + $0x2f0] sm:$0xff]  ;;  %v1430_v9 = vld [vmem:[#allocation14 + $0x2f8] sm:$0xff]  ;;  %v1696_v2 = vld [vmem:[%s17076_s7 + $0x70] sm:$0xff] }
 0x510   :  { %v9304_v15 = vpack.c.bf16 %v1430_v9, %v1429_v8  ;;  %v1697_v3 = vld [vmem:[%s17076_s7 + $0x78] sm:$0xff]  ;;  %v7602_v8 = vld [vmem:[%s17076_s7 + $0x100] sm:$0xff]  ;;  %v7603_v9 = vld [vmem:[%s17076_s7 + $0x108] sm:$0xff] }
 0x511   :  { %9283 = vmatpush3.bf16.msra.mxu1 %v9282_v13  ;;  %9315 = vmatpush3.bf16.msra.mxu0 %v9314_v14  ;;  %v9334_v13 = vpack.c.bf16 %v1516_v7, %v1515_v6  ;;  %v1413_v14 = vld [vmem:[#allocation14 + $0x270] sm:$0xff]  ;;  %v10796_v11 = vpack.c.bf16 %v7603_v9, %v7602_v8 }
 0x512   :  { %9285 = vmatprep.subr.bf16.mxu1 %v9284_v17  ;;  %9317 = vmatprep.subr.bf16.mxu0 %v9316_v18  ;;  %v1414_v17 = vld [vmem:[#allocation14 + $0x278] sm:$0xff]  ;;  %v1517_v18 = vld [vmem:[#allocation14 + $0x370] sm:$0xff] }
 0x513   :  { %v9306_v20 = vpack.c.bf16 %v1414_v17, %v1413_v14  ;;  %v9338_v21 = vpack.c.bf16 %v1518_v19, %v1517_v18  ;;  %v7601_v6 = vld [vmem:[%s17076_s7 + $0xf8] sm:$0xff]  ;;  %v7583_v17 = vld [vmem:[#allocation16] ss:$0 sm:$0xff] }
 0x515   :  { %9287 = vmatpush3.bf16.msra.mxu1 %v9286_v24  ;;  %9319 = vmatpush3.bf16.msra.mxu0 %v9318_v25  ;;  %v9340_v24 = vpack.c.bf16 %v1683_v36, %v1682_v22  ;;  %v7587_v25 = vld [vmem:[%s17076_s7 + $0x88] sm:$0xff] }
 0x516   :  { %9289 = vmatprep.subr.bf16.mxu1 %v9288_v28  ;;  %9321 = vmatprep.subr.bf16.mxu0 %v9320_v29  ;;  %v9372_v26 = vpack.c.bf16 %v7587_v25, %v7586_v23  ;;  %v7588_v28 = vld [vmem:[%s17076_s7 + $0x90] sm:$0xff] }
 0x517   :  { %v9376_v31 = vpack.c.bf16 %v7589_v30, %v7588_v28 }
 0x519   :  { %9291 = vmatpush3.bf16.msra.mxu1 %v9290_v37  ;;  %9323 = vmatpush3.bf16.msra.mxu0 %v9322_v38  ;;  %v7591_v37 = vld [vmem:[%s17076_s7 + $0xa8] sm:$0xff] }
 0x51a   :  { %9293 = vmatprep.subr.bf16.mxu1 %v9292_v41  ;;  %9325 = vmatprep.subr.bf16.mxu0 %v9324_v42  ;;  %v9380_v38 = vpack.c.bf16 %v7591_v37, %v7590_v34  ;;  %v7592_v41 = vld [vmem:[%s17076_s7 + $0xb0] sm:$0xff]  ;;  %v9352_v42 = vpack.c.bf16 %v1689_v40, %v1688_v39 }
 0x51b   :  { %v9384_v44 = vpack.c.bf16 %v7593_v43, %v7592_v41 }
 0x51d   :  { %9295 = vmatpush3.bf16.msra.mxu1 %v9294_v49  ;;  %9327 = vmatpush3.bf16.msra.mxu0 %v9326_v50  ;;  %v7595_v49 = vld [vmem:[%s17076_s7 + $0xc8] sm:$0xff] }
 0x51e   :  { %9297 = vmatprep.subr.bf16.mxu1 %v9296_v53  ;;  %9329 = vmatprep.subr.bf16.mxu0 %v9328_v54  ;;  %v9388_v50 = vpack.c.bf16 %v7595_v49, %v7594_v47  ;;  %v7596_v53 = vld [vmem:[%s17076_s7 + $0xd0] sm:$0xff]  ;;  %v9360_v54 = vpack.c.bf16 %v1693_v52, %v1692_v51 }
 0x51f   :  { %v9392_v56 = vpack.c.bf16 %v7597_v55, %v7596_v53 }
 0x521   :  { %9299 = vmatpush3.bf16.msra.mxu1 %v9298_v63  ;;  %9331 = vmatpush3.bf16.msra.mxu0 %v9330_v1  ;;  %v7599_v63 = vld [vmem:[%s17076_s7 + $0xe8] sm:$0xff] }
 0x522   :  { %9301 = vmatprep.subr.bf16.mxu1 %v9300_v4  ;;  %9333 = vmatprep.subr.bf16.mxu0 %v9332_v61  ;;  %v9396_v1 = vpack.c.bf16 %v7599_v63, %v7598_v60  ;;  %v7600_v4 = vld [vmem:[%s17076_s7 + $0xf0] sm:$0xff]  ;;  %v9368_v61 = vpack.c.bf16 %v1697_v3, %v1696_v2 }
 0x523   :  { %v9400_v7 = vpack.c.bf16 %v7601_v6, %v7600_v4  ;;  %v7585_v4 = vld [vmem:[#allocation19] ss:$0 sm:$0xff] }
 0x525   :  { %9303 = vmatpush3.bf16.msra.mxu1 %v9302_v12  ;;  %9335 = vmatpush3.bf16.msra.mxu0 %v9334_v13  ;;  %v7619_v12 = vld [vmem:[%s17076_s7 + $0x188] sm:$0xff] }
 0x526   :  { %9305 = vmatprep.subr.bf16.mxu1 %v9304_v15  ;;  %9337 = vmatprep.subr.bf16.mxu0 %v9336_v16  ;;  %v10801_v13 = vpack.c.bf16 %v7619_v12, %v7618_v10  ;;  %v7604_v12 = vld [vmem:[%s17076_s7 + $0x110] sm:$0xff] }
 0x529   :  { %9307 = vmatpush3.bf16.msra.mxu1 %v9306_v20  ;;  %9339 = vmatpush3.bf16.msra.mxu0 %v9338_v21 }
 0x52a   :  { %9341 = vmatprep.subr.bf16.mxu1 %v9340_v24  ;;  %9373 = vmatprep.subr.bf16.mxu0 %v9372_v26 }
 0x52c   :  { %1496 = vmatmul.mubr.f32.vlgmr.msra.gmra.mrb[6].mxu1 %v10685_v5  ;;  %1600 = vmatmul.mubr.f32.vlgmr.msra.gmra.mrb[8].mxu0 %v10685_v5  ;;  %v1684_v5 = vld [vmem:[%s17076_s7 + $0x10] sm:$0xff] }
 0x52d   :  { %9343 = vmatpush3.bf16.msra.mxu1 %v9340_v24  ;;  %9375 = vmatpush3.bf16.msra.mxu0 %v9372_v26  ;;  %v9344_v29 = vpack.c.bf16 %v1685_v27, %v1684_v5 }
 0x52e   :  { %9377 = vmatprep.subr.bf16.mxu0 %v9376_v31 }
 0x52f   :  { %9345 = vmatprep.subr.bf16.mxu1 %v9344_v29 }
 0x531   :  { %9347 = vmatpush3.bf16.msra.mxu1 %v9344_v29  ;;  %9379 = vmatpush3.bf16.msra.mxu0 %v9376_v31 }
 0x532   :  { %9349 = vmatprep.subr.bf16.mxu1 %v9348_v35  ;;  %9381 = vmatprep.subr.bf16.mxu0 %v9380_v38 }
 0x535   :  { %9351 = vmatpush3.bf16.msra.mxu1 %v9348_v35  ;;  %9383 = vmatpush3.bf16.msra.mxu0 %v9380_v38 }
 0x536   :  { %9353 = vmatprep.subr.bf16.mxu1 %v9352_v42  ;;  %9385 = vmatprep.subr.bf16.mxu0 %v9384_v44 }
 0x539   :  { %9355 = vmatpush3.bf16.msra.mxu1 %v9352_v42  ;;  %9387 = vmatpush3.bf16.msra.mxu0 %v9384_v44 }
 0x53a   :  { %9357 = vmatprep.subr.bf16.mxu1 %v9356_v48  ;;  %9389 = vmatprep.subr.bf16.mxu0 %v9388_v50 }
 0x53d   :  { %9359 = vmatpush3.bf16.msra.mxu1 %v9356_v48  ;;  %9391 = vmatpush3.bf16.msra.mxu0 %v9388_v50 }
 0x53e   :  { %9361 = vmatprep.subr.bf16.mxu1 %v9360_v54  ;;  %9393 = vmatprep.subr.bf16.mxu0 %v9392_v56 }
 0x541   :  { %9363 = vmatpush3.bf16.msra.mxu1 %v9360_v54  ;;  %9395 = vmatpush3.bf16.msra.mxu0 %v9392_v56 }
 0x542   :  { %9365 = vmatprep.subr.bf16.mxu1 %v9364_v62  ;;  %9397 = vmatprep.subr.bf16.mxu0 %v9396_v1 }
 0x545   :  { %9367 = vmatpush3.bf16.msra.mxu1 %v9364_v62  ;;  %9399 = vmatpush3.bf16.msra.mxu0 %v9396_v1  ;;  %v7584_v62 = vld [vmem:[#allocation17] ss:$0 sm:$0xff] }
 0x546   :  { %9369 = vmatprep.subr.bf16.mxu1 %v9368_v61  ;;  %9401 = vmatprep.subr.bf16.mxu0 %v9400_v7 }
 0x549   :  { %9371 = vmatpush3.bf16.msra.mxu1 %v9368_v61  ;;  %9403 = vmatpush3.bf16.msra.mxu0 %v9400_v7 }
 0x54a   :  { %9405 = vmatprep.subr.bf16.mxu1 %v10796_v11  ;;  %9437 = vmatprep.subr.bf16.mxu0 %v10801_v13 }
 0x5df   :  { %v7938_v14 = vpop.f32.mrb[4].mxu1  ;;  %v7973_v15 = vpop.f32.mrb[6].mxu0 }
 0x5e0   :  { %v7939_v16 = vpop.f32.mrb[5].mxu1  ;;  %v7974_v18 = vpop.f32.mrb[7].mxu0 }
 0x5e1   :  { %v7940_v19 = vadd.f32 %v7939_v16, %v7938_v14  ;;  %v7975_v20 = vadd.f32 %v7974_v18, %v7973_v15  ;;  %v7605_v15 = vld [vmem:[%s17076_s7 + $0x118] sm:$0xff]  ;;  %v7620_v16 = vld [vmem:[%s17076_s7 + $0x190] sm:$0xff] }
 0x5e3   :  { %v1617_v21 = vadd.f32 %v7940_v19, %v7583_v17  ;;  %v1618_v22 = vadd.f32 %v7975_v20, %v7583_v17 }
 0x5e5   :  { %v1621_v36 = vadd.f32 %v1618_v22, %v1617_v21 }
 0x5ff   :  { %v8008_v23 = vpop.f32.mrb[6].mxu1  ;;  %v8043_v24 = vpop.f32.mrb[8].mxu0 }
 0x600   :  { %v8009_v25 = vpop.f32.mrb[7].mxu1  ;;  %v8044_v26 = vpop.f32.mrb[9].mxu0 }
 0x601   :  { %v8010_v5 = vadd.f32 %v8009_v25, %v8008_v23  ;;  %v8045_v27 = vadd.f32 %v8044_v26, %v8043_v24  ;;  %v7607_v24 = vld [vmem:[%s17076_s7 + $0x128] sm:$0xff]  ;;  %v7622_v25 = vld [vmem:[%s17076_s7 + $0x1a0] sm:$0xff] }
 0x602   :  { %v7623_v26 = vld [vmem:[%s17076_s7 + $0x1a8] sm:$0xff] }
 0x603   :  { %v1619_v28 = vadd.f32 %v8010_v5, %v7583_v17  ;;  %v1620_v30 = vadd.f32 %v8045_v27, %v7583_v17  ;;  %v7621_v17 = vld [vmem:[%s17076_s7 + $0x198] sm:$0xff]  ;;  %v7608_v27 = vld [vmem:[%s17076_s7 + $0x130] sm:$0xff] }
 0x605   :  { %v1622_v29 = vadd.f32 %v1621_v36, %v1619_v28  ;;  %v7606_v36 = vld [vmem:[%s17076_s7 + $0x120] sm:$0xff] }
 0x607   :  { %v1623_v31 = vadd.f32 %v1622_v29, %v1620_v30  ;;  %v9444_v29 = vpack.c.bf16 %v7623_v26, %v7622_v25 }
 0x609   :  { %v1624_v32 = vrot.slane %v1623_v31, 4 }
 0x60b   :  { %v1625_v33 = vadd.f32 %v1624_v32, %v1623_v31 }
 0x60d   :  { %v1626_v34 = vrot.slane %v1625_v33, 2 }
 0x60f   :  { %v1627_v35 = vadd.f32 %v1626_v34, %v1625_v33  ;;  %v7610_v33 = vld [vmem:[%s17076_s7 + $0x140] sm:$0xff]  ;;  %v7611_v34 = vld [vmem:[%s17076_s7 + $0x148] sm:$0xff] }
 0x611   :  { %v1628_v37 = vrot.slane %v1627_v35, 1 }
 0x613   :  { %v1629_v38 = vadd.f32 %v1628_v37, %v1627_v35  ;;  %v7626_v35 = vld [vmem:[%s17076_s7 + $0x1c0] sm:$0xff]  ;;  %v7627_v37 = vld [vmem:[%s17076_s7 + $0x1c8] sm:$0xff] }
 0x615   :  { %v1631_v39 = vmul.f32 0.03125, %v1629_v38  ;;  %v9420_v38 = vpack.c.bf16 %v7611_v34, %v7610_v33 }
 0x617   :  { %v1632_v40 = vsub.f32 %v1617_v21, %v1631_v39  ;;  %v1633_v41 = vsub.f32 %v1618_v22, %v1631_v39  ;;  %v1634_v42 = vsub.f32 %v1619_v28, %v1631_v39  ;;  %v1635_v43 = vsub.f32 %v1620_v30, %v1631_v39  ;;  %v7625_v30 = vld [vmem:[%s17076_s7 + $0x1b8] sm:$0xff] }
 0x618   :  { %v9408_v21 = vpack.c.bf16 %v7605_v15, %v7604_v12  ;;  %v9440_v22 = vpack.c.bf16 %v7621_v17, %v7620_v16  ;;  %v9412_v28 = vpack.c.bf16 %v7607_v24, %v7606_v36  ;;  %v9452_v39 = vpack.c.bf16 %v7627_v37, %v7626_v35  ;;  %v7657_v12 = vld [vmem:[%s17077_s1 + $0x60] sm:$0xff]  ;;  %v2365_v17 = vld [vmem:[%s17077_s1 + $0x30] sm:$0xff] }
 0x619   :  { %v1636_v44 = vmul.f32 %v1632_v40, %v1632_v40  ;;  %v1637_v45 = vmul.f32 %v1633_v41, %v1633_v41  ;;  %v1638_v46 = vmul.f32 %v1634_v42, %v1634_v42  ;;  %v1639_v48 = vmul.f32 %v1635_v43, %v1635_v43 }
 0x61b   :  { %v1640_v47 = vadd.f32 %v1637_v45, %v1636_v44 }
 0x61d   :  { %v1641_v49 = vadd.f32 %v1640_v47, %v1638_v46  ;;  %v7614_v46 = vld [vmem:[%s17076_s7 + $0x160] sm:$0xff]  ;;  %v7615_v47 = vld [vmem:[%s17076_s7 + $0x168] sm:$0xff] }
 0x61f   :  { %v1642_v50 = vadd.f32 %v1641_v49, %v1639_v48  ;;  %v7630_v48 = vld [vmem:[%s17076_s7 + $0x1e0] sm:$0xff]  ;;  %v7631_v49 = vld [vmem:[%s17076_s7 + $0x1e8] sm:$0xff] }
 0x621   :  { %v1643_v51 = vrot.slane %v1642_v50, 4 }
 0x623   :  { %v1644_v52 = vadd.f32 %v1643_v51, %v1642_v50  ;;  %v9428_v50 = vpack.c.bf16 %v7615_v47, %v7614_v46  ;;  %v9460_v51 = vpack.c.bf16 %v7631_v49, %v7630_v48 }
 0x625   :  { %v1645_v53 = vrot.slane %v1644_v52, 2 }
 0x627   :  { %v1646_v54 = vadd.f32 %v1645_v53, %v1644_v52  ;;  %v7616_v52 = vld [vmem:[%s17076_s7 + $0x170] sm:$0xff]  ;;  %v7617_v53 = vld [vmem:[%s17076_s7 + $0x178] sm:$0xff] }
 0x629   :  { %v1647_v55 = vrot.slane %v1646_v54, 1 }
 0x62b   :  { %v1648_v56 = vadd.f32 %v1647_v55, %v1646_v54  ;;  %v7632_v54 = vld [vmem:[%s17076_s7 + $0x1f0] sm:$0xff]  ;;  %v7633_v55 = vld [vmem:[%s17076_s7 + $0x1f8] sm:$0xff] }
 0x62d   :  { %v1649_v57 = vmul.f32 0.03125, %v1648_v56  ;;  %v9432_v56 = vpack.c.bf16 %v7617_v53, %v7616_v52  ;;  %v7678_v52 = vld [vmem:[%s17077_s1 + $0x88] sm:$0xff] }
 0x62f   :  { %v1650_v58 = vadd.f32 1e-05, %v1649_v57  ;;  %v9464_v57 = vpack.c.bf16 %v7633_v55, %v7632_v54 }
 0x631   :  { %9645 = vrsqrt.f32 %v1650_v58  ;;  %v2359_v58 = vld [vmem:[%s17077_s1] sm:$0xff] }
 0x63b   :  { %v9646_v60 = vpop.eup %9645 }
 0x63c   :  { %v1655_v63 = vmul.f32 %v9646_v60, %v1635_v43  ;;  %v1652_v1 = vmul.f32 %v9646_v60, %v1632_v40  ;;  %v1653_v2 = vmul.f32 %v9646_v60, %v1633_v41  ;;  %v1654_v3 = vmul.f32 %v9646_v60, %v1634_v42  ;;  %v7612_v40 = vld [vmem:[%s17076_s7 + $0x150] sm:$0xff]  ;;  %v7613_v41 = vld [vmem:[%s17076_s7 + $0x158] sm:$0xff]  ;;  %v2360_v60 = vld [vmem:[%s17077_s1 + $0x8] sm:$0xff] }
 0x63d   :  { %v7628_v42 = vld [vmem:[%s17076_s7 + $0x1d0] sm:$0xff]  ;;  %v7629_v43 = vld [vmem:[%s17076_s7 + $0x1d8] sm:$0xff]  ;;  %v9424_v44 = vpack.c.bf16 %v7613_v41, %v7612_v40 }
 0x63e   :  { %v1663_v61 = vmul.f32 %v7584_v62, %v1652_v1  ;;  %v1664_v6 = vmul.f32 %v7584_v62, %v1653_v2  ;;  %v1665_v7 = vmul.f32 %v7584_v62, %v1654_v3  ;;  %v1666_v8 = vmul.f32 %v7584_v62, %v1655_v63  ;;  %v7653_v62 = vld [vmem:[%s17077_s1 + $0x40] sm:$0xff]  ;;  %v7654_v1 = vld [vmem:[%s17077_s1 + $0x48] sm:$0xff]  ;;  %v2361_v2 = vld [vmem:[%s17077_s1 + $0x10] sm:$0xff] }
 0x63f   :  { %v9456_v45 = vpack.c.bf16 %v7629_v43, %v7628_v42  ;;  %v9468_v63 = vpack.c.bf16 %v2360_v60, %v2359_v58  ;;  %v2362_v3 = vld [vmem:[%s17077_s1 + $0x18] sm:$0xff] }
 0x640   :  { %v1674_v9 = vadd.f32 %v7585_v4, %v1663_v61  ;;  %v1675_v10 = vadd.f32 %v7585_v4, %v1664_v6  ;;  %v1676_v14 = vadd.f32 %v7585_v4, %v1665_v7  ;;  %v1677_v20 = vadd.f32 %v7585_v4, %v1666_v8  ;;  %v7655_v6 = vld [vmem:[%s17077_s1 + $0x50] sm:$0xff]  ;;  %v7656_v7 = vld [vmem:[%s17077_s1 + $0x58] sm:$0xff]  ;;  %v2363_v8 = vld [vmem:[%s17077_s1 + $0x20] sm:$0xff] }
 0x641   :  { %v9484_v4 = vpack.c.bf16 %v7654_v1, %v7653_v62  ;;  %v9472_v61 = vpack.c.bf16 %v2362_v3, %v2361_v2 }
 0x642   :  { %v1678_v18 = vmax.f32 %v1674_v9, 0.0  ;;  %v10817_v19 = vmax.f32 %v1675_v10, 0.0  ;;  %v10824_v23 = vmax.f32 %v1676_v14, 0.0  ;;  %v10839_v5 = vmax.f32 %v1677_v20, 0.0  ;;  %v2364_v10 = vld [vmem:[%s17077_s1 + $0x28] sm:$0xff]  ;;  %v7660_v20 = vld [vmem:[%s17077_s1 + $0x78] sm:$0xff] }
 0x643   :  { %v9488_v9 = vpack.c.bf16 %v7656_v7, %v7655_v6  ;;  %v7658_v14 = vld [vmem:[%s17077_s1 + $0x68] sm:$0xff]  ;;  %v9476_v15 = vpack.c.bf16 %v2364_v10, %v2363_v8 }
 0x644   :  { %8466 = vmatprep.mubr.f32.mxu1 %v1678_v18  ;;  %8504 = vmatprep.mubr.f32.mxu0 %v1678_v18  ;;  %v9492_v16 = vpack.c.bf16 %v7658_v14, %v7657_v12 }
 0x645   :  { %8467 = vmatmul.mubr.f32.vlgmr.msra.gmra.mrb[8].mxu1 %v10817_v19  ;;  %8505 = vmatmul.mubr.f32.vlgmr.msra.gmra.mrb[10].mxu0 %v10817_v19 }
 0x646   :  { %9407 = vmatpush3.bf16.msra.mxu1 %v10796_v11  ;;  %9439 = vmatpush3.bf16.msra.mxu0 %v10801_v13  ;;  %v7609_v11 = vld [vmem:[%s17076_s7 + $0x138] sm:$0xff]  ;;  %v7624_v13 = vld [vmem:[%s17076_s7 + $0x1b0] sm:$0xff] }
 0x647   :  { %8469 = vmatprep.mubr.f32.mxu1 %v10824_v23  ;;  %8507 = vmatprep.mubr.f32.mxu0 %v10824_v23  ;;  %v9416_v31 = vpack.c.bf16 %v7609_v11, %v7608_v27  ;;  %v9448_v32 = vpack.c.bf16 %v7625_v30, %v7624_v13 }
 0x648   :  { %9409 = vmatprep.subr.bf16.mxu1 %v9408_v21  ;;  %9441 = vmatprep.subr.bf16.mxu0 %v9440_v22 }
 0x649   :  { %8470 = vmatmul.mubr.f32.gmra.mrb[10].mxu1 %v10839_v5  ;;  %8508 = vmatmul.mubr.f32.gmra.mrb[12].mxu0 %v10839_v5 }
 0x64a   :  { %9411 = vmatpush3.bf16.msra.mxu1 %v9408_v21  ;;  %9443 = vmatpush3.bf16.msra.mxu0 %v9440_v22 }
 0x64b   :  { %8542 = vmatprep.mubr.f32.mxu1 %v1678_v18  ;;  %8580 = vmatprep.mubr.f32.mxu0 %v1678_v18  ;;  %v2366_v18 = vld [vmem:[%s17077_s1 + $0x38] sm:$0xff] }
 0x64c   :  { %9413 = vmatprep.subr.bf16.mxu1 %v9412_v28  ;;  %9445 = vmatprep.subr.bf16.mxu0 %v9444_v29  ;;  %v9480_v21 = vpack.c.bf16 %v2366_v18, %v2365_v17 }
 0x64e   :  { %9415 = vmatpush3.bf16.msra.mxu1 %v9412_v28  ;;  %9447 = vmatpush3.bf16.msra.mxu0 %v9444_v29  ;;  %v10965_v29 = vld [vmem:[#allocation20] ss:$0 sm:$0xff] }
 0x64f   :  { %9417 = vmatprep.subr.bf16.mxu1 %v9416_v31  ;;  %9449 = vmatprep.subr.bf16.mxu0 %v9448_v32 }
 0x652   :  { %9419 = vmatpush3.bf16.msra.mxu1 %v9416_v31  ;;  %9451 = vmatpush3.bf16.msra.mxu0 %v9448_v32 }
 0x653   :  { %9421 = vmatprep.subr.bf16.mxu1 %v9420_v38  ;;  %9453 = vmatprep.subr.bf16.mxu0 %v9452_v39 }
 0x656   :  { %9423 = vmatpush3.bf16.msra.mxu1 %v9420_v38  ;;  %9455 = vmatpush3.bf16.msra.mxu0 %v9452_v39 }
 0x657   :  { %9425 = vmatprep.subr.bf16.mxu1 %v9424_v44  ;;  %9457 = vmatprep.subr.bf16.mxu0 %v9456_v45 }
 0x65a   :  { %9427 = vmatpush3.bf16.msra.mxu1 %v9424_v44  ;;  %9459 = vmatpush3.bf16.msra.mxu0 %v9456_v45 }
 0x65b   :  { %9429 = vmatprep.subr.bf16.mxu1 %v9428_v50  ;;  %9461 = vmatprep.subr.bf16.mxu0 %v9460_v51 }
 0x65e   :  { %9431 = vmatpush3.bf16.msra.mxu1 %v9428_v50  ;;  %9463 = vmatpush3.bf16.msra.mxu0 %v9460_v51  ;;  %v7677_v51 = vld [vmem:[%s17077_s1 + $0x80] sm:$0xff] }
 0x65f   :  { %9433 = vmatprep.subr.bf16.mxu1 %v9432_v56  ;;  %9465 = vmatprep.subr.bf16.mxu0 %v9464_v57  ;;  %v11001_v55 = vpack.c.bf16 %v7678_v52, %v7677_v51 }
 0x662   :  { %9435 = vmatpush3.bf16.msra.mxu1 %v9432_v56  ;;  %9467 = vmatpush3.bf16.msra.mxu0 %v9464_v57 }
 0x663   :  { %9469 = vmatprep.subr.bf16.mxu1 %v9468_v63  ;;  %9485 = vmatprep.subr.bf16.mxu0 %v9484_v4 }
 0x665   :  { %8543 = vmatmul.mubr.f32.vlgmr.msra.gmra.mrb[12].mxu1 %v10817_v19  ;;  %8581 = vmatmul.mubr.f32.vlgmr.msra.gmra.mrb[14].mxu0 %v10817_v19  ;;  %v7659_v19 = vld [vmem:[%s17077_s1 + $0x70] sm:$0xff] }
 0x666   :  { %8545 = vmatprep.mubr.f32.mxu1 %v10824_v23  ;;  %8583 = vmatprep.mubr.f32.mxu0 %v10824_v23  ;;  %v9496_v22 = vpack.c.bf16 %v7660_v20, %v7659_v19 }
 0x667   :  { %9471 = vmatpush3.bf16.msra.mxu1 %v9468_v63  ;;  %9487 = vmatpush3.bf16.msra.mxu0 %v9484_v4 }
 0x668   :  { %9473 = vmatprep.subr.bf16.mxu1 %v9472_v61  ;;  %9489 = vmatprep.subr.bf16.mxu0 %v9488_v9 }
 0x669   :  { %8546 = vmatmul.mubr.f32.gmra.mrb[14].mxu1 %v10839_v5  ;;  %8584 = vmatmul.mubr.f32.gmra.mrb[16].mxu0 %v10839_v5 }
 0x66b   :  { %9475 = vmatpush3.bf16.msra.mxu1 %v9472_v61  ;;  %9491 = vmatpush3.bf16.msra.mxu0 %v9488_v9 }
 0x66c   :  { %9477 = vmatprep.subr.bf16.mxu1 %v9476_v15  ;;  %9493 = vmatprep.subr.bf16.mxu0 %v9492_v16 }
 0x66f   :  { %9479 = vmatpush3.bf16.msra.mxu1 %v9476_v15  ;;  %9495 = vmatpush3.bf16.msra.mxu0 %v9492_v16 }
 0x670   :  { %9481 = vmatprep.subr.bf16.mxu1 %v9480_v21  ;;  %9497 = vmatprep.subr.bf16.mxu0 %v9496_v22 }
 0x673   :  { %9483 = vmatpush3.bf16.msra.mxu1 %v9480_v21  ;;  %9499 = vmatpush3.bf16.msra.mxu0 %v9496_v22 }
 0x674   :  { %9501 = vmatprep.subr.bf16.mxu1 %v11001_v55 }
 0x718   :  { %v8468_v36 = vpop.f32.mrb[8].mxu1  ;;  %v8506_v23 = vpop.f32.mrb[10].mxu0 }
 0x719   :  { %1785 = vst.msk [vmem:[#allocation3 + $0x8] sm:$0xff] %vm1783_vm2, %v8468_v36  ;;  %1891 = vst.msk [vmem:[#allocation3 + $0x28] sm:$0xff] %vm1783_vm2, %v8506_v23  ;;  %v1764_v24 = vpop.f32.mrb[9].mxu1  ;;  %v1871_v25 = vpop.f32.mrb[11].mxu0 }
 0x71a   :  { %1784 = vst.msk [vmem:[#allocation3] sm:$0xff] %vm1783_vm2, %v1764_v24  ;;  %1890 = vst.msk [vmem:[#allocation3 + $0x20] sm:$0xff] %vm1783_vm2, %v1871_v25 }
 0x71c   :  { %v8471_v26 = vpop.f32.mrb[10].mxu1  ;;  %v8509_v5 = vpop.f32.mrb[12].mxu0 }
 0x71d   :  { %1787 = vst.msk [vmem:[#allocation3 + $0x18] sm:$0xff] %vm1783_vm2, %v8471_v26  ;;  %1893 = vst.msk [vmem:[#allocation3 + $0x38] sm:$0xff] %vm1783_vm2, %v8509_v5  ;;  %v1774_v27 = vpop.f32.mrb[11].mxu1  ;;  %v1881_v28 = vpop.f32.mrb[13].mxu0 }
 0x71e   :  { %1786 = vst.msk [vmem:[#allocation3 + $0x10] sm:$0xff] %vm1783_vm2, %v1774_v27  ;;  %1892 = vst.msk [vmem:[#allocation3 + $0x30] sm:$0xff] %vm1783_vm2, %v1881_v28 }
 0x720   :  { %v2107_v13 = vld [vmem:[#allocation3 + $0x8] sm:$0xff] }
 0x721   :  { %v2106_v11 = vld [vmem:[#allocation3] sm:$0xff]  ;;  %v10971_v32 = vadd.f32 %v10965_v29, %v2107_v13  ;;  %v2111_v45 = vld [vmem:[#allocation3 + $0x28] sm:$0xff] }
 0x722   :  { %v10968_v31 = vadd.f32 %v10965_v29, %v2106_v11  ;;  %v2110_v41 = vld [vmem:[#allocation3 + $0x20] sm:$0xff]  ;;  %v10991_v47 = vadd.f32 %v10965_v29, %v2111_v45 }
 0x723   :  { %v2146_v35 = vsel %vm1783_vm2, %v10971_v32, 0.0  ;;  %v10986_v43 = vadd.f32 %v10965_v29, %v2110_v41 }
 0x724   :  { %v2145_v34 = vsel %vm1783_vm2, %v10968_v31, 0.0  ;;  %v2109_v37 = vld [vmem:[#allocation3 + $0x18] sm:$0xff]  ;;  %v2154_v60 = vsel %vm1783_vm2, %v10991_v47, 0.0 }
 0x725   :  { %v2108_v30 = vld [vmem:[#allocation3 + $0x10] sm:$0xff]  ;;  %v2147_v39 = vadd.f32 %v2146_v35, %v2145_v34  ;;  %v10983_v40 = vadd.f32 %v10965_v29, %v2109_v37  ;;  %v2152_v48 = vsel %vm1783_vm2, %v10986_v43, 0.0  ;;  %v2113_v62 = vld [vmem:[#allocation3 + $0x38] sm:$0xff] }
 0x726   :  { %v10974_v33 = vadd.f32 %v10965_v29, %v2108_v30  ;;  %v2112_v49 = vld [vmem:[#allocation3 + $0x30] sm:$0xff]  ;;  %v2136_v61 = vadd.f32 %v10965_v29, %v2113_v62 }
 0x727   :  { %v2150_v44 = vsel %vm1783_vm2, %v10983_v40, 0.0  ;;  %v11008_v58 = vadd.f32 %v10965_v29, %v2112_v49 }
 0x728   :  { %v2148_v38 = vsel %vm1783_vm2, %v10974_v33, 0.0  ;;  %v2158_v14 = vsel %vm1783_vm2, %v2136_v61, 0.0 }
 0x729   :  { %v2149_v42 = vadd.f32 %v2148_v38, %v2147_v39  ;;  %v2156_v6 = vsel %vm1783_vm2, %v11008_v58, 0.0 }
 0x72b   :  { %v2151_v46 = vadd.f32 %v2150_v44, %v2149_v42 }
 0x72d   :  { %v2153_v50 = vadd.f32 %v2152_v48, %v2151_v46 }
 0x72f   :  { %v2155_v63 = vadd.f32 %v2154_v60, %v2153_v50 }
 0x731   :  { %v2157_v7 = vadd.f32 %v2156_v6, %v2155_v63 }
 0x733   :  { %v2159_v15 = vadd.f32 %v2158_v14, %v2157_v7 }
 0x738   :  { %v8544_v53 = vpop.f32.mrb[12].mxu1  ;;  %v8582_v54 = vpop.f32.mrb[14].mxu0 }
 0x739   :  { %1997 = vst.msk [vmem:[#allocation3 + $0x48] sm:$0xff] %vm1783_vm2, %v8544_v53  ;;  %2103 = vst.msk [vmem:[#allocation3 + $0x68] sm:$0xff] %vm1783_vm2, %v8582_v54  ;;  %v1977_v56 = vpop.f32.mrb[13].mxu1  ;;  %v2083_v57 = vpop.f32.mrb[15].mxu0 }
 0x73a   :  { %1996 = vst.msk [vmem:[#allocation3 + $0x40] sm:$0xff] %vm1783_vm2, %v1977_v56  ;;  %2102 = vst.msk [vmem:[#allocation3 + $0x60] sm:$0xff] %vm1783_vm2, %v2083_v57 }
 0x73c   :  { %v8547_v1 = vpop.f32.mrb[14].mxu1  ;;  %v8585_v2 = vpop.f32.mrb[16].mxu0 }
 0x73d   :  { %1999 = vst.msk [vmem:[#allocation3 + $0x58] sm:$0xff] %vm1783_vm2, %v8547_v1  ;;  %2105 = vst.msk [vmem:[#allocation3 + $0x78] sm:$0xff] %vm1783_vm2, %v8585_v2  ;;  %v1987_v3 = vpop.f32.mrb[15].mxu1  ;;  %v2093_v4 = vpop.f32.mrb[17].mxu0 }
 0x73e   :  { %1998 = vst.msk [vmem:[#allocation3 + $0x50] sm:$0xff] %vm1783_vm2, %v1987_v3  ;;  %2104 = vst.msk [vmem:[#allocation3 + $0x70] sm:$0xff] %vm1783_vm2, %v2093_v4 }
 0x740   :  { %v2115_v8 = vld [vmem:[#allocation3 + $0x48] sm:$0xff] }
 0x741   :  { %v2114_v9 = vld [vmem:[#allocation3 + $0x40] sm:$0xff]  ;;  %v11021_v10 = vadd.f32 %v10965_v29, %v2115_v8  ;;  %v2119_v23 = vld [vmem:[#allocation3 + $0x68] sm:$0xff] }
 0x742   :  { %v11024_v12 = vadd.f32 %v10965_v29, %v2114_v9  ;;  %v2118_v18 = vld [vmem:[#allocation3 + $0x60] sm:$0xff]  ;;  %v11043_v28 = vadd.f32 %v10965_v29, %v2119_v23 }
 0x743   :  { %v2162_v36 = vsel %vm1783_vm2, %v11021_v10, 0.0  ;;  %v11038_v25 = vadd.f32 %v10965_v29, %v2118_v18 }
 0x744   :  { %v2117_v16 = vld [vmem:[#allocation3 + $0x58] sm:$0xff]  ;;  %v2160_v17 = vsel %vm1783_vm2, %v11024_v12, 0.0  ;;  %v2170_v38 = vsel %vm1783_vm2, %v11043_v28, 0.0 }
 0x745   :  { %v2116_v19 = vld [vmem:[#allocation3 + $0x50] sm:$0xff]  ;;  %v2161_v20 = vadd.f32 %v2160_v17, %v2159_v15  ;;  %v11030_v21 = vadd.f32 %v10965_v29, %v2117_v16  ;;  %v2121_v13 = vld [vmem:[#allocation3 + $0x78] sm:$0xff]  ;;  %v2168_v34 = vsel %vm1783_vm2, %v11038_v25, 0.0 }
 0x746   :  { %v11033_v22 = vadd.f32 %v10965_v29, %v2116_v19  ;;  %v2120_v5 = vld [vmem:[#allocation3 + $0x70] sm:$0xff]  ;;  %v11055_v39 = vadd.f32 %v10965_v29, %v2121_v13 }
 0x747   :  { %v2163_v24 = vadd.f32 %v2162_v36, %v2161_v20  ;;  %v2166_v11 = vsel %vm1783_vm2, %v11030_v21, 0.0  ;;  %v11050_v35 = vadd.f32 %v10965_v29, %v2120_v5 }
 0x748   :  { %v2164_v26 = vsel %vm1783_vm2, %v11033_v22, 0.0  ;;  %v2174_v45 = vsel %vm1783_vm2, %v11055_v39, 0.0 }
 0x749   :  { %v2165_v27 = vadd.f32 %v2164_v26, %v2163_v24  ;;  %v2172_v42 = vsel %vm1783_vm2, %v11050_v35, 0.0 }
 0x74b   :  { %v2167_v30 = vadd.f32 %v2166_v11, %v2165_v27 }
 0x74d   :  { %v2169_v37 = vadd.f32 %v2168_v34, %v2167_v30 }
 0x74f   :  { %v2171_v41 = vadd.f32 %v2170_v38, %v2169_v37 }
 0x751   :  { %v2173_v44 = vadd.f32 %v2172_v42, %v2171_v41 }
 0x753   :  { %v2175_v46 = vadd.f32 %v2174_v45, %v2173_v44 }
 0x755   :  { %v2176_v48 = vrot.slane %v2175_v46, 4 }
 0x757   :  { %v2177_v49 = vadd.f32 %v2176_v48, %v2175_v46 }
 0x759   :  { %v2178_v50 = vrot.slane %v2177_v49, 2 }
 0x75b   :  { %v2179_v51 = vadd.f32 %v2178_v50, %v2177_v49 }
 0x75d   :  { %v2180_v52 = vrot.slane %v2179_v51, 1 }
 0x75f   :  { %v2181_v53 = vadd.f32 %v2180_v52, %v2179_v51 }
 0x761   :  { %v11061_v54 = vmul.f32 0.0078125, %v2181_v53 }
 0x763   :  { %v11065_v29 = vsub.f32 %v10968_v31, %v11061_v54  ;;  %v11069_v56 = vsub.f32 %v10971_v32, %v11061_v54  ;;  %v11073_v57 = vsub.f32 %v10974_v33, %v11061_v54  ;;  %v11077_v60 = vsub.f32 %v10983_v40, %v11061_v54 }
 0x764   :  { %v11085_v31 = vsub.f32 %v10986_v43, %v11061_v54  ;;  %v11091_v33 = vsub.f32 %v10991_v47, %v11061_v54  ;;  %v11099_v4 = vsub.f32 %v11008_v58, %v11061_v54  ;;  %v11105_v47 = vsub.f32 %v2136_v61, %v11061_v54 }
 0x765   :  { %v2200_v62 = vmul.f32 %v11065_v29, %v11065_v29  ;;  %v2201_v63 = vmul.f32 %v11069_v56, %v11069_v56  ;;  %v2202_v32 = vmul.f32 %v11073_v57, %v11073_v57  ;;  %v2203_v40 = vmul.f32 %v11077_v60, %v11077_v60 }
 0x766   :  { %v2204_v43 = vmul.f32 %v11085_v31, %v11085_v31  ;;  %v2205_v8 = vmul.f32 %v11091_v33, %v11091_v33  ;;  %v11160_v58 = vsub.f32 %v11024_v12, %v11061_v54  ;;  %v2206_v61 = vmul.f32 %v11099_v4, %v11099_v4 }
 0x767   :  { %v2216_v1 = vsel %vm1783_vm2, %v2200_v62, 0.0  ;;  %v2217_v2 = vsel %vm1783_vm2, %v2201_v63, 0.0  ;;  %v2219_v6 = vsel %vm1783_vm2, %v2202_v32, 0.0  ;;  %v2221_v9 = vsel %vm1783_vm2, %v2203_v40, 0.0 }
 0x768   :  { %v2218_v3 = vadd.f32 %v2217_v2, %v2216_v1  ;;  %v2223_v15 = vsel %vm1783_vm2, %v2204_v43, 0.0  ;;  %v11167_v17 = vsub.f32 %v11021_v10, %v11061_v54  ;;  %v2207_v18 = vmul.f32 %v11105_v47, %v11105_v47 }
 0x769   :  { %v2225_v19 = vsel %vm1783_vm2, %v2205_v8, 0.0  ;;  %v11174_v12 = vsub.f32 %v11033_v22, %v11061_v54  ;;  %v2208_v36 = vmul.f32 %v11160_v58, %v11160_v58  ;;  %v2227_v23 = vsel %vm1783_vm2, %v2206_v61, 0.0 }
 0x76a   :  { %v2220_v7 = vadd.f32 %v2219_v6, %v2218_v3  ;;  %v11181_v10 = vsub.f32 %v11030_v21, %v11061_v54  ;;  %v2209_v26 = vmul.f32 %v11167_v17, %v11167_v17  ;;  %v2229_v5 = vsel %vm1783_vm2, %v2207_v18, 0.0  ;;  %v11234_v18 = vld [vmem:[#allocation23] ss:$0 sm:$0xff] }
 0x76b   :  { %v11188_v22 = vsub.f32 %v11038_v25, %v11061_v54  ;;  %v2210_v11 = vmul.f32 %v11174_v12, %v11174_v12  ;;  %v2231_v13 = vsel %vm1783_vm2, %v2208_v36, 0.0  ;;  %v11195_v21 = vsub.f32 %v11043_v28, %v11061_v54 }
 0x76c   :  { %v2222_v14 = vadd.f32 %v2221_v9, %v2220_v7  ;;  %v2211_v34 = vmul.f32 %v11181_v10, %v11181_v10  ;;  %v2233_v37 = vsel %vm1783_vm2, %v2209_v26, 0.0  ;;  %v11202_v25 = vsub.f32 %v11050_v35, %v11061_v54  ;;  %v11224_v9 = vld [vmem:[#allocation22] ss:$0 sm:$0xff] }
 0x76d   :  { %v2212_v41 = vmul.f32 %v11188_v22, %v11188_v22  ;;  %v2235_v42 = vsel %vm1783_vm2, %v2210_v11, 0.0  ;;  %v11209_v28 = vsub.f32 %v11055_v39, %v11061_v54  ;;  %v2213_v45 = vmul.f32 %v11195_v21, %v11195_v21 }
 0x76e   :  { %v2224_v16 = vadd.f32 %v2223_v15, %v2222_v14  ;;  %v2237_v46 = vsel %vm1783_vm2, %v2211_v34, 0.0  ;;  %v2214_v35 = vmul.f32 %v11202_v25, %v11202_v25 }
 0x76f   :  { %v2239_v49 = vsel %vm1783_vm2, %v2212_v41, 0.0  ;;  %v2215_v51 = vmul.f32 %v11209_v28, %v11209_v28  ;;  %v2241_v52 = vsel %vm1783_vm2, %v2213_v45, 0.0 }
 0x770   :  { %v2226_v20 = vadd.f32 %v2225_v19, %v2224_v16  ;;  %v2243_v39 = vsel %vm1783_vm2, %v2214_v35, 0.0 }
 0x771   :  { %v2245_v62 = vsel %vm1783_vm2, %v2215_v51, 0.0 }
 0x772   :  { %v2228_v24 = vadd.f32 %v2227_v23, %v2226_v20 }
 0x774   :  { %v2230_v27 = vadd.f32 %v2229_v5, %v2228_v24  ;;  %v7679_v5 = vld [vmem:[%s17077_s1 + $0x90] sm:$0xff] }
 0x776   :  { %v2232_v30 = vadd.f32 %v2231_v13, %v2230_v27  ;;  %v7680_v27 = vld [vmem:[%s17077_s1 + $0x98] sm:$0xff] }
 0x777   :  { %v9504_v34 = vpack.c.bf16 %v7680_v27, %v7679_v5  ;;  %v3339_v5 = vld [vmem:[#allocation29 + $0x18] sm:$0xff]  ;;  %v3623_v27 = vld [vmem:[#allocation29 + $0x20] sm:$0xff] }
 0x778   :  { %v2234_v38 = vadd.f32 %v2233_v37, %v2232_v30  ;;  %v7681_v37 = vld [vmem:[%s17077_s1 + $0xa0] sm:$0xff] }
 0x77a   :  { %v2236_v44 = vadd.f32 %v2235_v42, %v2234_v38  ;;  %v7682_v38 = vld [vmem:[%s17077_s1 + $0xa8] sm:$0xff] }
 0x77b   :  { %v9508_v45 = vpack.c.bf16 %v7682_v38, %v7681_v37  ;;  %v2561_v37 = vld [vmem:[#allocation4 + $0x8] sm:$0xff]  ;;  %v2560_v38 = vld [vmem:[#allocation4] sm:$0xff] }
 0x77c   :  { %v2238_v48 = vadd.f32 %v2237_v46, %v2236_v44 }
 0x77e   :  { %v2240_v50 = vadd.f32 %v2239_v49, %v2238_v48  ;;  %v7683_v49 = vld [vmem:[%s17077_s1 + $0xb0] sm:$0xff] }
 0x780   :  { %v2242_v53 = vadd.f32 %v2241_v52, %v2240_v50  ;;  %v7684_v50 = vld [vmem:[%s17077_s1 + $0xb8] sm:$0xff] }
 0x782   :  { %v2244_v54 = vadd.f32 %v2243_v39, %v2242_v53 }
 0x784   :  { %v2246_v63 = vadd.f32 %v2245_v62, %v2244_v54 }
 0x786   :  { %v2247_v32 = vrot.slane %v2246_v63, 4 }
 0x788   :  { %v2248_v40 = vadd.f32 %v2247_v32, %v2246_v63 }
 0x78a   :  { %v2249_v1 = vrot.slane %v2248_v40, 2 }
 0x78c   :  { %v2250_v2 = vadd.f32 %v2249_v1, %v2248_v40 }
 0x78e   :  { %v2251_v3 = vrot.slane %v2250_v2, 1 }
 0x790   :  { %v2252_v43 = vadd.f32 %v2251_v3, %v2250_v2 }
 0x792   :  { %v2253_v6 = vmul.f32 0.0078125, %v2252_v43 }
 0x794   :  { %v2254_v7 = vadd.f32 1e-05, %v2253_v6 }
 0x796   :  { %9647 = vrsqrt.f32 %v2254_v7 }
 0x7a0   :  { %v11222_v8 = vpop.eup %9647 }
 0x7a1   :  { %v2256_v14 = vmul.f32 %v11222_v8, %v11065_v29  ;;  %v2257_v61 = vmul.f32 %v11222_v8, %v11069_v56  ;;  %v2258_v15 = vmul.f32 %v11222_v8, %v11073_v57  ;;  %v2259_v16 = vmul.f32 %v11222_v8, %v11077_v60 }
 0x7a2   :  { %v2260_v19 = vmul.f32 %v11222_v8, %v11085_v31  ;;  %v2261_v56 = vmul.f32 %v11222_v8, %v11091_v33  ;;  %v2262_v57 = vmul.f32 %v11222_v8, %v11099_v4  ;;  %v2263_v30 = vmul.f32 %v11222_v8, %v11105_v47 }
 0x7a3   :  { %v2279_v20 = vmul.f32 %v11224_v9, %v2256_v14  ;;  %v2280_v36 = vmul.f32 %v11224_v9, %v2257_v61  ;;  %v2281_v29 = vmul.f32 %v11224_v9, %v2258_v15  ;;  %v2282_v23 = vmul.f32 %v11224_v9, %v2259_v16 }
 0x7a4   :  { %v2283_v26 = vmul.f32 %v11224_v9, %v2260_v19  ;;  %v2284_v13 = vmul.f32 %v11224_v9, %v2261_v56  ;;  %v2285_v47 = vmul.f32 %v11224_v9, %v2262_v57  ;;  %v2264_v44 = vmul.f32 %v11222_v8, %v11160_v58 }
 0x7a5   :  { %v2302_v60 = vadd.f32 %v11234_v18, %v2279_v20  ;;  %v2303_v24 = vadd.f32 %v11234_v18, %v2280_v36  ;;  %v2304_v31 = vadd.f32 %v11234_v18, %v2281_v29  ;;  %v2305_v4 = vadd.f32 %v11234_v18, %v2282_v23 }
 0x7a6   :  { %v2306_v42 = vadd.f32 %v11234_v18, %v2283_v26  ;;  %v2307_v48 = vadd.f32 %v11234_v18, %v2284_v13  ;;  %v2286_v58 = vmul.f32 %v11224_v9, %v2263_v30  ;;  %v2265_v35 = vmul.f32 %v11222_v8, %v11167_v17  ;;  %v3625_v13 = vld [vmem:[#allocation29 + $0x30] sm:$0xff]  ;;  %v3626_v30 = vld [vmem:[#allocation29 + $0x38] sm:$0xff] }
 0x7a7   :  { %v11256_v33 = vmax.f32 %v2302_v60, 0.0  ;;  %v11258_v11 = vmax.f32 %v2303_v24, 0.0  ;;  %v11274_v41 = vmax.f32 %v2304_v31, 0.0  ;;  %v11288_v46 = vmax.f32 %v2305_v4, 0.0  ;;  %v3337_v24 = vld [vmem:[#allocation29 + $0x8] sm:$0xff]  ;;  %v3338_v31 = vld [vmem:[#allocation29 + $0x10] sm:$0xff] }
 0x7a8   :  { %v11301_v51 = vmax.f32 %v2306_v42, 0.0  ;;  %v2308_v52 = vadd.f32 %v11234_v18, %v2285_v47  ;;  %v2287_v53 = vmul.f32 %v11224_v9, %v2264_v44  ;;  %v9512_v17 = vpack.c.bf16 %v7684_v50, %v7683_v49 }
 0x7a9   :  { %8602 = vmatprep.mubr.msk.f32.mxu1 %vm1783_vm2, %v11256_v33  ;;  %8642 = vmatprep.mubr.msk.f32.mxu0 %vm1783_vm2, %v11256_v33  ;;  %v11315_v39 = vmax.f32 %v2307_v48, 0.0  ;;  %v2309_v54 = vadd.f32 %v11234_v18, %v2286_v58  ;;  %v2267_v62 = vmul.f32 %v11222_v8, %v11181_v10  ;;  %v2268_v1 = vmul.f32 %v11222_v8, %v11188_v22  ;;  %v2563_v48 = vld [vmem:[#allocation4 + $0x18] sm:$0xff]  ;;  %v2562_v58 = vld [vmem:[#allocation4 + $0x10] sm:$0xff] }
 0x7aa   :  { %8603 = vmatmul.mubr.msk.f32.vlgmr.msra.gmra.mrb[16].mxu1 %vm1783_vm2, %v11258_v11  ;;  %8643 = vmatmul.mubr.msk.f32.vlgmr.msra.gmra.mrb[18].mxu0 %vm1783_vm2, %v11258_v11  ;;  %v2324_v63 = vmax.f32 %v2308_v52, 0.0  ;;  %v2310_v32 = vadd.f32 %v11234_v18, %v2287_v53  ;;  %v2269_v43 = vmul.f32 %v11222_v8, %v11195_v21  ;;  %v2270_v14 = vmul.f32 %v11222_v8, %v11202_v25 }
 0x7ab   :  { %8605 = vmatprep.mubr.msk.f32.mxu1 %vm1783_vm2, %v11274_v41  ;;  %8645 = vmatprep.mubr.msk.f32.mxu0 %vm1783_vm2, %v11274_v41  ;;  %v2325_v10 = vmax.f32 %v2309_v54, 0.0  ;;  %v2290_v3 = vmul.f32 %v11224_v9, %v2267_v62  ;;  %v2291_v7 = vmul.f32 %v11224_v9, %v2268_v1  ;;  %v2271_v16 = vmul.f32 %v11222_v8, %v11209_v28  ;;  %v2566_v1 = vld [vmem:[#allocation4 + $0x30] sm:$0xff] }
 0x7ac   :  { %9503 = vmatpush3.bf16.msra.mxu1 %v11001_v55  ;;  %v2266_v55 = vmul.f32 %v11222_v8, %v11174_v12  ;;  %v2288_v12 = vmul.f32 %v11224_v9, %v2265_v35  ;;  %v2326_v22 = vmax.f32 %v2310_v32, 0.0  ;;  %v2292_v15 = vmul.f32 %v11224_v9, %v2269_v43 }
 0x7ad   :  { %9505 = vmatprep.subr.bf16.mxu1 %v9504_v34  ;;  %v2313_v21 = vadd.f32 %v11234_v18, %v2290_v3  ;;  %v2314_v25 = vadd.f32 %v11234_v18, %v2291_v7  ;;  %v2293_v20 = vmul.f32 %v11224_v9, %v2270_v14  ;;  %v2294_v23 = vmul.f32 %v11224_v9, %v2271_v16  ;;  %v2569_v7 = vld [vmem:[#allocation4 + $0x48] sm:$0xff]  ;;  %v2568_v14 = vld [vmem:[#allocation4 + $0x40] sm:$0xff] }
 0x7ae   :  { %8606 = vmatmul.mubr.msk.f32.gmra.mrb[18].mxu1 %vm1783_vm2, %v11288_v46  ;;  %8646 = vmatmul.mubr.msk.f32.gmra.mrb[20].mxu0 %vm1783_vm2, %v11288_v46  ;;  %v2289_v40 = vmul.f32 %v11224_v9, %v2266_v55  ;;  %v2311_v2 = vadd.f32 %v11234_v18, %v2288_v12  ;;  %v2315_v29 = vadd.f32 %v11234_v18, %v2292_v15  ;;  %v2565_v55 = vld [vmem:[#allocation4 + $0x28] sm:$0xff] }
 0x7af   :  { %8608 = vmatprep.mubr.msk.f32.mxu1 %vm1783_vm2, %v11301_v51  ;;  %8648 = vmatprep.mubr.msk.f32.mxu0 %vm1783_vm2, %v11301_v51  ;;  %v2329_v36 = vmax.f32 %v2313_v21, 0.0  ;;  %v2330_v28 = vmax.f32 %v2314_v25, 0.0  ;;  %v2316_v8 = vadd.f32 %v11234_v18, %v2293_v20  ;;  %v2317_v57 = vadd.f32 %v11234_v18, %v2294_v23  ;;  %v11409_v25 = vld [vmem:[#allocation25] ss:$0 sm:$0xff] }
 0x7b0   :  { %9507 = vmatpush3.bf16.msra.mxu1 %v9504_v34  ;;  %v2312_v6 = vadd.f32 %v11234_v18, %v2289_v40  ;;  %v2327_v61 = vmax.f32 %v2311_v2, 0.0  ;;  %v2331_v56 = vmax.f32 %v2315_v29, 0.0  ;;  %v3336_v18 = vld [vmem:[#allocation29] sm:$0xff]  ;;  %v9528_v34 = vpack.c.bf16 %v3626_v30, %v3625_v13  ;;  %v2570_v23 = vld [vmem:[#allocation4 + $0x50] sm:$0xff] }
 0x7b1   :  { %9509 = vmatprep.subr.bf16.mxu1 %v9508_v45  ;;  %v2332_v60 = vmax.f32 %v2316_v8, 0.0  ;;  %v2333_v9 = vmax.f32 %v2317_v57, 0.0  ;;  %v9516_v26 = vpack.c.bf16 %v3337_v24, %v3336_v18  ;;  %v2567_v40 = vld [vmem:[#allocation4 + $0x38] sm:$0xff] }
 0x7b2   :  { %8609 = vmatmul.mubr.msk.f32.gmra.mrb[20].mxu1 %vm1783_vm2, %v11315_v39  ;;  %8649 = vmatmul.mubr.msk.f32.gmra.mrb[22].mxu0 %vm1783_vm2, %v11315_v39  ;;  %v2328_v19 = vmax.f32 %v2312_v6, 0.0  ;;  %v2571_v29 = vld [vmem:[#allocation4 + $0x58] sm:$0xff] }
 0x7b3   :  { %8611 = vmatprep.mubr.msk.f32.mxu1 %vm1783_vm2, %v2324_v63  ;;  %8651 = vmatprep.mubr.msk.f32.mxu0 %vm1783_vm2, %v2324_v63 }
 0x7b4   :  { %9511 = vmatpush3.bf16.msra.mxu1 %v9508_v45  ;;  %9517 = vmatprep.subr.bf16.mxu0 %v9516_v26 }
 0x7b5   :  { %9513 = vmatprep.subr.bf16.mxu1 %v9512_v17  ;;  %9519 = vmatpush3.bf16.msra.mxu0 %v9516_v26 }
 0x7b6   :  { %8612 = vmatmul.mubr.msk.f32.gmra.mrb[22].mxu1 %vm1783_vm2, %v2325_v10  ;;  %8652 = vmatmul.mubr.msk.f32.gmra.mrb[24].mxu0 %vm1783_vm2, %v2325_v10 }
 0x7b7   :  { %8614 = vmatprep.mubr.msk.f32.mxu1 %vm1783_vm2, %v2326_v22  ;;  %8654 = vmatprep.mubr.msk.f32.mxu0 %vm1783_vm2, %v2326_v22 }
 0x7b8   :  { %9515 = vmatpush3.bf16.msra.mxu1 %v9512_v17  ;;  %v2564_v17 = vld [vmem:[#allocation4 + $0x20] sm:$0xff] }
 0x7ba   :  { %8615 = vmatmul.mubr.msk.f32.gmra.mrb[24].mxu1 %vm1783_vm2, %v2327_v61  ;;  %8655 = vmatmul.mubr.msk.f32.gmra.mrb[26].mxu0 %vm1783_vm2, %v2327_v61 }
 0x7bb   :  { %8617 = vmatprep.mubr.msk.f32.mxu1 %vm1783_vm2, %v2328_v19  ;;  %8657 = vmatprep.mubr.msk.f32.mxu0 %vm1783_vm2, %v2328_v19 }
 0x7be   :  { %8618 = vmatmul.mubr.msk.f32.gmra.mrb[26].mxu1 %vm1783_vm2, %v2329_v36  ;;  %8658 = vmatmul.mubr.msk.f32.gmra.mrb[28].mxu0 %vm1783_vm2, %v2329_v36 }
 0x7bf   :  { %8620 = vmatprep.mubr.msk.f32.mxu1 %vm1783_vm2, %v2330_v28  ;;  %8660 = vmatprep.mubr.msk.f32.mxu0 %vm1783_vm2, %v2330_v28 }
 0x7c2   :  { %8621 = vmatmul.mubr.msk.f32.gmra.mrb[28].mxu1 %vm1783_vm2, %v2331_v56  ;;  %8661 = vmatmul.mubr.msk.f32.gmra.mrb[30].mxu0 %vm1783_vm2, %v2331_v56 }
 0x7c3   :  { %8623 = vmatprep.mubr.msk.f32.mxu1 %vm1783_vm2, %v2332_v60  ;;  %8663 = vmatprep.mubr.msk.f32.mxu0 %vm1783_vm2, %v2332_v60 }
 0x7c6   :  { %8624 = vmatmul.mubr.msk.f32.gmra.mrb[30].mxu1 %vm1783_vm2, %v2333_v9  ;;  %8664 = vmatmul.mubr.msk.f32.gmra.mrb[32].mxu0 %vm1783_vm2, %v2333_v9 }
 0x7c7   :  { %8682 = vmatprep.mubr.msk.f32.mxu1 %vm1783_vm2, %v11256_v33  ;;  %v3624_v33 = vld [vmem:[#allocation29 + $0x28] sm:$0xff] }
 0x7c8   :  { %v9524_v4 = vpack.c.bf16 %v3624_v33, %v3623_v27 }
 0x7ca   :  { %8683 = vmatmul.mubr.msk.f32.vlgmr.msra.gmra.mrb[32].mxu1 %vm1783_vm2, %v11258_v11  ;;  %v9520_v11 = vpack.c.bf16 %v3339_v5, %v3338_v31  ;;  %9525 = vmatprep.subr.bf16.mxu1 %v9524_v4 }
 0x7cb   :  { %8685 = vmatprep.mubr.msk.f32.mxu1 %vm1783_vm2, %v11274_v41  ;;  %9527 = vmatpush3.bf16.msra.mxu1 %v9524_v4  ;;  %v2775_v4 = vld [vmem:[#allocation4 + $0x88] sm:$0xff] }
 0x7cc   :  { %9521 = vmatprep.subr.bf16.mxu0 %v9520_v11  ;;  %9529 = vmatprep.subr.bf16.mxu1 %v9528_v34 }
 0x7cd   :  { %9523 = vmatpush3.bf16.msra.mxu0 %v9520_v11  ;;  %v2573_v11 = vld [vmem:[#allocation4 + $0x68] sm:$0xff] }
 0x7ce   :  { %8686 = vmatmul.mubr.msk.f32.gmra.mrb[34].mxu1 %vm1783_vm2, %v11288_v46 }
 0x7cf   :  { %8688 = vmatprep.mubr.msk.f32.mxu1 %vm1783_vm2, %v11301_v51  ;;  %9531 = vmatpush3.bf16.msra.mxu1 %v9528_v34 }
 0x7d2   :  { %8689 = vmatmul.mubr.msk.f32.gmra.mrb[36].mxu1 %vm1783_vm2, %v11315_v39 }
 0x7d3   :  { %8691 = vmatprep.mubr.msk.f32.mxu1 %vm1783_vm2, %v2324_v63 }
 0x7d6   :  { %8692 = vmatmul.mubr.msk.f32.gmra.mrb[38].mxu1 %vm1783_vm2, %v2325_v10 }
 0x7d7   :  { %8694 = vmatprep.mubr.msk.f32.mxu1 %vm1783_vm2, %v2326_v22 }
 0x7da   :  { %8695 = vmatmul.mubr.msk.f32.gmra.mrb[40].mxu1 %vm1783_vm2, %v2327_v61 }
 0x7db   :  { %8697 = vmatprep.mubr.msk.f32.mxu1 %vm1783_vm2, %v2328_v19 }
 0x7de   :  { %8698 = vmatmul.mubr.msk.f32.gmra.mrb[42].mxu1 %vm1783_vm2, %v2329_v36 }
 0x7df   :  { %8700 = vmatprep.mubr.msk.f32.mxu1 %vm1783_vm2, %v2330_v28 }
 0x7e2   :  { %8701 = vmatmul.mubr.msk.f32.gmra.mrb[44].mxu1 %vm1783_vm2, %v2331_v56 }
 0x7e3   :  { %8703 = vmatprep.mubr.msk.f32.mxu1 %vm1783_vm2, %v2332_v60 }
 0x7e6   :  { %8704 = vmatmul.mubr.msk.f32.gmra.mrb[46].mxu1 %vm1783_vm2, %v2333_v9 }
 0x87d   :  { %v8604_v41 = vpop.f32.mrb[16].mxu1  ;;  %v8644_v42 = vpop.f32.mrb[18].mxu0 }
 0x87e   :  { %v2577_v47 = vadd.f32 %v8604_v41, %v2561_v37  ;;  %v2481_v44 = vpop.f32.mrb[17].mxu1  ;;  %v2683_v45 = vpop.f32.mrb[19].mxu0  ;;  %v2774_v41 = vld [vmem:[#allocation4 + $0x80] sm:$0xff] }
 0x87f   :  { %v2576_v46 = vadd.f32 %v2560_v38, %v2481_v44  ;;  %v2572_v38 = vld [vmem:[#allocation4 + $0x60] sm:$0xff] }
 0x880   :  { %2593 = vst.msk [vmem:[#allocation4 + $0x8] sm:$0xff] %vm2334_vm3, %v2577_v47 }
 0x881   :  { %2592 = vst.msk [vmem:[#allocation4] sm:$0xff] %vm2334_vm3, %v2576_v46  ;;  %v8607_v35 = vpop.f32.mrb[18].mxu1  ;;  %v8647_v49 = vpop.f32.mrb[20].mxu0 }
 0x882   :  { %v2579_v50 = vadd.f32 %v8607_v35, %v2563_v48  ;;  %v2491_v51 = vpop.f32.mrb[19].mxu1  ;;  %v2693_v52 = vpop.f32.mrb[21].mxu0 }
 0x883   :  { %v2578_v53 = vadd.f32 %v2562_v58, %v2491_v51 }
 0x884   :  { %2595 = vst.msk [vmem:[#allocation4 + $0x18] sm:$0xff] %vm2334_vm3, %v2579_v50 }
 0x885   :  { %2594 = vst.msk [vmem:[#allocation4 + $0x10] sm:$0xff] %vm2334_vm3, %v2578_v53  ;;  %v8610_v39 = vpop.f32.mrb[20].mxu1  ;;  %v11393_v54 = vpop.f32.mrb[22].mxu0  ;;  %v2777_v53 = vld [vmem:[#allocation4 + $0x98] sm:$0xff] }
 0x886   :  { %v2581_v12 = vadd.f32 %v8610_v39, %v2565_v55  ;;  %v2501_v62 = vpop.f32.mrb[21].mxu1  ;;  %v11395_v63 = vpop.f32.mrb[23].mxu0 }
 0x887   :  { %v2580_v32 = vadd.f32 %v2564_v17, %v2501_v62  ;;  %v3013_v57 = vld [vmem:[#allocation4 + $0x8] sm:$0xff] }
 0x888   :  { %2597 = vst.msk [vmem:[#allocation4 + $0x28] sm:$0xff] %vm2334_vm3, %v2581_v12  ;;  %v3012_v56 = vld [vmem:[#allocation4] sm:$0xff]  ;;  %v11423_v30 = vadd.f32 %v11409_v25, %v3013_v57  ;;  %v2776_v12 = vld [vmem:[#allocation4 + $0x90] sm:$0xff] }
 0x889   :  { %2596 = vst.msk [vmem:[#allocation4 + $0x20] sm:$0xff] %vm2334_vm3, %v2580_v32  ;;  %v8613_v10 = vpop.f32.mrb[22].mxu1  ;;  %v11399_v2 = vpop.f32.mrb[24].mxu0  ;;  %v11420_v13 = vadd.f32 %v11409_v25, %v3012_v56 }
 0x88a   :  { %v2583_v3 = vadd.f32 %v8613_v10, %v2567_v40  ;;  %v2511_v43 = vpop.f32.mrb[23].mxu1  ;;  %v11401_v22 = vpop.f32.mrb[25].mxu0  ;;  %v3068_v39 = vsel %vm2334_vm3, %v11423_v30, 0.0 }
 0x88b   :  { %v2582_v6 = vadd.f32 %v2566_v1, %v2511_v43  ;;  %v3067_v17 = vsel %vm2334_vm3, %v11420_v13, 0.0  ;;  %v3015_v40 = vld [vmem:[#allocation4 + $0x18] sm:$0xff] }
 0x88c   :  { %2599 = vst.msk [vmem:[#allocation4 + $0x38] sm:$0xff] %vm2334_vm3, %v2583_v3  ;;  %v3014_v5 = vld [vmem:[#allocation4 + $0x10] sm:$0xff] }
 0x88d   :  { %2598 = vst.msk [vmem:[#allocation4 + $0x30] sm:$0xff] %vm2334_vm3, %v2582_v6  ;;  %v8616_v61 = vpop.f32.mrb[24].mxu1  ;;  %v11405_v21 = vpop.f32.mrb[26].mxu0 }
 0x88e   :  { %v2585_v15 = vadd.f32 %v8616_v61, %v2569_v7  ;;  %v2521_v16 = vpop.f32.mrb[25].mxu1  ;;  %v11407_v19 = vpop.f32.mrb[27].mxu0 }
 0x88f   :  { %v2763_v20 = vld [vmem:[#allocation4 + $0x28] sm:$0xff]  ;;  %v2584_v36 = vadd.f32 %v2568_v14, %v2521_v16 }
 0x890   :  { %v2779_v28 = vadd.f32 %v8644_v42, %v2763_v20  ;;  %v2762_v8 = vld [vmem:[#allocation4 + $0x20] sm:$0xff]  ;;  %2601 = vst.msk [vmem:[#allocation4 + $0x48] sm:$0xff] %vm2334_vm3, %v2585_v15  ;;  %v3069_v15 = vadd.f32 %v3068_v39, %v3067_v17 }
 0x891   :  { %v2778_v60 = vadd.f32 %v2762_v8, %v2683_v45  ;;  %2600 = vst.msk [vmem:[#allocation4 + $0x40] sm:$0xff] %vm2334_vm3, %v2584_v36  ;;  %v8619_v9 = vpop.f32.mrb[26].mxu1  ;;  %v11413_v18 = vpop.f32.mrb[28].mxu0  ;;  %v11428_v45 = vadd.f32 %v11409_v25, %v3014_v5 }
 0x892   :  { %2795 = vst.msk [vmem:[#allocation4 + $0x28] sm:$0xff] %vm2334_vm3, %v2779_v28  ;;  %v2587_v24 = vadd.f32 %v8619_v9, %v2571_v29  ;;  %v2531_v31 = vpop.f32.mrb[27].mxu1  ;;  %v11416_v26 = vpop.f32.mrb[29].mxu0  ;;  %v11447_v29 = vadd.f32 %v11409_v25, %v3015_v40 }
 0x893   :  { %2794 = vst.msk [vmem:[#allocation4 + $0x20] sm:$0xff] %vm2334_vm3, %v2778_v60  ;;  %v2765_v27 = vld [vmem:[#allocation4 + $0x38] sm:$0xff]  ;;  %v2586_v33 = vadd.f32 %v2570_v23, %v2531_v31  ;;  %v3070_v43 = vsel %vm2334_vm3, %v11428_v45, 0.0 }
 0x894   :  { %v2781_v34 = vadd.f32 %v8647_v49, %v2765_v27  ;;  %v2764_v37 = vld [vmem:[#allocation4 + $0x30] sm:$0xff]  ;;  %2603 = vst.msk [vmem:[#allocation4 + $0x58] sm:$0xff] %vm2334_vm3, %v2587_v24  ;;  %v2575_v49 = vld [vmem:[#allocation4 + $0x78] sm:$0xff]  ;;  %v3071_v8 = vadd.f32 %v3070_v43, %v3069_v15  ;;  %v3072_v31 = vsel %vm2334_vm3, %v11447_v29, 0.0 }
 0x895   :  { %v2780_v42 = vadd.f32 %v2764_v37, %v2693_v52  ;;  %2602 = vst.msk [vmem:[#allocation4 + $0x50] sm:$0xff] %vm2334_vm3, %v2586_v33  ;;  %v8622_v47 = vpop.f32.mrb[28].mxu1  ;;  %v8662_v44 = vpop.f32.mrb[30].mxu0  ;;  %v2574_v52 = vld [vmem:[#allocation4 + $0x70] sm:$0xff] }
 0x896   :  { %2797 = vst.msk [vmem:[#allocation4 + $0x38] sm:$0xff] %vm2334_vm3, %v2781_v34  ;;  %v2589_v46 = vadd.f32 %v8622_v47, %v2573_v11  ;;  %v2791_v48 = vadd.f32 %v8662_v44, %v2775_v4  ;;  %v2541_v58 = vpop.f32.mrb[29].mxu1  ;;  %v2743_v35 = vpop.f32.mrb[31].mxu0  ;;  %v3073_v11 = vadd.f32 %v3072_v31, %v3071_v8 }
 0x897   :  { %2796 = vst.msk [vmem:[#allocation4 + $0x30] sm:$0xff] %vm2334_vm3, %v2780_v42  ;;  %v2588_v50 = vadd.f32 %v2572_v38, %v2541_v58  ;;  %v2790_v51 = vadd.f32 %v2774_v41, %v2743_v35  ;;  %v2767_v55 = vld [vmem:[#allocation4 + $0x48] sm:$0xff] }
 0x898   :  { %2605 = vst.msk [vmem:[#allocation4 + $0x68] sm:$0xff] %vm2334_vm3, %v2589_v46  ;;  %2807 = vst.msk [vmem:[#allocation4 + $0x88] sm:$0xff] %vm2334_vm3, %v2791_v48  ;;  %v2783_v62 = vadd.f32 %v11393_v54, %v2767_v55  ;;  %v2766_v32 = vld [vmem:[#allocation4 + $0x40] sm:$0xff] }
 0x899   :  { %2604 = vst.msk [vmem:[#allocation4 + $0x60] sm:$0xff] %vm2334_vm3, %v2588_v50  ;;  %2806 = vst.msk [vmem:[#allocation4 + $0x80] sm:$0xff] %vm2334_vm3, %v2790_v51  ;;  %v8625_v1 = vpop.f32.mrb[30].mxu1  ;;  %v8665_v10 = vpop.f32.mrb[32].mxu0  ;;  %v2782_v3 = vadd.f32 %v2766_v32, %v11395_v63  ;;  %v3017_v9 = vld [vmem:[#allocation4 + $0x28] sm:$0xff] }
 0x89a   :  { %v2591_v6 = vadd.f32 %v8625_v1, %v2575_v49  ;;  %v2793_v7 = vadd.f32 %v8665_v10, %v2777_v53  ;;  %v2551_v14 = vpop.f32.mrb[31].mxu1  ;;  %v2753_v61 = vpop.f32.mrb[33].mxu0  ;;  %2799 = vst.msk [vmem:[#allocation4 + $0x48] sm:$0xff] %vm2334_vm3, %v2783_v62  ;;  %v3016_v54 = vld [vmem:[#allocation4 + $0x20] sm:$0xff]  ;;  %v11467_v37 = vadd.f32 %v11409_v25, %v3017_v9 }
 0x89b   :  { %v2590_v16 = vadd.f32 %v2574_v52, %v2551_v14  ;;  %v2792_v20 = vadd.f32 %v2776_v12, %v2753_v61  ;;  %2798 = vst.msk [vmem:[#allocation4 + $0x40] sm:$0xff] %vm2334_vm3, %v2782_v3  ;;  %v2769_v36 = vld [vmem:[#allocation4 + $0x58] sm:$0xff]  ;;  %v11450_v63 = vadd.f32 %v11409_v25, %v3016_v54 }
 0x89c   :  { %2607 = vst.msk [vmem:[#allocation4 + $0x78] sm:$0xff] %vm2334_vm3, %v2591_v6  ;;  %2809 = vst.msk [vmem:[#allocation4 + $0x98] sm:$0xff] %vm2334_vm3, %v2793_v7  ;;  %v2785_v23 = vadd.f32 %v11399_v2, %v2769_v36  ;;  %v2768_v28 = vld [vmem:[#allocation4 + $0x50] sm:$0xff]  ;;  %v3076_v50 = vsel %vm2334_vm3, %v11467_v37, 0.0 }
 0x89d   :  { %2606 = vst.msk [vmem:[#allocation4 + $0x70] sm:$0xff] %vm2334_vm3, %v2590_v16  ;;  %2808 = vst.msk [vmem:[#allocation4 + $0x90] sm:$0xff] %vm2334_vm3, %v2792_v20  ;;  %v8684_v56 = vpop.f32.mrb[32].mxu1  ;;  %v2784_v57 = vadd.f32 %v2768_v28, %v11401_v22  ;;  %v3074_v2 = vsel %vm2334_vm3, %v11450_v63, 0.0  ;;  %v3019_v55 = vld [vmem:[#allocation4 + $0x38] sm:$0xff] }
 0x89e   :  { %v2885_v60 = vpop.f32.mrb[33].mxu1  ;;  %2801 = vst.msk [vmem:[#allocation4 + $0x58] sm:$0xff] %vm2334_vm3, %v2785_v23  ;;  %v3018_v33 = vld [vmem:[#allocation4 + $0x30] sm:$0xff]  ;;  %v3075_v47 = vadd.f32 %v3074_v2, %v3073_v11  ;;  %v11487_v62 = vadd.f32 %v11409_v25, %v3019_v55 }
 0x89f   :  { %2800 = vst.msk [vmem:[#allocation4 + $0x50] sm:$0xff] %vm2334_vm3, %v2784_v57  ;;  %v2771_v24 = vld [vmem:[#allocation4 + $0x68] sm:$0xff]  ;;  %v11472_v46 = vadd.f32 %v11409_v25, %v3018_v33 }
 0x8a0   :  { %v2787_v5 = vadd.f32 %v11405_v21, %v2771_v24  ;;  %v2770_v27 = vld [vmem:[#allocation4 + $0x60] sm:$0xff]  ;;  %v3077_v17 = vadd.f32 %v3076_v50, %v3075_v47  ;;  %v2973_v61 = vld [vmem:[#allocation4 + $0x88] sm:$0xff]  ;;  %v3080_v16 = vsel %vm2334_vm3, %v11487_v62, 0.0 }
 0x8a1   :  { %v2965_v4 = vld [vmem:[#allocation4 + $0x48] sm:$0xff]  ;;  %v8687_v22 = vpop.f32.mrb[34].mxu1  ;;  %v2786_v34 = vadd.f32 %v2770_v27, %v11407_v19  ;;  %v2972_v8 = vld [vmem:[#allocation4 + $0x80] sm:$0xff] }
 0x8a2   :  { %v2981_v38 = vadd.f32 %v8684_v56, %v2965_v4  ;;  %v2964_v41 = vld [vmem:[#allocation4 + $0x40] sm:$0xff]  ;;  %v2895_v42 = vpop.f32.mrb[35].mxu1  ;;  %2803 = vst.msk [vmem:[#allocation4 + $0x68] sm:$0xff] %vm2334_vm3, %v2787_v5 }
 0x8a3   :  { %v2980_v44 = vadd.f32 %v2964_v41, %v2885_v60  ;;  %2802 = vst.msk [vmem:[#allocation4 + $0x60] sm:$0xff] %vm2334_vm3, %v2786_v34  ;;  %v2773_v21 = vld [vmem:[#allocation4 + $0x78] sm:$0xff] }
 0x8a4   :  { %2997 = vst.msk [vmem:[#allocation4 + $0x48] sm:$0xff] %vm2334_vm3, %v2981_v38  ;;  %v2789_v19 = vadd.f32 %v11413_v18, %v2773_v21  ;;  %v2772_v48 = vld [vmem:[#allocation4 + $0x70] sm:$0xff]  ;;  %v3078_v18 = vsel %vm2334_vm3, %v11472_v46, 0.0  ;;  %v2975_v33 = vld [vmem:[#allocation4 + $0x98] sm:$0xff] }
 0x8a5   :  { %2996 = vst.msk [vmem:[#allocation4 + $0x40] sm:$0xff] %vm2334_vm3, %v2980_v44  ;;  %v2967_v58 = vld [vmem:[#allocation4 + $0x58] sm:$0xff]  ;;  %v8690_v35 = vpop.f32.mrb[36].mxu1  ;;  %v2788_v49 = vadd.f32 %v2772_v48, %v11416_v26  ;;  %v3079_v10 = vadd.f32 %v3078_v18, %v3077_v17  ;;  %v2974_v38 = vld [vmem:[#allocation4 + $0x90] sm:$0xff]  ;;  %v2977_v44 = vld [vmem:[#allocation4 + $0xa8] sm:$0xff] }
 0x8a6   :  { %v2983_v51 = vadd.f32 %v8687_v22, %v2967_v58  ;;  %v2966_v53 = vld [vmem:[#allocation4 + $0x50] sm:$0xff]  ;;  %v2905_v52 = vpop.f32.mrb[37].mxu1  ;;  %2805 = vst.msk [vmem:[#allocation4 + $0x78] sm:$0xff] %vm2334_vm3, %v2789_v19  ;;  %v2976_v48 = vld [vmem:[#allocation4 + $0xa0] sm:$0xff]  ;;  %v2979_v18 = vld [vmem:[#allocation4 + $0xb8] sm:$0xff] }
 0x8a7   :  { %v2982_v39 = vadd.f32 %v2966_v53, %v2895_v42  ;;  %2804 = vst.msk [vmem:[#allocation4 + $0x70] sm:$0xff] %vm2334_vm3, %v2788_v49  ;;  %v3081_v56 = vadd.f32 %v3080_v16, %v3079_v10 }
 0x8a8   :  { %2999 = vst.msk [vmem:[#allocation4 + $0x58] sm:$0xff] %vm2334_vm3, %v2983_v51 }
 0x8a9   :  { %2998 = vst.msk [vmem:[#allocation4 + $0x50] sm:$0xff] %vm2334_vm3, %v2982_v39  ;;  %v2969_v26 = vld [vmem:[#allocation4 + $0x68] sm:$0xff]  ;;  %v8693_v12 = vpop.f32.mrb[38].mxu1 }
 0x8aa   :  { %v2985_v32 = vadd.f32 %v8690_v35, %v2969_v26  ;;  %v2968_v40 = vld [vmem:[#allocation4 + $0x60] sm:$0xff]  ;;  %v2915_v1 = vpop.f32.mrb[39].mxu1 }
 0x8ab   :  { %v2984_v3 = vadd.f32 %v2968_v40, %v2905_v52  ;;  %v3021_v43 = vld [vmem:[#allocation4 + $0x48] sm:$0xff]  ;;  %v2978_v40 = vld [vmem:[#allocation4 + $0xb0] sm:$0xff] }
 0x8ac   :  { %3001 = vst.msk [vmem:[#allocation4 + $0x68] sm:$0xff] %vm2334_vm3, %v2985_v32  ;;  %v3020_v6 = vld [vmem:[#allocation4 + $0x40] sm:$0xff]  ;;  %v11495_v15 = vadd.f32 %v11409_v25, %v3021_v43 }
 0x8ad   :  { %3000 = vst.msk [vmem:[#allocation4 + $0x60] sm:$0xff] %vm2334_vm3, %v2984_v3  ;;  %v2971_v7 = vld [vmem:[#allocation4 + $0x78] sm:$0xff]  ;;  %v8696_v14 = vpop.f32.mrb[40].mxu1  ;;  %v11492_v54 = vadd.f32 %v11409_v25, %v3020_v6 }
 0x8ae   :  { %v2987_v20 = vadd.f32 %v8693_v12, %v2971_v7  ;;  %v2970_v36 = vld [vmem:[#allocation4 + $0x70] sm:$0xff]  ;;  %v2989_v23 = vadd.f32 %v8696_v14, %v2973_v61  ;;  %v2925_v28 = vpop.f32.mrb[41].mxu1  ;;  %v3084_v4 = vsel %vm2334_vm3, %v11495_v15, 0.0 }
 0x8af   :  { %v3023_v57 = vld [vmem:[#allocation4 + $0x58] sm:$0xff]  ;;  %v2986_v60 = vadd.f32 %v2970_v36, %v2915_v1  ;;  %v2988_v9 = vadd.f32 %v2972_v8, %v2925_v28  ;;  %v3082_v24 = vsel %vm2334_vm3, %v11492_v54, 0.0 }
 0x8b0   :  { %v3022_v31 = vld [vmem:[#allocation4 + $0x50] sm:$0xff]  ;;  %3003 = vst.msk [vmem:[#allocation4 + $0x78] sm:$0xff] %vm2334_vm3, %v2987_v20  ;;  %3005 = vst.msk [vmem:[#allocation4 + $0x88] sm:$0xff] %vm2334_vm3, %v2989_v23  ;;  %v3083_v2 = vadd.f32 %v3082_v24, %v3081_v56  ;;  %v11504_v5 = vadd.f32 %v11409_v25, %v3023_v57 }
 0x8b1   :  { %3002 = vst.msk [vmem:[#allocation4 + $0x70] sm:$0xff] %vm2334_vm3, %v2986_v60  ;;  %3004 = vst.msk [vmem:[#allocation4 + $0x80] sm:$0xff] %vm2334_vm3, %v2988_v9  ;;  %v8699_v27 = vpop.f32.mrb[42].mxu1  ;;  %v11509_v11 = vadd.f32 %v11409_v25, %v3022_v31 }
 0x8b2   :  { %v2991_v22 = vadd.f32 %v8699_v27, %v2975_v33  ;;  %v2935_v34 = vpop.f32.mrb[43].mxu1  ;;  %v3085_v41 = vadd.f32 %v3084_v4, %v3083_v2  ;;  %v3088_v51 = vsel %vm2334_vm3, %v11504_v5, 0.0 }
 0x8b3   :  { %v3025_v42 = vld [vmem:[#allocation4 + $0x68] sm:$0xff]  ;;  %v2990_v47 = vadd.f32 %v2974_v38, %v2935_v34  ;;  %v3086_v21 = vsel %vm2334_vm3, %v11509_v11, 0.0 }
 0x8b4   :  { %v3024_v19 = vld [vmem:[#allocation4 + $0x60] sm:$0xff]  ;;  %3007 = vst.msk [vmem:[#allocation4 + $0x98] sm:$0xff] %vm2334_vm3, %v2991_v22  ;;  %v3087_v58 = vadd.f32 %v3086_v21, %v3085_v41  ;;  %v11517_v35 = vadd.f32 %v11409_v25, %v3025_v42 }
 0x8b5   :  { %v11520_v49 = vadd.f32 %v11409_v25, %v3024_v19  ;;  %3006 = vst.msk [vmem:[#allocation4 + $0x90] sm:$0xff] %vm2334_vm3, %v2990_v47  ;;  %v8702_v50 = vpop.f32.mrb[44].mxu1 }
 0x8b6   :  { %v2993_v53 = vadd.f32 %v8702_v50, %v2977_v44  ;;  %v2945_v52 = vpop.f32.mrb[45].mxu1  ;;  %v3089_v55 = vadd.f32 %v3088_v51, %v3087_v58  ;;  %v3092_v10 = vsel %vm2334_vm3, %v11517_v35, 0.0 }
 0x8b7   :  { %v3027_v17 = vld [vmem:[#allocation4 + $0x78] sm:$0xff]  ;;  %v2992_v39 = vadd.f32 %v2976_v48, %v2945_v52  ;;  %v3090_v26 = vsel %vm2334_vm3, %v11520_v49, 0.0  ;;  %v3029_v7 = vld [vmem:[#allocation4 + $0x88] sm:$0xff] }
 0x8b8   :  { %v3026_v12 = vld [vmem:[#allocation4 + $0x70] sm:$0xff]  ;;  %v3028_v32 = vld [vmem:[#allocation4 + $0x80] sm:$0xff]  ;;  %3009 = vst.msk [vmem:[#allocation4 + $0xa8] sm:$0xff] %vm2334_vm3, %v2993_v53  ;;  %v3091_v1 = vadd.f32 %v3090_v26, %v3089_v55  ;;  %v11531_v3 = vadd.f32 %v11409_v25, %v3027_v17  ;;  %v11546_v57 = vadd.f32 %v11409_v25, %v3029_v7 }
 0x8b9   :  { %v11534_v43 = vadd.f32 %v11409_v25, %v3026_v12  ;;  %3008 = vst.msk [vmem:[#allocation4 + $0xa0] sm:$0xff] %vm2334_vm3, %v2992_v39  ;;  %v8705_v6 = vpop.f32.mrb[46].mxu1  ;;  %v11540_v36 = vadd.f32 %v11409_v25, %v3028_v32 }
 0x8ba   :  { %v2995_v14 = vadd.f32 %v8705_v6, %v2979_v18  ;;  %v2955_v61 = vpop.f32.mrb[47].mxu1  ;;  %v3093_v16 = vadd.f32 %v3092_v10, %v3091_v1  ;;  %v3096_v56 = vsel %vm2334_vm3, %v11531_v3, 0.0  ;;  %v3100_v33 = vsel %vm2334_vm3, %v11546_v57, 0.0 }
 0x8bb   :  { %v3094_v20 = vsel %vm2334_vm3, %v11534_v43, 0.0  ;;  %v2994_v23 = vadd.f32 %v2978_v40, %v2955_v61  ;;  %v3031_v60 = vld [vmem:[#allocation4 + $0x98] sm:$0xff]  ;;  %v3098_v24 = vsel %vm2334_vm3, %v11540_v36, 0.0 }
 0x8bc   :  { %v3030_v28 = vld [vmem:[#allocation4 + $0x90] sm:$0xff]  ;;  %3011 = vst.msk [vmem:[#allocation4 + $0xb8] sm:$0xff] %vm2334_vm3, %v2995_v14  ;;  %v3095_v8 = vadd.f32 %v3094_v20, %v3093_v16  ;;  %v11557_v4 = vadd.f32 %v11409_v25, %v3031_v60 }
 0x8bd   :  { %3010 = vst.msk [vmem:[#allocation4 + $0xb0] sm:$0xff] %vm2334_vm3, %v2994_v23  ;;  %v11552_v31 = vadd.f32 %v11409_v25, %v3030_v28 }
 0x8be   :  { %v3097_v9 = vadd.f32 %v3096_v56, %v3095_v8  ;;  %v3104_v44 = vsel %vm2334_vm3, %v11557_v4, 0.0 }
 0x8bf   :  { %v3033_v22 = vld [vmem:[#allocation4 + $0xa8] sm:$0xff]  ;;  %v3102_v38 = vsel %vm2334_vm3, %v11552_v31, 0.0 }
 0x8c0   :  { %v3032_v2 = vld [vmem:[#allocation4 + $0xa0] sm:$0xff]  ;;  %v3099_v27 = vadd.f32 %v3098_v24, %v3097_v9  ;;  %v11567_v21 = vadd.f32 %v11409_v25, %v3033_v22 }
 0x8c1   :  { %v11562_v41 = vadd.f32 %v11409_v25, %v3032_v2  ;;  %v3838_v2 = vld [vmem:[#allocation29 + $0x48] sm:$0xff] }
 0x8c2   :  { %v3101_v34 = vadd.f32 %v3100_v33, %v3099_v27  ;;  %v3108_v53 = vsel %vm2334_vm3, %v11567_v21, 0.0 }
 0x8c3   :  { %v3035_v19 = vld [vmem:[#allocation4 + $0xb8] sm:$0xff]  ;;  %v3106_v58 = vsel %vm2334_vm3, %v11562_v41, 0.0 }
 0x8c4   :  { %v3034_v42 = vld [vmem:[#allocation4 + $0xb0] sm:$0xff]  ;;  %v3103_v47 = vadd.f32 %v3102_v38, %v3101_v34  ;;  %v11577_v52 = vadd.f32 %v11409_v25, %v3035_v19  ;;  %v4051_v34 = vld [vmem:[#allocation29 + $0x60] sm:$0xff] }
 0x8c5   :  { %v11572_v50 = vadd.f32 %v11409_v25, %v3034_v42 }
 0x8c6   :  { %v3105_v48 = vadd.f32 %v3104_v44, %v3103_v47  ;;  %v3112_v18 = vsel %vm2334_vm3, %v11577_v52, 0.0 }
 0x8c7   :  { %v3110_v17 = vsel %vm2334_vm3, %v11572_v50, 0.0 }
 0x8c8   :  { %v3107_v51 = vadd.f32 %v3106_v58, %v3105_v48 }
 0x8ca   :  { %v3109_v55 = vadd.f32 %v3108_v53, %v3107_v51 }
 0x8cc   :  { %v3111_v39 = vadd.f32 %v3110_v17, %v3109_v55 }
 0x8ce   :  { %v3113_v26 = vadd.f32 %v3112_v18, %v3111_v39 }
 0x8d0   :  { %v3114_v12 = vrot.slane %v3113_v26, 4 }
 0x8d2   :  { %v3115_v32 = vadd.f32 %v3114_v12, %v3113_v26 }
 0x8d4   :  { %v3116_v40 = vrot.slane %v3115_v32, 2 }
 0x8d6   :  { %v3117_v1 = vadd.f32 %v3116_v40, %v3115_v32 }
 0x8d8   :  { %v3118_v10 = vrot.slane %v3117_v1, 1 }
 0x8da   :  { %v3119_v6 = vadd.f32 %v3118_v10, %v3117_v1 }
 0x8dc   :  { %v11583_v7 = vmul.f32 0.0052083335, %v3119_v6 }
 0x8de   :  { %v11587_v25 = vsub.f32 %v11420_v13, %v11583_v7  ;;  %v11591_v14 = vsub.f32 %v11423_v30, %v11583_v7  ;;  %v11595_v61 = vsub.f32 %v11428_v45, %v11583_v7  ;;  %v11599_v16 = vsub.f32 %v11447_v29, %v11583_v7 }
 0x8df   :  { %v11607_v13 = vsub.f32 %v11450_v63, %v11583_v7  ;;  %v11613_v45 = vsub.f32 %v11467_v37, %v11583_v7  ;;  %v11621_v60 = vsub.f32 %v11472_v46, %v11583_v7  ;;  %v3837_v37 = vld [vmem:[#allocation29 + $0x40] sm:$0xff]  ;;  %v11628_v27 = vsub.f32 %v11487_v62, %v11583_v7  ;;  %v4052_v46 = vld [vmem:[#allocation29 + $0x68] sm:$0xff] }
 0x8e0   :  { %v3146_v20 = vmul.f32 %v11587_v25, %v11587_v25  ;;  %v3147_v23 = vmul.f32 %v11591_v14, %v11591_v14  ;;  %v3148_v30 = vmul.f32 %v11595_v61, %v11595_v61  ;;  %v3149_v29 = vmul.f32 %v11599_v16, %v11599_v16 }
 0x8e1   :  { %v3150_v63 = vmul.f32 %v11607_v13, %v11607_v13  ;;  %v3151_v33 = vmul.f32 %v11613_v45, %v11613_v45  ;;  %v11635_v42 = vsub.f32 %v11492_v54, %v11583_v7  ;;  %v3152_v47 = vmul.f32 %v11621_v60, %v11621_v60 }
 0x8e2   :  { %v3170_v28 = vsel %vm2334_vm3, %v3146_v20, 0.0  ;;  %v3171_v8 = vsel %vm2334_vm3, %v3147_v23, 0.0  ;;  %v3173_v9 = vsel %vm2334_vm3, %v3148_v30, 0.0  ;;  %v3175_v22 = vsel %vm2334_vm3, %v3149_v29, 0.0 }
 0x8e3   :  { %v3172_v56 = vadd.f32 %v3171_v8, %v3170_v28  ;;  %v3177_v44 = vsel %vm2334_vm3, %v3150_v63, 0.0  ;;  %v11640_v19 = vpack.c.bf16 %v3838_v2, %v3837_v37  ;;  %v11642_v48 = vpack.c.bf16 %v4052_v46, %v4051_v34 }
 0x8e4   :  { %v11646_v58 = vsub.f32 %v11495_v15, %v11583_v7  ;;  %v3153_v51 = vmul.f32 %v11628_v27, %v11628_v27  ;;  %v3179_v54 = vsel %vm2334_vm3, %v3151_v33, 0.0  ;;  %v11655_v55 = vsub.f32 %v11509_v11, %v11583_v7 }
 0x8e5   :  { %v3174_v24 = vadd.f32 %v3173_v9, %v3172_v56  ;;  %9533 = vmatprep.subr.bf16.mxu0 %v11640_v19  ;;  %9541 = vmatprep.subr.bf16.mxu1 %v11642_v48  ;;  %v3154_v17 = vmul.f32 %v11635_v42, %v11635_v42  ;;  %v3181_v15 = vsel %vm2334_vm3, %v3152_v47, 0.0  ;;  %v11662_v18 = vsub.f32 %v11504_v5, %v11583_v7 }
 0x8e6   :  { %v3155_v26 = vmul.f32 %v11646_v58, %v11646_v58  ;;  %v3183_v12 = vsel %vm2334_vm3, %v3153_v51, 0.0  ;;  %v11669_v11 = vsub.f32 %v11520_v49, %v11583_v7  ;;  %v3156_v40 = vmul.f32 %v11655_v55, %v11655_v55 }
 0x8e7   :  { %v3176_v38 = vadd.f32 %v3175_v22, %v3174_v24  ;;  %v3185_v1 = vsel %vm2334_vm3, %v3154_v17, 0.0  ;;  %v11676_v5 = vsub.f32 %v11517_v35, %v11583_v7  ;;  %v3157_v6 = vmul.f32 %v11662_v18, %v11662_v18 }
 0x8e8   :  { %v3187_v20 = vsel %vm2334_vm3, %v3155_v26, 0.0  ;;  %v11683_v49 = vsub.f32 %v11534_v43, %v11583_v7  ;;  %v3158_v30 = vmul.f32 %v11669_v11, %v11669_v11  ;;  %v3189_v29 = vsel %vm2334_vm3, %v3156_v40, 0.0 }
 0x8e9   :  { %v3178_v62 = vadd.f32 %v3177_v44, %v3176_v38  ;;  %v11690_v35 = vsub.f32 %v11531_v3, %v11583_v7  ;;  %v3159_v8 = vmul.f32 %v11676_v5, %v11676_v5  ;;  %v3191_v56 = vsel %vm2334_vm3, %v3157_v6, 0.0 }
 0x8ea   :  { %v11697_v43 = vsub.f32 %v11540_v36, %v11583_v7  ;;  %v3160_v9 = vmul.f32 %v11683_v49, %v11683_v49  ;;  %v3193_v24 = vsel %vm2334_vm3, %v3158_v30, 0.0  ;;  %v11704_v3 = vsub.f32 %v11546_v57, %v11583_v7 }
 0x8eb   :  { %v3180_v53 = vadd.f32 %v3179_v54, %v3178_v62  ;;  %v3161_v2 = vmul.f32 %v11690_v35, %v11690_v35  ;;  %v3195_v33 = vsel %vm2334_vm3, %v3159_v8, 0.0  ;;  %v11711_v36 = vsub.f32 %v11552_v31, %v11583_v7 }
 0x8ec   :  { %v3162_v34 = vmul.f32 %v11697_v43, %v11697_v43  ;;  %v3197_v46 = vsel %vm2334_vm3, %v3160_v9, 0.0  ;;  %v11718_v57 = vsub.f32 %v11557_v4, %v11583_v7  ;;  %v3163_v47 = vmul.f32 %v11704_v3, %v11704_v3 }
 0x8ed   :  { %v3182_v39 = vadd.f32 %v3181_v15, %v3180_v53  ;;  %v3199_v44 = vsel %vm2334_vm3, %v3161_v2, 0.0  ;;  %v11725_v31 = vsub.f32 %v11562_v41, %v11583_v7  ;;  %v3164_v51 = vmul.f32 %v11711_v36, %v11711_v36 }
 0x8ee   :  { %v3201_v54 = vsel %vm2334_vm3, %v3162_v34, 0.0  ;;  %v11732_v4 = vsub.f32 %v11567_v21, %v11583_v7  ;;  %v3165_v17 = vmul.f32 %v11718_v57, %v11718_v57  ;;  %v3203_v15 = vsel %vm2334_vm3, %v3163_v47, 0.0 }
 0x8ef   :  { %v3184_v32 = vadd.f32 %v3183_v12, %v3182_v39  ;;  %v11739_v41 = vsub.f32 %v11572_v50, %v11583_v7  ;;  %v3166_v26 = vmul.f32 %v11725_v31, %v11725_v31  ;;  %v3205_v12 = vsel %vm2334_vm3, %v3164_v51, 0.0  ;;  %v11771_v51 = vld [vmem:[#allocation28] ss:$0 sm:$0xff] }
 0x8f0   :  { %v11746_v21 = vsub.f32 %v11577_v52, %v11583_v7  ;;  %v3167_v40 = vmul.f32 %v11732_v4, %v11732_v4 }
 0x8f1   :  { %v3186_v10 = vadd.f32 %v3185_v1, %v3184_v32  ;;  %v3207_v1 = vsel %vm2334_vm3, %v3165_v17, 0.0  ;;  %v3168_v50 = vmul.f32 %v11739_v41, %v11739_v41  ;;  %v3209_v6 = vsel %vm2334_vm3, %v3166_v26, 0.0 }
 0x8f2   :  { %v3211_v30 = vsel %vm2334_vm3, %v3167_v40, 0.0  ;;  %v3839_v40 = vld [vmem:[#allocation29 + $0x50] sm:$0xff] }
 0x8f3   :  { %v3188_v23 = vadd.f32 %v3187_v20, %v3186_v10  ;;  %v3213_v52 = vsel %vm2334_vm3, %v3168_v50, 0.0  ;;  %v4053_v50 = vld [vmem:[#allocation29 + $0x70] sm:$0xff] }
 0x8f5   :  { %v3190_v28 = vadd.f32 %v3189_v29, %v3188_v23  ;;  %v3169_v23 = vmul.f32 %v11746_v21, %v11746_v21 }
 0x8f7   :  { %v3192_v63 = vadd.f32 %v3191_v56, %v3190_v28  ;;  %v3215_v28 = vsel %vm2334_vm3, %v3169_v23, 0.0 }
 0x8f9   :  { %v3194_v37 = vadd.f32 %v3193_v24, %v3192_v63 }
 0x8fb   :  { %v3196_v22 = vadd.f32 %v3195_v33, %v3194_v37 }
 0x8fd   :  { %v3198_v38 = vadd.f32 %v3197_v46, %v3196_v22  ;;  %v11761_v46 = vld [vmem:[#allocation26] ss:$0 sm:$0xff] }
 0x8ff   :  { %v3200_v62 = vadd.f32 %v3199_v44, %v3198_v38 }
 0x901   :  { %v3202_v53 = vadd.f32 %v3201_v54, %v3200_v62 }
 0x903   :  { %v3204_v39 = vadd.f32 %v3203_v15, %v3202_v53 }
 0x905   :  { %v3206_v32 = vadd.f32 %v3205_v12, %v3204_v39 }
 0x907   :  { %v3208_v10 = vadd.f32 %v3207_v1, %v3206_v32 }
 0x909   :  { %v3210_v20 = vadd.f32 %v3209_v6, %v3208_v10  ;;  %v3840_v10 = vld [vmem:[#allocation29 + $0x58] sm:$0xff] }
 0x90a   :  { %v4054_v6 = vld [vmem:[#allocation29 + $0x78] sm:$0xff] }
 0x90b   :  { %v3212_v29 = vadd.f32 %v3211_v30, %v3210_v20 }
 0x90d   :  { %v3214_v7 = vadd.f32 %v3213_v52, %v3212_v29  ;;  %v9544_v52 = vpack.c.bf16 %v4054_v6, %v4053_v50 }
 0x90f   :  { %v3216_v8 = vadd.f32 %v3215_v28, %v3214_v7 }
 0x911   :  { %v3217_v56 = vrot.slane %v3216_v8, 4 }
 0x913   :  { %v3218_v63 = vadd.f32 %v3217_v56, %v3216_v8 }
 0x915   :  { %v3219_v9 = vrot.slane %v3218_v63, 2 }
 0x917   :  { %v3220_v24 = vadd.f32 %v3219_v9, %v3218_v63 }
 0x919   :  { %v3221_v37 = vrot.slane %v3220_v24, 1 }
 0x91b   :  { %v3222_v2 = vadd.f32 %v3221_v37, %v3220_v24 }
 0x91d   :  { %v3223_v33 = vmul.f32 0.0052083335, %v3222_v2 }
 0x91f   :  { %v3224_v22 = vadd.f32 1e-05, %v3223_v33 }
 0x921   :  { %9649 = vrsqrt.f32 %v3224_v22 }
 0x92b   :  { %v11759_v34 = vpop.eup %9649 }
 0x92c   :  { %v3226_v38 = vmul.f32 %v11759_v34, %v11587_v25  ;;  %v3227_v47 = vmul.f32 %v11759_v34, %v11591_v14  ;;  %v3228_v44 = vmul.f32 %v11759_v34, %v11595_v61  ;;  %v3229_v62 = vmul.f32 %v11759_v34, %v11599_v16 }
 0x92d   :  { %v3230_v54 = vmul.f32 %v11759_v34, %v11607_v13  ;;  %v3231_v14 = vmul.f32 %v11759_v34, %v11613_v45  ;;  %v3232_v61 = vmul.f32 %v11759_v34, %v11621_v60  ;;  %v3233_v60 = vmul.f32 %v11759_v34, %v11628_v27 }
 0x92e   :  { %v3257_v53 = vmul.f32 %v11761_v46, %v3226_v38  ;;  %v3258_v17 = vmul.f32 %v11761_v46, %v3227_v47  ;;  %v3259_v25 = vmul.f32 %v11761_v46, %v3228_v44  ;;  %v3260_v15 = vmul.f32 %v11761_v46, %v3229_v62 }
 0x92f   :  { %v3261_v26 = vmul.f32 %v11761_v46, %v3230_v54  ;;  %v3262_v45 = vmul.f32 %v11761_v46, %v3231_v14  ;;  %v3263_v30 = vmul.f32 %v11761_v46, %v3232_v61  ;;  %v3234_v29 = vmul.f32 %v11759_v34, %v11635_v42 }
 0x930   :  { %v3288_v16 = vadd.f32 %v11771_v51, %v3257_v53  ;;  %v3289_v39 = vadd.f32 %v11771_v51, %v3258_v17  ;;  %v3290_v13 = vadd.f32 %v11771_v51, %v3259_v25  ;;  %v3291_v1 = vadd.f32 %v11771_v51, %v3260_v15 }
 0x931   :  { %v3292_v23 = vadd.f32 %v11771_v51, %v3261_v26  ;;  %v9536_v27 = vpack.c.bf16 %v3840_v10, %v3839_v40  ;;  %v3293_v28 = vadd.f32 %v11771_v51, %v3262_v45  ;;  %v3264_v42 = vmul.f32 %v11761_v46, %v3233_v60 }
 0x932   :  { %v11787_v12 = vmax.f32 %v3288_v16, 0.0  ;;  %v11789_v32 = vmax.f32 %v3289_v39, 0.0  ;;  %v11799_v20 = vmax.f32 %v3290_v13, 0.0  ;;  %v11813_v7 = vmax.f32 %v3291_v1, 0.0 }
 0x933   :  { %v3235_v8 = vmul.f32 %v11759_v34, %v11646_v58  ;;  %v11820_v56 = vmax.f32 %v3292_v23, 0.0  ;;  %v3294_v63 = vadd.f32 %v11771_v51, %v3263_v30  ;;  %v3265_v9 = vmul.f32 %v11761_v46, %v3234_v29 }
 0x934   :  { %8714 = vmatprep.mubr.msk.f32.mxu0 %vm2334_vm3, %v11787_v12  ;;  %8758 = vmatprep.mubr.msk.f32.mxu1 %vm2334_vm3, %v11787_v12  ;;  %v3236_v24 = vmul.f32 %v11759_v34, %v11655_v55  ;;  %v3295_v58 = vadd.f32 %v11771_v51, %v3264_v42  ;;  %v3238_v22 = vmul.f32 %v11759_v34, %v11669_v11 }
 0x935   :  { %8715 = vmatmul.mubr.msk.f32.vlgmr.msra.gmra.mrb[34].mxu0 %vm2334_vm3, %v11789_v32  ;;  %8759 = vmatmul.mubr.msk.f32.vlgmr.msra.gmra.mrb[48].mxu1 %vm2334_vm3, %v11789_v32  ;;  %v3266_v55 = vmul.f32 %v11761_v46, %v3235_v8  ;;  %v11841_v37 = vmax.f32 %v3294_v63, 0.0  ;;  %v3296_v2 = vadd.f32 %v11771_v51, %v3265_v9  ;;  %v3239_v11 = vmul.f32 %v11759_v34, %v11676_v5 }
 0x936   :  { %8717 = vmatprep.mubr.msk.f32.mxu0 %vm2334_vm3, %v11799_v20  ;;  %8761 = vmatprep.mubr.msk.f32.mxu1 %vm2334_vm3, %v11799_v20  ;;  %v3267_v33 = vmul.f32 %v11761_v46, %v3236_v24  ;;  %v3269_v54 = vmul.f32 %v11761_v46, %v3238_v22  ;;  %v3240_v53 = vmul.f32 %v11759_v34, %v11683_v49 }
 0x937   :  { %9535 = vmatpush3.bf16.msra.mxu0 %v11640_v19  ;;  %9543 = vmatpush3.bf16.msra.mxu1 %v11642_v48  ;;  %v11835_v19 = vmax.f32 %v3293_v28, 0.0  ;;  %v3237_v48 = vmul.f32 %v11759_v34, %v11662_v18  ;;  %v11855_v18 = vmax.f32 %v3295_v58, 0.0  ;;  %v3297_v38 = vadd.f32 %v11771_v51, %v3266_v55 }
 0x938   :  { %9537 = vmatprep.subr.bf16.mxu0 %v9536_v27  ;;  %9545 = vmatprep.subr.bf16.mxu1 %v9544_v52  ;;  %v11861_v44 = vmax.f32 %v3296_v2, 0.0  ;;  %v3298_v62 = vadd.f32 %v11771_v51, %v3267_v33  ;;  %v3270_v25 = vmul.f32 %v11761_v46, %v3239_v11  ;;  %v3241_v49 = vmul.f32 %v11759_v34, %v11690_v35 }
 0x939   :  { %8718 = vmatmul.mubr.msk.f32.gmra.mrb[36].mxu0 %vm2334_vm3, %v11813_v7  ;;  %8762 = vmatmul.mubr.msk.f32.gmra.mrb[50].mxu1 %vm2334_vm3, %v11813_v7  ;;  %v3268_v47 = vmul.f32 %v11761_v46, %v3237_v48  ;;  %v11875_v5 = vmax.f32 %v3297_v38, 0.0  ;;  %v3300_v14 = vadd.f32 %v11771_v51, %v3269_v54  ;;  %v3271_v61 = vmul.f32 %v11761_v46, %v3240_v53 }
 0x93a   :  { %8720 = vmatprep.mubr.msk.f32.mxu0 %vm2334_vm3, %v11820_v56  ;;  %8764 = vmatprep.mubr.msk.f32.mxu1 %vm2334_vm3, %v11820_v56  ;;  %v11881_v15 = vmax.f32 %v3298_v62, 0.0  ;;  %v3242_v16 = vmul.f32 %v11759_v34, %v11697_v43  ;;  %v3301_v39 = vadd.f32 %v11771_v51, %v3270_v25  ;;  %v3272_v13 = vmul.f32 %v11761_v46, %v3241_v49 }
 0x93b   :  { %9539 = vmatpush3.bf16.msra.mxu0 %v9536_v27  ;;  %9547 = vmatpush3.bf16.msra.mxu1 %v9544_v52  ;;  %v3299_v17 = vadd.f32 %v11771_v51, %v3268_v47  ;;  %v3243_v43 = vmul.f32 %v11759_v34, %v11704_v3  ;;  %v11901_v26 = vmax.f32 %v3300_v14, 0.0  ;;  %v3302_v40 = vadd.f32 %v11771_v51, %v3271_v61 }
 0x93c   :  { %v3273_v1 = vmul.f32 %v11761_v46, %v3242_v16  ;;  %v3244_v45 = vmul.f32 %v11759_v34, %v11711_v36  ;;  %v11915_v3 = vmax.f32 %v3301_v39, 0.0  ;;  %v3303_v60 = vadd.f32 %v11771_v51, %v3272_v13 }
 0x93d   :  { %8721 = vmatmul.mubr.msk.f32.gmra.mrb[38].mxu0 %vm2334_vm3, %v11835_v19  ;;  %8765 = vmatmul.mubr.msk.f32.gmra.mrb[52].mxu1 %vm2334_vm3, %v11835_v19  ;;  %v11895_v35 = vmax.f32 %v3299_v17, 0.0  ;;  %v3274_v10 = vmul.f32 %v11761_v46, %v3243_v43  ;;  %v3245_v36 = vmul.f32 %v11759_v34, %v11718_v57  ;;  %v11921_v50 = vmax.f32 %v3302_v40, 0.0 }
 0x93e   :  { %8723 = vmatprep.mubr.msk.f32.mxu0 %vm2334_vm3, %v11841_v37  ;;  %8767 = vmatprep.mubr.msk.f32.mxu1 %vm2334_vm3, %v11841_v37  ;;  %v3304_v6 = vadd.f32 %v11771_v51, %v3273_v1  ;;  %v3275_v23 = vmul.f32 %v11761_v46, %v3244_v45  ;;  %v3246_v30 = vmul.f32 %v11759_v34, %v11725_v31  ;;  %v11935_v57 = vmax.f32 %v3303_v60, 0.0 }
 0x93f   :  { %v3305_v29 = vadd.f32 %v11771_v51, %v3274_v10  ;;  %v3276_v27 = vmul.f32 %v11761_v46, %v3245_v36  ;;  %v3247_v31 = vmul.f32 %v11759_v34, %v11732_v4  ;;  %v3248_v8 = vmul.f32 %v11759_v34, %v11739_v41 }
 0x940   :  { %v11941_v52 = vmax.f32 %v3304_v6, 0.0  ;;  %v3306_v28 = vadd.f32 %v11771_v51, %v3275_v23  ;;  %v3277_v42 = vmul.f32 %v11761_v46, %v3246_v30  ;;  %v3249_v41 = vmul.f32 %v11759_v34, %v11746_v21 }
 0x941   :  { %8724 = vmatmul.mubr.msk.f32.gmra.mrb[40].mxu0 %vm2334_vm3, %v11855_v18  ;;  %8768 = vmatmul.mubr.msk.f32.gmra.mrb[54].mxu1 %vm2334_vm3, %v11855_v18  ;;  %v11955_v4 = vmax.f32 %v3305_v29, 0.0  ;;  %v3307_v63 = vadd.f32 %v11771_v51, %v3276_v27  ;;  %v3278_v9 = vmul.f32 %v11761_v46, %v3247_v31  ;;  %v3279_v55 = vmul.f32 %v11761_v46, %v3248_v8 }
 0x942   :  { %8726 = vmatprep.mubr.msk.f32.mxu0 %vm2334_vm3, %v11861_v44  ;;  %8770 = vmatprep.mubr.msk.f32.mxu1 %vm2334_vm3, %v11861_v44  ;;  %v11961_v24 = vmax.f32 %v3306_v28, 0.0  ;;  %v3308_v58 = vadd.f32 %v11771_v51, %v3277_v42  ;;  %v3280_v34 = vmul.f32 %v11761_v46, %v3249_v41 }
 0x943   :  { %v3331_v48 = vmax.f32 %v3307_v63, 0.0  ;;  %v3309_v21 = vadd.f32 %v11771_v51, %v3278_v9  ;;  %v3310_v33 = vadd.f32 %v11771_v51, %v3279_v55 }
 0x944   :  { %v3332_v2 = vmax.f32 %v3308_v58, 0.0  ;;  %v3311_v38 = vadd.f32 %v11771_v51, %v3280_v34 }
 0x945   :  { %8727 = vmatmul.mubr.msk.f32.gmra.mrb[42].mxu0 %vm2334_vm3, %v11875_v5  ;;  %8771 = vmatmul.mubr.msk.f32.gmra.mrb[56].mxu1 %vm2334_vm3, %v11875_v5  ;;  %v3333_v22 = vmax.f32 %v3309_v21, 0.0  ;;  %v3334_v47 = vmax.f32 %v3310_v33, 0.0 }
 0x946   :  { %8729 = vmatprep.mubr.msk.f32.mxu0 %vm2334_vm3, %v11881_v15  ;;  %8773 = vmatprep.mubr.msk.f32.mxu1 %vm2334_vm3, %v11881_v15  ;;  %v3335_v46 = vmax.f32 %v3311_v38, 0.0 }
 0x949   :  { %8730 = vmatmul.mubr.msk.f32.gmra.mrb[44].mxu0 %vm2334_vm3, %v11895_v35  ;;  %8774 = vmatmul.mubr.msk.f32.gmra.mrb[58].mxu1 %vm2334_vm3, %v11895_v35 }
 0x94a   :  { %8732 = vmatprep.mubr.msk.f32.mxu0 %vm2334_vm3, %v11901_v26  ;;  %8776 = vmatprep.mubr.msk.f32.mxu1 %vm2334_vm3, %v11901_v26 }
 0x94d   :  { %8733 = vmatmul.mubr.msk.f32.gmra.mrb[46].mxu0 %vm2334_vm3, %v11915_v3  ;;  %8777 = vmatmul.mubr.msk.f32.gmra.mrb[60].mxu1 %vm2334_vm3, %v11915_v3 }
 0x94e   :  { %8735 = vmatprep.mubr.msk.f32.mxu0 %vm2334_vm3, %v11921_v50  ;;  %8779 = vmatprep.mubr.msk.f32.mxu1 %vm2334_vm3, %v11921_v50 }
 0x951   :  { %8736 = vmatmul.mubr.msk.f32.gmra.mrb[48].mxu0 %vm2334_vm3, %v11935_v57  ;;  %8780 = vmatmul.mubr.msk.f32.gmra.mrb[62].mxu1 %vm2334_vm3, %v11935_v57 }
 0x952   :  { %8738 = vmatprep.mubr.msk.f32.mxu0 %vm2334_vm3, %v11941_v52  ;;  %8782 = vmatprep.mubr.msk.f32.mxu1 %vm2334_vm3, %v11941_v52 }
 0x955   :  { %8739 = vmatmul.mubr.msk.f32.gmra.mrb[50].mxu0 %vm2334_vm3, %v11955_v4  ;;  %8783 = vmatmul.mubr.msk.f32.gmra.mrb[64].mxu1 %vm2334_vm3, %v11955_v4 }
 0x956   :  { %8741 = vmatprep.mubr.msk.f32.mxu0 %vm2334_vm3, %v11961_v24  ;;  %8785 = vmatprep.mubr.msk.f32.mxu1 %vm2334_vm3, %v11961_v24 }
 0x959   :  { %8742 = vmatmul.mubr.msk.f32.gmra.mrb[52].mxu0 %vm2334_vm3, %v3331_v48  ;;  %8786 = vmatmul.mubr.msk.f32.gmra.mrb[66].mxu1 %vm2334_vm3, %v3331_v48 }
 0x95a   :  { %8744 = vmatprep.mubr.msk.f32.mxu0 %vm2334_vm3, %v3332_v2  ;;  %8788 = vmatprep.mubr.msk.f32.mxu1 %vm2334_vm3, %v3332_v2 }
 0x95d   :  { %8745 = vmatmul.mubr.msk.f32.gmra.mrb[54].mxu0 %vm2334_vm3, %v3333_v22  ;;  %8789 = vmatmul.mubr.msk.f32.gmra.mrb[68].mxu1 %vm2334_vm3, %v3333_v22 }
 0x95e   :  { %8747 = vmatprep.mubr.msk.f32.mxu0 %vm2334_vm3, %v3334_v47  ;;  %8791 = vmatprep.mubr.msk.f32.mxu1 %vm2334_vm3, %v3334_v47 }
 0x961   :  { %8748 = vmatmul.mubr.msk.f32.gmra.mrb[56].mxu0 %vm2334_vm3, %v3335_v46  ;;  %8792 = vmatmul.mubr.msk.f32.gmra.mrb[70].mxu1 %vm2334_vm3, %v3335_v46 }
 0x962   :  { %8802 = vmatprep.mubr.msk.f32.mxu0 %vm2334_vm3, %v11787_v12  ;;  %8846 = vmatprep.mubr.msk.f32.mxu1 %vm2334_vm3, %v11787_v12 }
 0x965   :  { %8803 = vmatmul.mubr.msk.f32.vlgmr.msra.gmra.mrb[58].mxu0 %vm2334_vm3, %v11789_v32  ;;  %8847 = vmatmul.mubr.msk.f32.vlgmr.msra.gmra.mrb[72].mxu1 %vm2334_vm3, %v11789_v32 }
 0x966   :  { %8805 = vmatprep.mubr.msk.f32.mxu0 %vm2334_vm3, %v11799_v20  ;;  %8849 = vmatprep.mubr.msk.f32.mxu1 %vm2334_vm3, %v11799_v20 }
 0x969   :  { %8806 = vmatmul.mubr.msk.f32.gmra.mrb[60].mxu0 %vm2334_vm3, %v11813_v7  ;;  %8850 = vmatmul.mubr.msk.f32.gmra.mrb[74].mxu1 %vm2334_vm3, %v11813_v7 }
 0x96a   :  { %8808 = vmatprep.mubr.msk.f32.mxu0 %vm2334_vm3, %v11820_v56  ;;  %8852 = vmatprep.mubr.msk.f32.mxu1 %vm2334_vm3, %v11820_v56 }
 0x96d   :  { %8809 = vmatmul.mubr.msk.f32.gmra.mrb[62].mxu0 %vm2334_vm3, %v11835_v19  ;;  %8853 = vmatmul.mubr.msk.f32.gmra.mrb[76].mxu1 %vm2334_vm3, %v11835_v19 }
 0x96e   :  { %8811 = vmatprep.mubr.msk.f32.mxu0 %vm2334_vm3, %v11841_v37  ;;  %8855 = vmatprep.mubr.msk.f32.mxu1 %vm2334_vm3, %v11841_v37 }
 0x971   :  { %8812 = vmatmul.mubr.msk.f32.gmra.mrb[64].mxu0 %vm2334_vm3, %v11855_v18  ;;  %8856 = vmatmul.mubr.msk.f32.gmra.mrb[78].mxu1 %vm2334_vm3, %v11855_v18  ;;  %v12079_v18 = vld [vmem:[#allocation31] ss:$0 sm:$0xff] }
 0x972   :  { %8814 = vmatprep.mubr.msk.f32.mxu0 %vm2334_vm3, %v11861_v44  ;;  %8858 = vmatprep.mubr.msk.f32.mxu1 %vm2334_vm3, %v11861_v44 }
 0x975   :  { %8815 = vmatmul.mubr.msk.f32.gmra.mrb[66].mxu0 %vm2334_vm3, %v11875_v5  ;;  %8859 = vmatmul.mubr.msk.f32.gmra.mrb[80].mxu1 %vm2334_vm3, %v11875_v5 }
 0x976   :  { %8817 = vmatprep.mubr.msk.f32.mxu0 %vm2334_vm3, %v11881_v15  ;;  %8861 = vmatprep.mubr.msk.f32.mxu1 %vm2334_vm3, %v11881_v15 }
 0x979   :  { %8818 = vmatmul.mubr.msk.f32.gmra.mrb[68].mxu0 %vm2334_vm3, %v11895_v35  ;;  %8862 = vmatmul.mubr.msk.f32.gmra.mrb[82].mxu1 %vm2334_vm3, %v11895_v35 }
 0x97a   :  { %8820 = vmatprep.mubr.msk.f32.mxu0 %vm2334_vm3, %v11901_v26  ;;  %8864 = vmatprep.mubr.msk.f32.mxu1 %vm2334_vm3, %v11901_v26 }
 0x97d   :  { %8821 = vmatmul.mubr.msk.f32.gmra.mrb[70].mxu0 %vm2334_vm3, %v11915_v3  ;;  %8865 = vmatmul.mubr.msk.f32.gmra.mrb[84].mxu1 %vm2334_vm3, %v11915_v3 }
 0x97e   :  { %8823 = vmatprep.mubr.msk.f32.mxu0 %vm2334_vm3, %v11921_v50  ;;  %8867 = vmatprep.mubr.msk.f32.mxu1 %vm2334_vm3, %v11921_v50 }
 0x981   :  { %8824 = vmatmul.mubr.msk.f32.gmra.mrb[72].mxu0 %vm2334_vm3, %v11935_v57  ;;  %8868 = vmatmul.mubr.msk.f32.gmra.mrb[86].mxu1 %vm2334_vm3, %v11935_v57 }
 0x982   :  { %8826 = vmatprep.mubr.msk.f32.mxu0 %vm2334_vm3, %v11941_v52  ;;  %8870 = vmatprep.mubr.msk.f32.mxu1 %vm2334_vm3, %v11941_v52 }
 0x985   :  { %8827 = vmatmul.mubr.msk.f32.gmra.mrb[74].mxu0 %vm2334_vm3, %v11955_v4  ;;  %8871 = vmatmul.mubr.msk.f32.gmra.mrb[88].mxu1 %vm2334_vm3, %v11955_v4 }
 0x986   :  { %8829 = vmatprep.mubr.msk.f32.mxu0 %vm2334_vm3, %v11961_v24  ;;  %8873 = vmatprep.mubr.msk.f32.mxu1 %vm2334_vm3, %v11961_v24 }
 0x989   :  { %8830 = vmatmul.mubr.msk.f32.gmra.mrb[76].mxu0 %vm2334_vm3, %v3331_v48  ;;  %8874 = vmatmul.mubr.msk.f32.gmra.mrb[90].mxu1 %vm2334_vm3, %v3331_v48 }
 0x98a   :  { %8832 = vmatprep.mubr.msk.f32.mxu0 %vm2334_vm3, %v3332_v2  ;;  %8876 = vmatprep.mubr.msk.f32.mxu1 %vm2334_vm3, %v3332_v2 }
 0x98d   :  { %8833 = vmatmul.mubr.msk.f32.gmra.mrb[78].mxu0 %vm2334_vm3, %v3333_v22  ;;  %8877 = vmatmul.mubr.msk.f32.gmra.mrb[92].mxu1 %vm2334_vm3, %v3333_v22 }
 0x98e   :  { %8835 = vmatprep.mubr.msk.f32.mxu0 %vm2334_vm3, %v3334_v47  ;;  %8879 = vmatprep.mubr.msk.f32.mxu1 %vm2334_vm3, %v3334_v47 }
 0x991   :  { %8836 = vmatmul.mubr.msk.f32.gmra.mrb[80].mxu0 %vm2334_vm3, %v3335_v46  ;;  %8880 = vmatmul.mubr.msk.f32.gmra.mrb[94].mxu1 %vm2334_vm3, %v3335_v46 }
 0xa08   :  { %v8716_v51 = vpop.f32.mrb[34].mxu0  ;;  %v8760_v12 = vpop.f32.mrb[48].mxu1 }
 0xa09   :  { %3599 = vst.msk [vmem:[#allocation5 + $0x8] sm:$0xff] %vm3597_vm4, %v8716_v51  ;;  %3813 = vst.msk [vmem:[#allocation5 + $0xc8] sm:$0xff] %vm3597_vm4, %v8760_v12  ;;  %v3478_v32 = vpop.f32.mrb[35].mxu0  ;;  %v3693_v20 = vpop.f32.mrb[49].mxu1 }
 0xa0a   :  { %3598 = vst.msk [vmem:[#allocation5] sm:$0xff] %vm3597_vm4, %v3478_v32  ;;  %3812 = vst.msk [vmem:[#allocation5 + $0xc0] sm:$0xff] %vm3597_vm4, %v3693_v20 }
 0xa0c   :  { %v8719_v7 = vpop.f32.mrb[36].mxu0  ;;  %v8763_v56 = vpop.f32.mrb[50].mxu1 }
 0xa0d   :  { %3601 = vst.msk [vmem:[#allocation5 + $0x18] sm:$0xff] %vm3597_vm4, %v8719_v7  ;;  %3815 = vst.msk [vmem:[#allocation5 + $0xd8] sm:$0xff] %vm3597_vm4, %v8763_v56  ;;  %v3488_v19 = vpop.f32.mrb[37].mxu0  ;;  %v3703_v37 = vpop.f32.mrb[51].mxu1 }
 0xa0e   :  { %3600 = vst.msk [vmem:[#allocation5 + $0x10] sm:$0xff] %vm3597_vm4, %v3488_v19  ;;  %3814 = vst.msk [vmem:[#allocation5 + $0xd0] sm:$0xff] %vm3597_vm4, %v3703_v37 }
 0xa10   :  { %v8722_v11 = vpop.f32.mrb[38].mxu0  ;;  %v8766_v44 = vpop.f32.mrb[52].mxu1  ;;  %v4265_v62 = vld [vmem:[#allocation5 + $0x8] sm:$0xff] }
 0xa11   :  { %3603 = vst.msk [vmem:[#allocation5 + $0x28] sm:$0xff] %vm3597_vm4, %v8722_v11  ;;  %3817 = vst.msk [vmem:[#allocation5 + $0xe8] sm:$0xff] %vm3597_vm4, %v8766_v44  ;;  %v3498_v54 = vpop.f32.mrb[39].mxu0  ;;  %v3713_v53 = vpop.f32.mrb[53].mxu1  ;;  %v4264_v5 = vld [vmem:[#allocation5] sm:$0xff]  ;;  %v12086_v17 = vadd.f32 %v12079_v18, %v4265_v62 }
 0xa12   :  { %3602 = vst.msk [vmem:[#allocation5 + $0x20] sm:$0xff] %vm3597_vm4, %v3498_v54  ;;  %3816 = vst.msk [vmem:[#allocation5 + $0xe0] sm:$0xff] %vm3597_vm4, %v3713_v53  ;;  %v12091_v25 = vadd.f32 %v12079_v18, %v4264_v5 }
 0xa13   :  { %v4464_v16 = vsel %vm3597_vm4, %v12086_v17, 0.0 }
 0xa14   :  { %v8725_v49 = vpop.f32.mrb[40].mxu0  ;;  %v8769_v15 = vpop.f32.mrb[54].mxu1  ;;  %v4267_v14 = vld [vmem:[#allocation5 + $0x18] sm:$0xff]  ;;  %v4463_v61 = vsel %vm3597_vm4, %v12091_v25, 0.0 }
 0xa15   :  { %3605 = vst.msk [vmem:[#allocation5 + $0x38] sm:$0xff] %vm3597_vm4, %v8725_v49  ;;  %3819 = vst.msk [vmem:[#allocation5 + $0xf8] sm:$0xff] %vm3597_vm4, %v8769_v15  ;;  %v3508_v35 = vpop.f32.mrb[41].mxu0  ;;  %v3723_v39 = vpop.f32.mrb[55].mxu1  ;;  %v4266_v13 = vld [vmem:[#allocation5 + $0x10] sm:$0xff]  ;;  %v12105_v26 = vadd.f32 %v12079_v18, %v4267_v14  ;;  %v4465_v40 = vadd.f32 %v4464_v16, %v4463_v61 }
 0xa16   :  { %3604 = vst.msk [vmem:[#allocation5 + $0x30] sm:$0xff] %vm3597_vm4, %v3508_v35  ;;  %3818 = vst.msk [vmem:[#allocation5 + $0xf0] sm:$0xff] %vm3597_vm4, %v3723_v39  ;;  %v12102_v43 = vadd.f32 %v12079_v18, %v4266_v13 }
 0xa17   :  { %v4468_v57 = vsel %vm3597_vm4, %v12105_v26, 0.0 }
 0xa18   :  { %v8728_v1 = vpop.f32.mrb[42].mxu0  ;;  %v8772_v45 = vpop.f32.mrb[56].mxu1  ;;  %v4269_v3 = vld [vmem:[#allocation5 + $0x28] sm:$0xff]  ;;  %v4466_v60 = vsel %vm3597_vm4, %v12102_v43, 0.0 }
 0xa19   :  { %3607 = vst.msk [vmem:[#allocation5 + $0x48] sm:$0xff] %vm3597_vm4, %v8728_v1  ;;  %3821 = vst.msk [vmem:[#allocation5 + $0x108] sm:$0xff] %vm3597_vm4, %v8772_v45  ;;  %v3518_v10 = vpop.f32.mrb[43].mxu0  ;;  %v3733_v36 = vpop.f32.mrb[57].mxu1  ;;  %v4268_v50 = vld [vmem:[#allocation5 + $0x20] sm:$0xff]  ;;  %v4467_v6 = vadd.f32 %v4466_v60, %v4465_v40  ;;  %v12117_v30 = vadd.f32 %v12079_v18, %v4269_v3 }
 0xa1a   :  { %3606 = vst.msk [vmem:[#allocation5 + $0x40] sm:$0xff] %vm3597_vm4, %v3518_v10  ;;  %3820 = vst.msk [vmem:[#allocation5 + $0x100] sm:$0xff] %vm3597_vm4, %v3733_v36  ;;  %v12114_v23 = vadd.f32 %v12079_v18, %v4268_v50 }
 0xa1b   :  { %v4469_v29 = vadd.f32 %v4468_v57, %v4467_v6  ;;  %v4472_v24 = vsel %vm3597_vm4, %v12117_v30, 0.0 }
 0xa1c   :  { %v4271_v27 = vld [vmem:[#allocation5 + $0x38] sm:$0xff]  ;;  %v8731_v31 = vpop.f32.mrb[44].mxu0  ;;  %v8775_v52 = vpop.f32.mrb[58].mxu1  ;;  %v4470_v28 = vsel %vm3597_vm4, %v12114_v23, 0.0 }
 0xa1d   :  { %3609 = vst.msk [vmem:[#allocation5 + $0x58] sm:$0xff] %vm3597_vm4, %v8731_v31  ;;  %3823 = vst.msk [vmem:[#allocation5 + $0x118] sm:$0xff] %vm3597_vm4, %v8775_v52  ;;  %v3528_v42 = vpop.f32.mrb[45].mxu0  ;;  %v3743_v8 = vpop.f32.mrb[59].mxu1  ;;  %v4270_v4 = vld [vmem:[#allocation5 + $0x30] sm:$0xff]  ;;  %v4471_v63 = vadd.f32 %v4470_v28, %v4469_v29  ;;  %v12131_v41 = vadd.f32 %v12079_v18, %v4271_v27 }
 0xa1e   :  { %3608 = vst.msk [vmem:[#allocation5 + $0x50] sm:$0xff] %vm3597_vm4, %v3528_v42  ;;  %3822 = vst.msk [vmem:[#allocation5 + $0x110] sm:$0xff] %vm3597_vm4, %v3743_v8  ;;  %v12128_v9 = vadd.f32 %v12079_v18, %v4270_v4 }
 0xa1f   :  { %v4473_v58 = vadd.f32 %v4472_v24, %v4471_v63  ;;  %v4476_v51 = vsel %vm3597_vm4, %v12131_v41, 0.0 }
 0xa20   :  { %v4273_v55 = vld [vmem:[#allocation5 + $0x48] sm:$0xff]  ;;  %v8734_v48 = vpop.f32.mrb[46].mxu0  ;;  %v8778_v21 = vpop.f32.mrb[60].mxu1  ;;  %v4474_v34 = vsel %vm3597_vm4, %v12128_v9, 0.0 }
 0xa21   :  { %v4272_v2 = vld [vmem:[#allocation5 + $0x40] sm:$0xff]  ;;  %3611 = vst.msk [vmem:[#allocation5 + $0x68] sm:$0xff] %vm3597_vm4, %v8734_v48  ;;  %3825 = vst.msk [vmem:[#allocation5 + $0x128] sm:$0xff] %vm3597_vm4, %v8778_v21  ;;  %v3538_v33 = vpop.f32.mrb[47].mxu0  ;;  %v3753_v22 = vpop.f32.mrb[61].mxu1  ;;  %v4475_v38 = vadd.f32 %v4474_v34, %v4473_v58  ;;  %v12140_v47 = vadd.f32 %v12079_v18, %v4273_v55 }
 0xa22   :  { %v12143_v46 = vadd.f32 %v12079_v18, %v4272_v2  ;;  %3610 = vst.msk [vmem:[#allocation5 + $0x60] sm:$0xff] %vm3597_vm4, %v3538_v33  ;;  %3824 = vst.msk [vmem:[#allocation5 + $0x120] sm:$0xff] %vm3597_vm4, %v3753_v22 }
 0xa23   :  { %v4477_v12 = vadd.f32 %v4476_v51, %v4475_v38  ;;  %v4480_v53 = vsel %vm3597_vm4, %v12140_v47, 0.0 }
 0xa24   :  { %v4275_v32 = vld [vmem:[#allocation5 + $0x58] sm:$0xff]  ;;  %v8737_v20 = vpop.f32.mrb[48].mxu0  ;;  %v8781_v7 = vpop.f32.mrb[62].mxu1  ;;  %v4478_v56 = vsel %vm3597_vm4, %v12143_v46, 0.0 }
 0xa25   :  { %v4274_v19 = vld [vmem:[#allocation5 + $0x50] sm:$0xff]  ;;  %3613 = vst.msk [vmem:[#allocation5 + $0x78] sm:$0xff] %vm3597_vm4, %v8737_v20  ;;  %3827 = vst.msk [vmem:[#allocation5 + $0x138] sm:$0xff] %vm3597_vm4, %v8781_v7  ;;  %v3548_v37 = vpop.f32.mrb[49].mxu0  ;;  %v3763_v11 = vpop.f32.mrb[63].mxu1  ;;  %v4479_v44 = vadd.f32 %v4478_v56, %v4477_v12  ;;  %v12154_v62 = vadd.f32 %v12079_v18, %v4275_v32 }
 0xa26   :  { %v12157_v54 = vadd.f32 %v12079_v18, %v4274_v19  ;;  %3612 = vst.msk [vmem:[#allocation5 + $0x70] sm:$0xff] %vm3597_vm4, %v3548_v37  ;;  %3826 = vst.msk [vmem:[#allocation5 + $0x130] sm:$0xff] %vm3597_vm4, %v3763_v11 }
 0xa27   :  { %v4481_v5 = vadd.f32 %v4480_v53, %v4479_v44  ;;  %v4484_v40 = vsel %vm3597_vm4, %v12154_v62, 0.0 }
 0xa28   :  { %v4482_v49 = vsel %vm3597_vm4, %v12157_v54, 0.0  ;;  %v4277_v15 = vld [vmem:[#allocation5 + $0x68] sm:$0xff]  ;;  %v8740_v14 = vpop.f32.mrb[50].mxu0  ;;  %v8784_v61 = vpop.f32.mrb[64].mxu1 }
 0xa29   :  { %v4276_v16 = vld [vmem:[#allocation5 + $0x60] sm:$0xff]  ;;  %3615 = vst.msk [vmem:[#allocation5 + $0x88] sm:$0xff] %vm3597_vm4, %v8740_v14  ;;  %3829 = vst.msk [vmem:[#allocation5 + $0x148] sm:$0xff] %vm3597_vm4, %v8784_v61  ;;  %v3558_v35 = vpop.f32.mrb[51].mxu0  ;;  %v3773_v39 = vpop.f32.mrb[65].mxu1  ;;  %v4483_v13 = vadd.f32 %v4482_v49, %v4481_v5  ;;  %v12170_v1 = vadd.f32 %v12079_v18, %v4277_v15 }
 0xa2a   :  { %v12173_v45 = vadd.f32 %v12079_v18, %v4276_v16  ;;  %3614 = vst.msk [vmem:[#allocation5 + $0x80] sm:$0xff] %vm3597_vm4, %v3558_v35  ;;  %3828 = vst.msk [vmem:[#allocation5 + $0x140] sm:$0xff] %vm3597_vm4, %v3773_v39 }
 0xa2b   :  { %v4485_v3 = vadd.f32 %v4484_v40, %v4483_v13  ;;  %v4488_v31 = vsel %vm3597_vm4, %v12170_v1, 0.0 }
 0xa2c   :  { %v4486_v60 = vsel %vm3597_vm4, %v12173_v45, 0.0  ;;  %v4279_v10 = vld [vmem:[#allocation5 + $0x78] sm:$0xff]  ;;  %v8743_v36 = vpop.f32.mrb[52].mxu0  ;;  %v8787_v50 = vpop.f32.mrb[66].mxu1 }
 0xa2d   :  { %v4278_v6 = vld [vmem:[#allocation5 + $0x70] sm:$0xff]  ;;  %3617 = vst.msk [vmem:[#allocation5 + $0x98] sm:$0xff] %vm3597_vm4, %v8743_v36  ;;  %3831 = vst.msk [vmem:[#allocation5 + $0x158] sm:$0xff] %vm3597_vm4, %v8787_v50  ;;  %v3568_v57 = vpop.f32.mrb[53].mxu0  ;;  %v3783_v29 = vpop.f32.mrb[67].mxu1  ;;  %v4487_v27 = vadd.f32 %v4486_v60, %v4485_v3  ;;  %v12184_v52 = vadd.f32 %v12079_v18, %v4279_v10 }
 0xa2e   :  { %v12187_v28 = vadd.f32 %v12079_v18, %v4278_v6  ;;  %3616 = vst.msk [vmem:[#allocation5 + $0x90] sm:$0xff] %vm3597_vm4, %v3568_v57  ;;  %3830 = vst.msk [vmem:[#allocation5 + $0x150] sm:$0xff] %vm3597_vm4, %v3783_v29  ;;  %v4288_v57 = vld [vmem:[#allocation5 + $0xc0] sm:$0xff] }
 0xa2f   :  { %v4489_v42 = vadd.f32 %v4488_v31, %v4487_v27  ;;  %v4492_v34 = vsel %vm3597_vm4, %v12184_v52, 0.0 }
 0xa30   :  { %v4490_v8 = vsel %vm3597_vm4, %v12187_v28, 0.0  ;;  %v4281_v4 = vld [vmem:[#allocation5 + $0x88] sm:$0xff]  ;;  %v8746_v63 = vpop.f32.mrb[54].mxu0  ;;  %v8790_v24 = vpop.f32.mrb[68].mxu1 }
 0xa31   :  { %v4280_v58 = vld [vmem:[#allocation5 + $0x80] sm:$0xff]  ;;  %3619 = vst.msk [vmem:[#allocation5 + $0xa8] sm:$0xff] %vm3597_vm4, %v8746_v63  ;;  %3833 = vst.msk [vmem:[#allocation5 + $0x168] sm:$0xff] %vm3597_vm4, %v8790_v24  ;;  %v3578_v55 = vpop.f32.mrb[55].mxu0  ;;  %v3793_v48 = vpop.f32.mrb[69].mxu1  ;;  %v4491_v21 = vadd.f32 %v4490_v8, %v4489_v42  ;;  %v12198_v2 = vadd.f32 %v12079_v18, %v4281_v4  ;;  %v4289_v24 = vld [vmem:[#allocation5 + $0xc8] sm:$0xff] }
 0xa32   :  { %v12201_v33 = vadd.f32 %v12079_v18, %v4280_v58  ;;  %3618 = vst.msk [vmem:[#allocation5 + $0xa0] sm:$0xff] %vm3597_vm4, %v3578_v55  ;;  %3832 = vst.msk [vmem:[#allocation5 + $0x160] sm:$0xff] %vm3597_vm4, %v3793_v48  ;;  %v12248_v55 = vadd.f32 %v12079_v18, %v4288_v57 }
 0xa33   :  { %v4493_v22 = vadd.f32 %v4492_v34, %v4491_v21  ;;  %v4496_v37 = vsel %vm3597_vm4, %v12198_v2, 0.0 }
 0xa34   :  { %v4494_v38 = vsel %vm3597_vm4, %v12201_v33, 0.0  ;;  %v4283_v51 = vld [vmem:[#allocation5 + $0x98] sm:$0xff]  ;;  %v8749_v12 = vpop.f32.mrb[56].mxu0  ;;  %v8793_v32 = vpop.f32.mrb[70].mxu1 }
 0xa35   :  { %v4282_v20 = vld [vmem:[#allocation5 + $0x90] sm:$0xff]  ;;  %3621 = vst.msk [vmem:[#allocation5 + $0xb8] sm:$0xff] %vm3597_vm4, %v8749_v12  ;;  %3835 = vst.msk [vmem:[#allocation5 + $0x178] sm:$0xff] %vm3597_vm4, %v8793_v32  ;;  %v3588_v7 = vpop.f32.mrb[57].mxu0  ;;  %v3803_v56 = vpop.f32.mrb[71].mxu1  ;;  %v4495_v19 = vadd.f32 %v4494_v38, %v4493_v22  ;;  %v12212_v11 = vadd.f32 %v12079_v18, %v4283_v51  ;;  %v12255_v32 = vadd.f32 %v12079_v18, %v4289_v24 }
 0xa36   :  { %v12215_v44 = vadd.f32 %v12079_v18, %v4282_v20  ;;  %3620 = vst.msk [vmem:[#allocation5 + $0xb0] sm:$0xff] %vm3597_vm4, %v3588_v7  ;;  %3834 = vst.msk [vmem:[#allocation5 + $0x170] sm:$0xff] %vm3597_vm4, %v3803_v56  ;;  %v4290_v22 = vld [vmem:[#allocation5 + $0xd0] sm:$0xff]  ;;  %v4291_v7 = vld [vmem:[#allocation5 + $0xd8] sm:$0xff] }
 0xa37   :  { %v4497_v53 = vadd.f32 %v4496_v37, %v4495_v19  ;;  %v4500_v13 = vsel %vm3597_vm4, %v12212_v11, 0.0  ;;  %v4510_v19 = vsel %vm3597_vm4, %v12248_v55, 0.0  ;;  %v12264_v37 = vadd.f32 %v12079_v18, %v4290_v22  ;;  %v4296_v22 = vld [vmem:[#allocation5 + $0x100] sm:$0xff] }
 0xa38   :  { %v4498_v5 = vsel %vm3597_vm4, %v12215_v44, 0.0  ;;  %v4285_v49 = vld [vmem:[#allocation5 + $0xa8] sm:$0xff]  ;;  %v8804_v15 = vpop.f32.mrb[58].mxu0  ;;  %v8848_v14 = vpop.f32.mrb[72].mxu1 }
 0xa39   :  { %v4284_v61 = vld [vmem:[#allocation5 + $0xa0] sm:$0xff]  ;;  %4027 = vst.msk [vmem:[#allocation5 + $0x188] sm:$0xff] %vm3597_vm4, %v8804_v15  ;;  %4241 = vst.msk [vmem:[#allocation5 + $0x248] sm:$0xff] %vm3597_vm4, %v8848_v14  ;;  %v3907_v16 = vpop.f32.mrb[59].mxu0  ;;  %v4121_v35 = vpop.f32.mrb[73].mxu1  ;;  %v4499_v39 = vadd.f32 %v4498_v5, %v4497_v53  ;;  %v12226_v40 = vadd.f32 %v12079_v18, %v4285_v49 }
 0xa3a   :  { %v12229_v3 = vadd.f32 %v12079_v18, %v4284_v61  ;;  %4026 = vst.msk [vmem:[#allocation5 + $0x180] sm:$0xff] %vm3597_vm4, %v3907_v16  ;;  %4240 = vst.msk [vmem:[#allocation5 + $0x240] sm:$0xff] %vm3597_vm4, %v4121_v35  ;;  %v4292_v49 = vld [vmem:[#allocation5 + $0xe0] sm:$0xff]  ;;  %v4512_v16 = vsel %vm3597_vm4, %v12255_v32, 0.0  ;;  %v12271_v35 = vadd.f32 %v12079_v18, %v4291_v7 }
 0xa3b   :  { %v4501_v60 = vadd.f32 %v4500_v13, %v4499_v39  ;;  %v4504_v8 = vsel %vm3597_vm4, %v12226_v40, 0.0  ;;  %v4293_v39 = vld [vmem:[#allocation5 + $0xe8] sm:$0xff] }
 0xa3c   :  { %v4502_v10 = vsel %vm3597_vm4, %v12229_v3, 0.0  ;;  %v4287_v36 = vld [vmem:[#allocation5 + $0xb8] sm:$0xff]  ;;  %v8807_v50 = vpop.f32.mrb[60].mxu0  ;;  %v8851_v6 = vpop.f32.mrb[74].mxu1 }
 0xa3d   :  { %v4286_v29 = vld [vmem:[#allocation5 + $0xb0] sm:$0xff]  ;;  %4029 = vst.msk [vmem:[#allocation5 + $0x198] sm:$0xff] %vm3597_vm4, %v8807_v50  ;;  %4243 = vst.msk [vmem:[#allocation5 + $0x258] sm:$0xff] %vm3597_vm4, %v8851_v6  ;;  %v3917_v27 = vpop.f32.mrb[61].mxu0  ;;  %v4131_v31 = vpop.f32.mrb[75].mxu1  ;;  %v4503_v42 = vadd.f32 %v4502_v10, %v4501_v60  ;;  %v12240_v4 = vadd.f32 %v12079_v18, %v4287_v36  ;;  %v4514_v60 = vsel %vm3597_vm4, %v12264_v37, 0.0  ;;  %v12278_v10 = vadd.f32 %v12079_v18, %v4292_v49 }
 0xa3e   :  { %v12243_v63 = vadd.f32 %v12079_v18, %v4286_v29  ;;  %4028 = vst.msk [vmem:[#allocation5 + $0x190] sm:$0xff] %vm3597_vm4, %v3917_v27  ;;  %4242 = vst.msk [vmem:[#allocation5 + $0x250] sm:$0xff] %vm3597_vm4, %v4131_v31  ;;  %v4294_v6 = vld [vmem:[#allocation5 + $0xf0] sm:$0xff]  ;;  %v4516_v31 = vsel %vm3597_vm4, %v12271_v35, 0.0 }
 0xa3f   :  { %v4505_v58 = vadd.f32 %v4504_v8, %v4503_v42  ;;  %v4508_v20 = vsel %vm3597_vm4, %v12240_v4, 0.0  ;;  %v12285_v42 = vadd.f32 %v12079_v18, %v4293_v39  ;;  %v4295_v8 = vld [vmem:[#allocation5 + $0xf8] sm:$0xff] }
 0xa40   :  { %v4506_v48 = vsel %vm3597_vm4, %v12243_v63, 0.0  ;;  %v8810_v21 = vpop.f32.mrb[62].mxu0  ;;  %v8854_v34 = vpop.f32.mrb[76].mxu1  ;;  %v12299_v7 = vadd.f32 %v12079_v18, %v4295_v8 }
 0xa41   :  { %4031 = vst.msk [vmem:[#allocation5 + $0x1a8] sm:$0xff] %vm3597_vm4, %v8810_v21  ;;  %4245 = vst.msk [vmem:[#allocation5 + $0x268] sm:$0xff] %vm3597_vm4, %v8854_v34  ;;  %v3927_v38 = vpop.f32.mrb[63].mxu0  ;;  %v4141_v51 = vpop.f32.mrb[77].mxu1  ;;  %v4507_v12 = vadd.f32 %v4506_v48, %v4505_v58  ;;  %v4518_v58 = vsel %vm3597_vm4, %v12278_v10, 0.0  ;;  %v12292_v48 = vadd.f32 %v12079_v18, %v4294_v6 }
 0xa42   :  { %4030 = vst.msk [vmem:[#allocation5 + $0x1a0] sm:$0xff] %vm3597_vm4, %v3927_v38  ;;  %4244 = vst.msk [vmem:[#allocation5 + $0x260] sm:$0xff] %vm3597_vm4, %v4141_v51 }
 0xa43   :  { %v4509_v56 = vadd.f32 %v4508_v20, %v4507_v12  ;;  %v4520_v20 = vsel %vm3597_vm4, %v12285_v42, 0.0 }
 0xa44   :  { %v8813_v53 = vpop.f32.mrb[64].mxu0  ;;  %v8857_v5 = vpop.f32.mrb[78].mxu1 }
 0xa45   :  { %4033 = vst.msk [vmem:[#allocation5 + $0x1b8] sm:$0xff] %vm3597_vm4, %v8813_v53  ;;  %4247 = vst.msk [vmem:[#allocation5 + $0x278] sm:$0xff] %vm3597_vm4, %v8857_v5  ;;  %v3937_v15 = vpop.f32.mrb[65].mxu0  ;;  %v4151_v14 = vpop.f32.mrb[79].mxu1  ;;  %v4511_v61 = vadd.f32 %v4510_v19, %v4509_v56  ;;  %v4297_v56 = vld [vmem:[#allocation5 + $0x108] sm:$0xff]  ;;  %v4522_v53 = vsel %vm3597_vm4, %v12292_v48, 0.0  ;;  %v12306_v5 = vadd.f32 %v12079_v18, %v4296_v22 }
 0xa46   :  { %4032 = vst.msk [vmem:[#allocation5 + $0x1b0] sm:$0xff] %vm3597_vm4, %v3937_v15  ;;  %4246 = vst.msk [vmem:[#allocation5 + $0x270] sm:$0xff] %vm3597_vm4, %v4151_v14  ;;  %v4298_v14 = vld [vmem:[#allocation5 + $0x110] sm:$0xff]  ;;  %v4301_v22 = vld [vmem:[#allocation5 + $0x128] sm:$0xff] }
 0xa47   :  { %v4513_v13 = vadd.f32 %v4512_v16, %v4511_v61  ;;  %v4526_v6 = vsel %vm3597_vm4, %v12306_v5, 0.0 }
 0xa48   :  { %v8816_v36 = vpop.f32.mrb[66].mxu0  ;;  %v8860_v50 = vpop.f32.mrb[80].mxu1 }
 0xa49   :  { %4035 = vst.msk [vmem:[#allocation5 + $0x1c8] sm:$0xff] %vm3597_vm4, %v8816_v36  ;;  %4249 = vst.msk [vmem:[#allocation5 + $0x288] sm:$0xff] %vm3597_vm4, %v8860_v50  ;;  %v3947_v57 = vpop.f32.mrb[67].mxu0  ;;  %v4161_v29 = vpop.f32.mrb[81].mxu1  ;;  %v4515_v27 = vadd.f32 %v4514_v60, %v4513_v13  ;;  %v4524_v13 = vsel %vm3597_vm4, %v12299_v7, 0.0  ;;  %v12313_v60 = vadd.f32 %v12079_v18, %v4297_v56  ;;  %v4299_v36 = vld [vmem:[#allocation5 + $0x118] sm:$0xff] }
 0xa4a   :  { %4034 = vst.msk [vmem:[#allocation5 + $0x1c0] sm:$0xff] %vm3597_vm4, %v3947_v57  ;;  %4248 = vst.msk [vmem:[#allocation5 + $0x280] sm:$0xff] %vm3597_vm4, %v4161_v29  ;;  %v12320_v57 = vadd.f32 %v12079_v18, %v4298_v14 }
 0xa4b   :  { %v4517_v24 = vadd.f32 %v4516_v31, %v4515_v27  ;;  %v4300_v31 = vld [vmem:[#allocation5 + $0x120] sm:$0xff] }
 0xa4c   :  { %v8819_v21 = vpop.f32.mrb[68].mxu0  ;;  %v8863_v34 = vpop.f32.mrb[82].mxu1 }
 0xa4d   :  { %4037 = vst.msk [vmem:[#allocation5 + $0x1d8] sm:$0xff] %vm3597_vm4, %v8819_v21  ;;  %4251 = vst.msk [vmem:[#allocation5 + $0x298] sm:$0xff] %vm3597_vm4, %v8863_v34  ;;  %v3957_v38 = vpop.f32.mrb[69].mxu0  ;;  %v4171_v51 = vpop.f32.mrb[83].mxu1  ;;  %v4519_v12 = vadd.f32 %v4518_v58, %v4517_v24  ;;  %v4528_v21 = vsel %vm3597_vm4, %v12313_v60, 0.0  ;;  %v12327_v34 = vadd.f32 %v12079_v18, %v4299_v36 }
 0xa4e   :  { %4036 = vst.msk [vmem:[#allocation5 + $0x1d0] sm:$0xff] %vm3597_vm4, %v3957_v38  ;;  %4250 = vst.msk [vmem:[#allocation5 + $0x290] sm:$0xff] %vm3597_vm4, %v4171_v51  ;;  %v4530_v51 = vsel %vm3597_vm4, %v12320_v57, 0.0 }
 0xa4f   :  { %v4521_v19 = vadd.f32 %v4520_v20, %v4519_v12  ;;  %v12334_v12 = vadd.f32 %v12079_v18, %v4300_v31  ;;  %v4532_v14 = vsel %vm3597_vm4, %v12327_v34, 0.0 }
 0xa50   :  { %v8822_v49 = vpop.f32.mrb[70].mxu0  ;;  %v8866_v15 = vpop.f32.mrb[84].mxu1 }
 0xa51   :  { %4039 = vst.msk [vmem:[#allocation5 + $0x1e8] sm:$0xff] %vm3597_vm4, %v8822_v49  ;;  %4253 = vst.msk [vmem:[#allocation5 + $0x2a8] sm:$0xff] %vm3597_vm4, %v8866_v15  ;;  %v3967_v61 = vpop.f32.mrb[71].mxu0  ;;  %v4181_v16 = vpop.f32.mrb[85].mxu1  ;;  %v4523_v39 = vadd.f32 %v4522_v53, %v4521_v19  ;;  %v4302_v19 = vld [vmem:[#allocation5 + $0x130] sm:$0xff] }
 0xa52   :  { %4038 = vst.msk [vmem:[#allocation5 + $0x1e0] sm:$0xff] %vm3597_vm4, %v3967_v61  ;;  %4252 = vst.msk [vmem:[#allocation5 + $0x2a0] sm:$0xff] %vm3597_vm4, %v4181_v16  ;;  %v12341_v61 = vadd.f32 %v12079_v18, %v4301_v22  ;;  %v4303_v16 = vld [vmem:[#allocation5 + $0x138] sm:$0xff]  ;;  %v12348_v36 = vadd.f32 %v12079_v18, %v4302_v19  ;;  %v4306_v19 = vld [vmem:[#allocation5 + $0x150] sm:$0xff] }
 0xa53   :  { %v4525_v50 = vadd.f32 %v4524_v13, %v4523_v39  ;;  %v4534_v13 = vsel %vm3597_vm4, %v12334_v12, 0.0 }
 0xa54   :  { %v8825_v29 = vpop.f32.mrb[72].mxu0  ;;  %v8869_v27 = vpop.f32.mrb[86].mxu1 }
 0xa55   :  { %4041 = vst.msk [vmem:[#allocation5 + $0x1f8] sm:$0xff] %vm3597_vm4, %v8825_v29  ;;  %4255 = vst.msk [vmem:[#allocation5 + $0x2b8] sm:$0xff] %vm3597_vm4, %v8869_v27  ;;  %v3977_v8 = vpop.f32.mrb[73].mxu0  ;;  %v4191_v24 = vpop.f32.mrb[87].mxu1  ;;  %v4527_v58 = vadd.f32 %v4526_v6, %v4525_v50  ;;  %v4304_v29 = vld [vmem:[#allocation5 + $0x140] sm:$0xff] }
 0xa56   :  { %4040 = vst.msk [vmem:[#allocation5 + $0x1f0] sm:$0xff] %vm3597_vm4, %v3977_v8  ;;  %4254 = vst.msk [vmem:[#allocation5 + $0x2b0] sm:$0xff] %vm3597_vm4, %v4191_v24  ;;  %v4536_v24 = vsel %vm3597_vm4, %v12341_v61, 0.0 }
 0xa57   :  { %v4529_v38 = vadd.f32 %v4528_v21, %v4527_v58  ;;  %v12355_v58 = vadd.f32 %v12079_v18, %v4303_v16  ;;  %v4305_v21 = vld [vmem:[#allocation5 + $0x148] sm:$0xff] }
 0xa58   :  { %v8828_v20 = vpop.f32.mrb[74].mxu0  ;;  %v8872_v56 = vpop.f32.mrb[88].mxu1  ;;  %v12369_v16 = vadd.f32 %v12079_v18, %v4305_v21 }
 0xa59   :  { %4043 = vst.msk [vmem:[#allocation5 + $0x208] sm:$0xff] %vm3597_vm4, %v8828_v20  ;;  %4257 = vst.msk [vmem:[#allocation5 + $0x2c8] sm:$0xff] %vm3597_vm4, %v8872_v56  ;;  %v3987_v53 = vpop.f32.mrb[75].mxu0  ;;  %v4201_v49 = vpop.f32.mrb[89].mxu1  ;;  %v4531_v15 = vadd.f32 %v4530_v51, %v4529_v38  ;;  %v4538_v38 = vsel %vm3597_vm4, %v12348_v36, 0.0  ;;  %v12362_v51 = vadd.f32 %v12079_v18, %v4304_v29 }
 0xa5a   :  { %4042 = vst.msk [vmem:[#allocation5 + $0x200] sm:$0xff] %vm3597_vm4, %v3987_v53  ;;  %4256 = vst.msk [vmem:[#allocation5 + $0x2c0] sm:$0xff] %vm3597_vm4, %v4201_v49 }
 0xa5b   :  { %v4533_v39 = vadd.f32 %v4532_v14, %v4531_v15  ;;  %v4540_v14 = vsel %vm3597_vm4, %v12355_v58, 0.0 }
 0xa5c   :  { %v8831_v50 = vpop.f32.mrb[76].mxu0  ;;  %v8875_v6 = vpop.f32.mrb[90].mxu1 }
 0xa5d   :  { %4045 = vst.msk [vmem:[#allocation5 + $0x218] sm:$0xff] %vm3597_vm4, %v8831_v50  ;;  %4259 = vst.msk [vmem:[#allocation5 + $0x2d8] sm:$0xff] %vm3597_vm4, %v8875_v6  ;;  %v3997_v27 = vpop.f32.mrb[77].mxu0  ;;  %v4211_v31 = vpop.f32.mrb[91].mxu1  ;;  %v4535_v8 = vadd.f32 %v4534_v13, %v4533_v39  ;;  %v4307_v39 = vld [vmem:[#allocation5 + $0x158] sm:$0xff]  ;;  %v4542_v50 = vsel %vm3597_vm4, %v12362_v51, 0.0  ;;  %v12376_v6 = vadd.f32 %v12079_v18, %v4306_v19 }
 0xa5e   :  { %4044 = vst.msk [vmem:[#allocation5 + $0x210] sm:$0xff] %vm3597_vm4, %v3997_v27  ;;  %4258 = vst.msk [vmem:[#allocation5 + $0x2d0] sm:$0xff] %vm3597_vm4, %v4211_v31  ;;  %v4308_v31 = vld [vmem:[#allocation5 + $0x160] sm:$0xff] }
 0xa5f   :  { %v4537_v22 = vadd.f32 %v4536_v24, %v4535_v8  ;;  %v4546_v19 = vsel %vm3597_vm4, %v12376_v6, 0.0 }
 0xa60   :  { %v8834_v20 = vpop.f32.mrb[78].mxu0  ;;  %v8878_v56 = vpop.f32.mrb[92].mxu1 }
 0xa61   :  { %4047 = vst.msk [vmem:[#allocation5 + $0x228] sm:$0xff] %vm3597_vm4, %v8834_v20  ;;  %4261 = vst.msk [vmem:[#allocation5 + $0x2e8] sm:$0xff] %vm3597_vm4, %v8878_v56  ;;  %v4007_v53 = vpop.f32.mrb[79].mxu0  ;;  %v4221_v49 = vpop.f32.mrb[93].mxu1  ;;  %v4539_v15 = vadd.f32 %v4538_v38, %v4537_v22  ;;  %v4544_v22 = vsel %vm3597_vm4, %v12369_v16, 0.0  ;;  %v12383_v38 = vadd.f32 %v12079_v18, %v4307_v39  ;;  %v4309_v20 = vld [vmem:[#allocation5 + $0x168] sm:$0xff] }
 0xa62   :  { %4046 = vst.msk [vmem:[#allocation5 + $0x220] sm:$0xff] %vm3597_vm4, %v4007_v53  ;;  %4260 = vst.msk [vmem:[#allocation5 + $0x2e0] sm:$0xff] %vm3597_vm4, %v4221_v49  ;;  %v12390_v53 = vadd.f32 %v12079_v18, %v4308_v31  ;;  %v4310_v49 = vld [vmem:[#allocation5 + $0x170] sm:$0xff]  ;;  %v12395_v39 = vadd.f32 %v12079_v18, %v4309_v20 }
 0xa63   :  { %v4541_v13 = vadd.f32 %v4540_v14, %v4539_v15  ;;  %v4548_v14 = vsel %vm3597_vm4, %v12383_v38, 0.0 }
 0xa64   :  { %v8837_v29 = vpop.f32.mrb[80].mxu0  ;;  %v8881_v27 = vpop.f32.mrb[94].mxu1  ;;  %v4552_v31 = vsel %vm3597_vm4, %v12395_v39, 0.0 }
 0xa65   :  { %4049 = vst.msk [vmem:[#allocation5 + $0x238] sm:$0xff] %vm3597_vm4, %v8837_v29  ;;  %4263 = vst.msk [vmem:[#allocation5 + $0x2f8] sm:$0xff] %vm3597_vm4, %v8881_v27  ;;  %v4017_v8 = vpop.f32.mrb[81].mxu0  ;;  %v4231_v24 = vpop.f32.mrb[95].mxu1  ;;  %v4543_v21 = vadd.f32 %v4542_v50, %v4541_v13  ;;  %v4311_v13 = vld [vmem:[#allocation5 + $0x178] sm:$0xff]  ;;  %v4550_v29 = vsel %vm3597_vm4, %v12390_v53, 0.0  ;;  %v12400_v27 = vadd.f32 %v12079_v18, %v4310_v49 }
 0xa66   :  { %4048 = vst.msk [vmem:[#allocation5 + $0x230] sm:$0xff] %vm3597_vm4, %v4017_v8  ;;  %4262 = vst.msk [vmem:[#allocation5 + $0x2f0] sm:$0xff] %vm3597_vm4, %v4231_v24  ;;  %v4312_v8 = vld [vmem:[#allocation5 + $0x180] sm:$0xff] }
 0xa67   :  { %v4545_v56 = vadd.f32 %v4544_v22, %v4543_v21  ;;  %17078 = vst [vmem:[#allocation54_spill] sm:$0xff] %v12400_v27  ;;  %v12405_v21 = vadd.f32 %v12079_v18, %v4311_v13  ;;  %v4313_v22 = vld [vmem:[#allocation5 + $0x188] sm:$0xff]  ;;  %v4554_v20 = vsel %vm3597_vm4, %v12400_v27, 0.0 }
 0xa69   :  { %v4547_v15 = vadd.f32 %v4546_v19, %v4545_v56  ;;  %17079 = vst [vmem:[#allocation55_spill] sm:$0xff] %v12405_v21  ;;  %v12410_v19 = vadd.f32 %v12079_v18, %v4312_v8  ;;  %v4556_v49 = vsel %vm3597_vm4, %v12405_v21, 0.0 }
 0xa6b   :  { %v4549_v50 = vadd.f32 %v4548_v14, %v4547_v15  ;;  %17080 = vst [vmem:[#allocation56_spill] sm:$0xff] %v12410_v19  ;;  %v4314_v15 = vld [vmem:[#allocation5 + $0x190] sm:$0xff]  ;;  %v4558_v13 = vsel %vm3597_vm4, %v12410_v19, 0.0 }
 0xa6d   :  { %v4551_v24 = vadd.f32 %v4550_v29, %v4549_v50  ;;  %v12415_v50 = vadd.f32 %v12079_v18, %v4313_v22  ;;  %v4315_v29 = vld [vmem:[#allocation5 + $0x198] sm:$0xff] }
 0xa6f   :  { %v4553_v56 = vadd.f32 %v4552_v31, %v4551_v24  ;;  %17081 = vst [vmem:[#allocation57_spill] sm:$0xff] %v12415_v50  ;;  %v12420_v24 = vadd.f32 %v12079_v18, %v4314_v15  ;;  %v4316_v31 = vld [vmem:[#allocation5 + $0x1a0] sm:$0xff]  ;;  %v4560_v8 = vsel %vm3597_vm4, %v12415_v50, 0.0 }
 0xa71   :  { %v4555_v14 = vadd.f32 %v4554_v20, %v4553_v56  ;;  %17082 = vst [vmem:[#allocation58_spill] sm:$0xff] %v12420_v24  ;;  %v12425_v56 = vadd.f32 %v12079_v18, %v4315_v29  ;;  %v4317_v20 = vld [vmem:[#allocation5 + $0x1a8] sm:$0xff]  ;;  %v4562_v22 = vsel %vm3597_vm4, %v12420_v24, 0.0 }
 0xa73   :  { %v4557_v0 = vadd.f32 %v4556_v49, %v4555_v14  ;;  %17083 = vst [vmem:[#allocation59_spill] sm:$0xff] %v12425_v56  ;;  %v12430_v14 = vadd.f32 %v12079_v18, %v4316_v31  ;;  %v4318_v49 = vld [vmem:[#allocation5 + $0x1b0] sm:$0xff]  ;;  %v4564_v15 = vsel %vm3597_vm4, %v12425_v56, 0.0 }
 0xa75   :  { %v4559_v59 = vadd.f32 %v4558_v13, %v4557_v0  ;;  %17084 = vst [vmem:[#allocation60_spill] sm:$0xff] %v12430_v14  ;;  %v12435_v0 = vadd.f32 %v12079_v18, %v4317_v20  ;;  %v4319_v13 = vld [vmem:[#allocation5 + $0x1b8] sm:$0xff]  ;;  %v4566_v29 = vsel %vm3597_vm4, %v12430_v14, 0.0 }
 0xa77   :  { %v4561_v21 = vadd.f32 %v4560_v8, %v4559_v59  ;;  %17085 = vst [vmem:[#allocation61_spill] sm:$0xff] %v12435_v0  ;;  %v12440_v59 = vadd.f32 %v12079_v18, %v4318_v49  ;;  %v4320_v8 = vld [vmem:[#allocation5 + $0x1c0] sm:$0xff]  ;;  %v4568_v31 = vsel %vm3597_vm4, %v12435_v0, 0.0 }
 0xa79   :  { %v4563_v19 = vadd.f32 %v4562_v22, %v4561_v21  ;;  %17086 = vst [vmem:[#allocation62_spill] sm:$0xff] %v12440_v59  ;;  %v12445_v21 = vadd.f32 %v12079_v18, %v4319_v13  ;;  %v4321_v22 = vld [vmem:[#allocation5 + $0x1c8] sm:$0xff]  ;;  %v4570_v20 = vsel %vm3597_vm4, %v12440_v59, 0.0 }
 0xa7b   :  { %v4565_v50 = vadd.f32 %v4564_v15, %v4563_v19  ;;  %17087 = vst [vmem:[#allocation63_spill] sm:$0xff] %v12445_v21  ;;  %v12450_v19 = vadd.f32 %v12079_v18, %v4320_v8  ;;  %v4322_v15 = vld [vmem:[#allocation5 + $0x1d0] sm:$0xff]  ;;  %v4572_v49 = vsel %vm3597_vm4, %v12445_v21, 0.0 }
 0xa7d   :  { %v4567_v24 = vadd.f32 %v4566_v29, %v4565_v50  ;;  %17088 = vst [vmem:[#allocation64_spill] sm:$0xff] %v12450_v19  ;;  %v12455_v50 = vadd.f32 %v12079_v18, %v4321_v22  ;;  %v4323_v29 = vld [vmem:[#allocation5 + $0x1d8] sm:$0xff]  ;;  %v4574_v13 = vsel %vm3597_vm4, %v12450_v19, 0.0 }
 0xa7f   :  { %v4569_v56 = vadd.f32 %v4568_v31, %v4567_v24  ;;  %17089 = vst [vmem:[#allocation65_spill] sm:$0xff] %v12455_v50  ;;  %v12460_v24 = vadd.f32 %v12079_v18, %v4322_v15  ;;  %v4324_v31 = vld [vmem:[#allocation5 + $0x1e0] sm:$0xff]  ;;  %v4576_v8 = vsel %vm3597_vm4, %v12455_v50, 0.0 }
 0xa81   :  { %v4571_v14 = vadd.f32 %v4570_v20, %v4569_v56  ;;  %17090 = vst [vmem:[#allocation66_spill] sm:$0xff] %v12460_v24  ;;  %v12465_v56 = vadd.f32 %v12079_v18, %v4323_v29  ;;  %v4325_v20 = vld [vmem:[#allocation5 + $0x1e8] sm:$0xff]  ;;  %v4578_v22 = vsel %vm3597_vm4, %v12460_v24, 0.0 }
 0xa83   :  { %v4573_v0 = vadd.f32 %v4572_v49, %v4571_v14  ;;  %17091 = vst [vmem:[#allocation67_spill] sm:$0xff] %v12465_v56  ;;  %v12470_v14 = vadd.f32 %v12079_v18, %v4324_v31  ;;  %v4326_v49 = vld [vmem:[#allocation5 + $0x1f0] sm:$0xff]  ;;  %v4580_v15 = vsel %vm3597_vm4, %v12465_v56, 0.0 }
 0xa85   :  { %v4575_v59 = vadd.f32 %v4574_v13, %v4573_v0  ;;  %17092 = vst [vmem:[#allocation68_spill] sm:$0xff] %v12470_v14  ;;  %v12475_v0 = vadd.f32 %v12079_v18, %v4325_v20  ;;  %v4327_v13 = vld [vmem:[#allocation5 + $0x1f8] sm:$0xff]  ;;  %v4582_v29 = vsel %vm3597_vm4, %v12470_v14, 0.0 }
 0xa87   :  { %v4577_v21 = vadd.f32 %v4576_v8, %v4575_v59  ;;  %17093 = vst [vmem:[#allocation69_spill] sm:$0xff] %v12475_v0  ;;  %v12480_v59 = vadd.f32 %v12079_v18, %v4326_v49  ;;  %v4328_v8 = vld [vmem:[#allocation5 + $0x200] sm:$0xff]  ;;  %v4584_v31 = vsel %vm3597_vm4, %v12475_v0, 0.0 }
 0xa89   :  { %v4579_v19 = vadd.f32 %v4578_v22, %v4577_v21  ;;  %17094 = vst [vmem:[#allocation70_spill] sm:$0xff] %v12480_v59  ;;  %v12485_v21 = vadd.f32 %v12079_v18, %v4327_v13  ;;  %v4329_v22 = vld [vmem:[#allocation5 + $0x208] sm:$0xff]  ;;  %v4586_v20 = vsel %vm3597_vm4, %v12480_v59, 0.0 }
 0xa8b   :  { %v4581_v50 = vadd.f32 %v4580_v15, %v4579_v19  ;;  %17095 = vst [vmem:[#allocation71_spill] sm:$0xff] %v12485_v21  ;;  %v12490_v19 = vadd.f32 %v12079_v18, %v4328_v8  ;;  %v4330_v15 = vld [vmem:[#allocation5 + $0x210] sm:$0xff]  ;;  %v4588_v49 = vsel %vm3597_vm4, %v12485_v21, 0.0 }
 0xa8d   :  { %v4583_v24 = vadd.f32 %v4582_v29, %v4581_v50  ;;  %17096 = vst [vmem:[#allocation72_spill] sm:$0xff] %v12490_v19  ;;  %v12495_v50 = vadd.f32 %v12079_v18, %v4329_v22  ;;  %v4331_v29 = vld [vmem:[#allocation5 + $0x218] sm:$0xff]  ;;  %v4590_v13 = vsel %vm3597_vm4, %v12490_v19, 0.0 }
 0xa8f   :  { %v4585_v56 = vadd.f32 %v4584_v31, %v4583_v24  ;;  %17097 = vst [vmem:[#allocation73_spill] sm:$0xff] %v12495_v50  ;;  %v12500_v24 = vadd.f32 %v12079_v18, %v4330_v15  ;;  %v4332_v31 = vld [vmem:[#allocation5 + $0x220] sm:$0xff]  ;;  %v4592_v8 = vsel %vm3597_vm4, %v12495_v50, 0.0 }
 0xa91   :  { %v4587_v14 = vadd.f32 %v4586_v20, %v4585_v56  ;;  %17098 = vst [vmem:[#allocation74_spill] sm:$0xff] %v12500_v24  ;;  %v12505_v56 = vadd.f32 %v12079_v18, %v4331_v29  ;;  %v4333_v20 = vld [vmem:[#allocation5 + $0x228] sm:$0xff]  ;;  %v4594_v22 = vsel %vm3597_vm4, %v12500_v24, 0.0 }
 0xa93   :  { %v4589_v0 = vadd.f32 %v4588_v49, %v4587_v14  ;;  %17099 = vst [vmem:[#allocation75_spill] sm:$0xff] %v12505_v56  ;;  %v12510_v14 = vadd.f32 %v12079_v18, %v4332_v31  ;;  %v4334_v49 = vld [vmem:[#allocation5 + $0x230] sm:$0xff]  ;;  %v4596_v15 = vsel %vm3597_vm4, %v12505_v56, 0.0 }
 0xa95   :  { %v4591_v59 = vadd.f32 %v4590_v13, %v4589_v0  ;;  %17100 = vst [vmem:[#allocation76_spill] sm:$0xff] %v12510_v14  ;;  %v12515_v0 = vadd.f32 %v12079_v18, %v4333_v20  ;;  %v4335_v13 = vld [vmem:[#allocation5 + $0x238] sm:$0xff]  ;;  %v4598_v29 = vsel %vm3597_vm4, %v12510_v14, 0.0 }
 0xa97   :  { %v4593_v21 = vadd.f32 %v4592_v8, %v4591_v59  ;;  %17101 = vst [vmem:[#allocation77_spill] sm:$0xff] %v12515_v0  ;;  %v12520_v59 = vadd.f32 %v12079_v18, %v4334_v49  ;;  %v4600_v31 = vsel %vm3597_vm4, %v12515_v0, 0.0  ;;  %v4341_v0 = vld [vmem:[#allocation5 + $0x268] sm:$0xff] }
 0xa99   :  { %v4595_v19 = vadd.f32 %v4594_v22, %v4593_v21  ;;  %17102 = vst [vmem:[#allocation78_spill] sm:$0xff] %v12520_v59  ;;  %v12525_v21 = vadd.f32 %v12079_v18, %v4335_v13  ;;  %v4336_v22 = vld [vmem:[#allocation5 + $0x240] sm:$0xff]  ;;  %v4602_v20 = vsel %vm3597_vm4, %v12520_v59, 0.0  ;;  %v5453_v13 = vld [vmem:[%s17105_s16 + $0x8] sm:$0xff] }
 0xa9b   :  { %v4597_v50 = vadd.f32 %v4596_v15, %v4595_v19  ;;  %17103 = vst [vmem:[#allocation79_spill] sm:$0xff] %v12525_v21  ;;  %v4337_v19 = vld [vmem:[#allocation5 + $0x248] sm:$0xff]  ;;  %v12530_v15 = vadd.f32 %v12079_v18, %v4336_v22  ;;  %v4604_v49 = vsel %vm3597_vm4, %v12525_v21, 0.0 }
 0xa9d   :  { %v4599_v8 = vadd.f32 %v4598_v29, %v4597_v50  ;;  %17104 = vst [vmem:[#allocation80_spill] sm:$0xff] %v12530_v15  ;;  %v5452_v29 = vld [vmem:[%s17105_s16] sm:$0xff]  ;;  %v4606_v21 = vsel %vm3597_vm4, %v12530_v15, 0.0 }
 0xa9f   :  { %v4601_v56 = vadd.f32 %v4600_v31, %v4599_v8  ;;  %v9548_v8 = vpack.c.bf16 %v5453_v13, %v5452_v29  ;;  %v5455_v31 = vld [vmem:[%s17105_s16 + $0x18] sm:$0xff]  ;;  %v4338_v29 = vld [vmem:[#allocation5 + $0x250] sm:$0xff] }
 0xaa0   :  { %v12566_v59 = vadd.f32 %v12079_v18, %v4338_v29 }
 0xaa1   :  { %v4603_v24 = vadd.f32 %v4602_v20, %v4601_v56  ;;  %v5454_v56 = vld [vmem:[%s17105_s16 + $0x10] sm:$0xff]  ;;  %v5457_v20 = vld [vmem:[%s17105_s16 + $0x28] sm:$0xff]  ;;  %9549 = vmatprep.subr.bf16.mxu0 %v9548_v8  ;;  %9594 = vmatprep.subr.bf16.mxu1 %v9548_v8 }
 0xaa2   :  { %v9552_v22 = vpack.c.bf16 %v5455_v31, %v5454_v56  ;;  %9551 = vmatpush3.bf16.msra.mxu0 %v9548_v8  ;;  %9599 = vmatpush3.bf16.msra.mxu1 %v9548_v8  ;;  %v5458_v31 = vld [vmem:[%s17105_s16 + $0x30] sm:$0xff]  ;;  %17107 = vst [vmem:[#allocation82_spill] sm:$0xff] %v12566_v59  ;;  %v4610_v29 = vsel %vm3597_vm4, %v12566_v59, 0.0 }
 0xaa3   :  { %v4605_v50 = vadd.f32 %v4604_v49, %v4603_v24  ;;  %v5456_v24 = vld [vmem:[%s17105_s16 + $0x20] sm:$0xff]  ;;  %v12553_v49 = vadd.f32 %v12079_v18, %v4337_v19  ;;  %v5459_v19 = vld [vmem:[%s17105_s16 + $0x38] sm:$0xff] }
 0xaa4   :  { %9553 = vmatprep.subr.bf16.mxu0 %v9552_v22  ;;  %v9556_v56 = vpack.c.bf16 %v5457_v20, %v5456_v24  ;;  %9595 = vmatprep.subr.bf16.mxu1 %v9552_v22  ;;  %v9560_v8 = vpack.c.bf16 %v5459_v19, %v5458_v31  ;;  %v5460_v24 = vld [vmem:[%s17105_s16 + $0x40] sm:$0xff]  ;;  %v5461_v20 = vld [vmem:[%s17105_s16 + $0x48] sm:$0xff] }
 0xaa5   :  { %17106 = vst [vmem:[#allocation81_spill] sm:$0xff] %v12553_v49  ;;  %v4607_v13 = vadd.f32 %v4606_v21, %v4605_v50  ;;  %v4608_v15 = vsel %vm3597_vm4, %v12553_v49, 0.0  ;;  %v4339_v21 = vld [vmem:[#allocation5 + $0x258] sm:$0xff] }
 0xaa6   :  { %9555 = vmatpush3.bf16.msra.mxu0 %v9552_v22  ;;  %9600 = vmatpush3.bf16.msra.mxu1 %v9552_v22  ;;  %v12575_v49 = vadd.f32 %v12079_v18, %v4339_v21  ;;  %v9564_v22 = vpack.c.bf16 %v5461_v20, %v5460_v24  ;;  %v12584_v21 = vld [vmem:[#allocation31] ss:$0 sm:$0xff]  ;;  %v4342_v24 = vld [vmem:[#allocation5 + $0x270] sm:$0xff] }
 0xaa7   :  { %v4609_v50 = vadd.f32 %v4608_v15, %v4607_v13  ;;  %9557 = vmatprep.subr.bf16.mxu0 %v9556_v56  ;;  %9596 = vmatprep.subr.bf16.mxu1 %v9556_v56  ;;  %v4340_v15 = vld [vmem:[#allocation5 + $0x260] sm:$0xff] }
 0xaa8   :  { %17108 = vst [vmem:[#allocation83_spill] sm:$0xff] %v12575_v49  ;;  %v4612_v31 = vsel %vm3597_vm4, %v12575_v49, 0.0  ;;  %v12582_v19 = vadd.f32 %v12079_v18, %v4340_v15 }
 0xaa9   :  { %v4611_v13 = vadd.f32 %v4610_v29, %v4609_v50  ;;  %v12587_v50 = vadd.f32 %v12584_v21, %v4341_v0  ;;  %v12594_v29 = vadd.f32 %v12584_v21, %v4342_v24 }
 0xaaa   :  { %9559 = vmatpush3.bf16.msra.mxu0 %v9556_v56  ;;  %9601 = vmatpush3.bf16.msra.mxu1 %v9556_v56  ;;  %17109 = vst [vmem:[#allocation84_spill] sm:$0xff] %v12582_v19  ;;  %v4614_v56 = vsel %vm3597_vm4, %v12582_v19, 0.0 }
 0xaab   :  { %9561 = vmatprep.subr.bf16.mxu0 %v9560_v8  ;;  %9597 = vmatprep.subr.bf16.mxu1 %v9560_v8  ;;  %v4613_v14 = vadd.f32 %v4612_v31, %v4611_v13  ;;  %17110 = vst [vmem:[#allocation85_spill] sm:$0xff] %v12587_v50  ;;  %v4616_v18 = vsel %vm3597_vm4, %v12587_v50, 0.0  ;;  %17111 = vst [vmem:[#allocation86_spill] sm:$0xff] %v12594_v29  ;;  %v4618_v0 = vsel %vm3597_vm4, %v12594_v29, 0.0  ;;  %v4344_v31 = vld [vmem:[#allocation5 + $0x280] sm:$0xff] }
 0xaad   :  { %v4615_v20 = vadd.f32 %v4614_v56, %v4613_v14  ;;  %v4345_v56 = vld [vmem:[#allocation5 + $0x288] sm:$0xff] }
 0xaae   :  { %9563 = vmatpush3.bf16.msra.mxu0 %v9560_v8  ;;  %9602 = vmatpush3.bf16.msra.mxu1 %v9560_v8  ;;  %v4343_v8 = vld [vmem:[#allocation5 + $0x278] sm:$0xff]  ;;  %v12607_v24 = vadd.f32 %v12584_v21, %v4345_v56 }
 0xaaf   :  { %9565 = vmatprep.subr.bf16.mxu0 %v9564_v22  ;;  %9598 = vmatprep.subr.bf16.mxu1 %v9564_v22  ;;  %v4617_v15 = vadd.f32 %v4616_v18, %v4615_v20  ;;  %v12597_v13 = vadd.f32 %v12584_v21, %v4343_v8  ;;  %v4346_v18 = vld [vmem:[#allocation5 + $0x290] sm:$0xff] }
 0xab0   :  { %17114 = vst [vmem:[#allocation89_spill] sm:$0xff] %v12607_v24  ;;  %v4624_v29 = vsel %vm3597_vm4, %v12607_v24, 0.0 }
 0xab1   :  { %17112 = vst [vmem:[#allocation87_spill] sm:$0xff] %v12597_v13  ;;  %v4619_v19 = vadd.f32 %v4618_v0, %v4617_v15  ;;  %v4620_v14 = vsel %vm3597_vm4, %v12597_v13, 0.0  ;;  %v12614_v15 = vadd.f32 %v12584_v21, %v4346_v18  ;;  %v4347_v0 = vld [vmem:[#allocation5 + $0x298] sm:$0xff] }
 0xab2   :  { %9567 = vmatpush3.bf16.msra.mxu0 %v9564_v22  ;;  %9603 = vmatpush3.bf16.msra.mxu1 %v9564_v22  ;;  %v12604_v22 = vadd.f32 %v12584_v21, %v4344_v31  ;;  %v12617_v31 = vadd.f32 %v12584_v21, %v4347_v0 }
 0xab3   :  { %v4621_v50 = vadd.f32 %v4620_v14, %v4619_v19  ;;  %17115 = vst [vmem:[#allocation90_spill] sm:$0xff] %v12614_v15  ;;  %v4626_v19 = vsel %vm3597_vm4, %v12614_v15, 0.0  ;;  %v4348_v14 = vld [vmem:[#allocation5 + $0x2a0] sm:$0xff] }
 0xab4   :  { %17113 = vst [vmem:[#allocation88_spill] sm:$0xff] %v12604_v22  ;;  %v4622_v20 = vsel %vm3597_vm4, %v12604_v22, 0.0  ;;  %17116 = vst [vmem:[#allocation91_spill] sm:$0xff] %v12617_v31  ;;  %v4628_v22 = vsel %vm3597_vm4, %v12617_v31, 0.0 }
 0xab5   :  { %v4623_v8 = vadd.f32 %v4622_v20, %v4621_v50  ;;  %v12624_v50 = vadd.f32 %v12584_v21, %v4348_v14  ;;  %v4349_v20 = vld [vmem:[#allocation5 + $0x2a8] sm:$0xff] }
 0xab6   :  { %v12627_v18 = vadd.f32 %v12584_v21, %v4349_v20 }
 0xab7   :  { %v4625_v13 = vadd.f32 %v4624_v29, %v4623_v8  ;;  %17117 = vst [vmem:[#allocation92_spill] sm:$0xff] %v12624_v50  ;;  %v4630_v29 = vsel %vm3597_vm4, %v12624_v50, 0.0  ;;  %v4350_v8 = vld [vmem:[#allocation5 + $0x2b0] sm:$0xff] }
 0xab8   :  { %17118 = vst [vmem:[#allocation93_spill] sm:$0xff] %v12627_v18  ;;  %v4632_v15 = vsel %vm3597_vm4, %v12627_v18, 0.0 }
 0xab9   :  { %v4627_v56 = vadd.f32 %v4626_v19, %v4625_v13  ;;  %v12634_v13 = vadd.f32 %v12584_v21, %v4350_v8  ;;  %v4351_v19 = vld [vmem:[#allocation5 + $0x2b8] sm:$0xff] }
 0xaba   :  { %v12637_v14 = vadd.f32 %v12584_v21, %v4351_v19 }
 0xabb   :  { %v4629_v24 = vadd.f32 %v4628_v22, %v4627_v56  ;;  %17119 = vst [vmem:[#allocation94_spill] sm:$0xff] %v12634_v13  ;;  %v4634_v22 = vsel %vm3597_vm4, %v12634_v13, 0.0  ;;  %v4352_v56 = vld [vmem:[#allocation5 + $0x2c0] sm:$0xff] }
 0xabc   :  { %17120 = vst [vmem:[#allocation95_spill] sm:$0xff] %v12637_v14  ;;  %v4636_v50 = vsel %vm3597_vm4, %v12637_v14, 0.0 }
 0xabd   :  { %v4631_v0 = vadd.f32 %v4630_v29, %v4629_v24  ;;  %v12644_v24 = vadd.f32 %v12584_v21, %v4352_v56  ;;  %v4353_v29 = vld [vmem:[#allocation5 + $0x2c8] sm:$0xff] }
 0xabe   :  { %v12647_v8 = vadd.f32 %v12584_v21, %v4353_v29 }
 0xabf   :  { %v4633_v31 = vadd.f32 %v4632_v15, %v4631_v0  ;;  %17121 = vst [vmem:[#allocation96_spill] sm:$0xff] %v12644_v24  ;;  %v4638_v15 = vsel %vm3597_vm4, %v12644_v24, 0.0  ;;  %v4354_v0 = vld [vmem:[#allocation5 + $0x2d0] sm:$0xff] }
 0xac0   :  { %17122 = vst [vmem:[#allocation97_spill] sm:$0xff] %v12647_v8  ;;  %v4640_v13 = vsel %vm3597_vm4, %v12647_v8, 0.0 }
 0xac1   :  { %v4635_v20 = vadd.f32 %v4634_v22, %v4633_v31  ;;  %v12654_v31 = vadd.f32 %v12584_v21, %v4354_v0  ;;  %v4355_v22 = vld [vmem:[#allocation5 + $0x2d8] sm:$0xff] }
 0xac2   :  { %v12657_v56 = vadd.f32 %v12584_v21, %v4355_v22 }
 0xac3   :  { %v4637_v18 = vadd.f32 %v4636_v50, %v4635_v20  ;;  %17123 = vst [vmem:[#allocation98_spill] sm:$0xff] %v12654_v31  ;;  %v4642_v50 = vsel %vm3597_vm4, %v12654_v31, 0.0  ;;  %v4356_v20 = vld [vmem:[#allocation5 + $0x2e0] sm:$0xff] }
 0xac4   :  { %17124 = vst [vmem:[#allocation99_spill] sm:$0xff] %v12657_v56  ;;  %v4644_v24 = vsel %vm3597_vm4, %v12657_v56, 0.0 }
 0xac5   :  { %v4639_v19 = vadd.f32 %v4638_v15, %v4637_v18  ;;  %v12664_v18 = vadd.f32 %v12584_v21, %v4356_v20  ;;  %v4357_v15 = vld [vmem:[#allocation5 + $0x2e8] sm:$0xff] }
 0xac6   :  { %v12667_v0 = vadd.f32 %v12584_v21, %v4357_v15 }
 0xac7   :  { %v4641_v14 = vadd.f32 %v4640_v13, %v4639_v19  ;;  %17125 = vst [vmem:[#allocation100_spill] sm:$0xff] %v12664_v18  ;;  %v4646_v13 = vsel %vm3597_vm4, %v12664_v18, 0.0  ;;  %v4358_v19 = vld [vmem:[#allocation5 + $0x2f0] sm:$0xff] }
 0xac8   :  { %17126 = vst [vmem:[#allocation101_spill] sm:$0xff] %v12667_v0  ;;  %v4648_v31 = vsel %vm3597_vm4, %v12667_v0, 0.0 }
 0xac9   :  { %v4643_v29 = vadd.f32 %v4642_v50, %v4641_v14  ;;  %v12674_v14 = vadd.f32 %v12584_v21, %v4358_v19  ;;  %v4359_v50 = vld [vmem:[#allocation5 + $0x2f8] sm:$0xff] }
 0xaca   :  { %v12677_v20 = vadd.f32 %v12584_v21, %v4359_v50 }
 0xacb   :  { %v4645_v8 = vadd.f32 %v4644_v24, %v4643_v29  ;;  %v4650_v24 = vsel %vm3597_vm4, %v12674_v14, 0.0 }
 0xacc   :  { %v4652_v15 = vsel %vm3597_vm4, %v12677_v20, 0.0 }
 0xacd   :  { %v4647_v22 = vadd.f32 %v4646_v13, %v4645_v8 }
 0xacf   :  { %v4649_v56 = vadd.f32 %v4648_v31, %v4647_v22 }
 0xad1   :  { %v4651_v29 = vadd.f32 %v4650_v24, %v4649_v56 }
 0xad3   :  { %v4653_v18 = vadd.f32 %v4652_v15, %v4651_v29 }
 0xad5   :  { %v4654_v8 = vrot.slane %v4653_v18, 4 }
 0xad7   :  { %v4655_v13 = vadd.f32 %v4654_v8, %v4653_v18 }
 0xad9   :  { %v4656_v49 = vrot.slane %v4655_v13, 2 }
 0xadb   :  { %v4657_v0 = vadd.f32 %v4656_v49, %v4655_v13 }
 0xadd   :  { %v4658_v59 = vrot.slane %v4657_v0, 1 }
 0xadf   :  { %v4659_v19 = vadd.f32 %v4658_v59, %v4657_v0 }
 0xae1   :  { %v12683_v27 = vmul.f32 0.0013020834, %v4659_v19 }
 0xae3   :  { %v12687_v21 = vsub.f32 %v12091_v25, %v12683_v27  ;;  %v12691_v31 = vsub.f32 %v12086_v17, %v12683_v27  ;;  %v12695_v56 = vsub.f32 %v12102_v43, %v12683_v27  ;;  %v12699_v18 = vsub.f32 %v12105_v26, %v12683_v27 }
 0xae4   :  { %v12707_v25 = vsub.f32 %v12114_v23, %v12683_v27  ;;  %v12713_v43 = vsub.f32 %v12117_v30, %v12683_v27  ;;  %v12721_v24 = vsub.f32 %v12128_v9, %v12683_v27  ;;  %v12728_v30 = vsub.f32 %v12131_v41, %v12683_v27 }
 0xae5   :  { %v4758_v59 = vmul.f32 %v12687_v21, %v12687_v21  ;;  %v4759_v49 = vmul.f32 %v12691_v31, %v12691_v31  ;;  %v4760_v17 = vmul.f32 %v12695_v56, %v12695_v56  ;;  %v4761_v26 = vmul.f32 %v12699_v18, %v12699_v18 }
 0xae6   :  { %v4762_v23 = vmul.f32 %v12707_v25, %v12707_v25  ;;  %v4763_v8 = vmul.f32 %v12713_v43, %v12713_v43  ;;  %v12735_v9 = vsub.f32 %v12143_v46, %v12683_v27  ;;  %v12742_v41 = vsub.f32 %v12140_v47, %v12683_v27 }
 0xae7   :  { %v4854_v0 = vsel %vm3597_vm4, %v4758_v59, 0.0  ;;  %v4855_v22 = vsel %vm3597_vm4, %v4759_v49, 0.0  ;;  %v4857_v29 = vsel %vm3597_vm4, %v4760_v17, 0.0  ;;  %v4859_v13 = vsel %vm3597_vm4, %v4761_v26, 0.0 }
 0xae8   :  { %v4856_v50 = vadd.f32 %v4855_v22, %v4854_v0  ;;  %v4764_v59 = vmul.f32 %v12721_v24, %v12721_v24  ;;  %v4861_v49 = vsel %vm3597_vm4, %v4762_v23, 0.0  ;;  %v4765_v0 = vmul.f32 %v12728_v30, %v12728_v30 }
 0xae9   :  { %v4863_v26 = vsel %vm3597_vm4, %v4763_v8, 0.0  ;;  %v12749_v46 = vsub.f32 %v12157_v54, %v12683_v27  ;;  %v12756_v47 = vsub.f32 %v12154_v62, %v12683_v27  ;;  %v12763_v54 = vsub.f32 %v12173_v45, %v12683_v27 }
 0xaea   :  { %v4858_v15 = vadd.f32 %v4857_v29, %v4856_v50  ;;  %v4766_v50 = vmul.f32 %v12735_v9, %v12735_v9  ;;  %v4865_v23 = vsel %vm3597_vm4, %v4764_v59, 0.0  ;;  %v4867_v8 = vsel %vm3597_vm4, %v4765_v0, 0.0 }
 0xaeb   :  { %v12770_v62 = vsub.f32 %v12170_v1, %v12683_v27  ;;  %v12777_v45 = vsub.f32 %v12187_v28, %v12683_v27  ;;  %v12784_v1 = vsub.f32 %v12184_v52, %v12683_v27  ;;  %v12791_v28 = vsub.f32 %v12201_v33, %v12683_v27 }
 0xaec   :  { %v4860_v19 = vadd.f32 %v4859_v13, %v4858_v15  ;;  %v4767_v15 = vmul.f32 %v12742_v41, %v12742_v41  ;;  %v4869_v59 = vsel %vm3597_vm4, %v4766_v50, 0.0  ;;  %v12798_v52 = vsub.f32 %v12198_v2, %v12683_v27 }
 0xaed   :  { %v12805_v33 = vsub.f32 %v12215_v44, %v12683_v27  ;;  %v12812_v2 = vsub.f32 %v12212_v11, %v12683_v27  ;;  %v12819_v44 = vsub.f32 %v12229_v3, %v12683_v27  ;;  %v12826_v11 = vsub.f32 %v12226_v40, %v12683_v27 }
 0xaee   :  { %v4862_v17 = vadd.f32 %v4861_v49, %v4860_v19  ;;  %v4768_v19 = vmul.f32 %v12749_v46, %v12749_v46  ;;  %v4871_v0 = vsel %vm3597_vm4, %v4767_v15, 0.0  ;;  %v12833_v3 = vsub.f32 %v12243_v63, %v12683_v27 }
 0xaef   :  { %v12840_v40 = vsub.f32 %v12240_v4, %v12683_v27  ;;  %v12847_v63 = vsub.f32 %v12248_v55, %v12683_v27  ;;  %v12854_v4 = vsub.f32 %v12255_v32, %v12683_v27  ;;  %v12861_v55 = vsub.f32 %v12264_v37, %v12683_v27 }
 0xaf0   :  { %v4864_v22 = vadd.f32 %v4863_v26, %v4862_v17  ;;  %v4769_v17 = vmul.f32 %v12756_v47, %v12756_v47  ;;  %v4873_v50 = vsel %vm3597_vm4, %v4768_v19, 0.0  ;;  %17127 = vst [vmem:[#allocation102_spill] sm:$0xff] %v12833_v3  ;;  %v12868_v32 = vsub.f32 %v12271_v35, %v12683_v27 }
 0xaf1   :  { %17128 = vst [vmem:[#allocation103_spill] sm:$0xff] %v12840_v40  ;;  %17129 = vst [vmem:[#allocation104_spill] sm:$0xff] %v12847_v63  ;;  %v12875_v37 = vsub.f32 %v12278_v10, %v12683_v27  ;;  %v12882_v35 = vsub.f32 %v12285_v42, %v12683_v27  ;;  %v12889_v10 = vsub.f32 %v12292_v48, %v12683_v27 }
 0xaf2   :  { %v4866_v29 = vadd.f32 %v4865_v23, %v4864_v22  ;;  %v4770_v22 = vmul.f32 %v12763_v54, %v12763_v54  ;;  %v4875_v15 = vsel %vm3597_vm4, %v4769_v17, 0.0  ;;  %17130 = vst [vmem:[#allocation105_spill] sm:$0xff] %v12854_v4  ;;  %17131 = vst [vmem:[#allocation106_spill] sm:$0xff] %v12861_v55  ;;  %v12896_v42 = vsub.f32 %v12299_v7, %v12683_v27 }
 0xaf3   :  { %17132 = vst [vmem:[#allocation107_spill] sm:$0xff] %v12868_v32  ;;  %17133 = vst [vmem:[#allocation108_spill] sm:$0xff] %v12875_v37  ;;  %v12903_v48 = vsub.f32 %v12306_v5, %v12683_v27  ;;  %v12910_v7 = vsub.f32 %v12313_v60, %v12683_v27  ;;  %v12917_v5 = vsub.f32 %v12320_v57, %v12683_v27 }
 0xaf4   :  { %v4868_v13 = vadd.f32 %v4867_v8, %v4866_v29  ;;  %v4771_v29 = vmul.f32 %v12770_v62, %v12770_v62  ;;  %v4877_v19 = vsel %vm3597_vm4, %v4770_v22, 0.0  ;;  %17134 = vst [vmem:[#allocation109_spill] sm:$0xff] %v12882_v35  ;;  %17135 = vst [vmem:[#allocation110_spill] sm:$0xff] %v12889_v10  ;;  %v12924_v60 = vsub.f32 %v12327_v34, %v12683_v27 }
 0xaf5   :  { %17136 = vst [vmem:[#allocation111_spill] sm:$0xff] %v12896_v42  ;;  %17137 = vst [vmem:[#allocation112_spill] sm:$0xff] %v12903_v48  ;;  %v12931_v57 = vsub.f32 %v12334_v12, %v12683_v27  ;;  %v12938_v34 = vsub.f32 %v12341_v61, %v12683_v27  ;;  %v12945_v12 = vsub.f32 %v12348_v36, %v12683_v27 }
 0xaf6   :  { %v4870_v49 = vadd.f32 %v4869_v59, %v4868_v13  ;;  %v4772_v13 = vmul.f32 %v12777_v45, %v12777_v45  ;;  %v4879_v17 = vsel %vm3597_vm4, %v4771_v29, 0.0  ;;  %17138 = vst [vmem:[#allocation113_spill] sm:$0xff] %v12910_v7  ;;  %17139 = vst [vmem:[#allocation114_spill] sm:$0xff] %v12917_v5  ;;  %v12952_v61 = vsub.f32 %v12355_v58, %v12683_v27 }
 0xaf7   :  { %17140 = vst [vmem:[#allocation115_spill] sm:$0xff] %v12924_v60  ;;  %17141 = vst [vmem:[#allocation116_spill] sm:$0xff] %v12931_v57  ;;  %v12959_v36 = vsub.f32 %v12362_v51, %v12683_v27  ;;  %v12966_v58 = vsub.f32 %v12369_v16, %v12683_v27  ;;  %v12973_v51 = vsub.f32 %v12376_v6, %v12683_v27 }
 0xaf8   :  { %v4872_v26 = vadd.f32 %v4871_v0, %v4870_v49  ;;  %v4773_v49 = vmul.f32 %v12784_v1, %v12784_v1  ;;  %v4881_v22 = vsel %vm3597_vm4, %v4772_v13, 0.0  ;;  %17142 = vst [vmem:[#allocation117_spill] sm:$0xff] %v12938_v34  ;;  %17143 = vst [vmem:[#allocation118_spill] sm:$0xff] %v12945_v12  ;;  %v12980_v16 = vsub.f32 %v12383_v38, %v12683_v27 }
 0xaf9   :  { %17144 = vst [vmem:[#allocation119_spill] sm:$0xff] %v12952_v61  ;;  %17145 = vst [vmem:[#allocation120_spill] sm:$0xff] %v12959_v36  ;;  %v12987_v6 = vsub.f32 %v12390_v53, %v12683_v27  ;;  %v12994_v38 = vsub.f32 %v12395_v39, %v12683_v27 }
 0xafa   :  { %v4874_v23 = vadd.f32 %v4873_v50, %v4872_v26  ;;  %v4774_v26 = vmul.f32 %v12791_v28, %v12791_v28  ;;  %v4883_v29 = vsel %vm3597_vm4, %v4773_v49, 0.0  ;;  %17146 = vst [vmem:[#allocation121_spill] sm:$0xff] %v12966_v58  ;;  %17147 = vst [vmem:[#allocation122_spill] sm:$0xff] %v12973_v51 }
 0xafb   :  { %17148 = vst [vmem:[#allocation123_spill] sm:$0xff] %v12980_v16  ;;  %17149 = vst [vmem:[#allocation124_spill] sm:$0xff] %v12987_v6 }
 0xafc   :  { %v4876_v8 = vadd.f32 %v4875_v15, %v4874_v23  ;;  %v4775_v23 = vmul.f32 %v12798_v52, %v12798_v52  ;;  %v4885_v13 = vsel %vm3597_vm4, %v4774_v26, 0.0  ;;  %17150 = vst [vmem:[#allocation125_spill] sm:$0xff] %v12994_v38 }
 0xafe   :  { %v4878_v59 = vadd.f32 %v4877_v19, %v4876_v8  ;;  %v4776_v8 = vmul.f32 %v12805_v33, %v12805_v33  ;;  %v4887_v49 = vsel %vm3597_vm4, %v4775_v23, 0.0 }
 0xb00   :  { %v4880_v0 = vadd.f32 %v4879_v17, %v4878_v59  ;;  %v4777_v59 = vmul.f32 %v12812_v2, %v12812_v2  ;;  %v4889_v26 = vsel %vm3597_vm4, %v4776_v8, 0.0 }
 0xb02   :  { %v4882_v50 = vadd.f32 %v4881_v22, %v4880_v0  ;;  %v4778_v0 = vmul.f32 %v12819_v44, %v12819_v44  ;;  %v4891_v23 = vsel %vm3597_vm4, %v4777_v59, 0.0 }
 0xb04   :  { %v4884_v15 = vadd.f32 %v4883_v29, %v4882_v50  ;;  %v4779_v50 = vmul.f32 %v12826_v11, %v12826_v11  ;;  %v4893_v8 = vsel %vm3597_vm4, %v4778_v0, 0.0 }
 0xb06   :  { %v4886_v19 = vadd.f32 %v4885_v13, %v4884_v15  ;;  %v4780_v15 = vmul.f32 %v12833_v3, %v12833_v3  ;;  %v4895_v59 = vsel %vm3597_vm4, %v4779_v50, 0.0 }
 0xb08   :  { %v4888_v17 = vadd.f32 %v4887_v49, %v4886_v19  ;;  %v4781_v19 = vmul.f32 %v12840_v40, %v12840_v40  ;;  %v4897_v0 = vsel %vm3597_vm4, %v4780_v15, 0.0 }
 0xb0a   :  { %v4890_v22 = vadd.f32 %v4889_v26, %v4888_v17  ;;  %v4782_v17 = vmul.f32 %v12847_v63, %v12847_v63  ;;  %v4899_v50 = vsel %vm3597_vm4, %v4781_v19, 0.0 }
 0xb0c   :  { %v4892_v29 = vadd.f32 %v4891_v23, %v4890_v22  ;;  %v4783_v22 = vmul.f32 %v12854_v4, %v12854_v4  ;;  %v4901_v15 = vsel %vm3597_vm4, %v4782_v17, 0.0 }
 0xb0e   :  { %v4894_v13 = vadd.f32 %v4893_v8, %v4892_v29  ;;  %v4784_v29 = vmul.f32 %v12861_v55, %v12861_v55  ;;  %v4903_v19 = vsel %vm3597_vm4, %v4783_v22, 0.0 }
 0xb10   :  { %v4896_v49 = vadd.f32 %v4895_v59, %v4894_v13  ;;  %v4785_v13 = vmul.f32 %v12868_v32, %v12868_v32  ;;  %v4905_v17 = vsel %vm3597_vm4, %v4784_v29, 0.0 }
 0xb12   :  { %v4898_v26 = vadd.f32 %v4897_v0, %v4896_v49  ;;  %v4786_v49 = vmul.f32 %v12875_v37, %v12875_v37  ;;  %v4907_v22 = vsel %vm3597_vm4, %v4785_v13, 0.0 }
 0xb14   :  { %v4900_v23 = vadd.f32 %v4899_v50, %v4898_v26  ;;  %v4787_v26 = vmul.f32 %v12882_v35, %v12882_v35  ;;  %v4909_v29 = vsel %vm3597_vm4, %v4786_v49, 0.0 }
 0xb16   :  { %v4902_v8 = vadd.f32 %v4901_v15, %v4900_v23  ;;  %v4788_v23 = vmul.f32 %v12889_v10, %v12889_v10  ;;  %v4911_v13 = vsel %vm3597_vm4, %v4787_v26, 0.0 }
 0xb18   :  { %v4904_v59 = vadd.f32 %v4903_v19, %v4902_v8  ;;  %v4789_v8 = vmul.f32 %v12896_v42, %v12896_v42  ;;  %v4913_v49 = vsel %vm3597_vm4, %v4788_v23, 0.0 }
 0xb1a   :  { %v4906_v0 = vadd.f32 %v4905_v17, %v4904_v59  ;;  %v4790_v59 = vmul.f32 %v12903_v48, %v12903_v48  ;;  %v4915_v26 = vsel %vm3597_vm4, %v4789_v8, 0.0 }
 0xb1c   :  { %v4908_v50 = vadd.f32 %v4907_v22, %v4906_v0  ;;  %v4791_v0 = vmul.f32 %v12910_v7, %v12910_v7  ;;  %v4917_v23 = vsel %vm3597_vm4, %v4790_v59, 0.0 }
 0xb1e   :  { %v4910_v15 = vadd.f32 %v4909_v29, %v4908_v50  ;;  %v4792_v50 = vmul.f32 %v12917_v5, %v12917_v5  ;;  %v4919_v8 = vsel %vm3597_vm4, %v4791_v0, 0.0 }
 0xb20   :  { %v4912_v19 = vadd.f32 %v4911_v13, %v4910_v15  ;;  %v4793_v15 = vmul.f32 %v12924_v60, %v12924_v60  ;;  %v4921_v59 = vsel %vm3597_vm4, %v4792_v50, 0.0 }
 0xb22   :  { %v4914_v17 = vadd.f32 %v4913_v49, %v4912_v19  ;;  %v4794_v19 = vmul.f32 %v12931_v57, %v12931_v57  ;;  %v4923_v0 = vsel %vm3597_vm4, %v4793_v15, 0.0 }
 0xb24   :  { %v4916_v22 = vadd.f32 %v4915_v26, %v4914_v17  ;;  %v4795_v17 = vmul.f32 %v12938_v34, %v12938_v34  ;;  %v4925_v50 = vsel %vm3597_vm4, %v4794_v19, 0.0 }
 0xb26   :  { %v4918_v29 = vadd.f32 %v4917_v23, %v4916_v22  ;;  %v4796_v22 = vmul.f32 %v12945_v12, %v12945_v12  ;;  %v4927_v15 = vsel %vm3597_vm4, %v4795_v17, 0.0 }
 0xb28   :  { %v4920_v13 = vadd.f32 %v4919_v8, %v4918_v29  ;;  %v4797_v29 = vmul.f32 %v12952_v61, %v12952_v61  ;;  %v4929_v19 = vsel %vm3597_vm4, %v4796_v22, 0.0 }
 0xb2a   :  { %v4922_v49 = vadd.f32 %v4921_v59, %v4920_v13  ;;  %v4798_v13 = vmul.f32 %v12959_v36, %v12959_v36  ;;  %v4931_v17 = vsel %vm3597_vm4, %v4797_v29, 0.0 }
 0xb2c   :  { %v4924_v26 = vadd.f32 %v4923_v0, %v4922_v49  ;;  %v4799_v49 = vmul.f32 %v12966_v58, %v12966_v58  ;;  %v4933_v22 = vsel %vm3597_vm4, %v4798_v13, 0.0 }
 0xb2e   :  { %v4926_v23 = vadd.f32 %v4925_v50, %v4924_v26  ;;  %v4800_v26 = vmul.f32 %v12973_v51, %v12973_v51  ;;  %v4935_v29 = vsel %vm3597_vm4, %v4799_v49, 0.0 }
 0xb30   :  { %v4928_v8 = vadd.f32 %v4927_v15, %v4926_v23  ;;  %v4801_v23 = vmul.f32 %v12980_v16, %v12980_v16  ;;  %v4937_v13 = vsel %vm3597_vm4, %v4800_v26, 0.0 }
 0xb32   :  { %v4930_v59 = vadd.f32 %v4929_v19, %v4928_v8  ;;  %v17151_v8 = vld [vmem:[#allocation54_spill] sm:$0xff]  ;;  %v4802_v19 = vmul.f32 %v12987_v6, %v12987_v6  ;;  %v4939_v49 = vsel %vm3597_vm4, %v4801_v23, 0.0 }
 0xb33   :  { %v13001_v53 = vsub.f32 %v17151_v8, %v12683_v27 }
 0xb34   :  { %v4932_v0 = vadd.f32 %v4931_v17, %v4930_v59  ;;  %v17153_v17 = vld [vmem:[#allocation55_spill] sm:$0xff]  ;;  %v4941_v26 = vsel %vm3597_vm4, %v4802_v19, 0.0 }
 0xb35   :  { %17152 = vst [vmem:[#allocation54_spill] sm:$0xff] %v13001_v53  ;;  %v13008_v39 = vsub.f32 %v17153_v17, %v12683_v27  ;;  %v4804_v8 = vmul.f32 %v13001_v53, %v13001_v53 }
 0xb36   :  { %v4934_v50 = vadd.f32 %v4933_v22, %v4932_v0  ;;  %v4803_v0 = vmul.f32 %v12994_v38, %v12994_v38 }
 0xb37   :  { %17154 = vst [vmem:[#allocation55_spill] sm:$0xff] %v13008_v39  ;;  %v4805_v38 = vmul.f32 %v13008_v39, %v13008_v39  ;;  %v4945_v19 = vsel %vm3597_vm4, %v4804_v8, 0.0 }
 0xb38   :  { %v4936_v15 = vadd.f32 %v4935_v29, %v4934_v50  ;;  %v17155_v50 = vld [vmem:[#allocation56_spill] sm:$0xff]  ;;  %v4943_v23 = vsel %vm3597_vm4, %v4803_v0, 0.0 }
 0xb39   :  { %v13015_v29 = vsub.f32 %v17155_v50, %v12683_v27  ;;  %v4947_v0 = vsel %vm3597_vm4, %v4805_v38, 0.0 }
 0xb3a   :  { %v4938_v59 = vadd.f32 %v4937_v13, %v4936_v15  ;;  %v17157_v13 = vld [vmem:[#allocation57_spill] sm:$0xff] }
 0xb3b   :  { %17156 = vst [vmem:[#allocation56_spill] sm:$0xff] %v13015_v29  ;;  %v13022_v17 = vsub.f32 %v17157_v13, %v12683_v27  ;;  %v4806_v53 = vmul.f32 %v13015_v29, %v13015_v29 }
 0xb3c   :  { %v4940_v22 = vadd.f32 %v4939_v49, %v4938_v59  ;;  %v17159_v49 = vld [vmem:[#allocation58_spill] sm:$0xff] }
 0xb3d   :  { %17158 = vst [vmem:[#allocation57_spill] sm:$0xff] %v13022_v17  ;;  %v13029_v50 = vsub.f32 %v17159_v49, %v12683_v27  ;;  %v4807_v39 = vmul.f32 %v13022_v17, %v13022_v17  ;;  %v4949_v8 = vsel %vm3597_vm4, %v4806_v53, 0.0 }
 0xb3e   :  { %v4942_v15 = vadd.f32 %v4941_v26, %v4940_v22  ;;  %v17161_v26 = vld [vmem:[#allocation59_spill] sm:$0xff] }
 0xb3f   :  { %17160 = vst [vmem:[#allocation58_spill] sm:$0xff] %v13029_v50  ;;  %v13036_v13 = vsub.f32 %v17161_v26, %v12683_v27  ;;  %v4808_v29 = vmul.f32 %v13029_v50, %v13029_v50  ;;  %v4951_v38 = vsel %vm3597_vm4, %v4807_v39, 0.0 }
 0xb40   :  { %v4944_v59 = vadd.f32 %v4943_v23, %v4942_v15  ;;  %v17163_v23 = vld [vmem:[#allocation60_spill] sm:$0xff] }
 0xb41   :  { %17162 = vst [vmem:[#allocation59_spill] sm:$0xff] %v13036_v13  ;;  %v13043_v49 = vsub.f32 %v17163_v23, %v12683_v27  ;;  %v4809_v17 = vmul.f32 %v13036_v13, %v13036_v13  ;;  %v4953_v53 = vsel %vm3597_vm4, %v4808_v29, 0.0 }
 0xb42   :  { %v4946_v22 = vadd.f32 %v4945_v19, %v4944_v59  ;;  %v17165_v19 = vld [vmem:[#allocation61_spill] sm:$0xff] }
 0xb43   :  { %17164 = vst [vmem:[#allocation60_spill] sm:$0xff] %v13043_v49  ;;  %v13050_v26 = vsub.f32 %v17165_v19, %v12683_v27  ;;  %v4810_v50 = vmul.f32 %v13043_v49, %v13043_v49  ;;  %v4955_v39 = vsel %vm3597_vm4, %v4809_v17, 0.0 }
 0xb44   :  { %v4948_v15 = vadd.f32 %v4947_v0, %v4946_v22  ;;  %v17167_v0 = vld [vmem:[#allocation62_spill] sm:$0xff] }
 0xb45   :  { %17166 = vst [vmem:[#allocation61_spill] sm:$0xff] %v13050_v26  ;;  %v13057_v23 = vsub.f32 %v17167_v0, %v12683_v27  ;;  %v4811_v13 = vmul.f32 %v13050_v26, %v13050_v26  ;;  %v4957_v29 = vsel %vm3597_vm4, %v4810_v50, 0.0 }
 0xb46   :  { %v4950_v59 = vadd.f32 %v4949_v8, %v4948_v15  ;;  %v17169_v8 = vld [vmem:[#allocation63_spill] sm:$0xff] }
 0xb47   :  { %17168 = vst [vmem:[#allocation62_spill] sm:$0xff] %v13057_v23  ;;  %v13064_v19 = vsub.f32 %v17169_v8, %v12683_v27  ;;  %v4812_v49 = vmul.f32 %v13057_v23, %v13057_v23  ;;  %v4959_v17 = vsel %vm3597_vm4, %v4811_v13, 0.0 }
 0xb48   :  { %v4952_v22 = vadd.f32 %v4951_v38, %v4950_v59  ;;  %v17171_v38 = vld [vmem:[#allocation64_spill] sm:$0xff] }
 0xb49   :  { %17170 = vst [vmem:[#allocation63_spill] sm:$0xff] %v13064_v19  ;;  %v13071_v0 = vsub.f32 %v17171_v38, %v12683_v27  ;;  %v4813_v26 = vmul.f32 %v13064_v19, %v13064_v19  ;;  %v4961_v50 = vsel %vm3597_vm4, %v4812_v49, 0.0 }
 0xb4a   :  { %v4954_v15 = vadd.f32 %v4953_v53, %v4952_v22  ;;  %v17173_v53 = vld [vmem:[#allocation65_spill] sm:$0xff] }
 0xb4b   :  { %17172 = vst [vmem:[#allocation64_spill] sm:$0xff] %v13071_v0  ;;  %v13078_v8 = vsub.f32 %v17173_v53, %v12683_v27  ;;  %v4814_v23 = vmul.f32 %v13071_v0, %v13071_v0  ;;  %v4963_v13 = vsel %vm3597_vm4, %v4813_v26, 0.0 }
 0xb4c   :  { %v4956_v59 = vadd.f32 %v4955_v39, %v4954_v15  ;;  %v17175_v39 = vld [vmem:[#allocation66_spill] sm:$0xff] }
 0xb4d   :  { %17174 = vst [vmem:[#allocation65_spill] sm:$0xff] %v13078_v8  ;;  %v13085_v38 = vsub.f32 %v17175_v39, %v12683_v27  ;;  %v4815_v19 = vmul.f32 %v13078_v8, %v13078_v8  ;;  %v4965_v49 = vsel %vm3597_vm4, %v4814_v23, 0.0 }
 0xb4e   :  { %v4958_v22 = vadd.f32 %v4957_v29, %v4956_v59  ;;  %v17176_v29 = vld [vmem:[#allocation67_spill] sm:$0xff] }
 0xb4f   :  { %v13092_v53 = vsub.f32 %v17176_v29, %v12683_v27  ;;  %v4816_v0 = vmul.f32 %v13085_v38, %v13085_v38  ;;  %v4967_v26 = vsel %vm3597_vm4, %v4815_v19, 0.0 }
 0xb50   :  { %v4960_v15 = vadd.f32 %v4959_v17, %v4958_v22  ;;  %v17177_v17 = vld [vmem:[#allocation68_spill] sm:$0xff] }
 0xb51   :  { %v13099_v39 = vsub.f32 %v17177_v17, %v12683_v27  ;;  %v4817_v8 = vmul.f32 %v13092_v53, %v13092_v53  ;;  %v4969_v23 = vsel %vm3597_vm4, %v4816_v0, 0.0 }
 0xb52   :  { %v4962_v59 = vadd.f32 %v4961_v50, %v4960_v15  ;;  %v17178_v50 = vld [vmem:[#allocation69_spill] sm:$0xff] }
 0xb53   :  { %v13106_v29 = vsub.f32 %v17178_v50, %v12683_v27  ;;  %v4818_v6 = vmul.f32 %v13099_v39, %v13099_v39  ;;  %v4971_v19 = vsel %vm3597_vm4, %v4817_v8, 0.0 }
 0xb54   :  { %v4964_v22 = vadd.f32 %v4963_v13, %v4962_v59  ;;  %v17179_v13 = vld [vmem:[#allocation70_spill] sm:$0xff] }
 0xb55   :  { %v13113_v17 = vsub.f32 %v17179_v13, %v12683_v27  ;;  %v4819_v16 = vmul.f32 %v13106_v29, %v13106_v29  ;;  %v4973_v0 = vsel %vm3597_vm4, %v4818_v6, 0.0 }
 0xb56   :  { %v4966_v15 = vadd.f32 %v4965_v49, %v4964_v22  ;;  %v17180_v49 = vld [vmem:[#allocation71_spill] sm:$0xff] }
 0xb57   :  { %v13120_v50 = vsub.f32 %v17180_v49, %v12683_v27  ;;  %v4820_v51 = vmul.f32 %v13113_v17, %v13113_v17  ;;  %v4975_v8 = vsel %vm3597_vm4, %v4819_v16, 0.0 }
 0xb58   :  { %v4968_v59 = vadd.f32 %v4967_v26, %v4966_v15  ;;  %v17181_v26 = vld [vmem:[#allocation72_spill] sm:$0xff] }
 0xb59   :  { %v13127_v13 = vsub.f32 %v17181_v26, %v12683_v27  ;;  %v4821_v58 = vmul.f32 %v13120_v50, %v13120_v50  ;;  %v4977_v6 = vsel %vm3597_vm4, %v4820_v51, 0.0 }
 0xb5a   :  { %v4970_v22 = vadd.f32 %v4969_v23, %v4968_v59  ;;  %v17182_v23 = vld [vmem:[#allocation73_spill] sm:$0xff] }
 0xb5b   :  { %v13134_v49 = vsub.f32 %v17182_v23, %v12683_v27  ;;  %v4822_v36 = vmul.f32 %v13127_v13, %v13127_v13  ;;  %v4979_v16 = vsel %vm3597_vm4, %v4821_v58, 0.0 }
 0xb5c   :  { %v4972_v15 = vadd.f32 %v4971_v19, %v4970_v22  ;;  %v17183_v19 = vld [vmem:[#allocation74_spill] sm:$0xff] }
 0xb5d   :  { %v13141_v26 = vsub.f32 %v17183_v19, %v12683_v27  ;;  %v4823_v61 = vmul.f32 %v13134_v49, %v13134_v49  ;;  %v4981_v51 = vsel %vm3597_vm4, %v4822_v36, 0.0 }
 0xb5e   :  { %v4974_v59 = vadd.f32 %v4973_v0, %v4972_v15  ;;  %v17184_v0 = vld [vmem:[#allocation75_spill] sm:$0xff] }
 0xb5f   :  { %v13148_v23 = vsub.f32 %v17184_v0, %v12683_v27  ;;  %v4824_v12 = vmul.f32 %v13141_v26, %v13141_v26  ;;  %v4983_v58 = vsel %vm3597_vm4, %v4823_v61, 0.0 }
 0xb60   :  { %v4976_v22 = vadd.f32 %v4975_v8, %v4974_v59  ;;  %v17185_v8 = vld [vmem:[#allocation76_spill] sm:$0xff] }
 0xb61   :  { %v13155_v19 = vsub.f32 %v17185_v8, %v12683_v27  ;;  %v4825_v34 = vmul.f32 %v13148_v23, %v13148_v23  ;;  %v4985_v36 = vsel %vm3597_vm4, %v4824_v12, 0.0 }
 0xb62   :  { %v4978_v15 = vadd.f32 %v4977_v6, %v4976_v22  ;;  %v17186_v6 = vld [vmem:[#allocation77_spill] sm:$0xff] }
 0xb63   :  { %v13162_v0 = vsub.f32 %v17186_v6, %v12683_v27  ;;  %v4826_v57 = vmul.f32 %v13155_v19, %v13155_v19  ;;  %v4987_v61 = vsel %vm3597_vm4, %v4825_v34, 0.0 }
 0xb64   :  { %v4980_v59 = vadd.f32 %v4979_v16, %v4978_v15  ;;  %v17187_v16 = vld [vmem:[#allocation78_spill] sm:$0xff] }
 0xb65   :  { %v13169_v8 = vsub.f32 %v17187_v16, %v12683_v27  ;;  %v4827_v60 = vmul.f32 %v13162_v0, %v13162_v0  ;;  %v4989_v12 = vsel %vm3597_vm4, %v4826_v57, 0.0 }
 0xb66   :  { %v4982_v22 = vadd.f32 %v4981_v51, %v4980_v59  ;;  %v17188_v51 = vld [vmem:[#allocation79_spill] sm:$0xff] }
 0xb67   :  { %v13176_v6 = vsub.f32 %v17188_v51, %v12683_v27  ;;  %v4828_v5 = vmul.f32 %v13169_v8, %v13169_v8  ;;  %v4991_v34 = vsel %vm3597_vm4, %v4827_v60, 0.0 }
 0xb68   :  { %v4984_v15 = vadd.f32 %v4983_v58, %v4982_v22  ;;  %v17189_v58 = vld [vmem:[#allocation80_spill] sm:$0xff] }
 0xb69   :  { %v13183_v16 = vsub.f32 %v17189_v58, %v12683_v27  ;;  %v4829_v7 = vmul.f32 %v13176_v6, %v13176_v6  ;;  %v4993_v57 = vsel %vm3597_vm4, %v4828_v5, 0.0 }
 0xb6a   :  { %v4986_v59 = vadd.f32 %v4985_v36, %v4984_v15  ;;  %v17190_v36 = vld [vmem:[#allocation81_spill] sm:$0xff] }
 0xb6b   :  { %v13190_v51 = vsub.f32 %v17190_v36, %v12683_v27  ;;  %v4830_v48 = vmul.f32 %v13183_v16, %v13183_v16  ;;  %v4995_v60 = vsel %vm3597_vm4, %v4829_v7, 0.0 }
 0xb6c   :  { %v4988_v22 = vadd.f32 %v4987_v61, %v4986_v59  ;;  %v17191_v61 = vld [vmem:[#allocation82_spill] sm:$0xff] }
 0xb6d   :  { %v13197_v58 = vsub.f32 %v17191_v61, %v12683_v27  ;;  %v4831_v42 = vmul.f32 %v13190_v51, %v13190_v51  ;;  %v4997_v5 = vsel %vm3597_vm4, %v4830_v48, 0.0 }
 0xb6e   :  { %v4990_v15 = vadd.f32 %v4989_v12, %v4988_v22  ;;  %v17192_v12 = vld [vmem:[#allocation83_spill] sm:$0xff] }
 0xb6f   :  { %v13204_v36 = vsub.f32 %v17192_v12, %v12683_v27  ;;  %v4832_v10 = vmul.f32 %v13197_v58, %v13197_v58  ;;  %v4999_v7 = vsel %vm3597_vm4, %v4831_v42, 0.0 }
 0xb70   :  { %v4992_v59 = vadd.f32 %v4991_v34, %v4990_v15  ;;  %v17193_v34 = vld [vmem:[#allocation84_spill] sm:$0xff] }
 0xb71   :  { %v13211_v61 = vsub.f32 %v17193_v34, %v12683_v27  ;;  %v4833_v35 = vmul.f32 %v13204_v36, %v13204_v36  ;;  %v5001_v48 = vsel %vm3597_vm4, %v4832_v10, 0.0 }
 0xb72   :  { %v4994_v22 = vadd.f32 %v4993_v57, %v4992_v59  ;;  %v17194_v57 = vld [vmem:[#allocation85_spill] sm:$0xff] }
 0xb73   :  { %v13218_v12 = vsub.f32 %v17194_v57, %v12683_v27  ;;  %v4834_v37 = vmul.f32 %v13211_v61, %v13211_v61  ;;  %v5003_v42 = vsel %vm3597_vm4, %v4833_v35, 0.0 }
 0xb74   :  { %v4996_v15 = vadd.f32 %v4995_v60, %v4994_v22  ;;  %v17195_v60 = vld [vmem:[#allocation86_spill] sm:$0xff] }
 0xb75   :  { %v13225_v34 = vsub.f32 %v17195_v60, %v12683_v27  ;;  %v4835_v32 = vmul.f32 %v13218_v12, %v13218_v12  ;;  %v5005_v10 = vsel %vm3597_vm4, %v4834_v37, 0.0 }
 0xb76   :  { %v4998_v59 = vadd.f32 %v4997_v5, %v4996_v15  ;;  %v17196_v5 = vld [vmem:[#allocation87_spill] sm:$0xff] }
 0xb77   :  { %v13232_v57 = vsub.f32 %v17196_v5, %v12683_v27  ;;  %v4836_v55 = vmul.f32 %v13225_v34, %v13225_v34  ;;  %v5007_v35 = vsel %vm3597_vm4, %v4835_v32, 0.0 }
 0xb78   :  { %v5000_v22 = vadd.f32 %v4999_v7, %v4998_v59  ;;  %v17197_v7 = vld [vmem:[#allocation88_spill] sm:$0xff] }
 0xb79   :  { %v13239_v60 = vsub.f32 %v17197_v7, %v12683_v27  ;;  %v4837_v4 = vmul.f32 %v13232_v57, %v13232_v57  ;;  %v5009_v37 = vsel %vm3597_vm4, %v4836_v55, 0.0 }
 0xb7a   :  { %v5002_v15 = vadd.f32 %v5001_v48, %v5000_v22  ;;  %v17199_v48 = vld [vmem:[#allocation89_spill] sm:$0xff] }
 0xb7b   :  { %17198 = vst [vmem:[#allocation66_spill] sm:$0xff] %v13239_v60  ;;  %v13246_v5 = vsub.f32 %v17199_v48, %v12683_v27  ;;  %v4838_v63 = vmul.f32 %v13239_v60, %v13239_v60  ;;  %v5011_v32 = vsel %vm3597_vm4, %v4837_v4, 0.0 }
 0xb7c   :  { %v5004_v59 = vadd.f32 %v5003_v42, %v5002_v15  ;;  %v17201_v42 = vld [vmem:[#allocation90_spill] sm:$0xff] }
 0xb7d   :  { %17200 = vst [vmem:[#allocation67_spill] sm:$0xff] %v13246_v5  ;;  %v13253_v7 = vsub.f32 %v17201_v42, %v12683_v27  ;;  %v4839_v40 = vmul.f32 %v13246_v5, %v13246_v5  ;;  %v5013_v55 = vsel %vm3597_vm4, %v4838_v63, 0.0 }
 0xb7e   :  { %v5006_v22 = vadd.f32 %v5005_v10, %v5004_v59  ;;  %v17203_v10 = vld [vmem:[#allocation91_spill] sm:$0xff] }
 0xb7f   :  { %17202 = vst [vmem:[#allocation68_spill] sm:$0xff] %v13253_v7  ;;  %v13260_v48 = vsub.f32 %v17203_v10, %v12683_v27  ;;  %v4840_v60 = vmul.f32 %v13253_v7, %v13253_v7  ;;  %v5015_v4 = vsel %vm3597_vm4, %v4839_v40, 0.0 }
 0xb80   :  { %v5008_v15 = vadd.f32 %v5007_v35, %v5006_v22  ;;  %v17205_v35 = vld [vmem:[#allocation92_spill] sm:$0xff] }
 0xb81   :  { %17204 = vst [vmem:[#allocation69_spill] sm:$0xff] %v13260_v48  ;;  %v13267_v42 = vsub.f32 %v17205_v35, %v12683_v27  ;;  %v4841_v5 = vmul.f32 %v13260_v48, %v13260_v48  ;;  %v5017_v63 = vsel %vm3597_vm4, %v4840_v60, 0.0 }
 0xb82   :  { %v5010_v59 = vadd.f32 %v5009_v37, %v5008_v15  ;;  %v17207_v37 = vld [vmem:[#allocation93_spill] sm:$0xff] }
 0xb83   :  { %17206 = vst [vmem:[#allocation70_spill] sm:$0xff] %v13267_v42  ;;  %v13274_v10 = vsub.f32 %v17207_v37, %v12683_v27  ;;  %v4842_v7 = vmul.f32 %v13267_v42, %v13267_v42  ;;  %v5019_v40 = vsel %vm3597_vm4, %v4841_v5, 0.0 }
 0xb84   :  { %v5012_v22 = vadd.f32 %v5011_v32, %v5010_v59  ;;  %v17209_v32 = vld [vmem:[#allocation94_spill] sm:$0xff] }
 0xb85   :  { %17208 = vst [vmem:[#allocation71_spill] sm:$0xff] %v13274_v10  ;;  %v13281_v35 = vsub.f32 %v17209_v32, %v12683_v27  ;;  %v4843_v48 = vmul.f32 %v13274_v10, %v13274_v10  ;;  %v5021_v60 = vsel %vm3597_vm4, %v4842_v7, 0.0 }
 0xb86   :  { %v5014_v15 = vadd.f32 %v5013_v55, %v5012_v22  ;;  %v17211_v55 = vld [vmem:[#allocation95_spill] sm:$0xff] }
 0xb87   :  { %17210 = vst [vmem:[#allocation72_spill] sm:$0xff] %v13281_v35  ;;  %v13288_v37 = vsub.f32 %v17211_v55, %v12683_v27  ;;  %v4844_v42 = vmul.f32 %v13281_v35, %v13281_v35  ;;  %v5023_v5 = vsel %vm3597_vm4, %v4843_v48, 0.0 }
 0xb88   :  { %v5016_v59 = vadd.f32 %v5015_v4, %v5014_v15  ;;  %v17213_v4 = vld [vmem:[#allocation96_spill] sm:$0xff] }
 0xb89   :  { %17212 = vst [vmem:[#allocation73_spill] sm:$0xff] %v13288_v37  ;;  %v13295_v32 = vsub.f32 %v17213_v4, %v12683_v27  ;;  %v4845_v10 = vmul.f32 %v13288_v37, %v13288_v37  ;;  %v5025_v7 = vsel %vm3597_vm4, %v4844_v42, 0.0 }
 0xb8a   :  { %v5018_v22 = vadd.f32 %v5017_v63, %v5016_v59  ;;  %v17215_v63 = vld [vmem:[#allocation97_spill] sm:$0xff] }
 0xb8b   :  { %17214 = vst [vmem:[#allocation74_spill] sm:$0xff] %v13295_v32  ;;  %v13302_v55 = vsub.f32 %v17215_v63, %v12683_v27  ;;  %v4846_v35 = vmul.f32 %v13295_v32, %v13295_v32  ;;  %v5027_v48 = vsel %vm3597_vm4, %v4845_v10, 0.0 }
 0xb8c   :  { %v5020_v15 = vadd.f32 %v5019_v40, %v5018_v22  ;;  %v17217_v40 = vld [vmem:[#allocation98_spill] sm:$0xff] }
 0xb8d   :  { %17216 = vst [vmem:[#allocation75_spill] sm:$0xff] %v13302_v55  ;;  %v13309_v4 = vsub.f32 %v17217_v40, %v12683_v27  ;;  %v4847_v37 = vmul.f32 %v13302_v55, %v13302_v55  ;;  %v5029_v42 = vsel %vm3597_vm4, %v4846_v35, 0.0 }
 0xb8e   :  { %v5022_v59 = vadd.f32 %v5021_v60, %v5020_v15  ;;  %v17219_v60 = vld [vmem:[#allocation99_spill] sm:$0xff] }
 0xb8f   :  { %17218 = vst [vmem:[#allocation76_spill] sm:$0xff] %v13309_v4  ;;  %v13316_v63 = vsub.f32 %v17219_v60, %v12683_v27  ;;  %v4848_v32 = vmul.f32 %v13309_v4, %v13309_v4  ;;  %v5031_v10 = vsel %vm3597_vm4, %v4847_v37, 0.0 }
 0xb90   :  { %v5024_v22 = vadd.f32 %v5023_v5, %v5022_v59  ;;  %v17221_v5 = vld [vmem:[#allocation100_spill] sm:$0xff] }
 0xb91   :  { %17220 = vst [vmem:[#allocation77_spill] sm:$0xff] %v13316_v63  ;;  %v13323_v40 = vsub.f32 %v17221_v5, %v12683_v27  ;;  %v4849_v55 = vmul.f32 %v13316_v63, %v13316_v63  ;;  %v5033_v35 = vsel %vm3597_vm4, %v4848_v32, 0.0 }
 0xb92   :  { %v5026_v15 = vadd.f32 %v5025_v7, %v5024_v22  ;;  %v17223_v7 = vld [vmem:[#allocation101_spill] sm:$0xff] }
 0xb93   :  { %17222 = vst [vmem:[#allocation78_spill] sm:$0xff] %v13323_v40  ;;  %v13330_v60 = vsub.f32 %v17223_v7, %v12683_v27  ;;  %v4850_v5 = vmul.f32 %v13323_v40, %v13323_v40  ;;  %v5035_v37 = vsel %vm3597_vm4, %v4849_v55, 0.0 }
 0xb94   :  { %v5028_v59 = vadd.f32 %v5027_v48, %v5026_v15  ;;  %v13337_v48 = vsub.f32 %v12674_v14, %v12683_v27 }
 0xb95   :  { %17224 = vst [vmem:[#allocation79_spill] sm:$0xff] %v13330_v60  ;;  %v4851_v7 = vmul.f32 %v13330_v60, %v13330_v60 }
 0xb96   :  { %v5030_v22 = vadd.f32 %v5029_v42, %v5028_v59  ;;  %17225 = vst [vmem:[#allocation80_spill] sm:$0xff] %v13337_v48  ;;  %v13344_v42 = vsub.f32 %v12677_v20, %v12683_v27  ;;  %v4852_v14 = vmul.f32 %v13337_v48, %v13337_v48 }
 0xb98   :  { %v5032_v15 = vadd.f32 %v5031_v10, %v5030_v22  ;;  %17226 = vst [vmem:[#allocation81_spill] sm:$0xff] %v13344_v42  ;;  %v5037_v10 = vsel %vm3597_vm4, %v4850_v5, 0.0  ;;  %v4853_v32 = vmul.f32 %v13344_v42, %v13344_v42  ;;  %v5041_v27 = vsel %vm3597_vm4, %v4852_v14, 0.0  ;;  %v13359_v42 = vld [vmem:[#allocation32] ss:$0 sm:$0xff] }
 0xb9a   :  { %v5034_v59 = vadd.f32 %v5033_v35, %v5032_v15  ;;  %v5039_v15 = vsel %vm3597_vm4, %v4851_v7, 0.0  ;;  %v5043_v60 = vsel %vm3597_vm4, %v4853_v32, 0.0 }
 0xb9c   :  { %v5036_v22 = vadd.f32 %v5035_v37, %v5034_v59 }
 0xb9e   :  { %v5038_v63 = vadd.f32 %v5037_v10, %v5036_v22 }
 0xba0   :  { %v5040_v35 = vadd.f32 %v5039_v15, %v5038_v63 }
 0xba2   :  { %v5042_v20 = vadd.f32 %v5041_v27, %v5040_v35 }
 0xba4   :  { %v5044_v40 = vadd.f32 %v5043_v60, %v5042_v20 }
 0xba6   :  { %v5045_v55 = vrot.slane %v5044_v40, 4 }
 0xba8   :  { %v5046_v59 = vadd.f32 %v5045_v55, %v5044_v40 }
 0xbaa   :  { %v5047_v37 = vrot.slane %v5046_v59, 2 }
 0xbac   :  { %v5048_v4 = vadd.f32 %v5047_v37, %v5046_v59 }
 0xbae   :  { %v5049_v48 = vrot.slane %v5048_v4, 1 }
 0xbb0   :  { %v5050_v3 = vadd.f32 %v5049_v48, %v5048_v4  ;;  %v13369_v4 = vld [vmem:[#allocation34] ss:$0 sm:$0xff] }
 0xbb2   :  { %v5051_v5 = vmul.f32 0.0013020834, %v5050_v3 }
 0xbb4   :  { %v5052_v22 = vadd.f32 1e-05, %v5051_v5 }
 0xbb6   :  { %9651 = vrsqrt.f32 %v5052_v22 }
 0xbc0   :  { %v13357_v10 = vpop.eup %9651 }
 0xbc1   :  { %v5054_v63 = vmul.f32 %v13357_v10, %v12687_v21  ;;  %v5112_v7 = vmul.f32 %v13357_v10, %v13085_v38  ;;  %v5055_v40 = vmul.f32 %v13357_v10, %v12691_v31  ;;  %v5113_v60 = vmul.f32 %v13357_v10, %v13092_v53 }
 0xbc2   :  { %v5056_v3 = vmul.f32 %v13357_v10, %v12695_v56  ;;  %v5114_v48 = vmul.f32 %v13357_v10, %v13099_v39  ;;  %v5057_v21 = vmul.f32 %v13357_v10, %v12699_v18  ;;  %v5115_v38 = vmul.f32 %v13357_v10, %v13106_v29 }
 0xbc3   :  { %v5157_v14 = vmul.f32 %v13359_v42, %v5054_v63  ;;  %v5215_v31 = vmul.f32 %v13359_v42, %v5112_v7  ;;  %v5158_v53 = vmul.f32 %v13359_v42, %v5055_v40  ;;  %v5216_v32 = vmul.f32 %v13359_v42, %v5113_v60 }
 0xbc4   :  { %v5159_v15 = vmul.f32 %v13359_v42, %v5056_v3  ;;  %v5217_v56 = vmul.f32 %v13359_v42, %v5114_v48  ;;  %v5160_v39 = vmul.f32 %v13359_v42, %v5057_v21  ;;  %v5218_v35 = vmul.f32 %v13359_v42, %v5115_v38 }
 0xbc5   :  { %v5260_v18 = vadd.f32 %v13369_v4, %v5157_v14  ;;  %v5318_v29 = vadd.f32 %v13369_v4, %v5215_v31  ;;  %v5261_v27 = vadd.f32 %v13369_v4, %v5158_v53  ;;  %v5319_v20 = vadd.f32 %v13369_v4, %v5216_v32 }
 0xbc6   :  { %v5262_v55 = vadd.f32 %v13369_v4, %v5159_v15  ;;  %v5320_v59 = vadd.f32 %v13369_v4, %v5217_v56  ;;  %v5263_v37 = vadd.f32 %v13369_v4, %v5160_v39  ;;  %v5321_v5 = vadd.f32 %v13369_v4, %v5218_v35 }
 0xbc7   :  { %v5356_v22 = vmax.f32 %v5260_v18, 0.0  ;;  %v5414_v63 = vmax.f32 %v5318_v29, 0.0  ;;  %v5357_v7 = vmax.f32 %v5261_v27, 0.0  ;;  %v5415_v40 = vmax.f32 %v5319_v20, 0.0 }
 0xbc8   :  { %v5358_v60 = vmax.f32 %v5262_v55, 0.0  ;;  %v5416_v3 = vmax.f32 %v5320_v59, 0.0  ;;  %v5058_v48 = vmul.f32 %v13357_v10, %v12707_v25  ;;  %v5116_v21 = vmul.f32 %v13357_v10, %v13113_v17 }
 0xbc9   :  { %8902 = vmatprep.mubr.msk.f32.mxu0 %vm3597_vm4, %v5356_v22  ;;  %8989 = vmatprep.mubr.msk.f32.mxu1 %vm3597_vm4, %v5414_v63  ;;  %v5059_v38 = vmul.f32 %v13357_v10, %v12713_v43  ;;  %v5359_v14 = vmax.f32 %v5263_v37, 0.0  ;;  %v5117_v31 = vmul.f32 %v13357_v10, %v13120_v50  ;;  %v5060_v53 = vmul.f32 %v13357_v10, %v12721_v24 }
 0xbca   :  { %8903 = vmatmul.mubr.msk.f32.vlgmr.msra.gmra.mrb[82].mxu0 %vm3597_vm4, %v5357_v7  ;;  %8990 = vmatmul.mubr.msk.f32.vlgmr.msra.gmra.mrb[96].mxu1 %vm3597_vm4, %v5415_v40  ;;  %v5118_v25 = vmul.f32 %v13357_v10, %v13127_v13  ;;  %v5417_v17 = vmax.f32 %v5321_v5, 0.0  ;;  %v5161_v43 = vmul.f32 %v13359_v42, %v5058_v48  ;;  %v5219_v32 = vmul.f32 %v13359_v42, %v5116_v21 }
 0xbcb   :  { %8905 = vmatprep.mubr.msk.f32.mxu0 %vm3597_vm4, %v5358_v60  ;;  %8992 = vmatprep.mubr.msk.f32.mxu1 %vm3597_vm4, %v5416_v3  ;;  %v5162_v15 = vmul.f32 %v13359_v42, %v5059_v38  ;;  %v5220_v56 = vmul.f32 %v13359_v42, %v5117_v31  ;;  %v5163_v50 = vmul.f32 %v13359_v42, %v5060_v53 }
 0xbcc   :  { %v5221_v24 = vmul.f32 %v13359_v42, %v5118_v25  ;;  %v5061_v13 = vmul.f32 %v13357_v10, %v12728_v30  ;;  %v5264_v39 = vadd.f32 %v13369_v4, %v5161_v43  ;;  %v5322_v35 = vadd.f32 %v13369_v4, %v5219_v32 }
 0xbcd   :  { %v5265_v18 = vadd.f32 %v13369_v4, %v5162_v15  ;;  %v5119_v29 = vmul.f32 %v13357_v10, %v13134_v49  ;;  %v5323_v27 = vadd.f32 %v13369_v4, %v5220_v56  ;;  %v5266_v20 = vadd.f32 %v13369_v4, %v5163_v50 }
 0xbce   :  { %8906 = vmatmul.mubr.msk.f32.gmra.mrb[84].mxu0 %vm3597_vm4, %v5359_v14  ;;  %8993 = vmatmul.mubr.msk.f32.gmra.mrb[98].mxu1 %vm3597_vm4, %v5417_v17  ;;  %v5324_v55 = vadd.f32 %v13369_v4, %v5221_v24  ;;  %v5360_v30 = vmax.f32 %v5264_v39, 0.0  ;;  %v5418_v59 = vmax.f32 %v5322_v35, 0.0  ;;  %v5164_v37 = vmul.f32 %v13359_v42, %v5061_v13 }
 0xbcf   :  { %v5361_v5 = vmax.f32 %v5265_v18, 0.0  ;;  %v5419_v22 = vmax.f32 %v5323_v27, 0.0  ;;  %v5362_v63 = vmax.f32 %v5266_v20, 0.0  ;;  %v5222_v7 = vmul.f32 %v13359_v42, %v5119_v29 }
 0xbd0   :  { %8908 = vmatprep.mubr.msk.f32.mxu0 %vm3597_vm4, %v5360_v30  ;;  %8995 = vmatprep.mubr.msk.f32.mxu1 %vm3597_vm4, %v5418_v59  ;;  %v5420_v49 = vmax.f32 %v5324_v55, 0.0  ;;  %v5267_v40 = vadd.f32 %v13369_v4, %v5164_v37  ;;  %v5062_v60 = vmul.f32 %v13357_v10, %v12735_v9  ;;  %v5120_v3 = vmul.f32 %v13357_v10, %v13141_v26 }
 0xbd1   :  { %v5325_v48 = vadd.f32 %v13369_v4, %v5222_v7  ;;  %v5063_v21 = vmul.f32 %v13357_v10, %v12742_v41  ;;  %v5121_v38 = vmul.f32 %v13357_v10, %v13148_v23  ;;  %v5064_v31 = vmul.f32 %v13357_v10, %v12749_v46 }
 0xbd2   :  { %8909 = vmatmul.mubr.msk.f32.gmra.mrb[86].mxu0 %vm3597_vm4, %v5361_v5  ;;  %8996 = vmatmul.mubr.msk.f32.gmra.mrb[100].mxu1 %vm3597_vm4, %v5419_v22  ;;  %v5363_v9 = vmax.f32 %v5267_v40, 0.0  ;;  %v5165_v14 = vmul.f32 %v13359_v42, %v5062_v60  ;;  %v5223_v26 = vmul.f32 %v13359_v42, %v5120_v3  ;;  %v5122_v23 = vmul.f32 %v13357_v10, %v13155_v19 }
 0xbd3   :  { %8911 = vmatprep.mubr.msk.f32.mxu0 %vm3597_vm4, %v5362_v63  ;;  %8998 = vmatprep.mubr.msk.f32.mxu1 %vm3597_vm4, %v5420_v49  ;;  %v5421_v53 = vmax.f32 %v5325_v48, 0.0  ;;  %v5166_v25 = vmul.f32 %v13359_v42, %v5063_v21  ;;  %v5224_v41 = vmul.f32 %v13359_v42, %v5121_v38  ;;  %v5167_v32 = vmul.f32 %v13359_v42, %v5064_v31 }
 0xbd4   :  { %v5268_v17 = vadd.f32 %v13369_v4, %v5165_v14  ;;  %v5326_v43 = vadd.f32 %v13369_v4, %v5223_v26  ;;  %v5065_v15 = vmul.f32 %v13357_v10, %v12756_v47  ;;  %v5225_v50 = vmul.f32 %v13359_v42, %v5122_v23 }
 0xbd5   :  { %v5269_v46 = vadd.f32 %v13369_v4, %v5166_v25  ;;  %v5327_v56 = vadd.f32 %v13369_v4, %v5224_v41  ;;  %v5270_v13 = vadd.f32 %v13369_v4, %v5167_v32  ;;  %v5123_v29 = vmul.f32 %v13357_v10, %v13162_v0 }
 0xbd6   :  { %8912 = vmatmul.mubr.msk.f32.gmra.mrb[88].mxu0 %vm3597_vm4, %v5363_v9  ;;  %8999 = vmatmul.mubr.msk.f32.gmra.mrb[102].mxu1 %vm3597_vm4, %v5421_v53  ;;  %v5364_v19 = vmax.f32 %v5268_v17, 0.0  ;;  %v5422_v24 = vmax.f32 %v5326_v43, 0.0  ;;  %v5168_v39 = vmul.f32 %v13359_v42, %v5065_v15  ;;  %v5328_v47 = vadd.f32 %v13369_v4, %v5225_v50 }
 0xbd7   :  { %v5365_v35 = vmax.f32 %v5269_v46, 0.0  ;;  %v5423_v18 = vmax.f32 %v5327_v56, 0.0  ;;  %v5366_v27 = vmax.f32 %v5270_v13, 0.0  ;;  %v5066_v55 = vmul.f32 %v13357_v10, %v12763_v54 }
 0xbd8   :  { %8914 = vmatprep.mubr.msk.f32.mxu0 %vm3597_vm4, %v5364_v19  ;;  %9001 = vmatprep.mubr.msk.f32.mxu1 %vm3597_vm4, %v5422_v24  ;;  %v5271_v20 = vadd.f32 %v13369_v4, %v5168_v39  ;;  %v5124_v30 = vmul.f32 %v13357_v10, %v13169_v8  ;;  %v5424_v59 = vmax.f32 %v5328_v47, 0.0  ;;  %v5226_v0 = vmul.f32 %v13359_v42, %v5123_v29 }
 0xbd9   :  { %v5067_v37 = vmul.f32 %v13357_v10, %v12770_v62  ;;  %v5125_v5 = vmul.f32 %v13357_v10, %v13176_v6  ;;  %v5169_v54 = vmul.f32 %v13359_v42, %v5066_v55  ;;  %v5068_v63 = vmul.f32 %v13357_v10, %v12777_v45 }
 0xbda   :  { %8915 = vmatmul.mubr.msk.f32.gmra.mrb[90].mxu0 %vm3597_vm4, %v5365_v35  ;;  %9002 = vmatmul.mubr.msk.f32.gmra.mrb[104].mxu1 %vm3597_vm4, %v5423_v18  ;;  %v5367_v22 = vmax.f32 %v5271_v20, 0.0  ;;  %v5227_v8 = vmul.f32 %v13359_v42, %v5124_v30  ;;  %v5329_v7 = vadd.f32 %v13369_v4, %v5226_v0  ;;  %v5126_v6 = vmul.f32 %v13357_v10, %v13183_v16 }
 0xbdb   :  { %8917 = vmatprep.mubr.msk.f32.mxu0 %vm3597_vm4, %v5366_v27  ;;  %9004 = vmatprep.mubr.msk.f32.mxu1 %vm3597_vm4, %v5424_v59  ;;  %v5170_v49 = vmul.f32 %v13359_v42, %v5067_v37  ;;  %v5228_v62 = vmul.f32 %v13359_v42, %v5125_v5  ;;  %v5272_v40 = vadd.f32 %v13369_v4, %v5169_v54 }
 0xbdc   :  { %v5330_v60 = vadd.f32 %v13369_v4, %v5227_v8  ;;  %v5171_v3 = vmul.f32 %v13359_v42, %v5068_v63  ;;  %v5069_v45 = vmul.f32 %v13357_v10, %v12784_v1  ;;  %v5425_v48 = vmax.f32 %v5329_v7, 0.0 }
 0xbdd   :  { %v5273_v21 = vadd.f32 %v13369_v4, %v5170_v49  ;;  %v5331_v38 = vadd.f32 %v13369_v4, %v5228_v62  ;;  %v5229_v9 = vmul.f32 %v13359_v42, %v5126_v6  ;;  %v5368_v14 = vmax.f32 %v5272_v40, 0.0 }
 0xbde   :  { %8918 = vmatmul.mubr.msk.f32.gmra.mrb[92].mxu0 %vm3597_vm4, %v5367_v22  ;;  %v5426_v16 = vmax.f32 %v5330_v60, 0.0  ;;  %v5274_v26 = vadd.f32 %v13369_v4, %v5171_v3  ;;  %v5172_v31 = vmul.f32 %v13359_v42, %v5069_v45  ;;  %9005 = vmatmul.mubr.msk.f32.gmra.mrb[106].mxu1 %vm3597_vm4, %v5425_v48  ;;  %v5127_v41 = vmul.f32 %v13357_v10, %v13190_v51  ;;  %v17227_v60 = vld [vmem:[#allocation102_spill] sm:$0xff] }
 0xbdf   :  { %v5369_v53 = vmax.f32 %v5273_v21, 0.0  ;;  %v5427_v25 = vmax.f32 %v5331_v38, 0.0  ;;  %v5332_v1 = vadd.f32 %v13369_v4, %v5229_v9  ;;  %8920 = vmatprep.mubr.msk.f32.mxu0 %vm3597_vm4, %v5368_v14  ;;  %v5070_v43 = vmul.f32 %v13357_v10, %v12791_v28  ;;  %v17228_v48 = vld [vmem:[#allocation66_spill] sm:$0xff]  ;;  %v17229_v14 = vld [vmem:[#allocation103_spill] sm:$0xff] }
 0xbe0   :  { %9007 = vmatprep.mubr.msk.f32.mxu1 %vm3597_vm4, %v5426_v16  ;;  %v5370_v23 = vmax.f32 %v5274_v26, 0.0  ;;  %v5275_v17 = vadd.f32 %v13369_v4, %v5172_v31  ;;  %v5128_v32 = vmul.f32 %v13357_v10, %v13197_v58  ;;  %v5230_v46 = vmul.f32 %v13359_v42, %v5127_v41 }
 0xbe1   :  { %v5428_v15 = vmax.f32 %v5332_v1, 0.0  ;;  %v5071_v51 = vmul.f32 %v13357_v10, %v12798_v52  ;;  %v5129_v56 = vmul.f32 %v13357_v10, %v13204_v36  ;;  %v5173_v19 = vmul.f32 %v13359_v42, %v5070_v43 }
 0xbe2   :  { %8921 = vmatmul.mubr.msk.f32.gmra.mrb[94].mxu0 %vm3597_vm4, %v5369_v53  ;;  %v5371_v50 = vmax.f32 %v5275_v17, 0.0  ;;  %v5231_v28 = vmul.f32 %v13359_v42, %v5128_v32  ;;  %v5072_v58 = vmul.f32 %v13357_v10, %v12805_v33  ;;  %9008 = vmatmul.mubr.msk.f32.gmra.mrb[108].mxu1 %vm3597_vm4, %v5427_v25  ;;  %v5333_v24 = vadd.f32 %v13369_v4, %v5230_v46  ;;  %v17230_v46 = vld [vmem:[#allocation67_spill] sm:$0xff] }
 0xbe3   :  { %8923 = vmatprep.mubr.msk.f32.mxu0 %vm3597_vm4, %v5370_v23  ;;  %v5174_v13 = vmul.f32 %v13359_v42, %v5071_v51  ;;  %v5232_v52 = vmul.f32 %v13359_v42, %v5129_v56  ;;  %v5130_v36 = vmul.f32 %v13357_v10, %v13211_v61  ;;  %9010 = vmatprep.mubr.msk.f32.mxu1 %vm3597_vm4, %v5428_v15 }
 0xbe4   :  { %v5276_v39 = vadd.f32 %v13369_v4, %v5173_v19  ;;  %v5334_v35 = vadd.f32 %v13369_v4, %v5231_v28  ;;  %v5175_v18 = vmul.f32 %v13359_v42, %v5072_v58  ;;  %v5073_v33 = vmul.f32 %v13357_v10, %v12812_v2  ;;  %v17231_v19 = vld [vmem:[#allocation104_spill] sm:$0xff] }
 0xbe5   :  { %v5429_v47 = vmax.f32 %v5333_v24, 0.0  ;;  %v5277_v29 = vadd.f32 %v13369_v4, %v5174_v13  ;;  %v5335_v27 = vadd.f32 %v13369_v4, %v5232_v52  ;;  %v5233_v61 = vmul.f32 %v13359_v42, %v5130_v36  ;;  %v17232_v58 = vld [vmem:[#allocation68_spill] sm:$0xff]  ;;  %v17233_v36 = vld [vmem:[#allocation105_spill] sm:$0xff] }
 0xbe6   :  { %8924 = vmatmul.mubr.msk.f32.gmra.mrb[96].mxu0 %vm3597_vm4, %v5371_v50  ;;  %v5372_v20 = vmax.f32 %v5276_v39, 0.0  ;;  %v5430_v55 = vmax.f32 %v5334_v35, 0.0  ;;  %v5278_v30 = vadd.f32 %v13369_v4, %v5175_v18  ;;  %v5176_v59 = vmul.f32 %v13359_v42, %v5073_v33  ;;  %v17234_v35 = vld [vmem:[#allocation69_spill] sm:$0xff] }
 0xbe7   :  { %9011 = vmatmul.mubr.msk.f32.gmra.mrb[110].mxu1 %vm3597_vm4, %v5429_v47  ;;  %v5373_v0 = vmax.f32 %v5277_v29, 0.0  ;;  %v5431_v37 = vmax.f32 %v5335_v27, 0.0  ;;  %v5336_v2 = vadd.f32 %v13369_v4, %v5233_v61  ;;  %v5131_v5 = vmul.f32 %v13357_v10, %v13218_v12  ;;  %v17235_v27 = vld [vmem:[#allocation106_spill] sm:$0xff] }
 0xbe8   :  { %8926 = vmatprep.mubr.msk.f32.mxu0 %vm3597_vm4, %v5372_v20  ;;  %9013 = vmatprep.mubr.msk.f32.mxu1 %vm3597_vm4, %v5430_v55  ;;  %v5374_v22 = vmax.f32 %v5278_v30, 0.0  ;;  %v5279_v54 = vadd.f32 %v13369_v4, %v5176_v59  ;;  %v5074_v8 = vmul.f32 %v13357_v10, %v12819_v44  ;;  %v5132_v63 = vmul.f32 %v13357_v10, %v13225_v34  ;;  %v17236_v59 = vld [vmem:[#allocation70_spill] sm:$0xff] }
 0xbe9   :  { %v5432_v7 = vmax.f32 %v5336_v2, 0.0  ;;  %v5234_v49 = vmul.f32 %v13359_v42, %v5131_v5  ;;  %v5075_v12 = vmul.f32 %v13357_v10, %v12826_v11  ;;  %v5133_v62 = vmul.f32 %v13357_v10, %v13232_v57 }
 0xbea   :  { %8927 = vmatmul.mubr.msk.f32.gmra.mrb[98].mxu0 %vm3597_vm4, %v5373_v0  ;;  %v5375_v6 = vmax.f32 %v5279_v54, 0.0  ;;  %v5177_v40 = vmul.f32 %v13359_v42, %v5074_v8  ;;  %v5235_v44 = vmul.f32 %v13359_v42, %v5132_v63  ;;  %v5076_v34 = vmul.f32 %v13357_v10, %v17227_v60 }
 0xbeb   :  { %8929 = vmatprep.mubr.msk.f32.mxu0 %vm3597_vm4, %v5374_v22  ;;  %9014 = vmatmul.mubr.msk.f32.gmra.mrb[112].mxu1 %vm3597_vm4, %v5431_v37  ;;  %v5337_v3 = vadd.f32 %v13369_v4, %v5234_v49  ;;  %v5178_v45 = vmul.f32 %v13359_v42, %v5075_v12  ;;  %v5236_v11 = vmul.f32 %v13359_v42, %v5133_v62  ;;  %v17237_v22 = vld [vmem:[#allocation107_spill] sm:$0xff] }
 0xbec   :  { %v5134_v57 = vmul.f32 %v13357_v10, %v17228_v48  ;;  %9016 = vmatprep.mubr.msk.f32.mxu1 %vm3597_vm4, %v5432_v7  ;;  %v5280_v21 = vadd.f32 %v13369_v4, %v5177_v40  ;;  %v5338_v38 = vadd.f32 %v13369_v4, %v5235_v44  ;;  %v5179_v9 = vmul.f32 %v13359_v42, %v5076_v34 }
 0xbed   :  { %v5077_v16 = vmul.f32 %v13357_v10, %v17229_v14  ;;  %v5433_v26 = vmax.f32 %v5337_v3, 0.0  ;;  %v5281_v31 = vadd.f32 %v13369_v4, %v5178_v45  ;;  %v5339_v53 = vadd.f32 %v13369_v4, %v5236_v11  ;;  %v17238_v3 = vld [vmem:[#allocation71_spill] sm:$0xff] }
 0xbee   :  { %8930 = vmatmul.mubr.msk.f32.gmra.mrb[100].mxu0 %vm3597_vm4, %v5375_v6  ;;  %v5237_v25 = vmul.f32 %v13359_v42, %v5134_v57  ;;  %v5376_v1 = vmax.f32 %v5280_v21, 0.0  ;;  %v5434_v41 = vmax.f32 %v5338_v38, 0.0  ;;  %v5282_v23 = vadd.f32 %v13369_v4, %v5179_v9  ;;  %v17239_v57 = vld [vmem:[#allocation108_spill] sm:$0xff] }
 0xbef   :  { %v5180_v17 = vmul.f32 %v13359_v42, %v5077_v16  ;;  %9017 = vmatmul.mubr.msk.f32.gmra.mrb[114].mxu1 %vm3597_vm4, %v5433_v26  ;;  %v5377_v43 = vmax.f32 %v5281_v31, 0.0  ;;  %v5435_v32 = vmax.f32 %v5339_v53, 0.0  ;;  %v5135_v51 = vmul.f32 %v13357_v10, %v17230_v46  ;;  %v17240_v38 = vld [vmem:[#allocation72_spill] sm:$0xff]  ;;  %v17241_v26 = vld [vmem:[#allocation109_spill] sm:$0xff] }
 0xbf0   :  { %v5340_v15 = vadd.f32 %v13369_v4, %v5237_v25  ;;  %8932 = vmatprep.mubr.msk.f32.mxu0 %vm3597_vm4, %v5376_v1  ;;  %9019 = vmatprep.mubr.msk.f32.mxu1 %vm3597_vm4, %v5434_v41  ;;  %v5378_v56 = vmax.f32 %v5282_v23, 0.0  ;;  %v5078_v28 = vmul.f32 %v13357_v10, %v17231_v19  ;;  %v5136_v24 = vmul.f32 %v13357_v10, %v17232_v58  ;;  %v17242_v53 = vld [vmem:[#allocation73_spill] sm:$0xff]  ;;  %v17245_v58 = vld [vmem:[#allocation111_spill] sm:$0xff] }
 0xbf1   :  { %v5283_v50 = vadd.f32 %v13369_v4, %v5180_v17  ;;  %v5238_v52 = vmul.f32 %v13359_v42, %v5135_v51  ;;  %v5079_v39 = vmul.f32 %v13357_v10, %v17233_v36  ;;  %v5137_v18 = vmul.f32 %v13357_v10, %v17234_v35  ;;  %v17243_v17 = vld [vmem:[#allocation110_spill] sm:$0xff] }
 0xbf2   :  { %8933 = vmatmul.mubr.msk.f32.gmra.mrb[102].mxu0 %vm3597_vm4, %v5377_v43  ;;  %v5436_v13 = vmax.f32 %v5340_v15, 0.0  ;;  %v5181_v47 = vmul.f32 %v13359_v42, %v5078_v28  ;;  %v5239_v29 = vmul.f32 %v13359_v42, %v5136_v24  ;;  %v5080_v61 = vmul.f32 %v13357_v10, %v17235_v27  ;;  %v17244_v51 = vld [vmem:[#allocation74_spill] sm:$0xff] }
 0xbf3   :  { %8935 = vmatprep.mubr.msk.f32.mxu0 %vm3597_vm4, %v5378_v56  ;;  %v5379_v33 = vmax.f32 %v5283_v50, 0.0  ;;  %9020 = vmatmul.mubr.msk.f32.gmra.mrb[116].mxu1 %vm3597_vm4, %v5435_v32  ;;  %v5341_v20 = vadd.f32 %v13369_v4, %v5238_v52  ;;  %v5182_v55 = vmul.f32 %v13359_v42, %v5079_v39  ;;  %v5240_v30 = vmul.f32 %v13359_v42, %v5137_v18 }
 0xbf4   :  { %v5138_v0 = vmul.f32 %v13357_v10, %v17236_v59  ;;  %9022 = vmatprep.mubr.msk.f32.mxu1 %vm3597_vm4, %v5436_v13  ;;  %v5284_v37 = vadd.f32 %v13369_v4, %v5181_v47  ;;  %v5342_v2 = vadd.f32 %v13369_v4, %v5239_v29  ;;  %v5183_v5 = vmul.f32 %v13359_v42, %v5080_v61 }
 0xbf5   :  { %v5081_v54 = vmul.f32 %v13357_v10, %v17237_v22  ;;  %v5437_v8 = vmax.f32 %v5341_v20, 0.0  ;;  %v5285_v63 = vadd.f32 %v13369_v4, %v5182_v55  ;;  %v5343_v7 = vadd.f32 %v13369_v4, %v5240_v30  ;;  %v17246_v20 = vld [vmem:[#allocation75_spill] sm:$0xff] }
 0xbf6   :  { %8936 = vmatmul.mubr.msk.f32.gmra.mrb[104].mxu0 %vm3597_vm4, %v5379_v33  ;;  %v5241_v49 = vmul.f32 %v13359_v42, %v5138_v0  ;;  %v5380_v12 = vmax.f32 %v5284_v37, 0.0  ;;  %v5438_v62 = vmax.f32 %v5342_v2, 0.0  ;;  %v5286_v6 = vadd.f32 %v13369_v4, %v5183_v5  ;;  %v17247_v0 = vld [vmem:[#allocation112_spill] sm:$0xff] }
 0xbf7   :  { %v5184_v40 = vmul.f32 %v13359_v42, %v5081_v54  ;;  %9023 = vmatmul.mubr.msk.f32.gmra.mrb[118].mxu1 %vm3597_vm4, %v5437_v8  ;;  %v5381_v44 = vmax.f32 %v5285_v63, 0.0  ;;  %v5439_v60 = vmax.f32 %v5343_v7, 0.0  ;;  %v5139_v45 = vmul.f32 %v13357_v10, %v17238_v3  ;;  %v17248_v2 = vld [vmem:[#allocation76_spill] sm:$0xff]  ;;  %v17249_v8 = vld [vmem:[#allocation113_spill] sm:$0xff] }
 0xbf8   :  { %v5344_v34 = vadd.f32 %v13369_v4, %v5241_v49  ;;  %8938 = vmatprep.mubr.msk.f32.mxu0 %vm3597_vm4, %v5380_v12  ;;  %9025 = vmatprep.mubr.msk.f32.mxu1 %vm3597_vm4, %v5438_v62  ;;  %v5382_v11 = vmax.f32 %v5286_v6, 0.0  ;;  %v5082_v21 = vmul.f32 %v13357_v10, %v17239_v57  ;;  %v5140_v9 = vmul.f32 %v13357_v10, %v17240_v38  ;;  %v17250_v7 = vld [vmem:[#allocation77_spill] sm:$0xff]  ;;  %v17253_v38 = vld [vmem:[#allocation115_spill] sm:$0xff] }
 0xbf9   :  { %v5287_v48 = vadd.f32 %v13369_v4, %v5184_v40  ;;  %v5242_v16 = vmul.f32 %v13359_v42, %v5139_v45  ;;  %v5083_v31 = vmul.f32 %v13357_v10, %v17241_v26  ;;  %v5141_v25 = vmul.f32 %v13357_v10, %v17242_v53  ;;  %v17251_v40 = vld [vmem:[#allocation114_spill] sm:$0xff] }
 0xbfa   :  { %8939 = vmatmul.mubr.msk.f32.gmra.mrb[106].mxu0 %vm3597_vm4, %v5381_v44  ;;  %v5440_v14 = vmax.f32 %v5344_v34, 0.0  ;;  %v5185_v41 = vmul.f32 %v13359_v42, %v5082_v21  ;;  %v5243_v23 = vmul.f32 %v13359_v42, %v5140_v9  ;;  %v5084_v43 = vmul.f32 %v13357_v10, %v17243_v17  ;;  %v17252_v45 = vld [vmem:[#allocation78_spill] sm:$0xff] }
 0xbfb   :  { %8941 = vmatprep.mubr.msk.f32.mxu0 %vm3597_vm4, %v5382_v11  ;;  %v5383_v1 = vmax.f32 %v5287_v48, 0.0  ;;  %9026 = vmatmul.mubr.msk.f32.gmra.mrb[120].mxu1 %vm3597_vm4, %v5439_v60  ;;  %v5345_v32 = vadd.f32 %v13369_v4, %v5242_v16  ;;  %v5186_v15 = vmul.f32 %v13359_v42, %v5083_v31  ;;  %v5244_v46 = vmul.f32 %v13359_v42, %v5141_v25 }
 0xbfc   :  { %v5142_v56 = vmul.f32 %v13357_v10, %v17244_v51  ;;  %9028 = vmatprep.mubr.msk.f32.mxu1 %vm3597_vm4, %v5440_v14  ;;  %v5288_v50 = vadd.f32 %v13369_v4, %v5185_v41  ;;  %v5346_v19 = vadd.f32 %v13369_v4, %v5243_v23  ;;  %v5187_v28 = vmul.f32 %v13359_v42, %v5084_v43 }
 0xbfd   :  { %v5085_v24 = vmul.f32 %v13357_v10, %v17245_v58  ;;  %v5441_v13 = vmax.f32 %v5345_v32, 0.0  ;;  %v5289_v52 = vadd.f32 %v13369_v4, %v5186_v15  ;;  %v5347_v36 = vadd.f32 %v13369_v4, %v5244_v46  ;;  %v17254_v32 = vld [vmem:[#allocation79_spill] sm:$0xff] }
 0xbfe   :  { %8942 = vmatmul.mubr.msk.f32.gmra.mrb[108].mxu0 %vm3597_vm4, %v5383_v1  ;;  %v5245_v39 = vmul.f32 %v13359_v42, %v5142_v56  ;;  %v5384_v35 = vmax.f32 %v5288_v50, 0.0  ;;  %v5442_v18 = vmax.f32 %v5346_v19, 0.0  ;;  %v5290_v33 = vadd.f32 %v13369_v4, %v5187_v28  ;;  %v17255_v56 = vld [vmem:[#allocation116_spill] sm:$0xff] }
 0xbff   :  { %v5188_v47 = vmul.f32 %v13359_v42, %v5085_v24  ;;  %9029 = vmatmul.mubr.msk.f32.gmra.mrb[122].mxu1 %vm3597_vm4, %v5441_v13  ;;  %v5385_v29 = vmax.f32 %v5289_v52, 0.0  ;;  %v5443_v27 = vmax.f32 %v5347_v36, 0.0  ;;  %v5143_v55 = vmul.f32 %v13357_v10, %v17246_v20  ;;  %v17256_v19 = vld [vmem:[#allocation80_spill] sm:$0xff]  ;;  %v17257_v13 = vld [vmem:[#allocation117_spill] sm:$0xff] }
 0xc00   :  { %v5348_v61 = vadd.f32 %v13369_v4, %v5245_v39  ;;  %8944 = vmatprep.mubr.msk.f32.mxu0 %vm3597_vm4, %v5384_v35  ;;  %9031 = vmatprep.mubr.msk.f32.mxu1 %vm3597_vm4, %v5442_v18  ;;  %v5386_v30 = vmax.f32 %v5290_v33, 0.0  ;;  %v5086_v37 = vmul.f32 %v13357_v10, %v17247_v0  ;;  %v5144_v5 = vmul.f32 %v13357_v10, %v17248_v2  ;;  %v17258_v36 = vld [vmem:[#allocation81_spill] sm:$0xff]  ;;  %v17261_v2 = vld [vmem:[#allocation120_spill] sm:$0xff] }
 0xc01   :  { %v5291_v59 = vadd.f32 %v13369_v4, %v5188_v47  ;;  %v5246_v54 = vmul.f32 %v13359_v42, %v5143_v55  ;;  %v5087_v63 = vmul.f32 %v13357_v10, %v17249_v8  ;;  %v5145_v49 = vmul.f32 %v13357_v10, %v17250_v7  ;;  %v17259_v47 = vld [vmem:[#allocation118_spill] sm:$0xff]  ;;  %v17260_v55 = vld [vmem:[#allocation119_spill] sm:$0xff] }
 0xc02   :  { %8945 = vmatmul.mubr.msk.f32.gmra.mrb[110].mxu0 %vm3597_vm4, %v5385_v29  ;;  %v5444_v22 = vmax.f32 %v5348_v61, 0.0  ;;  %v5189_v62 = vmul.f32 %v13359_v42, %v5086_v37  ;;  %v5247_v6 = vmul.f32 %v13359_v42, %v5144_v5  ;;  %v5088_v44 = vmul.f32 %v13357_v10, %v17251_v40 }
 0xc03   :  { %8947 = vmatprep.mubr.msk.f32.mxu0 %vm3597_vm4, %v5386_v30  ;;  %v5387_v12 = vmax.f32 %v5291_v59, 0.0  ;;  %9032 = vmatmul.mubr.msk.f32.gmra.mrb[124].mxu1 %vm3597_vm4, %v5443_v27  ;;  %v5349_v60 = vadd.f32 %v13369_v4, %v5246_v54  ;;  %v5190_v34 = vmul.f32 %v13359_v42, %v5087_v63  ;;  %v5248_v3 = vmul.f32 %v13359_v42, %v5145_v49 }
 0xc04   :  { %v5146_v11 = vmul.f32 %v13357_v10, %v17252_v45  ;;  %9034 = vmatprep.mubr.msk.f32.mxu1 %vm3597_vm4, %v5444_v22  ;;  %v5292_v48 = vadd.f32 %v13369_v4, %v5189_v62  ;;  %v5350_v57 = vadd.f32 %v13369_v4, %v5247_v6  ;;  %v5191_v21 = vmul.f32 %v13359_v42, %v5088_v44  ;;  %v17262_v44 = vld [vmem:[#allocation121_spill] sm:$0xff]  ;;  %v17263_v45 = vld [vmem:[#allocation122_spill] sm:$0xff] }
 0xc05   :  { %v5089_v9 = vmul.f32 %v13357_v10, %v17253_v38  ;;  %v5445_v14 = vmax.f32 %v5349_v60, 0.0  ;;  %v5293_v16 = vadd.f32 %v13369_v4, %v5190_v34  ;;  %v5351_v26 = vadd.f32 %v13369_v4, %v5248_v3 }
 0xc06   :  { %8948 = vmatmul.mubr.msk.f32.gmra.mrb[112].mxu0 %vm3597_vm4, %v5387_v12  ;;  %v5249_v31 = vmul.f32 %v13359_v42, %v5146_v11  ;;  %v5388_v53 = vmax.f32 %v5292_v48, 0.0  ;;  %v5446_v25 = vmax.f32 %v5350_v57, 0.0  ;;  %v5294_v1 = vadd.f32 %v13369_v4, %v5191_v21  ;;  %v17264_v48 = vld [vmem:[#allocation123_spill] sm:$0xff] }
 0xc07   :  { %v5192_v41 = vmul.f32 %v13359_v42, %v5089_v9  ;;  %9035 = vmatmul.mubr.msk.f32.gmra.mrb[126].mxu1 %vm3597_vm4, %v5445_v14  ;;  %v5389_v23 = vmax.f32 %v5293_v16, 0.0  ;;  %v5447_v17 = vmax.f32 %v5351_v26, 0.0  ;;  %v5147_v15 = vmul.f32 %v13357_v10, %v17254_v32  ;;  %v17265_v9 = vld [vmem:[#allocation124_spill] sm:$0xff] }
 0xc08   :  { %v5352_v43 = vadd.f32 %v13369_v4, %v5249_v31  ;;  %8950 = vmatprep.mubr.msk.f32.mxu0 %vm3597_vm4, %v5388_v53  ;;  %9037 = vmatprep.mubr.msk.f32.mxu1 %vm3597_vm4, %v5446_v25  ;;  %v5390_v46 = vmax.f32 %v5294_v1, 0.0  ;;  %v5090_v50 = vmul.f32 %v13357_v10, %v17255_v56  ;;  %v5148_v28 = vmul.f32 %v13357_v10, %v17256_v19  ;;  %v17266_v25 = vld [vmem:[#allocation125_spill] sm:$0xff]  ;;  %v17268_v56 = vld [vmem:[#allocation55_spill] sm:$0xff] }
 0xc09   :  { %v5295_v51 = vadd.f32 %v13369_v4, %v5192_v41  ;;  %v5250_v24 = vmul.f32 %v13359_v42, %v5147_v15  ;;  %v5091_v52 = vmul.f32 %v13357_v10, %v17257_v13  ;;  %v5149_v39 = vmul.f32 %v13357_v10, %v17258_v36 }
 0xc0a   :  { %8951 = vmatmul.mubr.msk.f32.gmra.mrb[114].mxu0 %vm3597_vm4, %v5389_v23  ;;  %v5448_v58 = vmax.f32 %v5352_v43, 0.0  ;;  %v5193_v18 = vmul.f32 %v13359_v42, %v5090_v50  ;;  %v5251_v33 = vmul.f32 %v13359_v42, %v5148_v28  ;;  %v5092_v29 = vmul.f32 %v13357_v10, %v17259_v47  ;;  %v17267_v43 = vld [vmem:[#allocation54_spill] sm:$0xff] }
 0xc0b   :  { %8953 = vmatprep.mubr.msk.f32.mxu0 %vm3597_vm4, %v5390_v46  ;;  %v5391_v35 = vmax.f32 %v5295_v51, 0.0  ;;  %9038 = vmatmul.mubr.msk.f32.gmra.mrb[128].mxu1 %vm3597_vm4, %v5447_v17  ;;  %v5353_v27 = vadd.f32 %v13369_v4, %v5250_v24  ;;  %v5194_v61 = vmul.f32 %v13359_v42, %v5091_v52  ;;  %v5252_v20 = vmul.f32 %v13359_v42, %v5149_v39  ;;  %v17269_v24 = vld [vmem:[#allocation56_spill] sm:$0xff] }
 0xc0c   :  { %v5093_v30 = vmul.f32 %v13357_v10, %v17260_v55  ;;  %9040 = vmatprep.mubr.msk.f32.mxu1 %vm3597_vm4, %v5448_v58  ;;  %v5296_v59 = vadd.f32 %v13369_v4, %v5193_v18  ;;  %v5354_v0 = vadd.f32 %v13369_v4, %v5251_v33  ;;  %v5195_v37 = vmul.f32 %v13359_v42, %v5092_v29 }
 0xc0d   :  { %v5094_v5 = vmul.f32 %v13357_v10, %v17261_v2  ;;  %v5449_v22 = vmax.f32 %v5353_v27, 0.0  ;;  %v5297_v54 = vadd.f32 %v13369_v4, %v5194_v61  ;;  %v5355_v8 = vadd.f32 %v13369_v4, %v5252_v20  ;;  %v17271_v27 = vld [vmem:[#allocation58_spill] sm:$0xff] }
 0xc0e   :  { %8954 = vmatmul.mubr.msk.f32.gmra.mrb[116].mxu0 %vm3597_vm4, %v5391_v35  ;;  %v5196_v63 = vmul.f32 %v13359_v42, %v5093_v30  ;;  %v5392_v7 = vmax.f32 %v5296_v59, 0.0  ;;  %v5450_v49 = vmax.f32 %v5354_v0, 0.0  ;;  %v5298_v12 = vadd.f32 %v13369_v4, %v5195_v37  ;;  %v17270_v35 = vld [vmem:[#allocation57_spill] sm:$0xff]  ;;  %v17272_v59 = vld [vmem:[#allocation59_spill] sm:$0xff] }
 0xc0f   :  { %v5197_v62 = vmul.f32 %v13359_v42, %v5094_v5  ;;  %9041 = vmatmul.mubr.msk.f32.gmra.mrb[130].mxu1 %vm3597_vm4, %v5449_v22  ;;  %v5393_v6 = vmax.f32 %v5297_v54, 0.0  ;;  %v5095_v60 = vmul.f32 %v13357_v10, %v17262_v44  ;;  %v5096_v11 = vmul.f32 %v13357_v10, %v17263_v45  ;;  %v17273_v22 = vld [vmem:[#allocation60_spill] sm:$0xff]  ;;  %v17275_v44 = vld [vmem:[#allocation62_spill] sm:$0xff] }
 0xc10   :  { %v5299_v40 = vadd.f32 %v13369_v4, %v5196_v63  ;;  %8956 = vmatprep.mubr.msk.f32.mxu0 %vm3597_vm4, %v5392_v7  ;;  %9043 = vmatprep.mubr.msk.f32.mxu1 %vm3597_vm4, %v5450_v49  ;;  %v5394_v34 = vmax.f32 %v5298_v12, 0.0  ;;  %v5097_v57 = vmul.f32 %v13357_v10, %v17264_v48  ;;  %v5451_v21 = vmax.f32 %v5355_v8, 0.0  ;;  %v17274_v49 = vld [vmem:[#allocation61_spill] sm:$0xff] }
 0xc11   :  { %v5300_v3 = vadd.f32 %v13369_v4, %v5197_v62  ;;  %v5198_v38 = vmul.f32 %v13359_v42, %v5095_v60  ;;  %v5098_v14 = vmul.f32 %v13357_v10, %v17265_v9  ;;  %v5199_v16 = vmul.f32 %v13359_v42, %v5096_v11  ;;  %v17276_v11 = vld [vmem:[#allocation63_spill] sm:$0xff]  ;;  %v17277_v9 = vld [vmem:[#allocation64_spill] sm:$0xff] }
 0xc12   :  { %8957 = vmatmul.mubr.msk.f32.gmra.mrb[118].mxu0 %vm3597_vm4, %v5393_v6  ;;  %v5395_v26 = vmax.f32 %v5299_v40, 0.0  ;;  %v5200_v53 = vmul.f32 %v13359_v42, %v5097_v57  ;;  %v5099_v1 = vmul.f32 %v13357_v10, %v17266_v25  ;;  %v5100_v32 = vmul.f32 %v13357_v10, %v17267_v43 }
 0xc13   :  { %8959 = vmatprep.mubr.msk.f32.mxu0 %vm3597_vm4, %v5394_v34  ;;  %9044 = vmatmul.mubr.msk.f32.gmra.mrb[132].mxu1 %vm3597_vm4, %v5451_v21  ;;  %v5301_v31 = vadd.f32 %v13369_v4, %v5198_v38  ;;  %v5396_v41 = vmax.f32 %v5300_v3, 0.0  ;;  %v5302_v23 = vadd.f32 %v13369_v4, %v5199_v16  ;;  %v5201_v17 = vmul.f32 %v13359_v42, %v5098_v14 }
 0xc14   :  { %v5303_v46 = vadd.f32 %v13369_v4, %v5200_v53  ;;  %v5202_v51 = vmul.f32 %v13359_v42, %v5099_v1  ;;  %v5101_v50 = vmul.f32 %v13357_v10, %v17268_v56  ;;  %v5203_v58 = vmul.f32 %v13359_v42, %v5100_v32  ;;  %v17278_v53 = vld [vmem:[#allocation65_spill] sm:$0xff] }
 0xc15   :  { %v5397_v15 = vmax.f32 %v5301_v31, 0.0  ;;  %v5398_v19 = vmax.f32 %v5302_v23, 0.0  ;;  %v5304_v28 = vadd.f32 %v13369_v4, %v5201_v17  ;;  %v5102_v13 = vmul.f32 %v13357_v10, %v17269_v24 }
 0xc16   :  { %8960 = vmatmul.mubr.msk.f32.gmra.mrb[120].mxu0 %vm3597_vm4, %v5395_v26  ;;  %v5399_v52 = vmax.f32 %v5303_v46, 0.0  ;;  %v5305_v36 = vadd.f32 %v13369_v4, %v5202_v51  ;;  %v5204_v39 = vmul.f32 %v13359_v42, %v5101_v50  ;;  %v5103_v18 = vmul.f32 %v13357_v10, %v17270_v35 }
 0xc17   :  { %8962 = vmatprep.mubr.msk.f32.mxu0 %vm3597_vm4, %v5396_v41  ;;  %v5400_v33 = vmax.f32 %v5304_v28, 0.0  ;;  %v5306_v47 = vadd.f32 %v13369_v4, %v5203_v58  ;;  %v5205_v29 = vmul.f32 %v13359_v42, %v5102_v13  ;;  %v5104_v61 = vmul.f32 %v13357_v10, %v17271_v27 }
 0xc18   :  { %v5401_v20 = vmax.f32 %v5305_v36, 0.0  ;;  %v5307_v55 = vadd.f32 %v13369_v4, %v5204_v39  ;;  %v5206_v30 = vmul.f32 %v13359_v42, %v5103_v18  ;;  %v5105_v0 = vmul.f32 %v13357_v10, %v17272_v59 }
 0xc19   :  { %v5402_v37 = vmax.f32 %v5306_v47, 0.0  ;;  %v5308_v2 = vadd.f32 %v13369_v4, %v5205_v29  ;;  %v5207_v5 = vmul.f32 %v13359_v42, %v5104_v61  ;;  %v5106_v54 = vmul.f32 %v13357_v10, %v17273_v22 }
 0xc1a   :  { %8963 = vmatmul.mubr.msk.f32.gmra.mrb[122].mxu0 %vm3597_vm4, %v5397_v15  ;;  %v5403_v8 = vmax.f32 %v5307_v55, 0.0  ;;  %v5309_v63 = vadd.f32 %v13369_v4, %v5206_v30  ;;  %v5208_v7 = vmul.f32 %v13359_v42, %v5105_v0  ;;  %v5107_v12 = vmul.f32 %v13357_v10, %v17274_v49 }
 0xc1b   :  { %8965 = vmatprep.mubr.msk.f32.mxu0 %vm3597_vm4, %v5398_v19  ;;  %v5404_v62 = vmax.f32 %v5308_v2, 0.0  ;;  %v5310_v6 = vadd.f32 %v13369_v4, %v5207_v5  ;;  %v5209_v40 = vmul.f32 %v13359_v42, %v5106_v54  ;;  %v5108_v60 = vmul.f32 %v13357_v10, %v17275_v44  ;;  %v13843_v19 = vld [vmem:[#allocation35] ss:$0 sm:$0xff] }
 0xc1c   :  { %v5405_v34 = vmax.f32 %v5309_v63, 0.0  ;;  %v5311_v3 = vadd.f32 %v13369_v4, %v5208_v7  ;;  %v5210_v45 = vmul.f32 %v13359_v42, %v5107_v12  ;;  %v5109_v48 = vmul.f32 %v13357_v10, %v17276_v11 }
 0xc1d   :  { %v5406_v57 = vmax.f32 %v5310_v6, 0.0  ;;  %v5312_v21 = vadd.f32 %v13369_v4, %v5209_v40  ;;  %v5211_v38 = vmul.f32 %v13359_v42, %v5108_v60  ;;  %v5110_v14 = vmul.f32 %v13357_v10, %v17277_v9 }
 0xc1e   :  { %8966 = vmatmul.mubr.msk.f32.gmra.mrb[124].mxu0 %vm3597_vm4, %v5399_v52  ;;  %v5407_v16 = vmax.f32 %v5311_v3, 0.0  ;;  %v5313_v26 = vadd.f32 %v13369_v4, %v5210_v45  ;;  %v5212_v31 = vmul.f32 %v13359_v42, %v5109_v48  ;;  %v5111_v25 = vmul.f32 %v13357_v10, %v17278_v53 }
 0xc1f   :  { %8968 = vmatprep.mubr.msk.f32.mxu0 %vm3597_vm4, %v5400_v33  ;;  %v5408_v1 = vmax.f32 %v5312_v21, 0.0  ;;  %v5314_v41 = vadd.f32 %v13369_v4, %v5211_v38  ;;  %v5213_v23 = vmul.f32 %v13359_v42, %v5110_v14 }
 0xc20   :  { %v5409_v17 = vmax.f32 %v5313_v26, 0.0  ;;  %v5315_v43 = vadd.f32 %v13369_v4, %v5212_v31  ;;  %v5214_v32 = vmul.f32 %v13359_v42, %v5111_v25 }
 0xc21   :  { %v5410_v15 = vmax.f32 %v5314_v41, 0.0  ;;  %v5316_v46 = vadd.f32 %v13369_v4, %v5213_v23 }
 0xc22   :  { %8969 = vmatmul.mubr.msk.f32.gmra.mrb[126].mxu0 %vm3597_vm4, %v5401_v20  ;;  %v5411_v10 = vmax.f32 %v5315_v43, 0.0  ;;  %v5317_v51 = vadd.f32 %v13369_v4, %v5214_v32 }
 0xc23   :  { %8971 = vmatprep.mubr.msk.f32.mxu0 %vm3597_vm4, %v5402_v37  ;;  %v5412_v56 = vmax.f32 %v5316_v46, 0.0 }
 0xc24   :  { %v5413_v50 = vmax.f32 %v5317_v51, 0.0 }
 0xc26   :  { %8972 = vmatmul.mubr.msk.f32.gmra.mrb[128].mxu0 %vm3597_vm4, %v5403_v8 }
 0xc27   :  { %8974 = vmatprep.mubr.msk.f32.mxu0 %vm3597_vm4, %v5404_v62 }
 0xc2a   :  { %8975 = vmatmul.mubr.msk.f32.gmra.mrb[130].mxu0 %vm3597_vm4, %v5405_v34 }
 0xc2b   :  { %8977 = vmatprep.mubr.msk.f32.mxu0 %vm3597_vm4, %v5406_v57 }
 0xc2e   :  { %8978 = vmatmul.mubr.msk.f32.gmra.mrb[132].mxu0 %vm3597_vm4, %v5407_v16 }
 0xc2f   :  { %8980 = vmatprep.mubr.msk.f32.mxu0 %vm3597_vm4, %v5408_v1 }
 0xc32   :  { %8981 = vmatmul.mubr.msk.f32.gmra.mrb[134].mxu0 %vm3597_vm4, %v5409_v17 }
 0xc33   :  { %8983 = vmatprep.mubr.msk.f32.mxu0 %vm3597_vm4, %v5410_v15 }
 0xc36   :  { %8984 = vmatmul.mubr.msk.f32.gmra.mrb[136].mxu0 %vm3597_vm4, %v5411_v10 }
 0xc37   :  { %8986 = vmatprep.mubr.msk.f32.mxu0 %vm3597_vm4, %v5412_v56 }
 0xc3a   :  { %8987 = vmatmul.mubr.msk.f32.gmra.mrb[138].mxu0 %vm3597_vm4, %v5413_v50 }
 0xc9d   :  { %v8904_v42 = vpop.f32.mrb[82].mxu0  ;;  %v13845_v28 = vpop.f32.mrb[96].mxu1 }
 0xc9e   :  { %v13848_v58 = vadd.f32 %v8904_v42, %v13843_v19  ;;  %v5823_v24 = vpop.f32.mrb[83].mxu0  ;;  %v13850_v13 = vpop.f32.mrb[97].mxu1 }
 0xc9f   :  { %v13853_v4 = vadd.f32 %v13843_v19, %v5823_v24 }
 0xca0   :  { %v6304_v52 = vsel %vm6302_vm5, %v13848_v58, 0.0 }
 0xca1   :  { %v6303_v36 = vsel %vm6302_vm5, %v13853_v4, 0.0  ;;  %v8907_v39 = vpop.f32.mrb[84].mxu0  ;;  %v13859_v35 = vpop.f32.mrb[98].mxu1 }
 0xca2   :  { %v5833_v18 = vpop.f32.mrb[85].mxu0  ;;  %v13861_v33 = vpop.f32.mrb[99].mxu1  ;;  %v13864_v47 = vadd.f32 %v8907_v39, %v13843_v19  ;;  %v6305_v27 = vadd.f32 %v6304_v52, %v6303_v36 }
 0xca3   :  { %v13867_v29 = vadd.f32 %v13843_v19, %v5833_v18 }
 0xca4   :  { %17279 = vst [vmem:[#allocation82_spill] sm:$0xff] %v13864_v47  ;;  %v6308_v37 = vsel %vm6302_vm5, %v13864_v47, 0.0 }
 0xca5   :  { %v6306_v61 = vsel %vm6302_vm5, %v13867_v29, 0.0  ;;  %v8910_v20 = vpop.f32.mrb[86].mxu0  ;;  %v13871_v55 = vpop.f32.mrb[100].mxu1 }
 0xca6   :  { %v6307_v30 = vadd.f32 %v6306_v61, %v6305_v27  ;;  %v5843_v59 = vpop.f32.mrb[87].mxu0  ;;  %v13873_v0 = vpop.f32.mrb[101].mxu1  ;;  %v13878_v2 = vadd.f32 %v8910_v20, %v13843_v19 }
 0xca7   :  { %v13881_v5 = vadd.f32 %v13843_v19, %v5843_v59 }
 0xca8   :  { %17280 = vst [vmem:[#allocation83_spill] sm:$0xff] %v13878_v2  ;;  %v6309_v22 = vadd.f32 %v6308_v37, %v6307_v30  ;;  %v6312_v62 = vsel %vm6302_vm5, %v13878_v2, 0.0 }
 0xca9   :  { %17281 = vst [vmem:[#allocation84_spill] sm:$0xff] %v13881_v5  ;;  %v6310_v54 = vsel %vm6302_vm5, %v13881_v5, 0.0  ;;  %v8913_v8 = vpop.f32.mrb[88].mxu0  ;;  %v13885_v63 = vpop.f32.mrb[102].mxu1 }
 0xcaa   :  { %v6311_v7 = vadd.f32 %v6310_v54, %v6309_v22  ;;  %v5853_v49 = vpop.f32.mrb[89].mxu0  ;;  %v13887_v12 = vpop.f32.mrb[103].mxu1  ;;  %v13892_v6 = vadd.f32 %v8913_v8, %v13843_v19 }
 0xcab   :  { %v13895_v40 = vadd.f32 %v13843_v19, %v5853_v49 }
 0xcac   :  { %17282 = vst [vmem:[#allocation85_spill] sm:$0xff] %v13892_v6  ;;  %v6313_v44 = vadd.f32 %v6312_v62, %v6311_v7  ;;  %v6316_v57 = vsel %vm6302_vm5, %v13892_v6, 0.0 }
 0xcad   :  { %17283 = vst [vmem:[#allocation86_spill] sm:$0xff] %v13895_v40  ;;  %v6314_v60 = vsel %vm6302_vm5, %v13895_v40, 0.0  ;;  %v8916_v34 = vpop.f32.mrb[90].mxu0  ;;  %v13899_v3 = vpop.f32.mrb[104].mxu1 }
 0xcae   :  { %v6315_v45 = vadd.f32 %v6314_v60, %v6313_v44  ;;  %v5863_v11 = vpop.f32.mrb[91].mxu0  ;;  %v13901_v48 = vpop.f32.mrb[105].mxu1  ;;  %v13906_v21 = vadd.f32 %v8916_v34, %v13843_v19 }
 0xcaf   :  { %v13909_v38 = vadd.f32 %v13843_v19, %v5863_v11 }
 0xcb0   :  { %17284 = vst [vmem:[#allocation87_spill] sm:$0xff] %v13906_v21  ;;  %v6317_v9 = vadd.f32 %v6316_v57, %v6315_v45  ;;  %v6320_v53 = vsel %vm6302_vm5, %v13906_v21, 0.0 }
 0xcb1   :  { %17285 = vst [vmem:[#allocation88_spill] sm:$0xff] %v13909_v38  ;;  %v6318_v14 = vsel %vm6302_vm5, %v13909_v38, 0.0  ;;  %v8919_v16 = vpop.f32.mrb[92].mxu0  ;;  %v13918_v1 = vpop.f32.mrb[106].mxu1 }
 0xcb2   :  { %v6319_v26 = vadd.f32 %v6318_v14, %v6317_v9  ;;  %v5873_v31 = vpop.f32.mrb[93].mxu0  ;;  %v13916_v25 = vadd.f32 %v8919_v16, %v13843_v19  ;;  %v13923_v17 = vpop.f32.mrb[107].mxu1  ;;  %v6501_v16 = vld [vmem:[#allocation40] sm:$0xff] }
 0xcb3   :  { %v13921_v41 = vadd.f32 %v13843_v19, %v5873_v31  ;;  %v6503_v31 = vld [vmem:[#allocation40 + $0x10] sm:$0xff] }
 0xcb4   :  { %17286 = vst [vmem:[#allocation89_spill] sm:$0xff] %v13916_v25  ;;  %v6321_v23 = vadd.f32 %v6320_v53, %v6319_v26  ;;  %v6324_v10 = vsel %vm6302_vm5, %v13916_v25, 0.0  ;;  %v6502_v26 = vld [vmem:[#allocation40 + $0x8] sm:$0xff] }
 0xcb5   :  { %17287 = vst [vmem:[#allocation90_spill] sm:$0xff] %v13921_v41  ;;  %v6322_v43 = vsel %vm6302_vm5, %v13921_v41, 0.0  ;;  %v8922_v32 = vpop.f32.mrb[94].mxu0  ;;  %v13932_v56 = vpop.f32.mrb[108].mxu1 }
 0xcb6   :  { %v6323_v15 = vadd.f32 %v6322_v43, %v6321_v23  ;;  %v5883_v46 = vpop.f32.mrb[95].mxu0  ;;  %v13930_v51 = vadd.f32 %v8922_v32, %v13843_v19  ;;  %v13937_v24 = vpop.f32.mrb[109].mxu1 }
 0xcb7   :  { %v13935_v50 = vadd.f32 %v13843_v19, %v5883_v46  ;;  %v13980_v46 = vpack.c.bf16 %v6502_v26, %v6501_v16 }
 0xcb8   :  { %17288 = vst [vmem:[#allocation91_spill] sm:$0xff] %v13930_v51  ;;  %v6325_v42 = vadd.f32 %v6324_v10, %v6323_v15  ;;  %v6328_v27 = vsel %vm6302_vm5, %v13930_v51, 0.0  ;;  %v16939_v15 = vmov 0.0|0.0   ;;  %v6504_v10 = vld [vmem:[#allocation40 + $0x18] sm:$0xff] }
 0xcb9   :  { %17289 = vst [vmem:[#allocation92_spill] sm:$0xff] %v13935_v50  ;;  %v6326_v52 = vsel %vm6302_vm5, %v13935_v50, 0.0  ;;  %v8925_v36 = vpop.f32.mrb[96].mxu0  ;;  %9568 = vmatprep.subr.bf16.mxu1 %v16939_v15 }
 0xcba   :  { %v6327_v39 = vadd.f32 %v6326_v52, %v6325_v42  ;;  %v5893_v18 = vpop.f32.mrb[97].mxu0  ;;  %v13944_v61 = vadd.f32 %v8925_v36, %v13843_v19  ;;  %v13946_v20 = vpop.f32.mrb[110].mxu1  ;;  %9570 = vmatpush3.bf16.msra.mxu1 %v13980_v46 }
 0xcbb   :  { %v13949_v30 = vadd.f32 %v13843_v19, %v5893_v18  ;;  %v13951_v37 = vpop.f32.mrb[111].mxu1  ;;  %v13987_v18 = vpack.c.bf16 %v6504_v10, %v6503_v31  ;;  %9571 = vmatprep.subr.bf16.mxu1 %v16939_v15  ;;  %v6507_v10 = vld [vmem:[#allocation40 + $0x30] sm:$0xff] }
 0xcbc   :  { %17290 = vst [vmem:[#allocation93_spill] sm:$0xff] %v13944_v61  ;;  %v6329_v59 = vadd.f32 %v6328_v27, %v6327_v39  ;;  %v6332_v49 = vsel %vm6302_vm5, %v13944_v61, 0.0 }
 0xcbd   :  { %17291 = vst [vmem:[#allocation94_spill] sm:$0xff] %v13949_v30  ;;  %v6330_v22 = vsel %vm6302_vm5, %v13949_v30, 0.0  ;;  %v8928_v54 = vpop.f32.mrb[98].mxu0 }
 0xcbe   :  { %v6331_v8 = vadd.f32 %v6330_v22, %v6329_v59  ;;  %v5903_v7 = vpop.f32.mrb[99].mxu0  ;;  %v13958_v62 = vadd.f32 %v8928_v54, %v13843_v19  ;;  %v13960_v44 = vpop.f32.mrb[112].mxu1  ;;  %v6505_v22 = vld [vmem:[#allocation40 + $0x20] sm:$0xff]  ;;  %v6506_v54 = vld [vmem:[#allocation40 + $0x28] sm:$0xff]  ;;  %9573 = vmatpush3.bf16.msra.mxu1 %v13987_v18 }
 0xcbf   :  { %v13963_v60 = vadd.f32 %v13843_v19, %v5903_v7  ;;  %v13965_v45 = vpop.f32.mrb[113].mxu1  ;;  %v14007_v26 = vpack.c.bf16 %v6506_v54, %v6505_v22  ;;  %9574 = vmatprep.subr.bf16.mxu1 %v16939_v15 }
 0xcc0   :  { %17292 = vst [vmem:[#allocation95_spill] sm:$0xff] %v13958_v62  ;;  %v6333_v34 = vadd.f32 %v6332_v49, %v6331_v8  ;;  %v6336_v53 = vsel %vm6302_vm5, %v13958_v62, 0.0 }
 0xcc1   :  { %17293 = vst [vmem:[#allocation96_spill] sm:$0xff] %v13963_v60  ;;  %v6334_v11 = vsel %vm6302_vm5, %v13963_v60, 0.0  ;;  %v8931_v57 = vpop.f32.mrb[100].mxu0 }
 0xcc2   :  { %v6335_v9 = vadd.f32 %v6334_v11, %v6333_v34  ;;  %v5913_v14 = vpop.f32.mrb[101].mxu0  ;;  %v13972_v23 = vadd.f32 %v8931_v57, %v13843_v19  ;;  %v13974_v43 = vpop.f32.mrb[114].mxu1  ;;  %9576 = vmatpush3.bf16.msra.mxu1 %v14007_v26 }
 0xcc3   :  { %v13977_v32 = vadd.f32 %v13843_v19, %v5913_v14  ;;  %v13982_v52 = vpop.f32.mrb[115].mxu1 }
 0xcc4   :  { %17294 = vst [vmem:[#allocation97_spill] sm:$0xff] %v13972_v23  ;;  %v6337_v42 = vadd.f32 %v6336_v53, %v6335_v9  ;;  %v6340_v8 = vsel %vm6302_vm5, %v13972_v23, 0.0  ;;  %v17298_v9 = vmov 0.0  }
 0xcc5   :  { %17295 = vst [vmem:[#allocation98_spill] sm:$0xff] %v13977_v32  ;;  %v6338_v36 = vsel %vm6302_vm5, %v13977_v32, 0.0  ;;  %v8934_v39 = vpop.f32.mrb[102].mxu0  ;;  %9062 = vmatprep.mubr.msk.f32.mxu1 %vm10215_vm6, %v17298_v9 }
 0xcc6   :  { %v6339_v27 = vadd.f32 %v6338_v36, %v6337_v42  ;;  %v5923_v59 = vpop.f32.mrb[103].mxu0  ;;  %v13993_v7 = vadd.f32 %v8934_v39, %v13843_v19  ;;  %v13995_v49 = vpop.f32.mrb[116].mxu1  ;;  %v6508_v42 = vld [vmem:[#allocation40 + $0x38] sm:$0xf] }
 0xcc7   :  { %v13998_v34 = vadd.f32 %v13843_v19, %v5923_v59  ;;  %v14000_v57 = vpop.f32.mrb[117].mxu1 }
 0xcc8   :  { %17296 = vst [vmem:[#allocation99_spill] sm:$0xff] %v13993_v7  ;;  %v6341_v11 = vadd.f32 %v6340_v8, %v6339_v27  ;;  %v6344_v36 = vsel %vm6302_vm5, %v13993_v7, 0.0 }
 0xcc9   :  { %17297 = vst [vmem:[#allocation100_spill] sm:$0xff] %v13998_v34  ;;  %v6342_v14 = vsel %vm6302_vm5, %v13998_v34, 0.0  ;;  %v8937_v16 = vpop.f32.mrb[104].mxu0 }
 0xcca   :  { %v6343_v31 = vadd.f32 %v6342_v14, %v6341_v11  ;;  %v5933_v53 = vpop.f32.mrb[105].mxu0  ;;  %v14013_v39 = vadd.f32 %v8937_v16, %v13843_v19  ;;  %v14015_v27 = vpop.f32.mrb[118].mxu1  ;;  %v14025_v14 = vpack.c.bf16 %v6508_v42, %v6507_v10  ;;  %v17301_v16 = vmov 0.0|0.0  }
 0xccb   :  { %v14018_v59 = vadd.f32 %v13843_v19, %v5933_v53  ;;  %v14020_v54 = vpop.f32.mrb[119].mxu1  ;;  %9577 = vmatprep.subr.bf16.mxu1 %v17301_v16 }
 0xccc   :  { %17299 = vst [vmem:[#allocation101_spill] sm:$0xff] %v14013_v39  ;;  %v6345_v22 = vadd.f32 %v6344_v36, %v6343_v31  ;;  %v6348_v31 = vsel %vm6302_vm5, %v14013_v39, 0.0  ;;  %9580 = vmatpush3.bf16.msk.msra.mxu1 %vm14029_vm9, %v14025_v14 }
 0xccd   :  { %17300 = vst [vmem:[#allocation102_spill] sm:$0xff] %v14018_v59  ;;  %v6346_v8 = vsel %vm6302_vm5, %v14018_v59, 0.0  ;;  %v8940_v11 = vpop.f32.mrb[106].mxu0  ;;  %9581 = vmatprep.subr.bf16.mxu1 %v17301_v16 }
 0xcce   :  { %v6347_v15 = vadd.f32 %v6346_v8, %v6345_v22  ;;  %v5943_v7 = vpop.f32.mrb[107].mxu0  ;;  %v14036_v36 = vadd.f32 %v8940_v11, %v13843_v19  ;;  %v14038_v59 = vpop.f32.mrb[120].mxu1 }
 0xccf   :  { %v14041_v10 = vadd.f32 %v13843_v19, %v5943_v7  ;;  %v14043_v22 = vpop.f32.mrb[121].mxu1 }
 0xcd0   :  { %17304 = vst [vmem:[#allocation66_spill] sm:$0xff] %v14036_v36  ;;  %v6349_v42 = vadd.f32 %v6348_v31, %v6347_v15  ;;  %v6352_v11 = vsel %vm6302_vm5, %v14036_v36, 0.0 }
 0xcd1   :  { %17305 = vst [vmem:[#allocation103_spill] sm:$0xff] %v14041_v10  ;;  %v6350_v8 = vsel %vm6302_vm5, %v14041_v10, 0.0  ;;  %v8943_v34 = vpop.f32.mrb[108].mxu0 }
 0xcd2   :  { %v6351_v39 = vadd.f32 %v6350_v8, %v6349_v42  ;;  %v5953_v23 = vpop.f32.mrb[109].mxu0  ;;  %v14054_v7 = vadd.f32 %v8943_v34, %v13843_v19  ;;  %v14056_v15 = vpop.f32.mrb[122].mxu1 }
 0xcd3   :  { %v14059_v31 = vadd.f32 %v13843_v19, %v5953_v23  ;;  %v14061_v32 = vpop.f32.mrb[123].mxu1 }
 0xcd4   :  { %17306 = vst [vmem:[#allocation67_spill] sm:$0xff] %v14054_v7  ;;  %v6353_v10 = vadd.f32 %v6352_v11, %v6351_v39  ;;  %v6356_v36 = vsel %vm6302_vm5, %v14054_v7, 0.0 }
 0xcd5   :  { %17307 = vst [vmem:[#allocation104_spill] sm:$0xff] %v14059_v31  ;;  %v6354_v42 = vsel %vm6302_vm5, %v14059_v31, 0.0  ;;  %v8946_v8 = vpop.f32.mrb[110].mxu0 }
 0xcd6   :  { %v6355_v62 = vadd.f32 %v6354_v42, %v6353_v10  ;;  %v5963_v60 = vpop.f32.mrb[111].mxu0  ;;  %v14068_v34 = vadd.f32 %v8946_v8, %v13843_v19  ;;  %v14070_v61 = vpop.f32.mrb[124].mxu1 }
 0xcd7   :  { %v14073_v23 = vadd.f32 %v13843_v19, %v5963_v60  ;;  %v14075_v11 = vpop.f32.mrb[125].mxu1 }
 0xcd8   :  { %17308 = vst [vmem:[#allocation68_spill] sm:$0xff] %v14068_v34  ;;  %v6357_v39 = vadd.f32 %v6356_v36, %v6355_v62  ;;  %v6360_v7 = vsel %vm6302_vm5, %v14068_v34, 0.0 }
 0xcd9   :  { %17309 = vst [vmem:[#allocation105_spill] sm:$0xff] %v14073_v23  ;;  %v6358_v31 = vsel %vm6302_vm5, %v14073_v23, 0.0  ;;  %v8949_v30 = vpop.f32.mrb[112].mxu0 }
 0xcda   :  { %v6359_v10 = vadd.f32 %v6358_v31, %v6357_v39  ;;  %v5973_v42 = vpop.f32.mrb[113].mxu0  ;;  %v14082_v8 = vadd.f32 %v8949_v30, %v13843_v19  ;;  %v14084_v51 = vpop.f32.mrb[126].mxu1 }
 0xcdb   :  { %v14087_v60 = vadd.f32 %v13843_v19, %v5973_v42  ;;  %v14089_v36 = vpop.f32.mrb[127].mxu1 }
 0xcdc   :  { %17310 = vst [vmem:[#allocation69_spill] sm:$0xff] %v14082_v8  ;;  %v6361_v62 = vadd.f32 %v6360_v7, %v6359_v10  ;;  %v6364_v34 = vsel %vm6302_vm5, %v14082_v8, 0.0 }
 0xcdd   :  { %17311 = vst [vmem:[#allocation106_spill] sm:$0xff] %v14087_v60  ;;  %v6362_v23 = vsel %vm6302_vm5, %v14087_v60, 0.0  ;;  %v8952_v50 = vpop.f32.mrb[114].mxu0 }
 0xcde   :  { %v6363_v31 = vadd.f32 %v6362_v23, %v6361_v62  ;;  %v5983_v39 = vpop.f32.mrb[115].mxu0  ;;  %v14096_v30 = vadd.f32 %v8952_v50, %v13843_v19  ;;  %v14098_v25 = vpop.f32.mrb[128].mxu1 }
 0xcdf   :  { %v14101_v42 = vadd.f32 %v13843_v19, %v5983_v39  ;;  %v14103_v10 = vpop.f32.mrb[129].mxu1 }
 0xce0   :  { %17312 = vst [vmem:[#allocation70_spill] sm:$0xff] %v14096_v30  ;;  %v6365_v7 = vadd.f32 %v6364_v34, %v6363_v31  ;;  %v6368_v8 = vsel %vm6302_vm5, %v14096_v30, 0.0 }
 0xce1   :  { %17313 = vst [vmem:[#allocation107_spill] sm:$0xff] %v14101_v42  ;;  %v6366_v60 = vsel %vm6302_vm5, %v14101_v42, 0.0  ;;  %v8955_v41 = vpop.f32.mrb[116].mxu0 }
 0xce2   :  { %v6367_v23 = vadd.f32 %v6366_v60, %v6365_v7  ;;  %v5993_v62 = vpop.f32.mrb[117].mxu0  ;;  %v14110_v50 = vadd.f32 %v8955_v41, %v13843_v19  ;;  %v14112_v21 = vpop.f32.mrb[130].mxu1 }
 0xce3   :  { %v14115_v39 = vadd.f32 %v13843_v19, %v5993_v62  ;;  %v14117_v31 = vpop.f32.mrb[131].mxu1 }
 0xce4   :  { %17314 = vst [vmem:[#allocation71_spill] sm:$0xff] %v14110_v50  ;;  %v6369_v34 = vadd.f32 %v6368_v8, %v6367_v23  ;;  %v6372_v30 = vsel %vm6302_vm5, %v14110_v50, 0.0 }
 0xce5   :  { %17315 = vst [vmem:[#allocation108_spill] sm:$0xff] %v14115_v39  ;;  %v6370_v42 = vsel %vm6302_vm5, %v14115_v39, 0.0  ;;  %v8958_v38 = vpop.f32.mrb[118].mxu0 }
 0xce6   :  { %v6371_v60 = vadd.f32 %v6370_v42, %v6369_v34  ;;  %v6003_v7 = vpop.f32.mrb[119].mxu0  ;;  %v14124_v41 = vadd.f32 %v8958_v38, %v13843_v19  ;;  %v14126_v6 = vpop.f32.mrb[132].mxu1 }
 0xce7   :  { %v14129_v62 = vadd.f32 %v13843_v19, %v6003_v7  ;;  %v14131_v23 = vpop.f32.mrb[133].mxu1 }
 0xce8   :  { %17316 = vst [vmem:[#allocation72_spill] sm:$0xff] %v14124_v41  ;;  %v6373_v8 = vadd.f32 %v6372_v30, %v6371_v60  ;;  %v6376_v50 = vsel %vm6302_vm5, %v14124_v41, 0.0 }
 0xce9   :  { %17317 = vst [vmem:[#allocation109_spill] sm:$0xff] %v14129_v62  ;;  %v6374_v39 = vsel %vm6302_vm5, %v14129_v62, 0.0  ;;  %v8961_v40 = vpop.f32.mrb[120].mxu0 }
 0xcea   :  { %v6375_v42 = vadd.f32 %v6374_v39, %v6373_v8  ;;  %v6013_v34 = vpop.f32.mrb[121].mxu0  ;;  %v14138_v38 = vadd.f32 %v8961_v40, %v13843_v19 }
 0xceb   :  { %v14141_v2 = vadd.f32 %v13843_v19, %v6013_v34 }
 0xcec   :  { %17318 = vst [vmem:[#allocation73_spill] sm:$0xff] %v14138_v38  ;;  %v6377_v7 = vadd.f32 %v6376_v50, %v6375_v42  ;;  %v6380_v39 = vsel %vm6302_vm5, %v14138_v38, 0.0 }
 0xced   :  { %17319 = vst [vmem:[#allocation110_spill] sm:$0xff] %v14141_v2  ;;  %v6378_v30 = vsel %vm6302_vm5, %v14141_v2, 0.0  ;;  %v8964_v60 = vpop.f32.mrb[122].mxu0 }
 0xcee   :  { %v6379_v5 = vadd.f32 %v6378_v30, %v6377_v7  ;;  %v6023_v47 = vpop.f32.mrb[123].mxu0  ;;  %v14148_v8 = vadd.f32 %v8964_v60, %v13843_v19 }
 0xcef   :  { %v14151_v41 = vadd.f32 %v13843_v19, %v6023_v47 }
 0xcf0   :  { %17320 = vst [vmem:[#allocation74_spill] sm:$0xff] %v14148_v8  ;;  %v6381_v40 = vadd.f32 %v6380_v39, %v6379_v5  ;;  %v6384_v7 = vsel %vm6302_vm5, %v14148_v8, 0.0 }
 0xcf1   :  { %17321 = vst [vmem:[#allocation111_spill] sm:$0xff] %v14151_v41  ;;  %v6382_v34 = vsel %vm6302_vm5, %v14151_v41, 0.0  ;;  %v8967_v50 = vpop.f32.mrb[124].mxu0 }
 0xcf2   :  { %v6383_v42 = vadd.f32 %v6382_v34, %v6381_v40  ;;  %v6033_v62 = vpop.f32.mrb[125].mxu0  ;;  %v14158_v30 = vadd.f32 %v8967_v50, %v13843_v19 }
 0xcf3   :  { %v14161_v38 = vadd.f32 %v13843_v19, %v6033_v62 }
 0xcf4   :  { %17322 = vst [vmem:[#allocation75_spill] sm:$0xff] %v14158_v30  ;;  %v6385_v60 = vadd.f32 %v6384_v7, %v6383_v42  ;;  %v6388_v40 = vsel %vm6302_vm5, %v14158_v30, 0.0 }
 0xcf5   :  { %17323 = vst [vmem:[#allocation112_spill] sm:$0xff] %v14161_v38  ;;  %v6386_v47 = vsel %vm6302_vm5, %v14161_v38, 0.0  ;;  %v8970_v5 = vpop.f32.mrb[126].mxu0 }
 0xcf6   :  { %v6387_v39 = vadd.f32 %v6386_v47, %v6385_v60  ;;  %v6043_v2 = vpop.f32.mrb[127].mxu0  ;;  %v14168_v34 = vadd.f32 %v8970_v5, %v13843_v19 }
 0xcf7   :  { %v14171_v8 = vadd.f32 %v13843_v19, %v6043_v2 }
 0xcf8   :  { %17324 = vst [vmem:[#allocation76_spill] sm:$0xff] %v14168_v34  ;;  %v6389_v50 = vadd.f32 %v6388_v40, %v6387_v39  ;;  %v6392_v60 = vsel %vm6302_vm5, %v14168_v34, 0.0 }
 0xcf9   :  { %17325 = vst [vmem:[#allocation113_spill] sm:$0xff] %v14171_v8  ;;  %v6390_v62 = vsel %vm6302_vm5, %v14171_v8, 0.0  ;;  %v8973_v42 = vpop.f32.mrb[128].mxu0 }
 0xcfa   :  { %v6391_v7 = vadd.f32 %v6390_v62, %v6389_v50  ;;  %v6053_v41 = vpop.f32.mrb[129].mxu0  ;;  %v14178_v47 = vadd.f32 %v8973_v42, %v13843_v19 }
 0xcfb   :  { %v14181_v30 = vadd.f32 %v13843_v19, %v6053_v41 }
 0xcfc   :  { %17326 = vst [vmem:[#allocation77_spill] sm:$0xff] %v14178_v47  ;;  %v6393_v5 = vadd.f32 %v6392_v60, %v6391_v7  ;;  %v6396_v50 = vsel %vm6302_vm5, %v14178_v47, 0.0 }
 0xcfd   :  { %17327 = vst [vmem:[#allocation114_spill] sm:$0xff] %v14181_v30  ;;  %v6394_v2 = vsel %vm6302_vm5, %v14181_v30, 0.0  ;;  %v8976_v39 = vpop.f32.mrb[130].mxu0 }
 0xcfe   :  { %v6395_v40 = vadd.f32 %v6394_v2, %v6393_v5  ;;  %v6063_v38 = vpop.f32.mrb[131].mxu0  ;;  %v14188_v62 = vadd.f32 %v8976_v39, %v13843_v19 }
 0xcff   :  { %v14191_v34 = vadd.f32 %v13843_v19, %v6063_v38 }
 0xd00   :  { %17328 = vst [vmem:[#allocation78_spill] sm:$0xff] %v14188_v62  ;;  %v6397_v42 = vadd.f32 %v6396_v50, %v6395_v40  ;;  %v6400_v5 = vsel %vm6302_vm5, %v14188_v62, 0.0 }
 0xd01   :  { %17329 = vst [vmem:[#allocation115_spill] sm:$0xff] %v14191_v34  ;;  %v6398_v41 = vsel %vm6302_vm5, %v14191_v34, 0.0  ;;  %v8979_v7 = vpop.f32.mrb[132].mxu0 }
 0xd02   :  { %v6399_v60 = vadd.f32 %v6398_v41, %v6397_v42  ;;  %v6073_v8 = vpop.f32.mrb[133].mxu0  ;;  %v14198_v2 = vadd.f32 %v8979_v7, %v13843_v19 }
 0xd03   :  { %v14201_v47 = vadd.f32 %v13843_v19, %v6073_v8 }
 0xd04   :  { %17330 = vst [vmem:[#allocation79_spill] sm:$0xff] %v14198_v2  ;;  %v6401_v39 = vadd.f32 %v6400_v5, %v6399_v60  ;;  %v6404_v42 = vsel %vm6302_vm5, %v14198_v2, 0.0 }
 0xd05   :  { %17331 = vst [vmem:[#allocation116_spill] sm:$0xff] %v14201_v47  ;;  %v6402_v38 = vsel %vm6302_vm5, %v14201_v47, 0.0  ;;  %v8982_v40 = vpop.f32.mrb[134].mxu0 }
 0xd06   :  { %v6403_v50 = vadd.f32 %v6402_v38, %v6401_v39  ;;  %v6083_v30 = vpop.f32.mrb[135].mxu0  ;;  %v14208_v41 = vadd.f32 %v8982_v40, %v13843_v19 }
 0xd07   :  { %v14211_v62 = vadd.f32 %v13843_v19, %v6083_v30 }
 0xd08   :  { %17332 = vst [vmem:[#allocation80_spill] sm:$0xff] %v14208_v41  ;;  %v6405_v7 = vadd.f32 %v6404_v42, %v6403_v50  ;;  %v6408_v39 = vsel %vm6302_vm5, %v14208_v41, 0.0 }
 0xd09   :  { %v6406_v8 = vsel %vm6302_vm5, %v14211_v62, 0.0  ;;  %v8985_v60 = vpop.f32.mrb[136].mxu0 }
 0xd0a   :  { %v6407_v5 = vadd.f32 %v6406_v8, %v6405_v7  ;;  %v6093_v34 = vpop.f32.mrb[137].mxu0  ;;  %v14218_v38 = vadd.f32 %v8985_v60, %v13843_v19 }
 0xd0b   :  { %v14221_v2 = vadd.f32 %v13843_v19, %v6093_v34  ;;  %v14235_v34 = vadd.f32 %v13843_v19, %v13850_v13 }
 0xd0c   :  { %v6409_v40 = vadd.f32 %v6408_v39, %v6407_v5  ;;  %v6412_v7 = vsel %vm6302_vm5, %v14218_v38, 0.0 }
 0xd0d   :  { %v6410_v30 = vsel %vm6302_vm5, %v14221_v2, 0.0  ;;  %v8988_v50 = vpop.f32.mrb[138].mxu0 }
 0xd0e   :  { %v6411_v42 = vadd.f32 %v6410_v30, %v6409_v40  ;;  %v6103_v47 = vpop.f32.mrb[139].mxu0  ;;  %v14228_v8 = vadd.f32 %v8988_v50, %v13843_v19  ;;  %v14241_v40 = vadd.f32 %v13845_v28, %v13843_v19 }
 0xd0f   :  { %v14231_v41 = vadd.f32 %v13843_v19, %v6103_v47  ;;  %v6418_v47 = vsel %vm6302_vm5, %v14235_v34, 0.0 }
 0xd10   :  { %v6413_v60 = vadd.f32 %v6412_v7, %v6411_v42  ;;  %v6416_v30 = vsel %vm6302_vm5, %v14228_v8, 0.0  ;;  %v14249_v42 = vadd.f32 %v13843_v19, %v13861_v33  ;;  %v6420_v7 = vsel %vm6302_vm5, %v14241_v40, 0.0 }
 0xd11   :  { %v6414_v5 = vsel %vm6302_vm5, %v14231_v41, 0.0 }
 0xd12   :  { %v6415_v39 = vadd.f32 %v6414_v5, %v6413_v60  ;;  %v14255_v60 = vadd.f32 %v13859_v35, %v13843_v19  ;;  %v6422_v5 = vsel %vm6302_vm5, %v14249_v42, 0.0 }
 0xd14   :  { %v6417_v50 = vadd.f32 %v6416_v30, %v6415_v39  ;;  %v14261_v39 = vadd.f32 %v13843_v19, %v13873_v0  ;;  %v6424_v33 = vsel %vm6302_vm5, %v14255_v60, 0.0 }
 0xd16   :  { %v6419_v13 = vadd.f32 %v6418_v47, %v6417_v50  ;;  %v14267_v50 = vadd.f32 %v13871_v55, %v13843_v19  ;;  %v6426_v35 = vsel %vm6302_vm5, %v14261_v39, 0.0 }
 0xd18   :  { %v6421_v28 = vadd.f32 %v6420_v7, %v6419_v13  ;;  %v14273_v13 = vadd.f32 %v13843_v19, %v13887_v12  ;;  %v6428_v0 = vsel %vm6302_vm5, %v14267_v50, 0.0 }
 0xd1a   :  { %v6423_v30 = vadd.f32 %v6422_v5, %v6421_v28  ;;  %v14279_v28 = vadd.f32 %v13885_v63, %v13843_v19  ;;  %v6430_v55 = vsel %vm6302_vm5, %v14273_v13, 0.0 }
 0xd1c   :  { %v6425_v47 = vadd.f32 %v6424_v33, %v6423_v30  ;;  %v14285_v30 = vadd.f32 %v13843_v19, %v13901_v48  ;;  %v6432_v12 = vsel %vm6302_vm5, %v14279_v28, 0.0 }
 0xd1e   :  { %v6427_v7 = vadd.f32 %v6426_v35, %v6425_v47  ;;  %v14291_v47 = vadd.f32 %v13899_v3, %v13843_v19  ;;  %v6434_v63 = vsel %vm6302_vm5, %v14285_v30, 0.0 }
 0xd20   :  { %v6429_v5 = vadd.f32 %v6428_v0, %v6427_v7  ;;  %v14297_v7 = vadd.f32 %v13843_v19, %v13923_v17  ;;  %v6436_v48 = vsel %vm6302_vm5, %v14291_v47, 0.0 }
 0xd22   :  { %v6431_v33 = vadd.f32 %v6430_v55, %v6429_v5  ;;  %v14303_v5 = vadd.f32 %v13918_v1, %v13843_v19  ;;  %v6438_v3 = vsel %vm6302_vm5, %v14297_v7, 0.0 }
 0xd24   :  { %v6433_v35 = vadd.f32 %v6432_v12, %v6431_v33  ;;  %v14309_v33 = vadd.f32 %v13843_v19, %v13937_v24  ;;  %v6440_v17 = vsel %vm6302_vm5, %v14303_v5, 0.0 }
 0xd26   :  { %v6435_v0 = vadd.f32 %v6434_v63, %v6433_v35  ;;  %v14315_v35 = vadd.f32 %v13932_v56, %v13843_v19  ;;  %v6442_v1 = vsel %vm6302_vm5, %v14309_v33, 0.0 }
 0xd28   :  { %v6437_v55 = vadd.f32 %v6436_v48, %v6435_v0  ;;  %v14321_v0 = vadd.f32 %v13843_v19, %v13951_v37  ;;  %v6444_v24 = vsel %vm6302_vm5, %v14315_v35, 0.0 }
 0xd2a   :  { %v6439_v12 = vadd.f32 %v6438_v3, %v6437_v55  ;;  %v14327_v55 = vadd.f32 %v13946_v20, %v13843_v19  ;;  %v6446_v56 = vsel %vm6302_vm5, %v14321_v0, 0.0 }
 0xd2c   :  { %v6441_v63 = vadd.f32 %v6440_v17, %v6439_v12  ;;  %v14333_v12 = vadd.f32 %v13843_v19, %v13965_v45  ;;  %v6448_v37 = vsel %vm6302_vm5, %v14327_v55, 0.0 }
 0xd2e   :  { %v6443_v48 = vadd.f32 %v6442_v1, %v6441_v63  ;;  %v14339_v63 = vadd.f32 %v13960_v44, %v13843_v19  ;;  %v6450_v20 = vsel %vm6302_vm5, %v14333_v12, 0.0 }
 0xd30   :  { %v6445_v3 = vadd.f32 %v6444_v24, %v6443_v48  ;;  %v14345_v48 = vadd.f32 %v13843_v19, %v13982_v52  ;;  %v6452_v45 = vsel %vm6302_vm5, %v14339_v63, 0.0 }
 0xd32   :  { %v6447_v17 = vadd.f32 %v6446_v56, %v6445_v3  ;;  %v14351_v3 = vadd.f32 %v13974_v43, %v13843_v19  ;;  %v6454_v44 = vsel %vm6302_vm5, %v14345_v48, 0.0 }
 0xd34   :  { %v6449_v1 = vadd.f32 %v6448_v37, %v6447_v17  ;;  %v14357_v17 = vadd.f32 %v13843_v19, %v14000_v57  ;;  %v6456_v52 = vsel %vm6302_vm5, %v14351_v3, 0.0 }
 0xd36   :  { %v6451_v24 = vadd.f32 %v6450_v20, %v6449_v1  ;;  %v14363_v1 = vadd.f32 %v13995_v49, %v13843_v19  ;;  %v6458_v43 = vsel %vm6302_vm5, %v14357_v17, 0.0 }
 0xd38   :  { %v6453_v56 = vadd.f32 %v6452_v45, %v6451_v24  ;;  %v14369_v24 = vadd.f32 %v13843_v19, %v14020_v54  ;;  %v6460_v57 = vsel %vm6302_vm5, %v14363_v1, 0.0 }
 0xd3a   :  { %v6455_v37 = vadd.f32 %v6454_v44, %v6453_v56  ;;  %v14375_v56 = vadd.f32 %v14015_v27, %v13843_v19  ;;  %v6462_v49 = vsel %vm6302_vm5, %v14369_v24, 0.0 }
 0xd3c   :  { %v6457_v20 = vadd.f32 %v6456_v52, %v6455_v37  ;;  %v14381_v37 = vadd.f32 %v13843_v19, %v14043_v22  ;;  %v6464_v54 = vsel %vm6302_vm5, %v14375_v56, 0.0 }
 0xd3e   :  { %v6459_v45 = vadd.f32 %v6458_v43, %v6457_v20  ;;  %v14387_v20 = vadd.f32 %v14038_v59, %v13843_v19  ;;  %v6466_v27 = vsel %vm6302_vm5, %v14381_v37, 0.0 }
 0xd40   :  { %v6461_v44 = vadd.f32 %v6460_v57, %v6459_v45  ;;  %v14393_v45 = vadd.f32 %v13843_v19, %v14061_v32  ;;  %v6468_v22 = vsel %vm6302_vm5, %v14387_v20, 0.0 }
 0xd42   :  { %v6463_v52 = vadd.f32 %v6462_v49, %v6461_v44  ;;  %v14399_v44 = vadd.f32 %v14056_v15, %v13843_v19  ;;  %v6470_v59 = vsel %vm6302_vm5, %v14393_v45, 0.0 }
 0xd44   :  { %v6465_v43 = vadd.f32 %v6464_v54, %v6463_v52  ;;  %v14405_v52 = vadd.f32 %v13843_v19, %v14075_v11  ;;  %v6472_v32 = vsel %vm6302_vm5, %v14399_v44, 0.0 }
 0xd46   :  { %v6467_v57 = vadd.f32 %v6466_v27, %v6465_v43  ;;  %v14411_v43 = vadd.f32 %v14070_v61, %v13843_v19  ;;  %v6474_v15 = vsel %vm6302_vm5, %v14405_v52, 0.0 }
 0xd48   :  { %v6469_v49 = vadd.f32 %v6468_v22, %v6467_v57  ;;  %v14417_v57 = vadd.f32 %v13843_v19, %v14089_v36  ;;  %v6476_v11 = vsel %vm6302_vm5, %v14411_v43, 0.0 }
 0xd4a   :  { %v6471_v54 = vadd.f32 %v6470_v59, %v6469_v49  ;;  %v14423_v49 = vadd.f32 %v14084_v51, %v13843_v19  ;;  %v6478_v61 = vsel %vm6302_vm5, %v14417_v57, 0.0 }
 0xd4c   :  { %v6473_v27 = vadd.f32 %v6472_v32, %v6471_v54  ;;  %17333 = vst [vmem:[#allocation117_spill] sm:$0xff] %v14423_v49  ;;  %v14429_v54 = vadd.f32 %v13843_v19, %v14103_v10  ;;  %v6480_v36 = vsel %vm6302_vm5, %v14423_v49, 0.0 }
 0xd4e   :  { %v6475_v22 = vadd.f32 %v6474_v15, %v6473_v27  ;;  %17334 = vst [vmem:[#allocation81_spill] sm:$0xff] %v14429_v54  ;;  %v14435_v27 = vadd.f32 %v14098_v25, %v13843_v19  ;;  %v6482_v51 = vsel %vm6302_vm5, %v14429_v54, 0.0 }
 0xd50   :  { %v6477_v59 = vadd.f32 %v6476_v11, %v6475_v22  ;;  %17335 = vst [vmem:[#allocation118_spill] sm:$0xff] %v14435_v27  ;;  %v14441_v22 = vadd.f32 %v13843_v19, %v14117_v31  ;;  %v6484_v10 = vsel %vm6302_vm5, %v14435_v27, 0.0 }
 0xd52   :  { %v6479_v32 = vadd.f32 %v6478_v61, %v6477_v59  ;;  %17336 = vst [vmem:[#allocation119_spill] sm:$0xff] %v14441_v22  ;;  %v14447_v59 = vadd.f32 %v14112_v21, %v13843_v19  ;;  %v6486_v25 = vsel %vm6302_vm5, %v14441_v22, 0.0 }
 0xd54   :  { %v6481_v15 = vadd.f32 %v6480_v36, %v6479_v32  ;;  %17337 = vst [vmem:[#allocation120_spill] sm:$0xff] %v14447_v59  ;;  %v14453_v32 = vadd.f32 %v13843_v19, %v14131_v23  ;;  %v6488_v31 = vsel %vm6302_vm5, %v14447_v59, 0.0 }
 0xd56   :  { %v6483_v11 = vadd.f32 %v6482_v51, %v6481_v15  ;;  %v14459_v15 = vadd.f32 %v14126_v6, %v13843_v19  ;;  %v6490_v21 = vsel %vm6302_vm5, %v14453_v32, 0.0 }
 0xd58   :  { %v6485_v61 = vadd.f32 %v6484_v10, %v6483_v11  ;;  %v6492_v10 = vsel %vm6302_vm5, %v14459_v15, 0.0 }
 0xd5a   :  { %v6487_v36 = vadd.f32 %v6486_v25, %v6485_v61 }
 0xd5c   :  { %v6489_v51 = vadd.f32 %v6488_v31, %v6487_v36 }
 0xd5e   :  { %v6491_v11 = vadd.f32 %v6490_v21, %v6489_v51  ;;  %v17342_v21 = vld [vmem:[#allocation86_spill] sm:$0xff] }
 0xd60   :  { %v6493_v22 = vadd.f32 %v6492_v10, %v6491_v11 }
 0xd62   :  { %v6494_v27 = vrot.slane %v6493_v22, 4 }
 0xd64   :  { %v6495_v23 = vadd.f32 %v6494_v27, %v6493_v22 }
 0xd66   :  { %v6496_v54 = vrot.slane %v6495_v23, 2 }
 0xd68   :  { %v6497_v61 = vadd.f32 %v6496_v54, %v6495_v23 }
 0xd6a   :  { %v6498_v25 = vrot.slane %v6497_v61, 1 }
 0xd6c   :  { %v6499_v49 = vadd.f32 %v6498_v25, %v6497_v61  ;;  %v17343_v25 = vld [vmem:[#allocation85_spill] sm:$0xff] }
 0xd6e   :  { %v6500_v59 = vmul.f32 0.0013020834, %v6499_v49 }
 0xd70   :  { %9063 = vmatmul.mubr.msk.f32.vlgmr.msra.gmra.mrb[134].mxu1 %vm6302_vm5, %v6500_v59 }
 0xd71   :  { %9583 = vmatpush3.bf16.msra.mxu1 %v13980_v46  ;;  %9081 = vmatprep.mubr.msk.f32.mxu1 %vm10215_vm6, %v17298_v9  ;;  %v17338_v46 = vld [vmem:[#allocation53_spill] sm:$0xff] }
 0xd72   :  { %9584 = vmatprep.subr.bf16.mxu1 %v17301_v16 }
 0xd75   :  { %9586 = vmatpush3.bf16.msra.mxu1 %v13987_v18 }
 0xd76   :  { %9587 = vmatprep.subr.bf16.mxu1 %v17301_v16 }
 0xd79   :  { %9589 = vmatpush3.bf16.msra.mxu1 %v14007_v26 }
 0xd7a   :  { %9590 = vmatprep.subr.bf16.mxu1 %v17301_v16  ;;  %v17339_v16 = vld [vmem:[#allocation82_spill] sm:$0xff] }
 0xd7d   :  { %9593 = vmatpush3.bf16.msk.msra.mxu1 %vm14029_vm9, %v14025_v14 }
 0xe43   :  { %v6582_v19 = vpop.f32.mrb[134].mxu1 }
 0xe44   :  { %v9064_v6 = vpop.f32.mrb[135].mxu1  ;;  %v14478_v49 = vrot.slane %v6582_v19, %v17338_v46 }
 0xe46   :  { %v14482_v9 = vsub.f32 %v13853_v4, %v14478_v49  ;;  %v14486_v18 = vsub.f32 %v13848_v58, %v14478_v49  ;;  %v14490_v26 = vsub.f32 %v13867_v29, %v14478_v49  ;;  %v14494_v14 = vsub.f32 %v17339_v16, %v14478_v49  ;;  %v17340_v4 = vld [vmem:[#allocation84_spill] sm:$0xff]  ;;  %v17341_v29 = vld [vmem:[#allocation83_spill] sm:$0xff] }
 0xe47   :  { %v14502_v27 = vsub.f32 %v17340_v4, %v14478_v49  ;;  %v14508_v22 = vsub.f32 %v17341_v29, %v14478_v49  ;;  %v14516_v11 = vsub.f32 %v17342_v21, %v14478_v49  ;;  %v14523_v19 = vsub.f32 %v17343_v25, %v14478_v49 }
 0xe48   :  { %v6686_v53 = vmul.f32 %v14482_v9, %v14482_v9  ;;  %v6687_v54 = vmul.f32 %v14486_v18, %v14486_v18  ;;  %v6688_v58 = vmul.f32 %v14490_v26, %v14490_v26  ;;  %v6689_v59 = vmul.f32 %v14494_v14, %v14494_v14 }
 0xe49   :  { %v6690_v10 = vmul.f32 %v14502_v27, %v14502_v27  ;;  %v6691_v6 = vmul.f32 %v14508_v22, %v14508_v22  ;;  %v6692_v29 = vmul.f32 %v14516_v11, %v14516_v11  ;;  %v6693_v21 = vmul.f32 %v14523_v19, %v14523_v19 }
 0xe4a   :  { %v6782_v36 = vsel %vm6302_vm5, %v6686_v53, 0.0  ;;  %v6783_v31 = vsel %vm6302_vm5, %v6687_v54, 0.0  ;;  %v6785_v23 = vsel %vm6302_vm5, %v6688_v58, 0.0  ;;  %v6787_v16 = vsel %vm6302_vm5, %v6689_v59, 0.0  ;;  %v17344_v54 = vld [vmem:[#allocation88_spill] sm:$0xff] }
 0xe4b   :  { %v6784_v51 = vadd.f32 %v6783_v31, %v6782_v36  ;;  %v14530_v4 = vsub.f32 %v17344_v54, %v14478_v49  ;;  %v6789_v58 = vsel %vm6302_vm5, %v6690_v10, 0.0  ;;  %v17346_v31 = vld [vmem:[#allocation87_spill] sm:$0xff]  ;;  %v6791_v59 = vsel %vm6302_vm5, %v6691_v6, 0.0  ;;  %v17350_v54 = vld [vmem:[#allocation89_spill] sm:$0xff] }
 0xe4c   :  { %v6793_v10 = vsel %vm6302_vm5, %v6692_v29, 0.0  ;;  %v6795_v6 = vsel %vm6302_vm5, %v6693_v21, 0.0 }
 0xe4d   :  { %v6786_v61 = vadd.f32 %v6785_v23, %v6784_v51  ;;  %17345 = vst [vmem:[#allocation121_spill] sm:$0xff] %v14530_v4  ;;  %v14537_v51 = vsub.f32 %v17346_v31, %v14478_v49 }
 0xe4f   :  { %v6788_v53 = vadd.f32 %v6787_v16, %v6786_v61  ;;  %17347 = vst [vmem:[#allocation122_spill] sm:$0xff] %v14537_v51  ;;  %v17348_v61 = vld [vmem:[#allocation90_spill] sm:$0xff]  ;;  %v6694_v16 = vmul.f32 %v14530_v4, %v14530_v4  ;;  %v6695_v31 = vmul.f32 %v14537_v51, %v14537_v51 }
 0xe50   :  { %v14544_v25 = vsub.f32 %v17348_v61, %v14478_v49 }
 0xe51   :  { %v6790_v36 = vadd.f32 %v6789_v58, %v6788_v53  ;;  %v14551_v58 = vsub.f32 %v17350_v54, %v14478_v49  ;;  %v6797_v29 = vsel %vm6302_vm5, %v6694_v16, 0.0  ;;  %v6799_v21 = vsel %vm6302_vm5, %v6695_v31, 0.0 }
 0xe52   :  { %17349 = vst [vmem:[#allocation123_spill] sm:$0xff] %v14544_v25  ;;  %v6696_v4 = vmul.f32 %v14544_v25, %v14544_v25 }
 0xe53   :  { %v6792_v23 = vadd.f32 %v6791_v59, %v6790_v36  ;;  %17351 = vst [vmem:[#allocation124_spill] sm:$0xff] %v14551_v58  ;;  %v17352_v59 = vld [vmem:[#allocation92_spill] sm:$0xff]  ;;  %v6697_v51 = vmul.f32 %v14551_v58, %v14551_v58 }
 0xe54   :  { %v14558_v61 = vsub.f32 %v17352_v59, %v14478_v49  ;;  %v6801_v16 = vsel %vm6302_vm5, %v6696_v4, 0.0 }
 0xe55   :  { %v6794_v53 = vadd.f32 %v6793_v10, %v6792_v23  ;;  %v17354_v10 = vld [vmem:[#allocation91_spill] sm:$0xff]  ;;  %v6803_v31 = vsel %vm6302_vm5, %v6697_v51, 0.0 }
 0xe56   :  { %17353 = vst [vmem:[#allocation125_spill] sm:$0xff] %v14558_v61  ;;  %v14565_v54 = vsub.f32 %v17354_v10, %v14478_v49  ;;  %v6698_v25 = vmul.f32 %v14558_v61, %v14558_v61 }
 0xe57   :  { %v6796_v36 = vadd.f32 %v6795_v6, %v6794_v53  ;;  %v17356_v6 = vld [vmem:[#allocation94_spill] sm:$0xff] }
 0xe58   :  { %17355 = vst [vmem:[#allocation54_spill] sm:$0xff] %v14565_v54  ;;  %v14572_v59 = vsub.f32 %v17356_v6, %v14478_v49  ;;  %v6699_v58 = vmul.f32 %v14565_v54, %v14565_v54  ;;  %v6805_v4 = vsel %vm6302_vm5, %v6698_v25, 0.0 }
 0xe59   :  { %v6798_v23 = vadd.f32 %v6797_v29, %v6796_v36  ;;  %v17358_v29 = vld [vmem:[#allocation93_spill] sm:$0xff] }
 0xe5a   :  { %17357 = vst [vmem:[#allocation55_spill] sm:$0xff] %v14572_v59  ;;  %v14579_v10 = vsub.f32 %v17358_v29, %v14478_v49  ;;  %v6700_v61 = vmul.f32 %v14572_v59, %v14572_v59  ;;  %v6807_v51 = vsel %vm6302_vm5, %v6699_v58, 0.0 }
 0xe5b   :  { %v6800_v53 = vadd.f32 %v6799_v21, %v6798_v23  ;;  %v17360_v21 = vld [vmem:[#allocation96_spill] sm:$0xff] }
 0xe5c   :  { %17359 = vst [vmem:[#allocation56_spill] sm:$0xff] %v14579_v10  ;;  %v14586_v6 = vsub.f32 %v17360_v21, %v14478_v49  ;;  %v6701_v54 = vmul.f32 %v14579_v10, %v14579_v10  ;;  %v6809_v25 = vsel %vm6302_vm5, %v6700_v61, 0.0 }
 0xe5d   :  { %v6802_v36 = vadd.f32 %v6801_v16, %v6800_v53  ;;  %v17362_v16 = vld [vmem:[#allocation95_spill] sm:$0xff] }
 0xe5e   :  { %17361 = vst [vmem:[#allocation57_spill] sm:$0xff] %v14586_v6  ;;  %v14593_v29 = vsub.f32 %v17362_v16, %v14478_v49  ;;  %v6702_v59 = vmul.f32 %v14586_v6, %v14586_v6  ;;  %v6811_v58 = vsel %vm6302_vm5, %v6701_v54, 0.0 }
 0xe5f   :  { %v6804_v23 = vadd.f32 %v6803_v31, %v6802_v36  ;;  %v17364_v31 = vld [vmem:[#allocation98_spill] sm:$0xff] }
 0xe60   :  { %17363 = vst [vmem:[#allocation58_spill] sm:$0xff] %v14593_v29  ;;  %v14600_v21 = vsub.f32 %v17364_v31, %v14478_v49  ;;  %v6703_v10 = vmul.f32 %v14593_v29, %v14593_v29  ;;  %v6813_v61 = vsel %vm6302_vm5, %v6702_v59, 0.0 }
 0xe61   :  { %v6806_v53 = vadd.f32 %v6805_v4, %v6804_v23  ;;  %v17366_v4 = vld [vmem:[#allocation97_spill] sm:$0xff] }
 0xe62   :  { %17365 = vst [vmem:[#allocation59_spill] sm:$0xff] %v14600_v21  ;;  %v14607_v16 = vsub.f32 %v17366_v4, %v14478_v49  ;;  %v6704_v6 = vmul.f32 %v14600_v21, %v14600_v21  ;;  %v6815_v54 = vsel %vm6302_vm5, %v6703_v10, 0.0 }
 0xe63   :  { %v6808_v36 = vadd.f32 %v6807_v51, %v6806_v53  ;;  %v17368_v51 = vld [vmem:[#allocation100_spill] sm:$0xff] }
 0xe64   :  { %17367 = vst [vmem:[#allocation60_spill] sm:$0xff] %v14607_v16  ;;  %v14614_v31 = vsub.f32 %v17368_v51, %v14478_v49  ;;  %v6705_v29 = vmul.f32 %v14607_v16, %v14607_v16  ;;  %v6817_v59 = vsel %vm6302_vm5, %v6704_v6, 0.0 }
 0xe65   :  { %v6810_v23 = vadd.f32 %v6809_v25, %v6808_v36  ;;  %v17370_v25 = vld [vmem:[#allocation99_spill] sm:$0xff] }
 0xe66   :  { %17369 = vst [vmem:[#allocation61_spill] sm:$0xff] %v14614_v31  ;;  %v14621_v4 = vsub.f32 %v17370_v25, %v14478_v49  ;;  %v6706_v21 = vmul.f32 %v14614_v31, %v14614_v31  ;;  %v6819_v10 = vsel %vm6302_vm5, %v6705_v29, 0.0 }
 0xe67   :  { %v6812_v53 = vadd.f32 %v6811_v58, %v6810_v23  ;;  %v17372_v58 = vld [vmem:[#allocation102_spill] sm:$0xff] }
 0xe68   :  { %17371 = vst [vmem:[#allocation62_spill] sm:$0xff] %v14621_v4  ;;  %v14628_v51 = vsub.f32 %v17372_v58, %v14478_v49  ;;  %v6707_v16 = vmul.f32 %v14621_v4, %v14621_v4  ;;  %v6821_v6 = vsel %vm6302_vm5, %v6706_v21, 0.0 }
 0xe69   :  { %v6814_v36 = vadd.f32 %v6813_v61, %v6812_v53  ;;  %v17374_v61 = vld [vmem:[#allocation101_spill] sm:$0xff] }
 0xe6a   :  { %17373 = vst [vmem:[#allocation63_spill] sm:$0xff] %v14628_v51  ;;  %v14635_v25 = vsub.f32 %v17374_v61, %v14478_v49  ;;  %v6708_v31 = vmul.f32 %v14628_v51, %v14628_v51  ;;  %v6823_v29 = vsel %vm6302_vm5, %v6707_v16, 0.0 }
 0xe6b   :  { %v6816_v23 = vadd.f32 %v6815_v54, %v6814_v36  ;;  %v17376_v54 = vld [vmem:[#allocation103_spill] sm:$0xff] }
 0xe6c   :  { %17375 = vst [vmem:[#allocation64_spill] sm:$0xff] %v14635_v25  ;;  %v14642_v58 = vsub.f32 %v17376_v54, %v14478_v49  ;;  %v6709_v4 = vmul.f32 %v14635_v25, %v14635_v25  ;;  %v6825_v21 = vsel %vm6302_vm5, %v6708_v31, 0.0 }
 0xe6d   :  { %v6818_v53 = vadd.f32 %v6817_v59, %v6816_v23  ;;  %v17378_v59 = vld [vmem:[#allocation66_spill] sm:$0xff] }
 0xe6e   :  { %17377 = vst [vmem:[#allocation65_spill] sm:$0xff] %v14642_v58  ;;  %v14649_v61 = vsub.f32 %v17378_v59, %v14478_v49  ;;  %v6710_v51 = vmul.f32 %v14642_v58, %v14642_v58  ;;  %v6827_v16 = vsel %vm6302_vm5, %v6709_v4, 0.0 }
 0xe6f   :  { %v6820_v36 = vadd.f32 %v6819_v10, %v6818_v53  ;;  %v17380_v10 = vld [vmem:[#allocation104_spill] sm:$0xff] }
 0xe70   :  { %17379 = vst [vmem:[#allocation53_spill] sm:$0xff] %v14649_v61  ;;  %v14656_v54 = vsub.f32 %v17380_v10, %v14478_v49  ;;  %v6711_v25 = vmul.f32 %v14649_v61, %v14649_v61  ;;  %v6829_v31 = vsel %vm6302_vm5, %v6710_v51, 0.0 }
 0xe71   :  { %v6822_v23 = vadd.f32 %v6821_v6, %v6820_v36  ;;  %v17382_v6 = vld [vmem:[#allocation67_spill] sm:$0xff] }
 0xe72   :  { %17381 = vst [vmem:[#allocation82_spill] sm:$0xff] %v14656_v54  ;;  %v14663_v59 = vsub.f32 %v17382_v6, %v14478_v49  ;;  %v6712_v58 = vmul.f32 %v14656_v54, %v14656_v54  ;;  %v6831_v4 = vsel %vm6302_vm5, %v6711_v25, 0.0 }
 0xe73   :  { %v6824_v53 = vadd.f32 %v6823_v29, %v6822_v23  ;;  %v17384_v29 = vld [vmem:[#allocation105_spill] sm:$0xff] }
 0xe74   :  { %17383 = vst [vmem:[#allocation84_spill] sm:$0xff] %v14663_v59  ;;  %v14670_v10 = vsub.f32 %v17384_v29, %v14478_v49  ;;  %v6713_v61 = vmul.f32 %v14663_v59, %v14663_v59  ;;  %v6833_v51 = vsel %vm6302_vm5, %v6712_v58, 0.0 }
 0xe75   :  { %v6826_v36 = vadd.f32 %v6825_v21, %v6824_v53  ;;  %v17386_v21 = vld [vmem:[#allocation68_spill] sm:$0xff] }
 0xe76   :  { %17385 = vst [vmem:[#allocation83_spill] sm:$0xff] %v14670_v10  ;;  %v14677_v6 = vsub.f32 %v17386_v21, %v14478_v49  ;;  %v6714_v54 = vmul.f32 %v14670_v10, %v14670_v10  ;;  %v6835_v25 = vsel %vm6302_vm5, %v6713_v61, 0.0 }
 0xe77   :  { %v6828_v23 = vadd.f32 %v6827_v16, %v6826_v36  ;;  %v17388_v16 = vld [vmem:[#allocation106_spill] sm:$0xff] }
 0xe78   :  { %17387 = vst [vmem:[#allocation86_spill] sm:$0xff] %v14677_v6  ;;  %v14684_v29 = vsub.f32 %v17388_v16, %v14478_v49  ;;  %v6715_v59 = vmul.f32 %v14677_v6, %v14677_v6  ;;  %v6837_v58 = vsel %vm6302_vm5, %v6714_v54, 0.0 }
 0xe79   :  { %v6830_v53 = vadd.f32 %v6829_v31, %v6828_v23  ;;  %v17390_v31 = vld [vmem:[#allocation69_spill] sm:$0xff] }
 0xe7a   :  { %17389 = vst [vmem:[#allocation85_spill] sm:$0xff] %v14684_v29  ;;  %v14691_v21 = vsub.f32 %v17390_v31, %v14478_v49  ;;  %v6716_v10 = vmul.f32 %v14684_v29, %v14684_v29  ;;  %v6839_v61 = vsel %vm6302_vm5, %v6715_v59, 0.0 }
 0xe7b   :  { %v6832_v36 = vadd.f32 %v6831_v4, %v6830_v53  ;;  %v17392_v4 = vld [vmem:[#allocation107_spill] sm:$0xff] }
 0xe7c   :  { %17391 = vst [vmem:[#allocation88_spill] sm:$0xff] %v14691_v21  ;;  %v14698_v16 = vsub.f32 %v17392_v4, %v14478_v49  ;;  %v6717_v6 = vmul.f32 %v14691_v21, %v14691_v21  ;;  %v6841_v54 = vsel %vm6302_vm5, %v6716_v10, 0.0 }
 0xe7d   :  { %v6834_v23 = vadd.f32 %v6833_v51, %v6832_v36  ;;  %v17394_v51 = vld [vmem:[#allocation70_spill] sm:$0xff] }
 0xe7e   :  { %17393 = vst [vmem:[#allocation87_spill] sm:$0xff] %v14698_v16  ;;  %v14705_v31 = vsub.f32 %v17394_v51, %v14478_v49  ;;  %v6718_v29 = vmul.f32 %v14698_v16, %v14698_v16  ;;  %v6843_v59 = vsel %vm6302_vm5, %v6717_v6, 0.0 }
 0xe7f   :  { %v6836_v53 = vadd.f32 %v6835_v25, %v6834_v23  ;;  %v17396_v25 = vld [vmem:[#allocation108_spill] sm:$0xff] }
 0xe80   :  { %17395 = vst [vmem:[#allocation90_spill] sm:$0xff] %v14705_v31  ;;  %v14712_v4 = vsub.f32 %v17396_v25, %v14478_v49  ;;  %v6719_v21 = vmul.f32 %v14705_v31, %v14705_v31  ;;  %v6845_v10 = vsel %vm6302_vm5, %v6718_v29, 0.0 }
 0xe81   :  { %v6838_v36 = vadd.f32 %v6837_v58, %v6836_v53  ;;  %v17398_v58 = vld [vmem:[#allocation71_spill] sm:$0xff] }
 0xe82   :  { %17397 = vst [vmem:[#allocation89_spill] sm:$0xff] %v14712_v4  ;;  %v14719_v51 = vsub.f32 %v17398_v58, %v14478_v49  ;;  %v6720_v16 = vmul.f32 %v14712_v4, %v14712_v4  ;;  %v6847_v6 = vsel %vm6302_vm5, %v6719_v21, 0.0 }
 0xe83   :  { %v6840_v23 = vadd.f32 %v6839_v61, %v6838_v36  ;;  %v17400_v61 = vld [vmem:[#allocation109_spill] sm:$0xff] }
 0xe84   :  { %17399 = vst [vmem:[#allocation92_spill] sm:$0xff] %v14719_v51  ;;  %v14726_v25 = vsub.f32 %v17400_v61, %v14478_v49  ;;  %v6721_v31 = vmul.f32 %v14719_v51, %v14719_v51  ;;  %v6849_v29 = vsel %vm6302_vm5, %v6720_v16, 0.0 }
 0xe85   :  { %v6842_v53 = vadd.f32 %v6841_v54, %v6840_v23  ;;  %v17402_v54 = vld [vmem:[#allocation72_spill] sm:$0xff] }
 0xe86   :  { %17401 = vst [vmem:[#allocation91_spill] sm:$0xff] %v14726_v25  ;;  %v14733_v58 = vsub.f32 %v17402_v54, %v14478_v49  ;;  %v6722_v4 = vmul.f32 %v14726_v25, %v14726_v25  ;;  %v6851_v21 = vsel %vm6302_vm5, %v6721_v31, 0.0 }
 0xe87   :  { %v6844_v36 = vadd.f32 %v6843_v59, %v6842_v53  ;;  %v17404_v59 = vld [vmem:[#allocation110_spill] sm:$0xff] }
 0xe88   :  { %17403 = vst [vmem:[#allocation94_spill] sm:$0xff] %v14733_v58  ;;  %v14740_v61 = vsub.f32 %v17404_v59, %v14478_v49  ;;  %v6723_v51 = vmul.f32 %v14733_v58, %v14733_v58  ;;  %v6853_v16 = vsel %vm6302_vm5, %v6722_v4, 0.0 }
 0xe89   :  { %v6846_v23 = vadd.f32 %v6845_v10, %v6844_v36  ;;  %v17406_v10 = vld [vmem:[#allocation73_spill] sm:$0xff] }
 0xe8a   :  { %17405 = vst [vmem:[#allocation93_spill] sm:$0xff] %v14740_v61  ;;  %v14747_v54 = vsub.f32 %v17406_v10, %v14478_v49  ;;  %v6724_v25 = vmul.f32 %v14740_v61, %v14740_v61  ;;  %v6855_v31 = vsel %vm6302_vm5, %v6723_v51, 0.0 }
 0xe8b   :  { %v6848_v53 = vadd.f32 %v6847_v6, %v6846_v23  ;;  %v17408_v6 = vld [vmem:[#allocation111_spill] sm:$0xff] }
 0xe8c   :  { %17407 = vst [vmem:[#allocation96_spill] sm:$0xff] %v14747_v54  ;;  %v14754_v59 = vsub.f32 %v17408_v6, %v14478_v49  ;;  %v6725_v58 = vmul.f32 %v14747_v54, %v14747_v54  ;;  %v6857_v4 = vsel %vm6302_vm5, %v6724_v25, 0.0 }
 0xe8d   :  { %v6850_v36 = vadd.f32 %v6849_v29, %v6848_v53  ;;  %v17410_v29 = vld [vmem:[#allocation74_spill] sm:$0xff] }
 0xe8e   :  { %17409 = vst [vmem:[#allocation95_spill] sm:$0xff] %v14754_v59  ;;  %v14761_v10 = vsub.f32 %v17410_v29, %v14478_v49  ;;  %v6726_v61 = vmul.f32 %v14754_v59, %v14754_v59  ;;  %v6859_v51 = vsel %vm6302_vm5, %v6725_v58, 0.0 }
 0xe8f   :  { %v6852_v23 = vadd.f32 %v6851_v21, %v6850_v36  ;;  %v17412_v21 = vld [vmem:[#allocation112_spill] sm:$0xff] }
 0xe90   :  { %17411 = vst [vmem:[#allocation98_spill] sm:$0xff] %v14761_v10  ;;  %v14768_v6 = vsub.f32 %v17412_v21, %v14478_v49  ;;  %v6727_v54 = vmul.f32 %v14761_v10, %v14761_v10  ;;  %v6861_v25 = vsel %vm6302_vm5, %v6726_v61, 0.0 }
 0xe91   :  { %v6854_v53 = vadd.f32 %v6853_v16, %v6852_v23  ;;  %v17414_v16 = vld [vmem:[#allocation75_spill] sm:$0xff] }
 0xe92   :  { %17413 = vst [vmem:[#allocation97_spill] sm:$0xff] %v14768_v6  ;;  %v14775_v29 = vsub.f32 %v17414_v16, %v14478_v49  ;;  %v6728_v59 = vmul.f32 %v14768_v6, %v14768_v6  ;;  %v6863_v58 = vsel %vm6302_vm5, %v6727_v54, 0.0 }
 0xe93   :  { %v6856_v36 = vadd.f32 %v6855_v31, %v6854_v53  ;;  %v17416_v31 = vld [vmem:[#allocation113_spill] sm:$0xff] }
 0xe94   :  { %17415 = vst [vmem:[#allocation100_spill] sm:$0xff] %v14775_v29  ;;  %v14782_v21 = vsub.f32 %v17416_v31, %v14478_v49  ;;  %v6729_v10 = vmul.f32 %v14775_v29, %v14775_v29  ;;  %v6865_v61 = vsel %vm6302_vm5, %v6728_v59, 0.0 }
 0xe95   :  { %v6858_v23 = vadd.f32 %v6857_v4, %v6856_v36  ;;  %v17418_v4 = vld [vmem:[#allocation76_spill] sm:$0xff] }
 0xe96   :  { %17417 = vst [vmem:[#allocation99_spill] sm:$0xff] %v14782_v21  ;;  %v14789_v16 = vsub.f32 %v17418_v4, %v14478_v49  ;;  %v6730_v6 = vmul.f32 %v14782_v21, %v14782_v21  ;;  %v6867_v54 = vsel %vm6302_vm5, %v6729_v10, 0.0 }
 0xe97   :  { %v6860_v53 = vadd.f32 %v6859_v51, %v6858_v23  ;;  %v17420_v51 = vld [vmem:[#allocation114_spill] sm:$0xff] }
 0xe98   :  { %17419 = vst [vmem:[#allocation102_spill] sm:$0xff] %v14789_v16  ;;  %v14796_v31 = vsub.f32 %v17420_v51, %v14478_v49  ;;  %v6731_v29 = vmul.f32 %v14789_v16, %v14789_v16  ;;  %v6869_v59 = vsel %vm6302_vm5, %v6730_v6, 0.0 }
 0xe99   :  { %v6862_v36 = vadd.f32 %v6861_v25, %v6860_v53  ;;  %v17422_v25 = vld [vmem:[#allocation77_spill] sm:$0xff] }
 0xe9a   :  { %17421 = vst [vmem:[#allocation101_spill] sm:$0xff] %v14796_v31  ;;  %v14803_v4 = vsub.f32 %v17422_v25, %v14478_v49  ;;  %v6732_v21 = vmul.f32 %v14796_v31, %v14796_v31  ;;  %v6871_v10 = vsel %vm6302_vm5, %v6731_v29, 0.0 }
 0xe9b   :  { %v6864_v23 = vadd.f32 %v6863_v58, %v6862_v36  ;;  %v17424_v58 = vld [vmem:[#allocation115_spill] sm:$0xff] }
 0xe9c   :  { %17423 = vst [vmem:[#allocation103_spill] sm:$0xff] %v14803_v4  ;;  %v14810_v51 = vsub.f32 %v17424_v58, %v14478_v49  ;;  %v6733_v16 = vmul.f32 %v14803_v4, %v14803_v4  ;;  %v6873_v6 = vsel %vm6302_vm5, %v6732_v21, 0.0 }
 0xe9d   :  { %v6866_v53 = vadd.f32 %v6865_v61, %v6864_v23  ;;  %v17425_v61 = vld [vmem:[#allocation78_spill] sm:$0xff] }
 0xe9e   :  { %v14817_v25 = vsub.f32 %v17425_v61, %v14478_v49  ;;  %v6734_v31 = vmul.f32 %v14810_v51, %v14810_v51  ;;  %v6875_v29 = vsel %vm6302_vm5, %v6733_v16, 0.0 }
 0xe9f   :  { %v6868_v36 = vadd.f32 %v6867_v54, %v6866_v53  ;;  %v17427_v54 = vld [vmem:[#allocation116_spill] sm:$0xff] }
 0xea0   :  { %17426 = vst [vmem:[#allocation66_spill] sm:$0xff] %v14817_v25  ;;  %v14824_v58 = vsub.f32 %v17427_v54, %v14478_v49  ;;  %v6735_v4 = vmul.f32 %v14817_v25, %v14817_v25  ;;  %v6877_v21 = vsel %vm6302_vm5, %v6734_v31, 0.0 }
 0xea1   :  { %v6870_v23 = vadd.f32 %v6869_v59, %v6868_v36  ;;  %v17428_v59 = vld [vmem:[#allocation79_spill] sm:$0xff] }
 0xea2   :  { %v14831_v61 = vsub.f32 %v17428_v59, %v14478_v49  ;;  %v6736_v54 = vmul.f32 %v14824_v58, %v14824_v58  ;;  %v6879_v16 = vsel %vm6302_vm5, %v6735_v4, 0.0 }
 0xea3   :  { %v6872_v53 = vadd.f32 %v6871_v10, %v6870_v23  ;;  %v14838_v10 = vsub.f32 %v14211_v62, %v14478_v49  ;;  %v14852_v62 = vsub.f32 %v14221_v2, %v14478_v49  ;;  %v14866_v2 = vsub.f32 %v14231_v41, %v14478_v49 }
 0xea4   :  { %v6737_v25 = vmul.f32 %v14831_v61, %v14831_v61  ;;  %v6881_v31 = vsel %vm6302_vm5, %v6736_v54, 0.0  ;;  %v14880_v41 = vsub.f32 %v14235_v34, %v14478_v49  ;;  %v14894_v34 = vsub.f32 %v14249_v42, %v14478_v49 }
 0xea5   :  { %v6874_v36 = vadd.f32 %v6873_v6, %v6872_v53  ;;  %v17429_v6 = vld [vmem:[#allocation80_spill] sm:$0xff]  ;;  %v14908_v42 = vsub.f32 %v14261_v39, %v14478_v49  ;;  %v14922_v39 = vsub.f32 %v14273_v13, %v14478_v49  ;;  %v14936_v13 = vsub.f32 %v14285_v30, %v14478_v49 }
 0xea6   :  { %v14845_v59 = vsub.f32 %v17429_v6, %v14478_v49  ;;  %v6883_v4 = vsel %vm6302_vm5, %v6737_v25, 0.0  ;;  %v14950_v30 = vsub.f32 %v14297_v7, %v14478_v49  ;;  %v14964_v7 = vsub.f32 %v14309_v33, %v14478_v49 }
 0xea7   :  { %v6876_v23 = vadd.f32 %v6875_v29, %v6874_v36  ;;  %v6738_v29 = vmul.f32 %v14838_v10, %v14838_v10  ;;  %v14978_v33 = vsub.f32 %v14321_v0, %v14478_v49  ;;  %v14992_v0 = vsub.f32 %v14333_v12, %v14478_v49 }
 0xea8   :  { %v6739_v6 = vmul.f32 %v14845_v59, %v14845_v59  ;;  %v15006_v12 = vsub.f32 %v14345_v48, %v14478_v49  ;;  %v15020_v48 = vsub.f32 %v14357_v17, %v14478_v49  ;;  %v15034_v17 = vsub.f32 %v14369_v24, %v14478_v49 }
 0xea9   :  { %v6878_v53 = vadd.f32 %v6877_v21, %v6876_v23  ;;  %v14859_v21 = vsub.f32 %v14218_v38, %v14478_v49  ;;  %v6885_v54 = vsel %vm6302_vm5, %v6738_v29, 0.0  ;;  %v14873_v38 = vsub.f32 %v14228_v8, %v14478_v49 }
 0xeaa   :  { %v6887_v25 = vsel %vm6302_vm5, %v6739_v6, 0.0  ;;  %v14887_v8 = vsub.f32 %v14241_v40, %v14478_v49  ;;  %v14901_v40 = vsub.f32 %v14255_v60, %v14478_v49  ;;  %v14915_v60 = vsub.f32 %v14267_v50, %v14478_v49 }
 0xeab   :  { %v6880_v36 = vadd.f32 %v6879_v16, %v6878_v53  ;;  %v6740_v16 = vmul.f32 %v14852_v62, %v14852_v62  ;;  %v14929_v50 = vsub.f32 %v14279_v28, %v14478_v49  ;;  %v14943_v28 = vsub.f32 %v14291_v47, %v14478_v49 }
 0xeac   :  { %v14957_v47 = vsub.f32 %v14303_v5, %v14478_v49  ;;  %v14971_v5 = vsub.f32 %v14315_v35, %v14478_v49  ;;  %v14985_v35 = vsub.f32 %v14327_v55, %v14478_v49  ;;  %v14999_v55 = vsub.f32 %v14339_v63, %v14478_v49 }
 0xead   :  { %v6882_v23 = vadd.f32 %v6881_v31, %v6880_v36  ;;  %v6741_v31 = vmul.f32 %v14859_v21, %v14859_v21  ;;  %v6889_v29 = vsel %vm6302_vm5, %v6740_v16, 0.0  ;;  %v15013_v63 = vsub.f32 %v14351_v3, %v14478_v49 }
 0xeae   :  { %v15027_v3 = vsub.f32 %v14363_v1, %v14478_v49  ;;  %v15041_v1 = vsub.f32 %v14375_v56, %v14478_v49  ;;  %v15048_v24 = vsub.f32 %v14381_v37, %v14478_v49  ;;  %v15055_v56 = vsub.f32 %v14387_v20, %v14478_v49 }
 0xeaf   :  { %v6884_v53 = vadd.f32 %v6883_v4, %v6882_v23  ;;  %v6742_v4 = vmul.f32 %v14866_v2, %v14866_v2  ;;  %v6891_v6 = vsel %vm6302_vm5, %v6741_v31, 0.0  ;;  %v15062_v37 = vsub.f32 %v14393_v45, %v14478_v49 }
 0xeb0   :  { %v15069_v20 = vsub.f32 %v14399_v44, %v14478_v49  ;;  %v15076_v45 = vsub.f32 %v14405_v52, %v14478_v49  ;;  %v15083_v44 = vsub.f32 %v14411_v43, %v14478_v49  ;;  %v15090_v52 = vsub.f32 %v14417_v57, %v14478_v49 }
 0xeb1   :  { %v6886_v36 = vadd.f32 %v6885_v54, %v6884_v53  ;;  %v6743_v54 = vmul.f32 %v14873_v38, %v14873_v38  ;;  %v6893_v16 = vsel %vm6302_vm5, %v6742_v4, 0.0  ;;  %17430 = vst [vmem:[#allocation104_spill] sm:$0xff] %v15062_v37 }
 0xeb2   :  { %17431 = vst [vmem:[#allocation67_spill] sm:$0xff] %v15069_v20  ;;  %17432 = vst [vmem:[#allocation105_spill] sm:$0xff] %v15076_v45 }
 0xeb3   :  { %v6888_v23 = vadd.f32 %v6887_v25, %v6886_v36  ;;  %v6744_v25 = vmul.f32 %v14880_v41, %v14880_v41  ;;  %v6895_v31 = vsel %vm6302_vm5, %v6743_v54, 0.0  ;;  %17433 = vst [vmem:[#allocation68_spill] sm:$0xff] %v15083_v44  ;;  %17434 = vst [vmem:[#allocation106_spill] sm:$0xff] %v15090_v52 }
 0xeb5   :  { %v6890_v53 = vadd.f32 %v6889_v29, %v6888_v23  ;;  %v6745_v29 = vmul.f32 %v14887_v8, %v14887_v8  ;;  %v6897_v4 = vsel %vm6302_vm5, %v6744_v25, 0.0 }
 0xeb7   :  { %v6892_v36 = vadd.f32 %v6891_v6, %v6890_v53  ;;  %v6746_v6 = vmul.f32 %v14894_v34, %v14894_v34  ;;  %v6899_v54 = vsel %vm6302_vm5, %v6745_v29, 0.0 }
 0xeb9   :  { %v6894_v23 = vadd.f32 %v6893_v16, %v6892_v36  ;;  %v6747_v16 = vmul.f32 %v14901_v40, %v14901_v40  ;;  %v6901_v25 = vsel %vm6302_vm5, %v6746_v6, 0.0 }
 0xebb   :  { %v6896_v53 = vadd.f32 %v6895_v31, %v6894_v23  ;;  %v6748_v31 = vmul.f32 %v14908_v42, %v14908_v42  ;;  %v6903_v29 = vsel %vm6302_vm5, %v6747_v16, 0.0 }
 0xebd   :  { %v6898_v36 = vadd.f32 %v6897_v4, %v6896_v53  ;;  %v6749_v4 = vmul.f32 %v14915_v60, %v14915_v60  ;;  %v6905_v6 = vsel %vm6302_vm5, %v6748_v31, 0.0 }
 0xebf   :  { %v6900_v23 = vadd.f32 %v6899_v54, %v6898_v36  ;;  %v6750_v54 = vmul.f32 %v14922_v39, %v14922_v39  ;;  %v6907_v16 = vsel %vm6302_vm5, %v6749_v4, 0.0 }
 0xec1   :  { %v6902_v53 = vadd.f32 %v6901_v25, %v6900_v23  ;;  %v6751_v25 = vmul.f32 %v14929_v50, %v14929_v50  ;;  %v6909_v31 = vsel %vm6302_vm5, %v6750_v54, 0.0 }
 0xec3   :  { %v6904_v36 = vadd.f32 %v6903_v29, %v6902_v53  ;;  %v6752_v29 = vmul.f32 %v14936_v13, %v14936_v13  ;;  %v6911_v4 = vsel %vm6302_vm5, %v6751_v25, 0.0 }
 0xec5   :  { %v6906_v23 = vadd.f32 %v6905_v6, %v6904_v36  ;;  %v6753_v6 = vmul.f32 %v14943_v28, %v14943_v28  ;;  %v6913_v54 = vsel %vm6302_vm5, %v6752_v29, 0.0 }
 0xec7   :  { %v6908_v53 = vadd.f32 %v6907_v16, %v6906_v23  ;;  %v6754_v16 = vmul.f32 %v14950_v30, %v14950_v30  ;;  %v6915_v25 = vsel %vm6302_vm5, %v6753_v6, 0.0 }
 0xec9   :  { %v6910_v36 = vadd.f32 %v6909_v31, %v6908_v53  ;;  %v6755_v31 = vmul.f32 %v14957_v47, %v14957_v47  ;;  %v6917_v29 = vsel %vm6302_vm5, %v6754_v16, 0.0 }
 0xecb   :  { %v6912_v23 = vadd.f32 %v6911_v4, %v6910_v36  ;;  %v6756_v4 = vmul.f32 %v14964_v7, %v14964_v7  ;;  %v6919_v6 = vsel %vm6302_vm5, %v6755_v31, 0.0 }
 0xecd   :  { %v6914_v53 = vadd.f32 %v6913_v54, %v6912_v23  ;;  %v6757_v54 = vmul.f32 %v14971_v5, %v14971_v5  ;;  %v6921_v16 = vsel %vm6302_vm5, %v6756_v4, 0.0 }
 0xecf   :  { %v6916_v36 = vadd.f32 %v6915_v25, %v6914_v53  ;;  %v6758_v25 = vmul.f32 %v14978_v33, %v14978_v33  ;;  %v6923_v31 = vsel %vm6302_vm5, %v6757_v54, 0.0 }
 0xed1   :  { %v6918_v23 = vadd.f32 %v6917_v29, %v6916_v36  ;;  %v6759_v29 = vmul.f32 %v14985_v35, %v14985_v35  ;;  %v6925_v4 = vsel %vm6302_vm5, %v6758_v25, 0.0 }
 0xed3   :  { %v6920_v53 = vadd.f32 %v6919_v6, %v6918_v23  ;;  %v6760_v6 = vmul.f32 %v14992_v0, %v14992_v0  ;;  %v6927_v54 = vsel %vm6302_vm5, %v6759_v29, 0.0 }
 0xed5   :  { %v6922_v36 = vadd.f32 %v6921_v16, %v6920_v53  ;;  %v6761_v16 = vmul.f32 %v14999_v55, %v14999_v55  ;;  %v6929_v25 = vsel %vm6302_vm5, %v6760_v6, 0.0 }
 0xed7   :  { %v6924_v23 = vadd.f32 %v6923_v31, %v6922_v36  ;;  %v6762_v31 = vmul.f32 %v15006_v12, %v15006_v12  ;;  %v6931_v29 = vsel %vm6302_vm5, %v6761_v16, 0.0 }
 0xed9   :  { %v6926_v53 = vadd.f32 %v6925_v4, %v6924_v23  ;;  %v6763_v4 = vmul.f32 %v15013_v63, %v15013_v63  ;;  %v6933_v6 = vsel %vm6302_vm5, %v6762_v31, 0.0 }
 0xedb   :  { %v6928_v36 = vadd.f32 %v6927_v54, %v6926_v53  ;;  %v6764_v54 = vmul.f32 %v15020_v48, %v15020_v48  ;;  %v6935_v16 = vsel %vm6302_vm5, %v6763_v4, 0.0 }
 0xedd   :  { %v6930_v23 = vadd.f32 %v6929_v25, %v6928_v36  ;;  %v6765_v25 = vmul.f32 %v15027_v3, %v15027_v3  ;;  %v6937_v31 = vsel %vm6302_vm5, %v6764_v54, 0.0 }
 0xedf   :  { %v6932_v53 = vadd.f32 %v6931_v29, %v6930_v23  ;;  %v6766_v29 = vmul.f32 %v15034_v17, %v15034_v17  ;;  %v6939_v4 = vsel %vm6302_vm5, %v6765_v25, 0.0 }
 0xee1   :  { %v6934_v36 = vadd.f32 %v6933_v6, %v6932_v53  ;;  %v6767_v6 = vmul.f32 %v15041_v1, %v15041_v1  ;;  %v6941_v54 = vsel %vm6302_vm5, %v6766_v29, 0.0 }
 0xee3   :  { %v6936_v23 = vadd.f32 %v6935_v16, %v6934_v36  ;;  %v6768_v16 = vmul.f32 %v15048_v24, %v15048_v24  ;;  %v6943_v25 = vsel %vm6302_vm5, %v6767_v6, 0.0 }
 0xee5   :  { %v6938_v53 = vadd.f32 %v6937_v31, %v6936_v23  ;;  %v6769_v31 = vmul.f32 %v15055_v56, %v15055_v56  ;;  %v6945_v29 = vsel %vm6302_vm5, %v6768_v16, 0.0 }
 0xee7   :  { %v6940_v36 = vadd.f32 %v6939_v4, %v6938_v53  ;;  %v6770_v4 = vmul.f32 %v15062_v37, %v15062_v37  ;;  %v6947_v6 = vsel %vm6302_vm5, %v6769_v31, 0.0 }
 0xee9   :  { %v6942_v23 = vadd.f32 %v6941_v54, %v6940_v36  ;;  %v6771_v54 = vmul.f32 %v15069_v20, %v15069_v20  ;;  %v6949_v16 = vsel %vm6302_vm5, %v6770_v4, 0.0  ;;  %v6773_v20 = vmul.f32 %v15083_v44, %v15083_v44 }
 0xeeb   :  { %v6944_v53 = vadd.f32 %v6943_v25, %v6942_v23  ;;  %v6772_v25 = vmul.f32 %v15076_v45, %v15076_v45  ;;  %v6951_v31 = vsel %vm6302_vm5, %v6771_v54, 0.0  ;;  %v6774_v45 = vmul.f32 %v15090_v52, %v15090_v52 }
 0xeec   :  { %v6955_v54 = vsel %vm6302_vm5, %v6773_v20, 0.0 }
 0xeed   :  { %v6946_v36 = vadd.f32 %v6945_v29, %v6944_v53  ;;  %v17435_v29 = vld [vmem:[#allocation117_spill] sm:$0xff]  ;;  %v6953_v4 = vsel %vm6302_vm5, %v6772_v25, 0.0  ;;  %v6957_v25 = vsel %vm6302_vm5, %v6774_v45, 0.0 }
 0xeee   :  { %v15097_v43 = vsub.f32 %v17435_v29, %v14478_v49 }
 0xeef   :  { %v6948_v23 = vadd.f32 %v6947_v6, %v6946_v36  ;;  %v17437_v6 = vld [vmem:[#allocation81_spill] sm:$0xff] }
 0xef0   :  { %17436 = vst [vmem:[#allocation69_spill] sm:$0xff] %v15097_v43  ;;  %v15104_v57 = vsub.f32 %v17437_v6, %v14478_v49  ;;  %v6775_v44 = vmul.f32 %v15097_v43, %v15097_v43 }
 0xef1   :  { %v6950_v53 = vadd.f32 %v6949_v16, %v6948_v23  ;;  %v17439_v16 = vld [vmem:[#allocation118_spill] sm:$0xff] }
 0xef2   :  { %17438 = vst [vmem:[#allocation107_spill] sm:$0xff] %v15104_v57  ;;  %v15111_v29 = vsub.f32 %v17439_v16, %v14478_v49  ;;  %v6776_v52 = vmul.f32 %v15104_v57, %v15104_v57  ;;  %v6959_v20 = vsel %vm6302_vm5, %v6775_v44, 0.0 }
 0xef3   :  { %v6952_v36 = vadd.f32 %v6951_v31, %v6950_v53  ;;  %v17441_v31 = vld [vmem:[#allocation119_spill] sm:$0xff] }
 0xef4   :  { %17440 = vst [vmem:[#allocation70_spill] sm:$0xff] %v15111_v29  ;;  %v15118_v6 = vsub.f32 %v17441_v31, %v14478_v49  ;;  %v6777_v43 = vmul.f32 %v15111_v29, %v15111_v29  ;;  %v6961_v45 = vsel %vm6302_vm5, %v6776_v52, 0.0 }
 0xef5   :  { %v6954_v23 = vadd.f32 %v6953_v4, %v6952_v36  ;;  %v17443_v4 = vld [vmem:[#allocation120_spill] sm:$0xff] }
 0xef6   :  { %17442 = vst [vmem:[#allocation108_spill] sm:$0xff] %v15118_v6  ;;  %v15125_v16 = vsub.f32 %v17443_v4, %v14478_v49  ;;  %v6778_v31 = vmul.f32 %v15118_v6, %v15118_v6  ;;  %v6963_v44 = vsel %vm6302_vm5, %v6777_v43, 0.0 }
 0xef7   :  { %v6956_v53 = vadd.f32 %v6955_v54, %v6954_v23  ;;  %v15132_v54 = vsub.f32 %v14453_v32, %v14478_v49 }
 0xef8   :  { %17444 = vst [vmem:[#allocation71_spill] sm:$0xff] %v15125_v16  ;;  %v6779_v4 = vmul.f32 %v15125_v16, %v15125_v16 }
 0xef9   :  { %v6958_v36 = vadd.f32 %v6957_v25, %v6956_v53  ;;  %17445 = vst [vmem:[#allocation109_spill] sm:$0xff] %v15132_v54  ;;  %v15139_v25 = vsub.f32 %v14459_v15, %v14478_v49  ;;  %v6780_v32 = vmul.f32 %v15132_v54, %v15132_v54 }
 0xefb   :  { %v6960_v23 = vadd.f32 %v6959_v20, %v6958_v36  ;;  %17446 = vst [vmem:[#allocation72_spill] sm:$0xff] %v15139_v25  ;;  %v6965_v20 = vsel %vm6302_vm5, %v6778_v31, 0.0  ;;  %v6781_v52 = vmul.f32 %v15139_v25, %v15139_v25  ;;  %v6969_v15 = vsel %vm6302_vm5, %v6780_v32, 0.0  ;;  %v17449_v32 = vld [vmem:[#allocation123_spill] sm:$0xff] }
 0xefd   :  { %v6962_v53 = vadd.f32 %v6961_v45, %v6960_v23  ;;  %v6967_v23 = vsel %vm6302_vm5, %v6779_v4, 0.0  ;;  %v6971_v16 = vsel %vm6302_vm5, %v6781_v52, 0.0  ;;  %v17450_v52 = vld [vmem:[#allocation124_spill] sm:$0xff] }
 0xeff   :  { %v6964_v36 = vadd.f32 %v6963_v44, %v6962_v53 }
 0xf01   :  { %v6966_v29 = vadd.f32 %v6965_v20, %v6964_v36 }
 0xf03   :  { %v6968_v45 = vadd.f32 %v6967_v23, %v6966_v29  ;;  %v17451_v23 = vld [vmem:[#allocation125_spill] sm:$0xff] }
 0xf05   :  { %v6970_v49 = vadd.f32 %v6969_v15, %v6968_v45  ;;  %v17452_v45 = vld [vmem:[#allocation54_spill] sm:$0xff] }
 0xf07   :  { %v6972_v6 = vadd.f32 %v6971_v16, %v6970_v49  ;;  %v17453_v49 = vld [vmem:[#allocation55_spill] sm:$0xff] }
 0xf09   :  { %v6973_v43 = vrot.slane %v6972_v6, 4 }
 0xf0b   :  { %v6974_v53 = vadd.f32 %v6973_v43, %v6972_v6 }
 0xf0d   :  { %v6975_v44 = vrot.slane %v6974_v53, 2 }
 0xf0f   :  { %v6976_v57 = vadd.f32 %v6975_v44, %v6974_v53  ;;  %v17454_v53 = vld [vmem:[#allocation56_spill] sm:$0xff] }
 0xf11   :  { %v6977_v54 = vrot.slane %v6976_v57, 1 }
 0xf13   :  { %v6978_v37 = vadd.f32 %v6977_v54, %v6976_v57  ;;  %v17447_v54 = vld [vmem:[#allocation121_spill] sm:$0xff] }
 0xf15   :  { %v6979_v31 = vmul.f32 0.0013020834, %v6978_v37 }
 0xf17   :  { %9082 = vmatmul.mubr.msk.f32.vlgmr.msra.gmra.mrb[136].mxu1 %vm6302_vm5, %v6979_v31  ;;  %v17455_v31 = vld [vmem:[#allocation57_spill] sm:$0xff] }
 0xfea   :  { %v7049_v36 = vpop.f32.mrb[136].mxu1 }
 0xfeb   :  { %v7050_v20 = vadd.f32 1e-05, %v7049_v36  ;;  %v9083_v25 = vpop.f32.mrb[137].mxu1 }
 0xfec   :  { %v17448_v25 = vld [vmem:[#allocation122_spill] sm:$0xff] }
 0xfed   :  { %9653 = vrsqrt.f32 %v7050_v20  ;;  %v17456_v20 = vld [vmem:[#allocation58_spill] sm:$0xff] }
 0xff7   :  { %v9654_v29 = vpop.eup %9653 }
 0xff8   :  { %v15154_v4 = vrot.slane %v9654_v29, %v17338_v46 }
 0xffa   :  { %v15158_v16 = vmul.f32 %v15154_v4, %v14482_v9  ;;  %v15162_v6 = vmul.f32 %v15154_v4, %v14486_v18  ;;  %v15166_v37 = vmul.f32 %v15154_v4, %v14490_v26  ;;  %v15170_v57 = vmul.f32 %v15154_v4, %v14494_v14 }
 0xffb   :  { %v15174_v46 = vmul.f32 %v15154_v4, %v14502_v27  ;;  %v15178_v9 = vmul.f32 %v15154_v4, %v14508_v22  ;;  %v15182_v18 = vmul.f32 %v15154_v4, %v14516_v11  ;;  %v15186_v26 = vmul.f32 %v15154_v4, %v14523_v19 }
 0xffc   :  { %v15190_v14 = vmul.f32 %v15154_v4, %v17447_v54  ;;  %v15194_v27 = vmul.f32 %v15154_v4, %v17448_v25  ;;  %v15198_v22 = vmul.f32 %v15154_v4, %v17449_v32  ;;  %v15202_v11 = vmul.f32 %v15154_v4, %v17450_v52  ;;  %v17458_v54 = vld [vmem:[#allocation59_spill] sm:$0xff]  ;;  %v17460_v32 = vld [vmem:[#allocation60_spill] sm:$0xff] }
 0xffd   :  { %v15206_v19 = vmul.f32 %v15154_v4, %v17451_v23  ;;  %v15210_v15 = vmul.f32 %v15154_v4, %v17452_v45  ;;  %v15214_v43 = vmul.f32 %v15154_v4, %v17453_v49  ;;  %v15218_v44 = vmul.f32 %v15154_v4, %v17454_v53  ;;  %v17462_v23 = vld [vmem:[#allocation61_spill] sm:$0xff]  ;;  %v17464_v49 = vld [vmem:[#allocation62_spill] sm:$0xff] }
 0xffe   :  { %v15222_v36 = vmul.f32 %v15154_v4, %v17455_v31  ;;  %v15226_v29 = vmul.f32 %v15154_v4, %v17456_v20  ;;  %v15230_v25 = vmul.f32 %v15154_v4, %v17458_v54  ;;  %v15234_v52 = vmul.f32 %v15154_v4, %v17460_v32  ;;  %v17466_v31 = vld [vmem:[#allocation63_spill] sm:$0xff] }
 0xfff   :  { %v15238_v45 = vmul.f32 %v15154_v4, %v17462_v23  ;;  %v15242_v53 = vmul.f32 %v15154_v4, %v17464_v49  ;;  %v15246_v20 = vmul.f32 %v15154_v4, %v17466_v31 }
0x1000   :  { %17457 = vst [vmem:[#allocation110_spill] sm:$0xff] %v15226_v29  ;;  %17459 = vst [vmem:[#allocation73_spill] sm:$0xff] %v15230_v25  ;;  %v17468_v29 = vld [vmem:[#allocation64_spill] sm:$0xff]  ;;  %v17470_v25 = vld [vmem:[#allocation65_spill] sm:$0xff] }
0x1001   :  { %17461 = vst [vmem:[#allocation111_spill] sm:$0xff] %v15234_v52  ;;  %17463 = vst [vmem:[#allocation74_spill] sm:$0xff] %v15238_v45  ;;  %v15250_v54 = vmul.f32 %v15154_v4, %v17468_v29  ;;  %v15254_v32 = vmul.f32 %v15154_v4, %v17470_v25  ;;  %v17472_v52 = vld [vmem:[#allocation53_spill] sm:$0xff]  ;;  %v17474_v45 = vld [vmem:[#allocation82_spill] sm:$0xff] }
0x1002   :  { %17465 = vst [vmem:[#allocation112_spill] sm:$0xff] %v15242_v53  ;;  %17467 = vst [vmem:[#allocation75_spill] sm:$0xff] %v15246_v20  ;;  %v15258_v23 = vmul.f32 %v15154_v4, %v17472_v52  ;;  %v15262_v49 = vmul.f32 %v15154_v4, %v17474_v45  ;;  %v17476_v53 = vld [vmem:[#allocation84_spill] sm:$0xff]  ;;  %v17478_v20 = vld [vmem:[#allocation83_spill] sm:$0xff] }
0x1003   :  { %17469 = vst [vmem:[#allocation113_spill] sm:$0xff] %v15250_v54  ;;  %17471 = vst [vmem:[#allocation76_spill] sm:$0xff] %v15254_v32  ;;  %v15266_v31 = vmul.f32 %v15154_v4, %v17476_v53  ;;  %v15270_v29 = vmul.f32 %v15154_v4, %v17478_v20  ;;  %v17480_v54 = vld [vmem:[#allocation86_spill] sm:$0xff]  ;;  %v17482_v32 = vld [vmem:[#allocation85_spill] sm:$0xff] }
0x1004   :  { %17473 = vst [vmem:[#allocation114_spill] sm:$0xff] %v15258_v23  ;;  %17475 = vst [vmem:[#allocation77_spill] sm:$0xff] %v15262_v49  ;;  %v15274_v25 = vmul.f32 %v15154_v4, %v17480_v54  ;;  %v15278_v52 = vmul.f32 %v15154_v4, %v17482_v32  ;;  %v17484_v23 = vld [vmem:[#allocation88_spill] sm:$0xff]  ;;  %v17486_v49 = vld [vmem:[#allocation87_spill] sm:$0xff] }
0x1005   :  { %17477 = vst [vmem:[#allocation115_spill] sm:$0xff] %v15266_v31  ;;  %17479 = vst [vmem:[#allocation78_spill] sm:$0xff] %v15270_v29  ;;  %v15282_v45 = vmul.f32 %v15154_v4, %v17484_v23  ;;  %v15286_v53 = vmul.f32 %v15154_v4, %v17486_v49  ;;  %v17488_v31 = vld [vmem:[#allocation90_spill] sm:$0xff]  ;;  %v17490_v29 = vld [vmem:[#allocation89_spill] sm:$0xff] }
0x1006   :  { %17481 = vst [vmem:[#allocation116_spill] sm:$0xff] %v15274_v25  ;;  %17483 = vst [vmem:[#allocation79_spill] sm:$0xff] %v15278_v52  ;;  %v15290_v20 = vmul.f32 %v15154_v4, %v17488_v31  ;;  %v15294_v54 = vmul.f32 %v15154_v4, %v17490_v29  ;;  %v17492_v25 = vld [vmem:[#allocation92_spill] sm:$0xff]  ;;  %v17494_v52 = vld [vmem:[#allocation91_spill] sm:$0xff] }
0x1007   :  { %17485 = vst [vmem:[#allocation80_spill] sm:$0xff] %v15282_v45  ;;  %17487 = vst [vmem:[#allocation117_spill] sm:$0xff] %v15286_v53  ;;  %v15298_v32 = vmul.f32 %v15154_v4, %v17492_v25  ;;  %v15302_v23 = vmul.f32 %v15154_v4, %v17494_v52  ;;  %v17496_v45 = vld [vmem:[#allocation94_spill] sm:$0xff]  ;;  %v17498_v53 = vld [vmem:[#allocation93_spill] sm:$0xff] }
0x1008   :  { %17489 = vst [vmem:[#allocation81_spill] sm:$0xff] %v15290_v20  ;;  %17491 = vst [vmem:[#allocation118_spill] sm:$0xff] %v15294_v54  ;;  %v15306_v49 = vmul.f32 %v15154_v4, %v17496_v45  ;;  %v15310_v31 = vmul.f32 %v15154_v4, %v17498_v53  ;;  %v17500_v20 = vld [vmem:[#allocation96_spill] sm:$0xff]  ;;  %v17502_v54 = vld [vmem:[#allocation95_spill] sm:$0xff] }
0x1009   :  { %17493 = vst [vmem:[#allocation119_spill] sm:$0xff] %v15298_v32  ;;  %17495 = vst [vmem:[#allocation120_spill] sm:$0xff] %v15302_v23  ;;  %v15314_v29 = vmul.f32 %v15154_v4, %v17500_v20  ;;  %v15318_v25 = vmul.f32 %v15154_v4, %v17502_v54  ;;  %v17504_v32 = vld [vmem:[#allocation98_spill] sm:$0xff]  ;;  %v17506_v23 = vld [vmem:[#allocation97_spill] sm:$0xff] }
0x100a   :  { %17497 = vst [vmem:[#allocation121_spill] sm:$0xff] %v15306_v49  ;;  %17499 = vst [vmem:[#allocation122_spill] sm:$0xff] %v15310_v31  ;;  %v15322_v52 = vmul.f32 %v15154_v4, %v17504_v32  ;;  %v15326_v45 = vmul.f32 %v15154_v4, %v17506_v23  ;;  %v17507_v49 = vld [vmem:[#allocation100_spill] sm:$0xff]  ;;  %v17509_v31 = vld [vmem:[#allocation99_spill] sm:$0xff] }
0x100b   :  { %17501 = vst [vmem:[#allocation123_spill] sm:$0xff] %v15314_v29  ;;  %17503 = vst [vmem:[#allocation124_spill] sm:$0xff] %v15318_v25  ;;  %v15330_v53 = vmul.f32 %v15154_v4, %v17507_v49  ;;  %v15334_v20 = vmul.f32 %v15154_v4, %v17509_v31  ;;  %v17510_v29 = vld [vmem:[#allocation102_spill] sm:$0xff]  ;;  %v17511_v25 = vld [vmem:[#allocation101_spill] sm:$0xff]  ;;  %v15350_v49 = vmul.f32 %v15154_v4, %v14810_v51 }
0x100c   :  { %17505 = vst [vmem:[#allocation125_spill] sm:$0xff] %v15322_v52  ;;  %v15338_v54 = vmul.f32 %v15154_v4, %v17510_v29  ;;  %v15342_v32 = vmul.f32 %v15154_v4, %v17511_v25  ;;  %v17512_v52 = vld [vmem:[#allocation103_spill] sm:$0xff]  ;;  %v15358_v29 = vmul.f32 %v15154_v4, %v14824_v58  ;;  %v15362_v25 = vmul.f32 %v15154_v4, %v14831_v61 }
0x100d   :  { %17508 = vst [vmem:[#allocation54_spill] sm:$0xff] %v15330_v53  ;;  %v15346_v23 = vmul.f32 %v15154_v4, %v17512_v52  ;;  %v17513_v53 = vld [vmem:[#allocation66_spill] sm:$0xff]  ;;  %v15366_v52 = vmul.f32 %v15154_v4, %v14838_v10  ;;  %v15370_v51 = vmul.f32 %v15154_v4, %v14845_v59  ;;  %v15378_v58 = vmul.f32 %v15154_v4, %v14859_v21 }
0x100e   :  { %v15354_v31 = vmul.f32 %v15154_v4, %v17513_v53  ;;  %v15374_v53 = vmul.f32 %v15154_v4, %v14852_v62  ;;  %v15382_v61 = vmul.f32 %v15154_v4, %v14866_v2  ;;  %v15386_v10 = vmul.f32 %v15154_v4, %v14873_v38 }
0x100f   :  { %v15390_v59 = vmul.f32 %v15154_v4, %v14880_v41  ;;  %v15394_v62 = vmul.f32 %v15154_v4, %v14887_v8  ;;  %v15398_v21 = vmul.f32 %v15154_v4, %v14894_v34  ;;  %v15402_v2 = vmul.f32 %v15154_v4, %v14901_v40 }
0x1010   :  { %v15406_v38 = vmul.f32 %v15154_v4, %v14908_v42  ;;  %v15410_v41 = vmul.f32 %v15154_v4, %v14915_v60  ;;  %v15414_v8 = vmul.f32 %v15154_v4, %v14922_v39  ;;  %v15418_v34 = vmul.f32 %v15154_v4, %v14929_v50 }
0x1011   :  { %v15422_v40 = vmul.f32 %v15154_v4, %v14936_v13  ;;  %v15426_v42 = vmul.f32 %v15154_v4, %v14943_v28  ;;  %v15430_v60 = vmul.f32 %v15154_v4, %v14950_v30  ;;  %v15434_v39 = vmul.f32 %v15154_v4, %v14957_v47 }
0x1012   :  { %v15438_v50 = vmul.f32 %v15154_v4, %v14964_v7  ;;  %v15442_v13 = vmul.f32 %v15154_v4, %v14971_v5  ;;  %v15446_v28 = vmul.f32 %v15154_v4, %v14978_v33  ;;  %v15450_v30 = vmul.f32 %v15154_v4, %v14985_v35 }
0x1013   :  { %v15454_v47 = vmul.f32 %v15154_v4, %v14992_v0  ;;  %v15458_v7 = vmul.f32 %v15154_v4, %v14999_v55  ;;  %v15462_v5 = vmul.f32 %v15154_v4, %v15006_v12  ;;  %v15466_v33 = vmul.f32 %v15154_v4, %v15013_v63 }
0x1014   :  { %v15470_v35 = vmul.f32 %v15154_v4, %v15020_v48  ;;  %v15474_v0 = vmul.f32 %v15154_v4, %v15027_v3  ;;  %v15478_v55 = vmul.f32 %v15154_v4, %v15034_v17  ;;  %v15482_v12 = vmul.f32 %v15154_v4, %v15041_v1 }
0x1015   :  { %17514 = vst [vmem:[#allocation55_spill] sm:$0xff] %v15466_v33  ;;  %v15486_v63 = vmul.f32 %v15154_v4, %v15048_v24  ;;  %v15490_v48 = vmul.f32 %v15154_v4, %v15055_v56  ;;  %v17529_v56 = vld [vmem:[#allocation106_spill] sm:$0xff]  ;;  %v17536_v33 = vld [vmem:[#allocation71_spill] sm:$0xff] }
0x1016   :  { %17515 = vst [vmem:[#allocation56_spill] sm:$0xff] %v15470_v35  ;;  %17516 = vst [vmem:[#allocation57_spill] sm:$0xff] %v15474_v0  ;;  %v17521_v35 = vld [vmem:[#allocation104_spill] sm:$0xff]  ;;  %v17523_v0 = vld [vmem:[#allocation67_spill] sm:$0xff] }
0x1017   :  { %17517 = vst [vmem:[#allocation58_spill] sm:$0xff] %v15478_v55  ;;  %17518 = vst [vmem:[#allocation59_spill] sm:$0xff] %v15482_v12  ;;  %v15494_v3 = vmul.f32 %v15154_v4, %v17521_v35  ;;  %v15498_v17 = vmul.f32 %v15154_v4, %v17523_v0  ;;  %v17525_v55 = vld [vmem:[#allocation105_spill] sm:$0xff]  ;;  %v17527_v12 = vld [vmem:[#allocation68_spill] sm:$0xff] }
0x1018   :  { %17519 = vst [vmem:[#allocation60_spill] sm:$0xff] %v15486_v63  ;;  %17520 = vst [vmem:[#allocation61_spill] sm:$0xff] %v15490_v48  ;;  %v15502_v1 = vmul.f32 %v15154_v4, %v17525_v55  ;;  %v15506_v24 = vmul.f32 %v15154_v4, %v17527_v12  ;;  %v15508_v63 = vld [vmem:[#allocation37] ss:$0 sm:$0xff]  ;;  %v15512_v48 = vmul.f32 %v15154_v4, %v17529_v56  ;;  %v17531_v35 = vld [vmem:[#allocation69_spill] sm:$0xff] }
0x1019   :  { %17522 = vst [vmem:[#allocation62_spill] sm:$0xff] %v15494_v3  ;;  %17524 = vst [vmem:[#allocation63_spill] sm:$0xff] %v15498_v17  ;;  %v15516_v3 = vmul.f32 %v15154_v4, %v17531_v35  ;;  %v17533_v0 = vld [vmem:[#allocation107_spill] sm:$0xff]  ;;  %v17534_v55 = vld [vmem:[#allocation70_spill] sm:$0xff]  ;;  %v15532_v56 = vmul.f32 %v15154_v4, %v17536_v33  ;;  %v15552_v33 = vmul.f32 %v15508_v63, %v15166_v37 }
0x101a   :  { %17526 = vst [vmem:[#allocation64_spill] sm:$0xff] %v15502_v1  ;;  %17528 = vst [vmem:[#allocation65_spill] sm:$0xff] %v15506_v24  ;;  %v15520_v17 = vmul.f32 %v15154_v4, %v17533_v0  ;;  %v15524_v1 = vmul.f32 %v15154_v4, %v17534_v55  ;;  %v17535_v12 = vld [vmem:[#allocation108_spill] sm:$0xff]  ;;  %v15544_v55 = vmul.f32 %v15508_v63, %v15158_v16 }
0x101b   :  { %17530 = vst [vmem:[#allocation53_spill] sm:$0xff] %v15512_v48  ;;  %17532 = vst [vmem:[#allocation82_spill] sm:$0xff] %v15516_v3  ;;  %v15528_v24 = vmul.f32 %v15154_v4, %v17535_v12  ;;  %v17537_v48 = vld [vmem:[#allocation109_spill] sm:$0xff]  ;;  %v17538_v3 = vld [vmem:[#allocation72_spill] sm:$0xff]  ;;  %v15548_v12 = vmul.f32 %v15508_v63, %v15162_v6  ;;  %v15564_v16 = vmul.f32 %v15508_v63, %v15178_v9 }
0x101c   :  { %v15536_v35 = vmul.f32 %v15154_v4, %v17537_v48  ;;  %v15540_v0 = vmul.f32 %v15154_v4, %v17538_v3  ;;  %v15556_v48 = vmul.f32 %v15508_v63, %v15170_v57  ;;  %v15560_v4 = vmul.f32 %v15508_v63, %v15174_v46  ;;  %v17544_v3 = vld [vmem:[#allocation110_spill] sm:$0xff] }
0x101d   :  { %v15568_v6 = vmul.f32 %v15508_v63, %v15182_v18  ;;  %v15572_v37 = vmul.f32 %v15508_v63, %v15186_v26  ;;  %v15576_v57 = vmul.f32 %v15508_v63, %v15190_v14  ;;  %v15580_v46 = vmul.f32 %v15508_v63, %v15194_v27 }
0x101e   :  { %v15584_v9 = vmul.f32 %v15508_v63, %v15198_v22  ;;  %v15588_v18 = vmul.f32 %v15508_v63, %v15202_v11  ;;  %v15592_v26 = vmul.f32 %v15508_v63, %v15206_v19  ;;  %v15596_v14 = vmul.f32 %v15508_v63, %v15210_v15 }
0x101f   :  { %v15600_v27 = vmul.f32 %v15508_v63, %v15214_v43  ;;  %v15604_v22 = vmul.f32 %v15508_v63, %v15218_v44  ;;  %v15608_v11 = vmul.f32 %v15508_v63, %v15222_v36  ;;  %v15612_v19 = vmul.f32 %v15508_v63, %v17544_v3 }
0x1020   :  { %17539 = vst [vmem:[#allocation84_spill] sm:$0xff] %v15592_v26  ;;  %17540 = vst [vmem:[#allocation83_spill] sm:$0xff] %v15596_v14  ;;  %v17546_v26 = vld [vmem:[#allocation73_spill] sm:$0xff]  ;;  %v17548_v14 = vld [vmem:[#allocation111_spill] sm:$0xff] }
0x1021   :  { %17541 = vst [vmem:[#allocation86_spill] sm:$0xff] %v15600_v27  ;;  %17542 = vst [vmem:[#allocation85_spill] sm:$0xff] %v15604_v22  ;;  %v15616_v15 = vmul.f32 %v15508_v63, %v17546_v26  ;;  %v15620_v43 = vmul.f32 %v15508_v63, %v17548_v14  ;;  %v17550_v27 = vld [vmem:[#allocation74_spill] sm:$0xff]  ;;  %v17552_v22 = vld [vmem:[#allocation112_spill] sm:$0xff] }
0x1022   :  { %17543 = vst [vmem:[#allocation88_spill] sm:$0xff] %v15608_v11  ;;  %17545 = vst [vmem:[#allocation87_spill] sm:$0xff] %v15612_v19  ;;  %v15624_v44 = vmul.f32 %v15508_v63, %v17550_v27  ;;  %v15628_v36 = vmul.f32 %v15508_v63, %v17552_v22  ;;  %v17554_v11 = vld [vmem:[#allocation75_spill] sm:$0xff]  ;;  %v17556_v19 = vld [vmem:[#allocation113_spill] sm:$0xff] }
0x1023   :  { %17547 = vst [vmem:[#allocation90_spill] sm:$0xff] %v15616_v15  ;;  %17549 = vst [vmem:[#allocation89_spill] sm:$0xff] %v15620_v43  ;;  %v15632_v3 = vmul.f32 %v15508_v63, %v17554_v11  ;;  %v15636_v26 = vmul.f32 %v15508_v63, %v17556_v19  ;;  %v17558_v15 = vld [vmem:[#allocation76_spill] sm:$0xff]  ;;  %v17560_v43 = vld [vmem:[#allocation114_spill] sm:$0xff] }
0x1024   :  { %17551 = vst [vmem:[#allocation92_spill] sm:$0xff] %v15624_v44  ;;  %17553 = vst [vmem:[#allocation91_spill] sm:$0xff] %v15628_v36  ;;  %v15640_v14 = vmul.f32 %v15508_v63, %v17558_v15  ;;  %v15644_v27 = vmul.f32 %v15508_v63, %v17560_v43  ;;  %v17562_v44 = vld [vmem:[#allocation77_spill] sm:$0xff]  ;;  %v17564_v36 = vld [vmem:[#allocation115_spill] sm:$0xff] }
0x1025   :  { %17555 = vst [vmem:[#allocation94_spill] sm:$0xff] %v15632_v3  ;;  %17557 = vst [vmem:[#allocation93_spill] sm:$0xff] %v15636_v26  ;;  %v15648_v22 = vmul.f32 %v15508_v63, %v17562_v44  ;;  %v15652_v11 = vmul.f32 %v15508_v63, %v17564_v36  ;;  %v17566_v3 = vld [vmem:[#allocation78_spill] sm:$0xff]  ;;  %v17568_v26 = vld [vmem:[#allocation116_spill] sm:$0xff] }
0x1026   :  { %17559 = vst [vmem:[#allocation96_spill] sm:$0xff] %v15640_v14  ;;  %17561 = vst [vmem:[#allocation95_spill] sm:$0xff] %v15644_v27  ;;  %v15656_v19 = vmul.f32 %v15508_v63, %v17566_v3  ;;  %v15660_v15 = vmul.f32 %v15508_v63, %v17568_v26  ;;  %v17570_v14 = vld [vmem:[#allocation79_spill] sm:$0xff]  ;;  %v17572_v27 = vld [vmem:[#allocation80_spill] sm:$0xff] }
0x1027   :  { %17563 = vst [vmem:[#allocation98_spill] sm:$0xff] %v15648_v22  ;;  %17565 = vst [vmem:[#allocation97_spill] sm:$0xff] %v15652_v11  ;;  %v15664_v43 = vmul.f32 %v15508_v63, %v17570_v14  ;;  %v15668_v44 = vmul.f32 %v15508_v63, %v17572_v27  ;;  %v17574_v22 = vld [vmem:[#allocation117_spill] sm:$0xff] }
0x1028   :  { %17567 = vst [vmem:[#allocation100_spill] sm:$0xff] %v15656_v19  ;;  %17569 = vst [vmem:[#allocation99_spill] sm:$0xff] %v15660_v15  ;;  %v15672_v36 = vmul.f32 %v15508_v63, %v17574_v22  ;;  %v17576_v11 = vld [vmem:[#allocation81_spill] sm:$0xff]  ;;  %v17578_v19 = vld [vmem:[#allocation118_spill] sm:$0xff] }
0x1029   :  { %17571 = vst [vmem:[#allocation102_spill] sm:$0xff] %v15664_v43  ;;  %17573 = vst [vmem:[#allocation101_spill] sm:$0xff] %v15668_v44  ;;  %v15676_v3 = vmul.f32 %v15508_v63, %v17576_v11  ;;  %v15680_v26 = vmul.f32 %v15508_v63, %v17578_v19  ;;  %v17580_v15 = vld [vmem:[#allocation119_spill] sm:$0xff]  ;;  %v17582_v43 = vld [vmem:[#allocation120_spill] sm:$0xff] }
0x102a   :  { %17575 = vst [vmem:[#allocation103_spill] sm:$0xff] %v15672_v36  ;;  %v15684_v14 = vmul.f32 %v15508_v63, %v17580_v15  ;;  %v15688_v27 = vmul.f32 %v15508_v63, %v17582_v43  ;;  %v17583_v44 = vld [vmem:[#allocation121_spill] sm:$0xff]  ;;  %v17585_v36 = vld [vmem:[#allocation122_spill] sm:$0xff] }
0x102b   :  { %17577 = vst [vmem:[#allocation66_spill] sm:$0xff] %v15676_v3  ;;  %17579 = vst [vmem:[#allocation104_spill] sm:$0xff] %v15680_v26  ;;  %v15692_v22 = vmul.f32 %v15508_v63, %v17583_v44  ;;  %v15696_v11 = vmul.f32 %v15508_v63, %v17585_v36  ;;  %v17586_v3 = vld [vmem:[#allocation123_spill] sm:$0xff]  ;;  %v17587_v26 = vld [vmem:[#allocation124_spill] sm:$0xff]  ;;  %v15712_v44 = vmul.f32 %v15508_v63, %v15326_v45 }
0x102c   :  { %17581 = vst [vmem:[#allocation67_spill] sm:$0xff] %v15684_v14  ;;  %v15700_v19 = vmul.f32 %v15508_v63, %v17586_v3  ;;  %v15704_v15 = vmul.f32 %v15508_v63, %v17587_v26  ;;  %v17588_v14 = vld [vmem:[#allocation125_spill] sm:$0xff]  ;;  %v15720_v3 = vmul.f32 %v15508_v63, %v15334_v20  ;;  %v15724_v26 = vmul.f32 %v15508_v63, %v15338_v54 }
0x102d   :  { %17584 = vst [vmem:[#allocation105_spill] sm:$0xff] %v15692_v22  ;;  %v15708_v43 = vmul.f32 %v15508_v63, %v17588_v14  ;;  %v17589_v22 = vld [vmem:[#allocation54_spill] sm:$0xff]  ;;  %v15728_v14 = vmul.f32 %v15508_v63, %v15342_v32  ;;  %v15732_v45 = vmul.f32 %v15508_v63, %v15346_v23  ;;  %v15740_v20 = vmul.f32 %v15508_v63, %v15354_v31 }
0x102e   :  { %v15716_v36 = vmul.f32 %v15508_v63, %v17589_v22  ;;  %v15736_v22 = vmul.f32 %v15508_v63, %v15350_v49  ;;  %v15744_v54 = vmul.f32 %v15508_v63, %v15358_v29  ;;  %v15748_v32 = vmul.f32 %v15508_v63, %v15362_v25 }
0x102f   :  { %v15752_v23 = vmul.f32 %v15508_v63, %v15366_v52  ;;  %v15756_v49 = vmul.f32 %v15508_v63, %v15370_v51  ;;  %v15760_v31 = vmul.f32 %v15508_v63, %v15374_v53  ;;  %v15764_v29 = vmul.f32 %v15508_v63, %v15378_v58 }
0x1030   :  { %v15768_v25 = vmul.f32 %v15508_v63, %v15382_v61  ;;  %v15772_v52 = vmul.f32 %v15508_v63, %v15386_v10  ;;  %v15776_v51 = vmul.f32 %v15508_v63, %v15390_v59  ;;  %v15780_v53 = vmul.f32 %v15508_v63, %v15394_v62 }
0x1031   :  { %v15784_v58 = vmul.f32 %v15508_v63, %v15398_v21  ;;  %v15788_v61 = vmul.f32 %v15508_v63, %v15402_v2  ;;  %v15792_v10 = vmul.f32 %v15508_v63, %v15406_v38  ;;  %v15796_v59 = vmul.f32 %v15508_v63, %v15410_v41 }
0x1032   :  { %v15800_v62 = vmul.f32 %v15508_v63, %v15414_v8  ;;  %v15804_v21 = vmul.f32 %v15508_v63, %v15418_v34  ;;  %v15808_v2 = vmul.f32 %v15508_v63, %v15422_v40  ;;  %v15812_v38 = vmul.f32 %v15508_v63, %v15426_v42 }
0x1033   :  { %v15816_v41 = vmul.f32 %v15508_v63, %v15430_v60  ;;  %v15820_v8 = vmul.f32 %v15508_v63, %v15434_v39  ;;  %v15824_v34 = vmul.f32 %v15508_v63, %v15438_v50  ;;  %v15828_v40 = vmul.f32 %v15508_v63, %v15442_v13 }
0x1034   :  { %v15832_v42 = vmul.f32 %v15508_v63, %v15446_v28  ;;  %v15836_v60 = vmul.f32 %v15508_v63, %v15450_v30  ;;  %v15840_v39 = vmul.f32 %v15508_v63, %v15454_v47  ;;  %v15844_v50 = vmul.f32 %v15508_v63, %v15458_v7 }
0x1035   :  { %17590 = vst [vmem:[#allocation68_spill] sm:$0xff] %v15828_v40  ;;  %v15848_v13 = vmul.f32 %v15508_v63, %v15462_v5  ;;  %v17596_v40 = vld [vmem:[#allocation55_spill] sm:$0xff] }
0x1036   :  { %17591 = vst [vmem:[#allocation106_spill] sm:$0xff] %v15832_v42  ;;  %17592 = vst [vmem:[#allocation69_spill] sm:$0xff] %v15836_v60  ;;  %v15852_v28 = vmul.f32 %v15508_v63, %v17596_v40  ;;  %v17598_v42 = vld [vmem:[#allocation56_spill] sm:$0xff]  ;;  %v17600_v60 = vld [vmem:[#allocation57_spill] sm:$0xff] }
0x1037   :  { %17593 = vst [vmem:[#allocation107_spill] sm:$0xff] %v15840_v39  ;;  %17594 = vst [vmem:[#allocation70_spill] sm:$0xff] %v15844_v50  ;;  %v15856_v30 = vmul.f32 %v15508_v63, %v17598_v42  ;;  %v15860_v47 = vmul.f32 %v15508_v63, %v17600_v60  ;;  %v17602_v39 = vld [vmem:[#allocation58_spill] sm:$0xff]  ;;  %v17604_v50 = vld [vmem:[#allocation59_spill] sm:$0xff] }
0x1038   :  { %17595 = vst [vmem:[#allocation108_spill] sm:$0xff] %v15848_v13  ;;  %17597 = vst [vmem:[#allocation71_spill] sm:$0xff] %v15852_v28  ;;  %v15864_v7 = vmul.f32 %v15508_v63, %v17602_v39  ;;  %v15868_v5 = vmul.f32 %v15508_v63, %v17604_v50  ;;  %v17606_v13 = vld [vmem:[#allocation60_spill] sm:$0xff]  ;;  %v17608_v28 = vld [vmem:[#allocation61_spill] sm:$0xff] }
0x1039   :  { %17599 = vst [vmem:[#allocation109_spill] sm:$0xff] %v15856_v30  ;;  %17601 = vst [vmem:[#allocation72_spill] sm:$0xff] %v15860_v47  ;;  %v15872_v40 = vmul.f32 %v15508_v63, %v17606_v13  ;;  %v15876_v42 = vmul.f32 %v15508_v63, %v17608_v28  ;;  %v17610_v30 = vld [vmem:[#allocation62_spill] sm:$0xff]  ;;  %v17612_v47 = vld [vmem:[#allocation63_spill] sm:$0xff] }
0x103a   :  { %17603 = vst [vmem:[#allocation110_spill] sm:$0xff] %v15864_v7  ;;  %17605 = vst [vmem:[#allocation73_spill] sm:$0xff] %v15868_v5  ;;  %v15880_v60 = vmul.f32 %v15508_v63, %v17610_v30  ;;  %v15884_v39 = vmul.f32 %v15508_v63, %v17612_v47  ;;  %v17613_v7 = vld [vmem:[#allocation64_spill] sm:$0xff]  ;;  %v17614_v5 = vld [vmem:[#allocation65_spill] sm:$0xff]  ;;  %v15906_v47 = vmul.f32 %v15508_v63, %v15520_v17 }
0x103b   :  { %17607 = vst [vmem:[#allocation111_spill] sm:$0xff] %v15872_v40  ;;  %17609 = vst [vmem:[#allocation74_spill] sm:$0xff] %v15876_v42  ;;  %v15888_v50 = vmul.f32 %v15508_v63, %v17613_v7  ;;  %v15892_v13 = vmul.f32 %v15508_v63, %v17614_v5  ;;  %v15894_v40 = vld [vmem:[#allocation38] ss:$0 sm:$0xff]  ;;  %v17615_v28 = vld [vmem:[#allocation53_spill] sm:$0xff]  ;;  %v15910_v7 = vmul.f32 %v15508_v63, %v15524_v1 }
0x103c   :  { %17611 = vst [vmem:[#allocation112_spill] sm:$0xff] %v15880_v60  ;;  %v15898_v42 = vmul.f32 %v15508_v63, %v17615_v28  ;;  %v17616_v30 = vld [vmem:[#allocation82_spill] sm:$0xff]  ;;  %v15914_v5 = vmul.f32 %v15508_v63, %v15528_v24  ;;  %v15918_v28 = vmul.f32 %v15508_v63, %v15532_v56  ;;  %v15926_v17 = vmul.f32 %v15508_v63, %v15540_v0 }
0x103d   :  { %v15902_v60 = vmul.f32 %v15508_v63, %v17616_v30  ;;  %v15922_v30 = vmul.f32 %v15508_v63, %v15536_v35  ;;  %v15930_v1 = vadd.f32 %v15894_v40, %v15544_v55  ;;  %v15934_v24 = vadd.f32 %v15894_v40, %v15548_v12 }
0x103e   :  { %v15938_v56 = vadd.f32 %v15894_v40, %v15552_v33  ;;  %v15942_v35 = vadd.f32 %v15894_v40, %v15556_v48  ;;  %v15946_v63 = vadd.f32 %v15894_v40, %v15560_v4  ;;  %v15950_v0 = vadd.f32 %v15894_v40, %v15564_v16 }
0x103f   :  { %v15954_v55 = vadd.f32 %v15894_v40, %v15568_v6  ;;  %v15958_v12 = vadd.f32 %v15894_v40, %v15572_v37  ;;  %v15962_v33 = vadd.f32 %v15894_v40, %v15576_v57  ;;  %v15966_v48 = vadd.f32 %v15894_v40, %v15580_v46  ;;  %v17622_v6 = vld [vmem:[#allocation84_spill] sm:$0xff] }
0x1040   :  { %v15970_v4 = vadd.f32 %v15894_v40, %v15584_v9  ;;  %v15974_v16 = vadd.f32 %v15894_v40, %v15588_v18  ;;  %v15978_v37 = vadd.f32 %v15894_v40, %v17622_v6 }
0x1041   :  { %17617 = vst [vmem:[#allocation75_spill] sm:$0xff] %v15958_v12  ;;  %17618 = vst [vmem:[#allocation113_spill] sm:$0xff] %v15962_v33  ;;  %v17624_v12 = vld [vmem:[#allocation83_spill] sm:$0xff]  ;;  %v17626_v33 = vld [vmem:[#allocation86_spill] sm:$0xff] }
0x1042   :  { %17619 = vst [vmem:[#allocation76_spill] sm:$0xff] %v15966_v48  ;;  %17620 = vst [vmem:[#allocation114_spill] sm:$0xff] %v15970_v4  ;;  %v15982_v57 = vadd.f32 %v15894_v40, %v17624_v12  ;;  %v15986_v46 = vadd.f32 %v15894_v40, %v17626_v33  ;;  %v17628_v48 = vld [vmem:[#allocation85_spill] sm:$0xff]  ;;  %v17630_v4 = vld [vmem:[#allocation88_spill] sm:$0xff] }
0x1043   :  { %17621 = vst [vmem:[#allocation77_spill] sm:$0xff] %v15974_v16  ;;  %17623 = vst [vmem:[#allocation115_spill] sm:$0xff] %v15978_v37  ;;  %v15990_v9 = vadd.f32 %v15894_v40, %v17628_v48  ;;  %v15994_v18 = vadd.f32 %v15894_v40, %v17630_v4  ;;  %v17632_v16 = vld [vmem:[#allocation87_spill] sm:$0xff]  ;;  %v17634_v37 = vld [vmem:[#allocation90_spill] sm:$0xff] }
0x1044   :  { %17625 = vst [vmem:[#allocation78_spill] sm:$0xff] %v15982_v57  ;;  %17627 = vst [vmem:[#allocation116_spill] sm:$0xff] %v15986_v46  ;;  %v15998_v6 = vadd.f32 %v15894_v40, %v17632_v16  ;;  %v16002_v12 = vadd.f32 %v15894_v40, %v17634_v37  ;;  %v17636_v57 = vld [vmem:[#allocation89_spill] sm:$0xff]  ;;  %v17638_v46 = vld [vmem:[#allocation92_spill] sm:$0xff] }
0x1045   :  { %17629 = vst [vmem:[#allocation79_spill] sm:$0xff] %v15990_v9  ;;  %17631 = vst [vmem:[#allocation80_spill] sm:$0xff] %v15994_v18  ;;  %v16006_v33 = vadd.f32 %v15894_v40, %v17636_v57  ;;  %v16010_v48 = vadd.f32 %v15894_v40, %v17638_v46  ;;  %v17640_v9 = vld [vmem:[#allocation91_spill] sm:$0xff]  ;;  %v17642_v18 = vld [vmem:[#allocation94_spill] sm:$0xff] }
0x1046   :  { %17633 = vst [vmem:[#allocation117_spill] sm:$0xff] %v15998_v6  ;;  %17635 = vst [vmem:[#allocation81_spill] sm:$0xff] %v16002_v12  ;;  %v16014_v4 = vadd.f32 %v15894_v40, %v17640_v9  ;;  %v16018_v16 = vadd.f32 %v15894_v40, %v17642_v18  ;;  %v17644_v6 = vld [vmem:[#allocation93_spill] sm:$0xff]  ;;  %v17646_v12 = vld [vmem:[#allocation96_spill] sm:$0xff] }
0x1047   :  { %17637 = vst [vmem:[#allocation118_spill] sm:$0xff] %v16006_v33  ;;  %17639 = vst [vmem:[#allocation119_spill] sm:$0xff] %v16010_v48  ;;  %v16022_v37 = vadd.f32 %v15894_v40, %v17644_v6  ;;  %v16026_v57 = vadd.f32 %v15894_v40, %v17646_v12  ;;  %v17648_v33 = vld [vmem:[#allocation95_spill] sm:$0xff]  ;;  %v17650_v48 = vld [vmem:[#allocation98_spill] sm:$0xff] }
0x1048   :  { %17641 = vst [vmem:[#allocation120_spill] sm:$0xff] %v16014_v4  ;;  %17643 = vst [vmem:[#allocation121_spill] sm:$0xff] %v16018_v16  ;;  %v16030_v46 = vadd.f32 %v15894_v40, %v17648_v33  ;;  %v16034_v9 = vadd.f32 %v15894_v40, %v17650_v48  ;;  %v17652_v4 = vld [vmem:[#allocation97_spill] sm:$0xff]  ;;  %v17654_v16 = vld [vmem:[#allocation100_spill] sm:$0xff] }
0x1049   :  { %17645 = vst [vmem:[#allocation122_spill] sm:$0xff] %v16022_v37  ;;  %17647 = vst [vmem:[#allocation123_spill] sm:$0xff] %v16026_v57  ;;  %v16038_v18 = vadd.f32 %v15894_v40, %v17652_v4  ;;  %v16042_v6 = vadd.f32 %v15894_v40, %v17654_v16  ;;  %v17656_v37 = vld [vmem:[#allocation99_spill] sm:$0xff]  ;;  %v17658_v57 = vld [vmem:[#allocation102_spill] sm:$0xff] }
0x104a   :  { %17649 = vst [vmem:[#allocation124_spill] sm:$0xff] %v16030_v46  ;;  %17651 = vst [vmem:[#allocation125_spill] sm:$0xff] %v16034_v9  ;;  %v16046_v12 = vadd.f32 %v15894_v40, %v17656_v37  ;;  %v16050_v33 = vadd.f32 %v15894_v40, %v17658_v57  ;;  %v17659_v46 = vld [vmem:[#allocation101_spill] sm:$0xff]  ;;  %v17661_v9 = vld [vmem:[#allocation103_spill] sm:$0xff] }
0x104b   :  { %17653 = vst [vmem:[#allocation54_spill] sm:$0xff] %v16038_v18  ;;  %17655 = vst [vmem:[#allocation55_spill] sm:$0xff] %v16042_v6  ;;  %v16054_v48 = vadd.f32 %v15894_v40, %v17659_v46  ;;  %v16058_v4 = vadd.f32 %v15894_v40, %v17661_v9  ;;  %v17662_v18 = vld [vmem:[#allocation66_spill] sm:$0xff]  ;;  %v17663_v6 = vld [vmem:[#allocation104_spill] sm:$0xff]  ;;  %v16074_v46 = vadd.f32 %v15894_v40, %v15688_v27 }
0x104c   :  { %17657 = vst [vmem:[#allocation56_spill] sm:$0xff] %v16046_v12  ;;  %v16062_v16 = vadd.f32 %v15894_v40, %v17662_v18  ;;  %v16066_v37 = vadd.f32 %v15894_v40, %v17663_v6  ;;  %v17664_v12 = vld [vmem:[#allocation67_spill] sm:$0xff]  ;;  %v16082_v18 = vadd.f32 %v15894_v40, %v15696_v11  ;;  %v16086_v6 = vadd.f32 %v15894_v40, %v15700_v19 }
0x104d   :  { %17660 = vst [vmem:[#allocation57_spill] sm:$0xff] %v16054_v48  ;;  %v16070_v57 = vadd.f32 %v15894_v40, %v17664_v12  ;;  %v17665_v48 = vld [vmem:[#allocation105_spill] sm:$0xff]  ;;  %v16090_v12 = vadd.f32 %v15894_v40, %v15704_v15  ;;  %v16094_v27 = vadd.f32 %v15894_v40, %v15708_v43  ;;  %v16102_v11 = vadd.f32 %v15894_v40, %v15716_v36 }
0x104e   :  { %v16078_v9 = vadd.f32 %v15894_v40, %v17665_v48  ;;  %v16098_v48 = vadd.f32 %v15894_v40, %v15712_v44  ;;  %v16106_v19 = vadd.f32 %v15894_v40, %v15720_v3  ;;  %v16110_v15 = vadd.f32 %v15894_v40, %v15724_v26 }
0x104f   :  { %v16114_v43 = vadd.f32 %v15894_v40, %v15728_v14  ;;  %v16118_v44 = vadd.f32 %v15894_v40, %v15732_v45  ;;  %v16122_v36 = vadd.f32 %v15894_v40, %v15736_v22  ;;  %v16126_v3 = vadd.f32 %v15894_v40, %v15740_v20 }
0x1050   :  { %v16130_v26 = vadd.f32 %v15894_v40, %v15744_v54  ;;  %v16134_v14 = vadd.f32 %v15894_v40, %v15748_v32  ;;  %v16138_v45 = vadd.f32 %v15894_v40, %v15752_v23  ;;  %v16142_v22 = vadd.f32 %v15894_v40, %v15756_v49 }
0x1051   :  { %v16146_v20 = vadd.f32 %v15894_v40, %v15760_v31  ;;  %v16150_v54 = vadd.f32 %v15894_v40, %v15764_v29  ;;  %v16154_v32 = vadd.f32 %v15894_v40, %v15768_v25  ;;  %v16158_v23 = vadd.f32 %v15894_v40, %v15772_v52 }
0x1052   :  { %v16162_v49 = vadd.f32 %v15894_v40, %v15776_v51  ;;  %v16166_v31 = vadd.f32 %v15894_v40, %v15780_v53  ;;  %v16170_v29 = vadd.f32 %v15894_v40, %v15784_v58  ;;  %v16174_v25 = vadd.f32 %v15894_v40, %v15788_v61 }
0x1053   :  { %v16178_v52 = vadd.f32 %v15894_v40, %v15792_v10  ;;  %v16182_v51 = vadd.f32 %v15894_v40, %v15796_v59  ;;  %v16186_v53 = vadd.f32 %v15894_v40, %v15800_v62  ;;  %v16190_v58 = vadd.f32 %v15894_v40, %v15804_v21 }
0x1054   :  { %v16194_v61 = vadd.f32 %v15894_v40, %v15808_v2  ;;  %v16198_v10 = vadd.f32 %v15894_v40, %v15812_v38  ;;  %v16202_v59 = vadd.f32 %v15894_v40, %v15816_v41  ;;  %v16206_v62 = vadd.f32 %v15894_v40, %v15820_v8 }
0x1055   :  { %17666 = vst [vmem:[#allocation58_spill] sm:$0xff] %v16190_v58  ;;  %v16210_v21 = vadd.f32 %v15894_v40, %v15824_v34  ;;  %v17672_v58 = vld [vmem:[#allocation68_spill] sm:$0xff] }
0x1056   :  { %17667 = vst [vmem:[#allocation59_spill] sm:$0xff] %v16194_v61  ;;  %17668 = vst [vmem:[#allocation60_spill] sm:$0xff] %v16198_v10  ;;  %v16214_v2 = vadd.f32 %v15894_v40, %v17672_v58  ;;  %v17674_v61 = vld [vmem:[#allocation106_spill] sm:$0xff]  ;;  %v17676_v10 = vld [vmem:[#allocation69_spill] sm:$0xff] }
0x1057   :  { %17669 = vst [vmem:[#allocation61_spill] sm:$0xff] %v16202_v59  ;;  %17670 = vst [vmem:[#allocation62_spill] sm:$0xff] %v16206_v62  ;;  %v16218_v38 = vadd.f32 %v15894_v40, %v17674_v61  ;;  %v16222_v41 = vadd.f32 %v15894_v40, %v17676_v10  ;;  %v17678_v59 = vld [vmem:[#allocation107_spill] sm:$0xff]  ;;  %v17680_v62 = vld [vmem:[#allocation70_spill] sm:$0xff] }
0x1058   :  { %17671 = vst [vmem:[#allocation63_spill] sm:$0xff] %v16210_v21  ;;  %17673 = vst [vmem:[#allocation64_spill] sm:$0xff] %v16214_v2  ;;  %v16226_v8 = vadd.f32 %v15894_v40, %v17678_v59  ;;  %v16230_v34 = vadd.f32 %v15894_v40, %v17680_v62  ;;  %v17682_v21 = vld [vmem:[#allocation108_spill] sm:$0xff]  ;;  %v17684_v2 = vld [vmem:[#allocation71_spill] sm:$0xff] }
0x1059   :  { %17675 = vst [vmem:[#allocation65_spill] sm:$0xff] %v16218_v38  ;;  %17677 = vst [vmem:[#allocation53_spill] sm:$0xff] %v16222_v41  ;;  %v16234_v58 = vadd.f32 %v15894_v40, %v17682_v21  ;;  %v16238_v61 = vadd.f32 %v15894_v40, %v17684_v2  ;;  %v17686_v38 = vld [vmem:[#allocation109_spill] sm:$0xff]  ;;  %v17688_v41 = vld [vmem:[#allocation72_spill] sm:$0xff] }
0x105a   :  { %17679 = vst [vmem:[#allocation82_spill] sm:$0xff] %v16226_v8  ;;  %17681 = vst [vmem:[#allocation84_spill] sm:$0xff] %v16230_v34  ;;  %v16242_v10 = vadd.f32 %v15894_v40, %v17686_v38  ;;  %v16246_v59 = vadd.f32 %v15894_v40, %v17688_v41  ;;  %v17689_v8 = vld [vmem:[#allocation110_spill] sm:$0xff]  ;;  %v17690_v34 = vld [vmem:[#allocation73_spill] sm:$0xff] }
0x105b   :  { %17683 = vst [vmem:[#allocation83_spill] sm:$0xff] %v16234_v58  ;;  %17685 = vst [vmem:[#allocation86_spill] sm:$0xff] %v16238_v61  ;;  %v16250_v62 = vadd.f32 %v15894_v40, %v17689_v8  ;;  %v16254_v21 = vadd.f32 %v15894_v40, %v17690_v34  ;;  %v17691_v58 = vld [vmem:[#allocation111_spill] sm:$0xff]  ;;  %v17692_v61 = vld [vmem:[#allocation74_spill] sm:$0xff]  ;;  %v16270_v8 = vadd.f32 %v15894_v40, %v15884_v39 }
0x105c   :  { %17687 = vst [vmem:[#allocation85_spill] sm:$0xff] %v16242_v10  ;;  %v16258_v2 = vadd.f32 %v15894_v40, %v17691_v58  ;;  %v16262_v38 = vadd.f32 %v15894_v40, %v17692_v61  ;;  %v17693_v10 = vld [vmem:[#allocation112_spill] sm:$0xff]  ;;  %v16274_v34 = vadd.f32 %v15894_v40, %v15888_v50  ;;  %v16278_v58 = vadd.f32 %v15894_v40, %v15892_v13 }
0x105d   :  { %v16266_v41 = vadd.f32 %v15894_v40, %v17693_v10  ;;  %v16282_v61 = vadd.f32 %v15894_v40, %v15898_v42  ;;  %v16286_v10 = vadd.f32 %v15894_v40, %v15902_v60  ;;  %v16290_v39 = vadd.f32 %v15894_v40, %v15906_v47 }
0x105e   :  { %17694 = vst [vmem:[#allocation88_spill] sm:$0xff] %v16278_v58  ;;  %v16294_v50 = vadd.f32 %v15894_v40, %v15910_v7  ;;  %v16298_v13 = vadd.f32 %v15894_v40, %v15914_v5  ;;  %v16302_v42 = vadd.f32 %v15894_v40, %v15918_v28  ;;  %v16306_v60 = vadd.f32 %v15894_v40, %v15922_v30  ;;  %v17703_v30 = vld [vmem:[#allocation75_spill] sm:$0xff]  ;;  %v17707_v58 = vld [vmem:[#allocation77_spill] sm:$0xff] }
0x105f   :  { %17695 = vst [vmem:[#allocation87_spill] sm:$0xff] %v16282_v61  ;;  %17696 = vst [vmem:[#allocation90_spill] sm:$0xff] %v16286_v10  ;;  %v16310_v47 = vadd.f32 %v15894_v40, %v15926_v17  ;;  %v7361_v7 = vmax.f32 %v15934_v24, 0.0  ;;  %v7363_v5 = vmax.f32 %v15942_v35, 0.0  ;;  %v7365_v28 = vmax.f32 %v15950_v0, 0.0  ;;  %v17704_v10 = vld [vmem:[#allocation113_spill] sm:$0xff] }
0x1060   :  { %17697 = vst [vmem:[#allocation89_spill] sm:$0xff] %v16290_v39  ;;  %17698 = vst [vmem:[#allocation92_spill] sm:$0xff] %v16294_v50  ;;  %v7360_v39 = vmax.f32 %v15930_v1, 0.0  ;;  %v7362_v50 = vmax.f32 %v15938_v56, 0.0  ;;  %v7368_v61 = vmax.f32 %v17704_v10, 0.0  ;;  %v17705_v40 = vld [vmem:[#allocation76_spill] sm:$0xff] }
0x1061   :  { %17699 = vst [vmem:[#allocation91_spill] sm:$0xff] %v16298_v13  ;;  %17700 = vst [vmem:[#allocation94_spill] sm:$0xff] %v16302_v42  ;;  %v7364_v13 = vmax.f32 %v15946_v63, 0.0  ;;  %v7366_v42 = vmax.f32 %v15954_v55, 0.0  ;;  %v7369_v17 = vmax.f32 %v17705_v40, 0.0  ;;  %v7371_v24 = vmax.f32 %v17707_v58, 0.0 }
0x1062   :  { %17701 = vst [vmem:[#allocation93_spill] sm:$0xff] %v16306_v60  ;;  %17702 = vst [vmem:[#allocation96_spill] sm:$0xff] %v16310_v47  ;;  %v7367_v60 = vmax.f32 %v17703_v30, 0.0  ;;  %v17706_v47 = vld [vmem:[#allocation114_spill] sm:$0xff]  ;;  %v17709_v56 = vld [vmem:[#allocation115_spill] sm:$0xff] }
0x1063   :  { %v7370_v1 = vmax.f32 %v17706_v47, 0.0  ;;  %7456 = vst.msk [vmem:[%s17708_s29] sm:$0xff] %vm6302_vm5, %v7360_v39  ;;  %7457 = vst.msk [vmem:[%s17708_s29 + $0x8] sm:$0xff] %vm6302_vm5, %v7361_v7  ;;  %v7372_v35 = vmax.f32 %v17709_v56, 0.0  ;;  %v17710_v63 = vld [vmem:[#allocation78_spill] sm:$0xff]  ;;  %v17711_v55 = vld [vmem:[#allocation116_spill] sm:$0xff] }
0x1064   :  { %7458 = vst.msk [vmem:[%s17708_s29 + $0x10] sm:$0xff] %vm6302_vm5, %v7362_v50  ;;  %7459 = vst.msk [vmem:[%s17708_s29 + $0x18] sm:$0xff] %vm6302_vm5, %v7363_v5  ;;  %v7373_v0 = vmax.f32 %v17710_v63, 0.0  ;;  %v7374_v58 = vmax.f32 %v17711_v55, 0.0  ;;  %v17712_v10 = vld [vmem:[#allocation79_spill] sm:$0xff]  ;;  %v17713_v50 = vld [vmem:[#allocation80_spill] sm:$0xff] }
0x1065   :  { %v7375_v39 = vmax.f32 %v17712_v10, 0.0  ;;  %7460 = vst.msk [vmem:[%s17708_s29 + $0x20] sm:$0xff] %vm6302_vm5, %v7364_v13  ;;  %7461 = vst.msk [vmem:[%s17708_s29 + $0x28] sm:$0xff] %vm6302_vm5, %v7365_v28  ;;  %v7376_v47 = vmax.f32 %v17713_v50, 0.0  ;;  %v17714_v7 = vld [vmem:[#allocation117_spill] sm:$0xff]  ;;  %v17716_v40 = vld [vmem:[#allocation118_spill] sm:$0xff] }
0x1066   :  { %7462 = vst.msk [vmem:[%s17708_s29 + $0x30] sm:$0xff] %vm6302_vm5, %v7366_v42  ;;  %7463 = vst.msk [vmem:[%s17708_s29 + $0x38] sm:$0xff] %vm6302_vm5, %v7367_v60  ;;  %v7377_v5 = vmax.f32 %v17714_v7, 0.0  ;;  %v17715_v13 = vld [vmem:[#allocation81_spill] sm:$0xff]  ;;  %v7379_v56 = vmax.f32 %v17716_v40, 0.0  ;;  %v17717_v42 = vld [vmem:[#allocation119_spill] sm:$0xff] }
0x1067   :  { %v7378_v30 = vmax.f32 %v17715_v13, 0.0  ;;  %7464 = vst.msk [vmem:[%s17708_s29 + $0x40] sm:$0xff] %vm6302_vm5, %v7368_v61  ;;  %7465 = vst.msk [vmem:[%s17708_s29 + $0x48] sm:$0xff] %vm6302_vm5, %v7369_v17  ;;  %v7380_v60 = vmax.f32 %v17717_v42, 0.0  ;;  %v17718_v28 = vld [vmem:[#allocation120_spill] sm:$0xff]  ;;  %v17719_v61 = vld [vmem:[#allocation121_spill] sm:$0xff] }
0x1068   :  { %7466 = vst.msk [vmem:[%s17708_s29 + $0x50] sm:$0xff] %vm6302_vm5, %v7370_v1  ;;  %7467 = vst.msk [vmem:[%s17708_s29 + $0x58] sm:$0xff] %vm6302_vm5, %v7371_v24  ;;  %v7381_v63 = vmax.f32 %v17718_v28, 0.0  ;;  %v7382_v55 = vmax.f32 %v17719_v61, 0.0  ;;  %v17720_v10 = vld [vmem:[#allocation122_spill] sm:$0xff]  ;;  %v17721_v17 = vld [vmem:[#allocation123_spill] sm:$0xff] }
0x1069   :  { %v7383_v50 = vmax.f32 %v17720_v10, 0.0  ;;  %7468 = vst.msk [vmem:[%s17708_s29 + $0x60] sm:$0xff] %vm6302_vm5, %v7372_v35  ;;  %7469 = vst.msk [vmem:[%s17708_s29 + $0x68] sm:$0xff] %vm6302_vm5, %v7373_v0  ;;  %v7384_v1 = vmax.f32 %v17721_v17, 0.0  ;;  %v17722_v24 = vld [vmem:[#allocation124_spill] sm:$0xff]  ;;  %v17723_v35 = vld [vmem:[#allocation125_spill] sm:$0xff] }
0x106a   :  { %7470 = vst.msk [vmem:[%s17708_s29 + $0x70] sm:$0xff] %vm6302_vm5, %v7374_v58  ;;  %7471 = vst.msk [vmem:[%s17708_s29 + $0x78] sm:$0xff] %vm6302_vm5, %v7375_v39  ;;  %v7385_v7 = vmax.f32 %v17722_v24, 0.0  ;;  %v7386_v13 = vmax.f32 %v17723_v35, 0.0  ;;  %v17724_v40 = vld [vmem:[#allocation54_spill] sm:$0xff]  ;;  %v17725_v0 = vld [vmem:[#allocation55_spill] sm:$0xff] }
0x106b   :  { %v7387_v42 = vmax.f32 %v17724_v40, 0.0  ;;  %7472 = vst.msk [vmem:[%s17708_s29 + $0x80] sm:$0xff] %vm6302_vm5, %v7376_v47  ;;  %7473 = vst.msk [vmem:[%s17708_s29 + $0x88] sm:$0xff] %vm6302_vm5, %v7377_v5  ;;  %v7388_v58 = vmax.f32 %v17725_v0, 0.0  ;;  %v17726_v39 = vld [vmem:[#allocation56_spill] sm:$0xff]  ;;  %v7390_v47 = vmax.f32 %v16050_v33, 0.0 }
0x106c   :  { %7474 = vst.msk [vmem:[%s17708_s29 + $0x90] sm:$0xff] %vm6302_vm5, %v7378_v30  ;;  %7475 = vst.msk [vmem:[%s17708_s29 + $0x98] sm:$0xff] %vm6302_vm5, %v7379_v56  ;;  %v7389_v28 = vmax.f32 %v17726_v39, 0.0  ;;  %v17727_v61 = vld [vmem:[#allocation57_spill] sm:$0xff]  ;;  %v7392_v33 = vmax.f32 %v16058_v4, 0.0  ;;  %v7393_v5 = vmax.f32 %v16062_v16, 0.0 }
0x106d   :  { %v7391_v10 = vmax.f32 %v17727_v61, 0.0  ;;  %7476 = vst.msk [vmem:[%s17708_s29 + $0xa0] sm:$0xff] %vm6302_vm5, %v7380_v60  ;;  %7477 = vst.msk [vmem:[%s17708_s29 + $0xa8] sm:$0xff] %vm6302_vm5, %v7381_v63  ;;  %v7394_v30 = vmax.f32 %v16066_v37, 0.0  ;;  %v7395_v56 = vmax.f32 %v16070_v57, 0.0  ;;  %v7396_v4 = vmax.f32 %v16074_v46, 0.0 }
0x106e   :  { %7478 = vst.msk [vmem:[%s17708_s29 + $0xb0] sm:$0xff] %vm6302_vm5, %v7382_v55  ;;  %7479 = vst.msk [vmem:[%s17708_s29 + $0xb8] sm:$0xff] %vm6302_vm5, %v7383_v50  ;;  %v7397_v16 = vmax.f32 %v16078_v9, 0.0  ;;  %v7398_v37 = vmax.f32 %v16082_v18, 0.0  ;;  %v7399_v57 = vmax.f32 %v16086_v6, 0.0  ;;  %v7400_v46 = vmax.f32 %v16090_v12, 0.0 }
0x106f   :  { %7480 = vst.msk [vmem:[%s17708_s29 + $0xc0] sm:$0xff] %vm6302_vm5, %v7384_v1  ;;  %7481 = vst.msk [vmem:[%s17708_s29 + $0xc8] sm:$0xff] %vm6302_vm5, %v7385_v7  ;;  %v7401_v9 = vmax.f32 %v16094_v27, 0.0  ;;  %v7402_v18 = vmax.f32 %v16098_v48, 0.0  ;;  %v7403_v6 = vmax.f32 %v16102_v11, 0.0  ;;  %v7404_v12 = vmax.f32 %v16106_v19, 0.0 }
0x1070   :  { %7482 = vst.msk [vmem:[%s17708_s29 + $0xd0] sm:$0xff] %vm6302_vm5, %v7386_v13  ;;  %7483 = vst.msk [vmem:[%s17708_s29 + $0xd8] sm:$0xff] %vm6302_vm5, %v7387_v42  ;;  %v7405_v27 = vmax.f32 %v16110_v15, 0.0  ;;  %v7406_v48 = vmax.f32 %v16114_v43, 0.0  ;;  %v7407_v11 = vmax.f32 %v16118_v44, 0.0  ;;  %v7408_v19 = vmax.f32 %v16122_v36, 0.0 }
0x1071   :  { %7484 = vst.msk [vmem:[%s17708_s29 + $0xe0] sm:$0xff] %vm6302_vm5, %v7388_v58  ;;  %7485 = vst.msk [vmem:[%s17708_s29 + $0xe8] sm:$0xff] %vm6302_vm5, %v7389_v28  ;;  %v7409_v15 = vmax.f32 %v16126_v3, 0.0  ;;  %v7410_v43 = vmax.f32 %v16130_v26, 0.0  ;;  %v7411_v44 = vmax.f32 %v16134_v14, 0.0  ;;  %v7412_v36 = vmax.f32 %v16138_v45, 0.0 }
0x1072   :  { %7486 = vst.msk [vmem:[%s17708_s29 + $0xf0] sm:$0xff] %vm6302_vm5, %v7390_v47  ;;  %7487 = vst.msk [vmem:[%s17708_s29 + $0xf8] sm:$0xff] %vm6302_vm5, %v7391_v10  ;;  %v7413_v3 = vmax.f32 %v16142_v22, 0.0  ;;  %v7414_v26 = vmax.f32 %v16146_v20, 0.0  ;;  %v7415_v14 = vmax.f32 %v16150_v54, 0.0  ;;  %v7416_v45 = vmax.f32 %v16154_v32, 0.0 }
0x1073   :  { %7488 = vst.msk [vmem:[%s17708_s29 + $0x100] sm:$0xff] %vm6302_vm5, %v7392_v33  ;;  %7489 = vst.msk [vmem:[%s17708_s29 + $0x108] sm:$0xff] %vm6302_vm5, %v7393_v5  ;;  %v7417_v22 = vmax.f32 %v16158_v23, 0.0  ;;  %v7418_v20 = vmax.f32 %v16162_v49, 0.0  ;;  %v7419_v54 = vmax.f32 %v16166_v31, 0.0  ;;  %v7420_v32 = vmax.f32 %v16170_v29, 0.0 }
0x1074   :  { %7490 = vst.msk [vmem:[%s17708_s29 + $0x110] sm:$0xff] %vm6302_vm5, %v7394_v30  ;;  %7491 = vst.msk [vmem:[%s17708_s29 + $0x118] sm:$0xff] %vm6302_vm5, %v7395_v56  ;;  %v7421_v23 = vmax.f32 %v16174_v25, 0.0  ;;  %v7422_v49 = vmax.f32 %v16178_v52, 0.0  ;;  %v7423_v31 = vmax.f32 %v16182_v51, 0.0  ;;  %v7424_v29 = vmax.f32 %v16186_v53, 0.0 }
0x1075   :  { %7492 = vst.msk [vmem:[%s17708_s29 + $0x120] sm:$0xff] %vm6302_vm5, %v7396_v4  ;;  %7493 = vst.msk [vmem:[%s17708_s29 + $0x128] sm:$0xff] %vm6302_vm5, %v7397_v16  ;;  %v17728_v25 = vld [vmem:[#allocation58_spill] sm:$0xff]  ;;  %v17729_v51 = vld [vmem:[#allocation59_spill] sm:$0xff]  ;;  %v7439_v16 = vmax.f32 %v16246_v59, 0.0  ;;  %v7440_v59 = vmax.f32 %v16250_v62, 0.0 }
0x1076   :  { %7494 = vst.msk [vmem:[%s17708_s29 + $0x130] sm:$0xff] %vm6302_vm5, %v7398_v37  ;;  %7495 = vst.msk [vmem:[%s17708_s29 + $0x138] sm:$0xff] %vm6302_vm5, %v7399_v57  ;;  %v7425_v52 = vmax.f32 %v17728_v25, 0.0  ;;  %v7426_v60 = vmax.f32 %v17729_v51, 0.0  ;;  %v17730_v63 = vld [vmem:[#allocation60_spill] sm:$0xff]  ;;  %v17731_v53 = vld [vmem:[#allocation61_spill] sm:$0xff] }
0x1077   :  { %7496 = vst.msk [vmem:[%s17708_s29 + $0x140] sm:$0xff] %vm6302_vm5, %v7400_v46  ;;  %7497 = vst.msk [vmem:[%s17708_s29 + $0x148] sm:$0xff] %vm6302_vm5, %v7401_v9  ;;  %v7427_v55 = vmax.f32 %v17730_v63, 0.0  ;;  %v7428_v50 = vmax.f32 %v17731_v53, 0.0  ;;  %v17732_v17 = vld [vmem:[#allocation62_spill] sm:$0xff]  ;;  %v17733_v24 = vld [vmem:[#allocation63_spill] sm:$0xff] }
0x1078   :  { %7498 = vst.msk [vmem:[%s17708_s29 + $0x150] sm:$0xff] %vm6302_vm5, %v7402_v18  ;;  %7499 = vst.msk [vmem:[%s17708_s29 + $0x158] sm:$0xff] %vm6302_vm5, %v7403_v6  ;;  %v7429_v1 = vmax.f32 %v17732_v17, 0.0  ;;  %v7430_v7 = vmax.f32 %v17733_v24, 0.0  ;;  %v17734_v35 = vld [vmem:[#allocation64_spill] sm:$0xff]  ;;  %v17735_v40 = vld [vmem:[#allocation65_spill] sm:$0xff] }
0x1079   :  { %7500 = vst.msk [vmem:[%s17708_s29 + $0x160] sm:$0xff] %vm6302_vm5, %v7404_v12  ;;  %7501 = vst.msk [vmem:[%s17708_s29 + $0x168] sm:$0xff] %vm6302_vm5, %v7405_v27  ;;  %v7431_v13 = vmax.f32 %v17734_v35, 0.0  ;;  %v7432_v42 = vmax.f32 %v17735_v40, 0.0  ;;  %v17736_v0 = vld [vmem:[#allocation53_spill] sm:$0xff]  ;;  %v17737_v39 = vld [vmem:[#allocation82_spill] sm:$0xff] }
0x107a   :  { %7502 = vst.msk [vmem:[%s17708_s29 + $0x170] sm:$0xff] %vm6302_vm5, %v7406_v48  ;;  %7503 = vst.msk [vmem:[%s17708_s29 + $0x178] sm:$0xff] %vm6302_vm5, %v7407_v11  ;;  %v7433_v58 = vmax.f32 %v17736_v0, 0.0  ;;  %v7434_v28 = vmax.f32 %v17737_v39, 0.0  ;;  %v17738_v47 = vld [vmem:[#allocation84_spill] sm:$0xff]  ;;  %v17739_v10 = vld [vmem:[#allocation83_spill] sm:$0xff] }
0x107b   :  { %7504 = vst.msk [vmem:[%s17708_s29 + $0x180] sm:$0xff] %vm6302_vm5, %v7408_v19  ;;  %7505 = vst.msk [vmem:[%s17708_s29 + $0x188] sm:$0xff] %vm6302_vm5, %v7409_v15  ;;  %v7435_v61 = vmax.f32 %v17738_v47, 0.0  ;;  %v7436_v33 = vmax.f32 %v17739_v10, 0.0  ;;  %v17740_v5 = vld [vmem:[#allocation86_spill] sm:$0xff]  ;;  %v17741_v56 = vld [vmem:[#allocation85_spill] sm:$0xff] }
0x107c   :  { %7506 = vst.msk [vmem:[%s17708_s29 + $0x190] sm:$0xff] %vm6302_vm5, %v7410_v43  ;;  %7507 = vst.msk [vmem:[%s17708_s29 + $0x198] sm:$0xff] %vm6302_vm5, %v7411_v44  ;;  %v7437_v30 = vmax.f32 %v17740_v5, 0.0  ;;  %v7438_v4 = vmax.f32 %v17741_v56, 0.0  ;;  %v7441_v37 = vmax.f32 %v16254_v21, 0.0  ;;  %v7442_v57 = vmax.f32 %v16258_v2, 0.0 }
0x107d   :  { %7508 = vst.msk [vmem:[%s17708_s29 + $0x1a0] sm:$0xff] %vm6302_vm5, %v7412_v36  ;;  %7509 = vst.msk [vmem:[%s17708_s29 + $0x1a8] sm:$0xff] %vm6302_vm5, %v7413_v3  ;;  %v7443_v46 = vmax.f32 %v16262_v38, 0.0  ;;  %v7444_v62 = vmax.f32 %v16266_v41, 0.0  ;;  %v7445_v21 = vmax.f32 %v16270_v8, 0.0  ;;  %v7446_v2 = vmax.f32 %v16274_v34, 0.0 }
0x107e   :  { %7510 = vst.msk [vmem:[%s17708_s29 + $0x1b0] sm:$0xff] %vm6302_vm5, %v7414_v26  ;;  %7511 = vst.msk [vmem:[%s17708_s29 + $0x1b8] sm:$0xff] %vm6302_vm5, %v7415_v14  ;;  %v17742_v38 = vld [vmem:[#allocation88_spill] sm:$0xff]  ;;  %v17743_v41 = vld [vmem:[#allocation87_spill] sm:$0xff] }
0x107f   :  { %7512 = vst.msk [vmem:[%s17708_s29 + $0x1c0] sm:$0xff] %vm6302_vm5, %v7416_v45  ;;  %7513 = vst.msk [vmem:[%s17708_s29 + $0x1c8] sm:$0xff] %vm6302_vm5, %v7417_v22  ;;  %v7447_v9 = vmax.f32 %v17742_v38, 0.0  ;;  %v7448_v8 = vmax.f32 %v17743_v41, 0.0  ;;  %v17744_v34 = vld [vmem:[#allocation90_spill] sm:$0xff]  ;;  %v17745_v6 = vld [vmem:[#allocation89_spill] sm:$0xff] }
0x1080   :  { %7514 = vst.msk [vmem:[%s17708_s29 + $0x1d0] sm:$0xff] %vm6302_vm5, %v7418_v20  ;;  %7515 = vst.msk [vmem:[%s17708_s29 + $0x1d8] sm:$0xff] %vm6302_vm5, %v7419_v54  ;;  %v7449_v18 = vmax.f32 %v17744_v34, 0.0  ;;  %v7450_v12 = vmax.f32 %v17745_v6, 0.0  ;;  %v17746_v27 = vld [vmem:[#allocation92_spill] sm:$0xff]  ;;  %v17747_v11 = vld [vmem:[#allocation91_spill] sm:$0xff] }
0x1081   :  { %7516 = vst.msk [vmem:[%s17708_s29 + $0x1e0] sm:$0xff] %vm6302_vm5, %v7420_v32  ;;  %7517 = vst.msk [vmem:[%s17708_s29 + $0x1e8] sm:$0xff] %vm6302_vm5, %v7421_v23  ;;  %v7451_v48 = vmax.f32 %v17746_v27, 0.0  ;;  %v7452_v19 = vmax.f32 %v17747_v11, 0.0  ;;  %v17748_v15 = vld [vmem:[#allocation94_spill] sm:$0xff]  ;;  %v17749_v44 = vld [vmem:[#allocation93_spill] sm:$0xff] }
0x1082   :  { %7518 = vst.msk [vmem:[%s17708_s29 + $0x1f0] sm:$0xff] %vm6302_vm5, %v7422_v49  ;;  %7519 = vst.msk [vmem:[%s17708_s29 + $0x1f8] sm:$0xff] %vm6302_vm5, %v7423_v31  ;;  %v7453_v43 = vmax.f32 %v17748_v15, 0.0  ;;  %v7454_v36 = vmax.f32 %v17749_v44, 0.0  ;;  %v17750_v3 = vld [vmem:[#allocation96_spill] sm:$0xff] }
0x1083   :  { %7520 = vst.msk [vmem:[%s17708_s29 + $0x200] sm:$0xff] %vm6302_vm5, %v7424_v29  ;;  %7521 = vst.msk [vmem:[%s17708_s29 + $0x208] sm:$0xff] %vm6302_vm5, %v7425_v52  ;;  %v7455_v26 = vmax.f32 %v17750_v3, 0.0 }
0x1084   :  { %7522 = vst.msk [vmem:[%s17708_s29 + $0x210] sm:$0xff] %vm6302_vm5, %v7426_v60  ;;  %7523 = vst.msk [vmem:[%s17708_s29 + $0x218] sm:$0xff] %vm6302_vm5, %v7427_v55 }
0x1085   :  { %7524 = vst.msk [vmem:[%s17708_s29 + $0x220] sm:$0xff] %vm6302_vm5, %v7428_v50  ;;  %7525 = vst.msk [vmem:[%s17708_s29 + $0x228] sm:$0xff] %vm6302_vm5, %v7429_v1 }
0x1086   :  { %7526 = vst.msk [vmem:[%s17708_s29 + $0x230] sm:$0xff] %vm6302_vm5, %v7430_v7  ;;  %7527 = vst.msk [vmem:[%s17708_s29 + $0x238] sm:$0xff] %vm6302_vm5, %v7431_v13 }
0x1087   :  { %7528 = vst.msk [vmem:[%s17708_s29 + $0x240] sm:$0xff] %vm6302_vm5, %v7432_v42  ;;  %7529 = vst.msk [vmem:[%s17708_s29 + $0x248] sm:$0xff] %vm6302_vm5, %v7433_v58 }
0x1088   :  { %7530 = vst.msk [vmem:[%s17708_s29 + $0x250] sm:$0xff] %vm6302_vm5, %v7434_v28  ;;  %7531 = vst.msk [vmem:[%s17708_s29 + $0x258] sm:$0xff] %vm6302_vm5, %v7435_v61 }
0x1089   :  { %7532 = vst.msk [vmem:[%s17708_s29 + $0x260] sm:$0xff] %vm6302_vm5, %v7436_v33  ;;  %7533 = vst.msk [vmem:[%s17708_s29 + $0x268] sm:$0xff] %vm6302_vm5, %v7437_v30 }
0x108a   :  { %7534 = vst.msk [vmem:[%s17708_s29 + $0x270] sm:$0xff] %vm6302_vm5, %v7438_v4  ;;  %7535 = vst.msk [vmem:[%s17708_s29 + $0x278] sm:$0xff] %vm6302_vm5, %v7439_v16 }
0x108b   :  { %7536 = vst.msk [vmem:[%s17708_s29 + $0x280] sm:$0xff] %vm6302_vm5, %v7440_v59  ;;  %7537 = vst.msk [vmem:[%s17708_s29 + $0x288] sm:$0xff] %vm6302_vm5, %v7441_v37 }
0x108c   :  { %7538 = vst.msk [vmem:[%s17708_s29 + $0x290] sm:$0xff] %vm6302_vm5, %v7442_v57  ;;  %7539 = vst.msk [vmem:[%s17708_s29 + $0x298] sm:$0xff] %vm6302_vm5, %v7443_v46 }
0x108d   :  { %7540 = vst.msk [vmem:[%s17708_s29 + $0x2a0] sm:$0xff] %vm6302_vm5, %v7444_v62  ;;  %7541 = vst.msk [vmem:[%s17708_s29 + $0x2a8] sm:$0xff] %vm6302_vm5, %v7445_v21 }
0x108e   :  { %7542 = vst.msk [vmem:[%s17708_s29 + $0x2b0] sm:$0xff] %vm6302_vm5, %v7446_v2  ;;  %7543 = vst.msk [vmem:[%s17708_s29 + $0x2b8] sm:$0xff] %vm6302_vm5, %v7447_v9 }
0x108f   :  { %7544 = vst.msk [vmem:[%s17708_s29 + $0x2c0] sm:$0xff] %vm6302_vm5, %v7448_v8  ;;  %7545 = vst.msk [vmem:[%s17708_s29 + $0x2c8] sm:$0xff] %vm6302_vm5, %v7449_v18 }
0x1090   :  { %7546 = vst.msk [vmem:[%s17708_s29 + $0x2d0] sm:$0xff] %vm6302_vm5, %v7450_v12  ;;  %7547 = vst.msk [vmem:[%s17708_s29 + $0x2d8] sm:$0xff] %vm6302_vm5, %v7451_v48 }
0x1091   :  { %7548 = vst.msk [vmem:[%s17708_s29 + $0x2e0] sm:$0xff] %vm6302_vm5, %v7452_v19  ;;  %7549 = vst.msk [vmem:[%s17708_s29 + $0x2e8] sm:$0xff] %vm6302_vm5, %v7453_v43 }
0x1092   :  { %7550 = vst.msk [vmem:[%s17708_s29 + $0x2f0] sm:$0xff] %vm6302_vm5, %v7454_v36  ;;  %7551 = vst.msk [vmem:[%s17708_s29 + $0x2f8] sm:$0xff] %vm6302_vm5, %v7455_v26 }
0x1093   :  { %7556 = vsyncpa [#allocation7], 1 }
0x1094   :  { %7557 = vsyncpa [#allocation9], 1 }
0x1095   :  { %7558 = vsyncpa [#allocation12], 1 }
0x1096   :  { %7559 = vsyncpa [#allocation15], 1 }
0x1097   :  { %7560 = vsyncpa [#allocation18], 1 }
0x1098   :  { %7561 = vsyncpa [#allocation21], 1 }
0x1099   :  { %7562 = vsyncpa [#allocation24], 1 }
0x109a   :  { %7563 = vsyncpa [#allocation27], 1 }
0x109b   :  { %7564 = vsyncpa [#allocation30], 1 }
0x109c   :  { %7565 = vsyncpa [#allocation33], 1 }
0x109d   :  { %7566 = vsyncpa [#allocation36], 1 }
0x109e   :  { %7567 = vsyncpa [#allocation39], 1 }

</bundles_post_ra>
